<compile_context>
chip_gen: v7x
topology: tpu7x:2x2x1
jax: 0.10.0
libtpu: 0.0.40
codegen_flags: <defaults>
</compile_context>

<pallas_src>
import jax
import jax.numpy as jnp
from jax.experimental import pallas as pl
from jax.experimental.pallas import tpu as pltpu


# -----------------------------------------------------------------------------
# Fused LeNet-5 forward kernel, grid=(4,) over fc1's K dimension.
#
#   xcol_ref : (576*N, 32)   bf16  conv1 im2col; row = d*144N + (ph*12+pw)*N + n
#                                  (d = 2*dh+dw pool offset), lane = kh*5+kw (pad 32)
#   w1_ref   : (32, 128)     bf16  conv1 weight  [tap, Cout(pad 128)]
#   b1_ref   : (1, 128)      f32
#   w2_ref   : (25,128,128)  bf16  conv2 weight  [tap, Cin(pad), Cout(pad)]
#   b2_ref   : (1, 128)      f32
#   w3_ref   : (512, 512)    bf16  fc1 weight chunk k: row = (4k+qw)*128 + c
#   b3_ref   : (1, 512)      f32
#   w4_ref   : (512, 128)    bf16  fc2 weight [in pad 512, out pad 128]
#   b4_ref   : (1, 128)      f32
#   o_ref    : (N, 128)      f32   lane-dense logits (cols >= 10 are zeros)
#   p1_ref   : (12,12N,128)  f32   scratch: pooled conv1 act, [h1, w1*N + n, c]
#   acc3_ref : (N, 512)      f32   scratch: fc1 accumulator
# -----------------------------------------------------------------------------
def lenet5_kernel(xcol_ref, w1_ref, b1_ref, w2_ref, b2_ref,
                  w3_ref, b3_ref, w4_ref, b4_ref, o_ref, p1_ref, acc3_ref):
    N = o_ref.shape[0]                      # padded batch (multiple of 8)
    k = pl.program_id(0)

    # --- step 0: conv1 + 2x2 maxpool + ReLU -> p1 scratch; zero fc1 acc ------
    @pl.when(k == 0)
    def _():
        w1 = w1_ref[...]
        b1 = b1_ref[...]
        # 4 groups of 3 pooled rows keep the pool-max value tree small while
        # every dot reuses the same resident RHS (w1).
        for g in range(4):
            base = g * 36 * N               # 3 pooled rows * 12 cols * N

            def slab(d, base=base):
                return jnp.dot(
                    xcol_ref[pl.ds(d * 144 * N + base, 36 * N), :], w1,
                    preferred_element_type=jnp.float32)      # (36N, 128) f32

            m = jnp.maximum(jnp.maximum(slab(0), slab(1)),
                            jnp.maximum(slab(2), slab(3)))
            p1_ref[3 * g:3 * g + 3] = jnp.maximum(m + b1, 0.0).reshape(
                3, 12 * N, 128)
        acc3_ref[...] = jnp.zeros_like(acc3_ref)

    # --- every step: conv2 output rows oh = 2k, 2k+1 as 25 K=128 tap dots ----
    acc2 = jnp.zeros((16 * N, 128), jnp.float32)    # rows: j*8N + ow*N + n
    for kh in range(5):
        rows = p1_ref[pl.ds(2 * k + kh, 2), :, :]            # (2, 12N, 128) f32
        for kw in range(5):
            # aligned value slice (kw*N is a multiple of 8) + free reshape
            lhs = rows[:, kw * N:(kw + 8) * N, :].reshape(16 * N, 128)
            acc2 = acc2 + jnp.dot(lhs.astype(jnp.bfloat16),
                                  w2_ref[kh * 5 + kw],
                                  preferred_element_type=jnp.float32)

    # --- 2x2 maxpool + bias + ReLU -> fc1 input chunk (positions 4k..4k+3) ---
    # (max(x)+b = max(x+b) and relu(max) = max(relu): pool-before-epilogue is
    #  exact because the bias is constant per window and ReLU is monotone.)
    b2 = b2_ref[...]
    a = jnp.maximum(acc2[0:8 * N], acc2[8 * N:16 * N])        # pool over oh
    blocks = []
    for qw in range(4):                                       # pool over ow
        m = jnp.maximum(a[(2 * qw) * N:(2 * qw + 1) * N],
                        a[(2 * qw + 1) * N:(2 * qw + 2) * N])
        blocks.append(jnp.maximum(m + b2, 0.0))               # (N, 128) f32
    x3 = jnp.concatenate(blocks, axis=1).astype(jnp.bfloat16)  # (N, 512)

    # --- fc1 partial product against this step's streamed w3 chunk -----------
    acc3_ref[...] += jnp.dot(x3, w3_ref[...],
                             preferred_element_type=jnp.float32)

    # --- last step: fc1 epilogue + fc2 ---------------------------------------
    @pl.when(k == pl.num_programs(0) - 1)
    def _():
        h = jnp.maximum(acc3_ref[...] + b3_ref[...], 0.0)     # (N, 512) f32
        o_ref[...] = jnp.dot(h.astype(jnp.bfloat16), w4_ref[...],
                             preferred_element_type=jnp.float32) + b4_ref[...]


# -----------------------------------------------------------------------------
# Parameter construction: dense weights are products of deterministic low-rank
# factors (rank=20), matching the forward semantics of Conv2d_lr / Linear(rank),
# then repacked once into the lane-padded kernel layouts.
# -----------------------------------------------------------------------------
def init_params(key):
    ks = jax.random.split(key, 11)
    r = 20

    def nrm(k, shape, scale):
        return scale * jax.random.normal(k, shape, dtype=jnp.float32)

    # Conv2d_lr(1->20, k=5, rank=20):  W = U @ V -> (20, 25)
    w1 = nrm(ks[0], (20, r), 0.2) @ nrm(ks[1], (r, 25), 0.2)
    b1 = nrm(ks[2], (20,), 0.1)
    # Conv2d_lr(20->50, k=5, rank=20): W = U @ V -> (50, 20, 5, 5)
    w2 = (nrm(ks[3], (50, r), 0.1) @ nrm(ks[4], (r, 20 * 25), 0.1)).reshape(
        50, 20, 5, 5)
    b2 = nrm(ks[5], (50,), 0.1)
    # Linear(800 -> 500, rank=20), torch layout (out, in)
    w3 = nrm(ks[6], (500, r), 0.08) @ nrm(ks[7], (r, 800), 0.08)
    b3 = nrm(ks[8], (500,), 0.05)
    # Linear(500 -> 10), full rank
    w4 = nrm(ks[9], (10, 500), 0.05)
    b4 = nrm(ks[10], (10,), 0.05)

    # --- repack to lane-padded kernel layouts (bf16 matmul operands) ---------
    # conv1: (Cout, tap) -> (tap, Cout) padded to (32, 128)
    W1p = jnp.zeros((32, 128), jnp.float32).at[:25, :20].set(w1.T)
    B1p = jnp.zeros((1, 128), jnp.float32).at[0, :20].set(b1)

    # conv2: (Cout,Cin,5,5) -> (tap, Cin, Cout) padded to (25, 128, 128)
    w2k = jnp.transpose(w2, (2, 3, 1, 0)).reshape(25, 20, 50)
    W2p = jnp.zeros((25, 128, 128), jnp.float32).at[:, :20, :50].set(w2k)
    B2p = jnp.zeros((1, 128), jnp.float32).at[0, :50].set(b2)

    # fc1: torch flat index = c*16 + (qh*4+qw) -> kernel row = (qh*4+qw)*128 + c
    w3k = jnp.transpose(w3.reshape(500, 50, 4, 4), (2, 3, 1, 0)).reshape(16, 50, 500)
    W3p = jnp.zeros((16, 128, 512), jnp.float32).at[:, :50, :500].set(w3k)
    W3p = W3p.reshape(16 * 128, 512)
    B3p = jnp.zeros((1, 512), jnp.float32).at[0, :500].set(b3)

    # fc2: (out, in) -> (in pad 512, out pad 128)
    W4p = jnp.zeros((512, 128), jnp.float32).at[:500, :10].set(w4.T)
    B4p = jnp.zeros((1, 128), jnp.float32).at[0, :10].set(b4)

    return dict(
        w1=W1p.astype(jnp.bfloat16), b1=B1p,
        w2=W2p.astype(jnp.bfloat16), b2=B2p,
        w3=W3p.astype(jnp.bfloat16), b3=B3p,
        w4=W4p.astype(jnp.bfloat16), b4=B4p,
    )


# -----------------------------------------------------------------------------
# Forward wrapper: pad batch to a sublane multiple, build the conv1 im2col slab
# (the only XLA glue), run one fused pallas_call, slice logits to 10 classes.
# -----------------------------------------------------------------------------
@jax.jit
def lenet5_forward(x_nchw, params):
    n = x_nchw.shape[0]
    N = ((n + 7) // 8) * 8                        # pad batch to sublane multiple
    x2 = x_nchw[:, 0, :, :].astype(jnp.float32)   # (n, 28, 28)
    if N != n:
        x2 = jnp.pad(x2, ((0, N - n), (0, 0), (0, 0)))
    x2t = jnp.transpose(x2, (1, 2, 0))            # (28, 28, N) — tiny transpose

    # conv1 im2col built directly in (d, ph, pw, n, tap) order from strided
    # slices, so no large transpose is materialized and the reshape is free.
    zero_tap = jnp.zeros((12, 12, N), jnp.float32)
    slabs = []
    for dh in range(2):
        for dw in range(2):
            taps = [x2t[dh + kh:dh + kh + 23:2, dw + kw:dw + kw + 23:2, :]
                    for kh in range(5) for kw in range(5)]
            taps += [zero_tap] * 7                            # pad taps 25 -> 32
            slabs.append(jnp.stack(taps, axis=-1).reshape(144 * N, 32))
    xcol = jnp.concatenate(slabs, axis=0).astype(jnp.bfloat16)  # (576N, 32)

    out = pl.pallas_call(
        lenet5_kernel,
        out_shape=jax.ShapeDtypeStruct((N, 128), jnp.float32),
        grid=(4,),
        in_specs=[
            pl.BlockSpec((576 * N, 32), lambda k: (0, 0)),       # xcol (resident)
            pl.BlockSpec((32, 128), lambda k: (0, 0)),           # w1
            pl.BlockSpec((1, 128), lambda k: (0, 0)),            # b1
            pl.BlockSpec((25, 128, 128), lambda k: (0, 0, 0)),   # w2
            pl.BlockSpec((1, 128), lambda k: (0, 0)),            # b2
            pl.BlockSpec((512, 512), lambda k: (k, 0)),          # w3 (streamed)
            pl.BlockSpec((1, 512), lambda k: (0, 0)),            # b3
            pl.BlockSpec((512, 128), lambda k: (0, 0)),          # w4
            pl.BlockSpec((1, 128), lambda k: (0, 0)),            # b4
        ],
        out_specs=pl.BlockSpec((N, 128), lambda k: (0, 0)),
        scratch_shapes=[
            pltpu.VMEM((12, 12 * N, 128), jnp.float32),          # p1 (pooled conv1)
            pltpu.VMEM((N, 512), jnp.float32),                   # fc1 accumulator
        ],
        compiler_params=pltpu.CompilerParams(
            dimension_semantics=("arbitrary",)),
    )(xcol, params["w1"], params["b1"], params["w2"], params["b2"],
      params["w3"], params["b3"], params["w4"], params["b4"])

    return out[:n, :10]


if __name__ == "__main__":
    key = jax.random.PRNGKey(0)
    k_x, k_p = jax.random.split(key)

    # LeNet-5 geometry (Linear(800, 500) after 50x4x4) implies 1x28x28 inputs.
    x = jax.random.normal(k_x, (2, 1, 28, 28), dtype=jnp.float32)
    params = init_params(k_p)

    out = lenet5_forward(x, params)
    out = jax.block_until_ready(out)
    assert out.shape == (2, 10) and out.dtype == jnp.float32
    print("KERNEL_OK")
</pallas_src>

<mosaic_0001>
module attributes {stable_mosaic.version = 11 : i64} {
  func.func @lenet5_kernel(%arg0: i32, %arg1: memref<4608x32xbf16, #tpu.memory_space<vmem>>, %arg2: memref<32x128xbf16, #tpu.memory_space<vmem>>, %arg3: memref<1x128xf32, #tpu.memory_space<vmem>>, %arg4: memref<25x128x128xbf16, #tpu.memory_space<vmem>>, %arg5: memref<1x128xf32, #tpu.memory_space<vmem>>, %arg6: memref<512x512xbf16, #tpu.memory_space<vmem>>, %arg7: memref<1x512xf32, #tpu.memory_space<vmem>>, %arg8: memref<512x128xbf16, #tpu.memory_space<vmem>>, %arg9: memref<1x128xf32, #tpu.memory_space<vmem>>, %arg10: memref<8x128xf32, #tpu.memory_space<vmem>>, %arg11: memref<12x96x128xf32, #tpu.memory_space<vmem>>, %arg12: memref<8x512xf32, #tpu.memory_space<vmem>>) attributes {dimension_semantics = [#tpu.dimension_semantics<arbitrary>], iteration_bounds = array<i64: 4>, scalar_prefetch = 0 : i64, scratch_operands = 2 : i64, tpu.core_type = #tpu.core_type<tc>, window_params = [{pipeline_mode = #tpu.pipeline_mode<synchronous>, transform_indices = @transform_0, window_bounds = array<i64: 4608, 32>}, {pipeline_mode = #tpu.pipeline_mode<synchronous>, transform_indices = @transform_1, window_bounds = array<i64: 32, 128>}, {pipeline_mode = #tpu.pipeline_mode<synchronous>, transform_indices = @transform_2, window_bounds = array<i64: 1, 128>}, {pipeline_mode = #tpu.pipeline_mode<synchronous>, transform_indices = @transform_3, window_bounds = array<i64: 25, 128, 128>}, {pipeline_mode = #tpu.pipeline_mode<synchronous>, transform_indices = @transform_4, window_bounds = array<i64: 1, 128>}, {transform_indices = @transform_5, window_bounds = array<i64: 512, 512>}, {pipeline_mode = #tpu.pipeline_mode<synchronous>, transform_indices = @transform_6, window_bounds = array<i64: 1, 512>}, {pipeline_mode = #tpu.pipeline_mode<synchronous>, transform_indices = @transform_7, window_bounds = array<i64: 512, 128>}, {pipeline_mode = #tpu.pipeline_mode<synchronous>, transform_indices = @transform_8, window_bounds = array<i64: 1, 128>}, {pipeline_mode = #tpu.pipeline_mode<synchronous>, transform_indices = @transform_9, window_bounds = array<i64: 8, 128>}]} {
    %c0_i32 = arith.constant 0 : i32
    %0 = arith.cmpi eq, %arg0, %c0_i32 : i32
    %1 = arith.extui %0 : i1 to i32
    %c0_i32_0 = arith.constant 0 : i32
    %2 = arith.cmpi ne, %1, %c0_i32_0 : i32
    scf.if %2 {
      %c0_107 = arith.constant 0 : index
      %c0_108 = arith.constant 0 : index
      %241 = vector.load %arg2[%c0_107, %c0_108] : memref<32x128xbf16, #tpu.memory_space<vmem>>, vector<32x128xbf16>
      %c0_109 = arith.constant 0 : index
      %c0_110 = arith.constant 0 : index
      %242 = vector.load %arg3[%c0_109, %c0_110] : memref<1x128xf32, #tpu.memory_space<vmem>>, vector<1x128xf32>
      %c0_111 = arith.constant 0 : index
      %c0_112 = arith.constant 0 : index
      %243 = vector.load %arg1[%c0_111, %c0_112] : memref<4608x32xbf16, #tpu.memory_space<vmem>>, vector<288x32xbf16>
      %cst_113 = arith.constant dense<0.000000e+00> : vector<288x128xf32>
      %244 = tpu.matmul %243, %241, %cst_113 {dimension_numbers = #tpu.dot_dimension_numbers<[1], [0], [0], [1], [0, 0, 1, 1], [], []>} : vector<288x32xbf16>, vector<32x128xbf16>, vector<288x128xf32> -> vector<288x128xf32>
      %c1152 = arith.constant 1152 : index
      %c0_114 = arith.constant 0 : index
      %245 = vector.load %arg1[%c1152, %c0_114] : memref<4608x32xbf16, #tpu.memory_space<vmem>>, vector<288x32xbf16>
      %cst_115 = arith.constant dense<0.000000e+00> : vector<288x128xf32>
      %246 = tpu.matmul %245, %241, %cst_115 {dimension_numbers = #tpu.dot_dimension_numbers<[1], [0], [0], [1], [0, 0, 1, 1], [], []>} : vector<288x32xbf16>, vector<32x128xbf16>, vector<288x128xf32> -> vector<288x128xf32>
      %247 = arith.maximumf %244, %246 : vector<288x128xf32>
      %c2304 = arith.constant 2304 : index
      %c0_116 = arith.constant 0 : index
      %248 = vector.load %arg1[%c2304, %c0_116] : memref<4608x32xbf16, #tpu.memory_space<vmem>>, vector<288x32xbf16>
      %cst_117 = arith.constant dense<0.000000e+00> : vector<288x128xf32>
      %249 = tpu.matmul %248, %241, %cst_117 {dimension_numbers = #tpu.dot_dimension_numbers<[1], [0], [0], [1], [0, 0, 1, 1], [], []>} : vector<288x32xbf16>, vector<32x128xbf16>, vector<288x128xf32> -> vector<288x128xf32>
      %c3456 = arith.constant 3456 : index
      %c0_118 = arith.constant 0 : index
      %250 = vector.load %arg1[%c3456, %c0_118] : memref<4608x32xbf16, #tpu.memory_space<vmem>>, vector<288x32xbf16>
      %cst_119 = arith.constant dense<0.000000e+00> : vector<288x128xf32>
      %251 = tpu.matmul %250, %241, %cst_119 {dimension_numbers = #tpu.dot_dimension_numbers<[1], [0], [0], [1], [0, 0, 1, 1], [], []>} : vector<288x32xbf16>, vector<32x128xbf16>, vector<288x128xf32> -> vector<288x128xf32>
      %252 = arith.maximumf %249, %251 : vector<288x128xf32>
      %253 = arith.maximumf %247, %252 : vector<288x128xf32>
      %254 = vector.broadcast %242 : vector<1x128xf32> to vector<288x128xf32>
      %255 = arith.addf %253, %254 : vector<288x128xf32>
      %cst_120 = arith.constant 0.000000e+00 : f32
      %256 = vector.broadcast %cst_120 : f32 to vector<288x128xf32>
      %257 = arith.maximumf %255, %256 : vector<288x128xf32>
      %258 = vector.shape_cast %257 : vector<288x128xf32> to vector<3x96x128xf32>
      %c0_121 = arith.constant 0 : index
      %c0_122 = arith.constant 0 : index
      %c0_123 = arith.constant 0 : index
      %259 = vector.load %arg11[%c0_121, %c0_122, %c0_123] : memref<12x96x128xf32, #tpu.memory_space<vmem>>, vector<3x96x128xf32>
      tpu.vector_store %arg11[%c0_121, %c0_122, %c0_123], %258 {strides = array<i32>} : memref<12x96x128xf32, #tpu.memory_space<vmem>>, vector<3x96x128xf32>,
      %c288 = arith.constant 288 : index
      %c0_124 = arith.constant 0 : index
      %260 = vector.load %arg1[%c288, %c0_124] : memref<4608x32xbf16, #tpu.memory_space<vmem>>, vector<288x32xbf16>
      %cst_125 = arith.constant dense<0.000000e+00> : vector<288x128xf32>
      %261 = tpu.matmul %260, %241, %cst_125 {dimension_numbers = #tpu.dot_dimension_numbers<[1], [0], [0], [1], [0, 0, 1, 1], [], []>} : vector<288x32xbf16>, vector<32x128xbf16>, vector<288x128xf32> -> vector<288x128xf32>
      %c1440 = arith.constant 1440 : index
      %c0_126 = arith.constant 0 : index
      %262 = vector.load %arg1[%c1440, %c0_126] : memref<4608x32xbf16, #tpu.memory_space<vmem>>, vector<288x32xbf16>
      %cst_127 = arith.constant dense<0.000000e+00> : vector<288x128xf32>
      %263 = tpu.matmul %262, %241, %cst_127 {dimension_numbers = #tpu.dot_dimension_numbers<[1], [0], [0], [1], [0, 0, 1, 1], [], []>} : vector<288x32xbf16>, vector<32x128xbf16>, vector<288x128xf32> -> vector<288x128xf32>
      %264 = arith.maximumf %261, %263 : vector<288x128xf32>
      %c2592 = arith.constant 2592 : index
      %c0_128 = arith.constant 0 : index
      %265 = vector.load %arg1[%c2592, %c0_128] : memref<4608x32xbf16, #tpu.memory_space<vmem>>, vector<288x32xbf16>
      %cst_129 = arith.constant dense<0.000000e+00> : vector<288x128xf32>
      %266 = tpu.matmul %265, %241, %cst_129 {dimension_numbers = #tpu.dot_dimension_numbers<[1], [0], [0], [1], [0, 0, 1, 1], [], []>} : vector<288x32xbf16>, vector<32x128xbf16>, vector<288x128xf32> -> vector<288x128xf32>
      %c3744 = arith.constant 3744 : index
      %c0_130 = arith.constant 0 : index
      %267 = vector.load %arg1[%c3744, %c0_130] : memref<4608x32xbf16, #tpu.memory_space<vmem>>, vector<288x32xbf16>
      %cst_131 = arith.constant dense<0.000000e+00> : vector<288x128xf32>
      %268 = tpu.matmul %267, %241, %cst_131 {dimension_numbers = #tpu.dot_dimension_numbers<[1], [0], [0], [1], [0, 0, 1, 1], [], []>} : vector<288x32xbf16>, vector<32x128xbf16>, vector<288x128xf32> -> vector<288x128xf32>
      %269 = arith.maximumf %266, %268 : vector<288x128xf32>
      %270 = arith.maximumf %264, %269 : vector<288x128xf32>
      %271 = vector.broadcast %242 : vector<1x128xf32> to vector<288x128xf32>
      %272 = arith.addf %270, %271 : vector<288x128xf32>
      %cst_132 = arith.constant 0.000000e+00 : f32
      %273 = vector.broadcast %cst_132 : f32 to vector<288x128xf32>
      %274 = arith.maximumf %272, %273 : vector<288x128xf32>
      %275 = vector.shape_cast %274 : vector<288x128xf32> to vector<3x96x128xf32>
      %c3_133 = arith.constant 3 : index
      %c0_134 = arith.constant 0 : index
      %c0_135 = arith.constant 0 : index
      %276 = vector.load %arg11[%c3_133, %c0_134, %c0_135] : memref<12x96x128xf32, #tpu.memory_space<vmem>>, vector<3x96x128xf32>
      tpu.vector_store %arg11[%c3_133, %c0_134, %c0_135], %275 {strides = array<i32>} : memref<12x96x128xf32, #tpu.memory_space<vmem>>, vector<3x96x128xf32>,
      %c576 = arith.constant 576 : index
      %c0_136 = arith.constant 0 : index
      %277 = vector.load %arg1[%c576, %c0_136] : memref<4608x32xbf16, #tpu.memory_space<vmem>>, vector<288x32xbf16>
      %cst_137 = arith.constant dense<0.000000e+00> : vector<288x128xf32>
      %278 = tpu.matmul %277, %241, %cst_137 {dimension_numbers = #tpu.dot_dimension_numbers<[1], [0], [0], [1], [0, 0, 1, 1], [], []>} : vector<288x32xbf16>, vector<32x128xbf16>, vector<288x128xf32> -> vector<288x128xf32>
      %c1728 = arith.constant 1728 : index
      %c0_138 = arith.constant 0 : index
      %279 = vector.load %arg1[%c1728, %c0_138] : memref<4608x32xbf16, #tpu.memory_space<vmem>>, vector<288x32xbf16>
      %cst_139 = arith.constant dense<0.000000e+00> : vector<288x128xf32>
      %280 = tpu.matmul %279, %241, %cst_139 {dimension_numbers = #tpu.dot_dimension_numbers<[1], [0], [0], [1], [0, 0, 1, 1], [], []>} : vector<288x32xbf16>, vector<32x128xbf16>, vector<288x128xf32> -> vector<288x128xf32>
      %281 = arith.maximumf %278, %280 : vector<288x128xf32>
      %c2880 = arith.constant 2880 : index
      %c0_140 = arith.constant 0 : index
      %282 = vector.load %arg1[%c2880, %c0_140] : memref<4608x32xbf16, #tpu.memory_space<vmem>>, vector<288x32xbf16>
      %cst_141 = arith.constant dense<0.000000e+00> : vector<288x128xf32>
      %283 = tpu.matmul %282, %241, %cst_141 {dimension_numbers = #tpu.dot_dimension_numbers<[1], [0], [0], [1], [0, 0, 1, 1], [], []>} : vector<288x32xbf16>, vector<32x128xbf16>, vector<288x128xf32> -> vector<288x128xf32>
      %c4032 = arith.constant 4032 : index
      %c0_142 = arith.constant 0 : index
      %284 = vector.load %arg1[%c4032, %c0_142] : memref<4608x32xbf16, #tpu.memory_space<vmem>>, vector<288x32xbf16>
      %cst_143 = arith.constant dense<0.000000e+00> : vector<288x128xf32>
      %285 = tpu.matmul %284, %241, %cst_143 {dimension_numbers = #tpu.dot_dimension_numbers<[1], [0], [0], [1], [0, 0, 1, 1], [], []>} : vector<288x32xbf16>, vector<32x128xbf16>, vector<288x128xf32> -> vector<288x128xf32>
      %286 = arith.maximumf %283, %285 : vector<288x128xf32>
      %287 = arith.maximumf %281, %286 : vector<288x128xf32>
      %288 = vector.broadcast %242 : vector<1x128xf32> to vector<288x128xf32>
      %289 = arith.addf %287, %288 : vector<288x128xf32>
      %cst_144 = arith.constant 0.000000e+00 : f32
      %290 = vector.broadcast %cst_144 : f32 to vector<288x128xf32>
      %291 = arith.maximumf %289, %290 : vector<288x128xf32>
      %292 = vector.shape_cast %291 : vector<288x128xf32> to vector<3x96x128xf32>
      %c6_145 = arith.constant 6 : index
      %c0_146 = arith.constant 0 : index
      %c0_147 = arith.constant 0 : index
      %293 = vector.load %arg11[%c6_145, %c0_146, %c0_147] : memref<12x96x128xf32, #tpu.memory_space<vmem>>, vector<3x96x128xf32>
      tpu.vector_store %arg11[%c6_145, %c0_146, %c0_147], %292 {strides = array<i32>} : memref<12x96x128xf32, #tpu.memory_space<vmem>>, vector<3x96x128xf32>,
      %c864 = arith.constant 864 : index
      %c0_148 = arith.constant 0 : index
      %294 = vector.load %arg1[%c864, %c0_148] : memref<4608x32xbf16, #tpu.memory_space<vmem>>, vector<288x32xbf16>
      %cst_149 = arith.constant dense<0.000000e+00> : vector<288x128xf32>
      %295 = tpu.matmul %294, %241, %cst_149 {dimension_numbers = #tpu.dot_dimension_numbers<[1], [0], [0], [1], [0, 0, 1, 1], [], []>} : vector<288x32xbf16>, vector<32x128xbf16>, vector<288x128xf32> -> vector<288x128xf32>
      %c2016 = arith.constant 2016 : index
      %c0_150 = arith.constant 0 : index
      %296 = vector.load %arg1[%c2016, %c0_150] : memref<4608x32xbf16, #tpu.memory_space<vmem>>, vector<288x32xbf16>
      %cst_151 = arith.constant dense<0.000000e+00> : vector<288x128xf32>
      %297 = tpu.matmul %296, %241, %cst_151 {dimension_numbers = #tpu.dot_dimension_numbers<[1], [0], [0], [1], [0, 0, 1, 1], [], []>} : vector<288x32xbf16>, vector<32x128xbf16>, vector<288x128xf32> -> vector<288x128xf32>
      %298 = arith.maximumf %295, %297 : vector<288x128xf32>
      %c3168 = arith.constant 3168 : index
      %c0_152 = arith.constant 0 : index
      %299 = vector.load %arg1[%c3168, %c0_152] : memref<4608x32xbf16, #tpu.memory_space<vmem>>, vector<288x32xbf16>
      %cst_153 = arith.constant dense<0.000000e+00> : vector<288x128xf32>
      %300 = tpu.matmul %299, %241, %cst_153 {dimension_numbers = #tpu.dot_dimension_numbers<[1], [0], [0], [1], [0, 0, 1, 1], [], []>} : vector<288x32xbf16>, vector<32x128xbf16>, vector<288x128xf32> -> vector<288x128xf32>
      %c4320 = arith.constant 4320 : index
      %c0_154 = arith.constant 0 : index
      %301 = vector.load %arg1[%c4320, %c0_154] : memref<4608x32xbf16, #tpu.memory_space<vmem>>, vector<288x32xbf16>
      %cst_155 = arith.constant dense<0.000000e+00> : vector<288x128xf32>
      %302 = tpu.matmul %301, %241, %cst_155 {dimension_numbers = #tpu.dot_dimension_numbers<[1], [0], [0], [1], [0, 0, 1, 1], [], []>} : vector<288x32xbf16>, vector<32x128xbf16>, vector<288x128xf32> -> vector<288x128xf32>
      %303 = arith.maximumf %300, %302 : vector<288x128xf32>
      %304 = arith.maximumf %298, %303 : vector<288x128xf32>
      %305 = vector.broadcast %242 : vector<1x128xf32> to vector<288x128xf32>
      %306 = arith.addf %304, %305 : vector<288x128xf32>
      %cst_156 = arith.constant 0.000000e+00 : f32
      %307 = vector.broadcast %cst_156 : f32 to vector<288x128xf32>
      %308 = arith.maximumf %306, %307 : vector<288x128xf32>
      %309 = vector.shape_cast %308 : vector<288x128xf32> to vector<3x96x128xf32>
      %c9_157 = arith.constant 9 : index
      %c0_158 = arith.constant 0 : index
      %c0_159 = arith.constant 0 : index
      %310 = vector.load %arg11[%c9_157, %c0_158, %c0_159] : memref<12x96x128xf32, #tpu.memory_space<vmem>>, vector<3x96x128xf32>
      tpu.vector_store %arg11[%c9_157, %c0_158, %c0_159], %309 {strides = array<i32>} : memref<12x96x128xf32, #tpu.memory_space<vmem>>, vector<3x96x128xf32>,
      %cst_160 = arith.constant 0.000000e+00 : f32
      %311 = vector.broadcast %cst_160 : f32 to vector<8x512xf32>
      %c0_161 = arith.constant 0 : index
      %c0_162 = arith.constant 0 : index
      %312 = vector.load %arg12[%c0_161, %c0_162] : memref<8x512xf32, #tpu.memory_space<vmem>>, vector<8x512xf32>
      tpu.vector_store %arg12[%c0_161, %c0_162], %311 {strides = array<i32>} : memref<8x512xf32, #tpu.memory_space<vmem>>, vector<8x512xf32>,
    } else {
    }
    %cst = arith.constant 0.000000e+00 : f32
    %3 = vector.broadcast %cst : f32 to vector<128x128xf32>
    %c2_i32 = arith.constant 2 : i32
    %4 = arith.muli %c2_i32, %arg0 : i32
    %c0_i32_1 = arith.constant 0 : i32
    %5 = arith.addi %4, %c0_i32_1 : i32
    %6 = arith.index_cast %5 : i32 to index
    %c0 = arith.constant 0 : index
    %c0_2 = arith.constant 0 : index
    %7 = vector.load %arg11[%6, %c0, %c0_2] : memref<12x96x128xf32, #tpu.memory_space<vmem>>, vector<2x96x128xf32>
    %8 = vector.extract_strided_slice %7 {offsets = [0, 0, 0], sizes = [2, 64, 128], strides = [1, 1, 1]} : vector<2x96x128xf32> to vector<2x64x128xf32>
    %9 = vector.shape_cast %8 : vector<2x64x128xf32> to vector<128x128xf32>
    %10 = arith.truncf %9 : vector<128x128xf32> to vector<128x128xbf16>
    %c0_3 = arith.constant 0 : index
    %c0_4 = arith.constant 0 : index
    %c0_5 = arith.constant 0 : index
    %11 = vector.load %arg4[%c0_3, %c0_4, %c0_5] : memref<25x128x128xbf16, #tpu.memory_space<vmem>>, vector<1x128x128xbf16>
    %12 = vector.shape_cast %11 : vector<1x128x128xbf16> to vector<128x128xbf16>
    %cst_6 = arith.constant dense<0.000000e+00> : vector<128x128xf32>
    %13 = tpu.matmul %10, %12, %cst_6 {dimension_numbers = #tpu.dot_dimension_numbers<[1], [0], [0], [1], [0, 0, 1, 1], [], []>} : vector<128x128xbf16>, vector<128x128xbf16>, vector<128x128xf32> -> vector<128x128xf32>
    %14 = arith.addf %3, %13 : vector<128x128xf32>
    %15 = vector.extract_strided_slice %7 {offsets = [0, 8, 0], sizes = [2, 64, 128], strides = [1, 1, 1]} : vector<2x96x128xf32> to vector<2x64x128xf32>
    %16 = vector.shape_cast %15 : vector<2x64x128xf32> to vector<128x128xf32>
    %17 = arith.truncf %16 : vector<128x128xf32> to vector<128x128xbf16>
    %c1 = arith.constant 1 : index
    %c0_7 = arith.constant 0 : index
    %c0_8 = arith.constant 0 : index
    %18 = vector.load %arg4[%c1, %c0_7, %c0_8] : memref<25x128x128xbf16, #tpu.memory_space<vmem>>, vector<1x128x128xbf16>
    %19 = vector.shape_cast %18 : vector<1x128x128xbf16> to vector<128x128xbf16>
    %cst_9 = arith.constant dense<0.000000e+00> : vector<128x128xf32>
    %20 = tpu.matmul %17, %19, %cst_9 {dimension_numbers = #tpu.dot_dimension_numbers<[1], [0], [0], [1], [0, 0, 1, 1], [], []>} : vector<128x128xbf16>, vector<128x128xbf16>, vector<128x128xf32> -> vector<128x128xf32>
    %21 = arith.addf %14, %20 : vector<128x128xf32>
    %22 = vector.extract_strided_slice %7 {offsets = [0, 16, 0], sizes = [2, 64, 128], strides = [1, 1, 1]} : vector<2x96x128xf32> to vector<2x64x128xf32>
    %23 = vector.shape_cast %22 : vector<2x64x128xf32> to vector<128x128xf32>
    %24 = arith.truncf %23 : vector<128x128xf32> to vector<128x128xbf16>
    %c2 = arith.constant 2 : index
    %c0_10 = arith.constant 0 : index
    %c0_11 = arith.constant 0 : index
    %25 = vector.load %arg4[%c2, %c0_10, %c0_11] : memref<25x128x128xbf16, #tpu.memory_space<vmem>>, vector<1x128x128xbf16>
    %26 = vector.shape_cast %25 : vector<1x128x128xbf16> to vector<128x128xbf16>
    %cst_12 = arith.constant dense<0.000000e+00> : vector<128x128xf32>
    %27 = tpu.matmul %24, %26, %cst_12 {dimension_numbers = #tpu.dot_dimension_numbers<[1], [0], [0], [1], [0, 0, 1, 1], [], []>} : vector<128x128xbf16>, vector<128x128xbf16>, vector<128x128xf32> -> vector<128x128xf32>
    %28 = arith.addf %21, %27 : vector<128x128xf32>
    %29 = vector.extract_strided_slice %7 {offsets = [0, 24, 0], sizes = [2, 64, 128], strides = [1, 1, 1]} : vector<2x96x128xf32> to vector<2x64x128xf32>
    %30 = vector.shape_cast %29 : vector<2x64x128xf32> to vector<128x128xf32>
    %31 = arith.truncf %30 : vector<128x128xf32> to vector<128x128xbf16>
    %c3 = arith.constant 3 : index
    %c0_13 = arith.constant 0 : index
    %c0_14 = arith.constant 0 : index
    %32 = vector.load %arg4[%c3, %c0_13, %c0_14] : memref<25x128x128xbf16, #tpu.memory_space<vmem>>, vector<1x128x128xbf16>
    %33 = vector.shape_cast %32 : vector<1x128x128xbf16> to vector<128x128xbf16>
    %cst_15 = arith.constant dense<0.000000e+00> : vector<128x128xf32>
    %34 = tpu.matmul %31, %33, %cst_15 {dimension_numbers = #tpu.dot_dimension_numbers<[1], [0], [0], [1], [0, 0, 1, 1], [], []>} : vector<128x128xbf16>, vector<128x128xbf16>, vector<128x128xf32> -> vector<128x128xf32>
    %35 = arith.addf %28, %34 : vector<128x128xf32>
    %36 = vector.extract_strided_slice %7 {offsets = [0, 32, 0], sizes = [2, 64, 128], strides = [1, 1, 1]} : vector<2x96x128xf32> to vector<2x64x128xf32>
    %37 = vector.shape_cast %36 : vector<2x64x128xf32> to vector<128x128xf32>
    %38 = arith.truncf %37 : vector<128x128xf32> to vector<128x128xbf16>
    %c4 = arith.constant 4 : index
    %c0_16 = arith.constant 0 : index
    %c0_17 = arith.constant 0 : index
    %39 = vector.load %arg4[%c4, %c0_16, %c0_17] : memref<25x128x128xbf16, #tpu.memory_space<vmem>>, vector<1x128x128xbf16>
    %40 = vector.shape_cast %39 : vector<1x128x128xbf16> to vector<128x128xbf16>
    %cst_18 = arith.constant dense<0.000000e+00> : vector<128x128xf32>
    %41 = tpu.matmul %38, %40, %cst_18 {dimension_numbers = #tpu.dot_dimension_numbers<[1], [0], [0], [1], [0, 0, 1, 1], [], []>} : vector<128x128xbf16>, vector<128x128xbf16>, vector<128x128xf32> -> vector<128x128xf32>
    %42 = arith.addf %35, %41 : vector<128x128xf32>
    %c2_i32_19 = arith.constant 2 : i32
    %43 = arith.muli %c2_i32_19, %arg0 : i32
    %c1_i32 = arith.constant 1 : i32
    %44 = arith.addi %43, %c1_i32 : i32
    %45 = arith.index_cast %44 : i32 to index
    %c0_20 = arith.constant 0 : index
    %c0_21 = arith.constant 0 : index
    %46 = vector.load %arg11[%45, %c0_20, %c0_21] : memref<12x96x128xf32, #tpu.memory_space<vmem>>, vector<2x96x128xf32>
    %47 = vector.extract_strided_slice %46 {offsets = [0, 0, 0], sizes = [2, 64, 128], strides = [1, 1, 1]} : vector<2x96x128xf32> to vector<2x64x128xf32>
    %48 = vector.shape_cast %47 : vector<2x64x128xf32> to vector<128x128xf32>
    %49 = arith.truncf %48 : vector<128x128xf32> to vector<128x128xbf16>
    %c5 = arith.constant 5 : index
    %c0_22 = arith.constant 0 : index
    %c0_23 = arith.constant 0 : index
    %50 = vector.load %arg4[%c5, %c0_22, %c0_23] : memref<25x128x128xbf16, #tpu.memory_space<vmem>>, vector<1x128x128xbf16>
    %51 = vector.shape_cast %50 : vector<1x128x128xbf16> to vector<128x128xbf16>
    %cst_24 = arith.constant dense<0.000000e+00> : vector<128x128xf32>
    %52 = tpu.matmul %49, %51, %cst_24 {dimension_numbers = #tpu.dot_dimension_numbers<[1], [0], [0], [1], [0, 0, 1, 1], [], []>} : vector<128x128xbf16>, vector<128x128xbf16>, vector<128x128xf32> -> vector<128x128xf32>
    %53 = arith.addf %42, %52 : vector<128x128xf32>
    %54 = vector.extract_strided_slice %46 {offsets = [0, 8, 0], sizes = [2, 64, 128], strides = [1, 1, 1]} : vector<2x96x128xf32> to vector<2x64x128xf32>
    %55 = vector.shape_cast %54 : vector<2x64x128xf32> to vector<128x128xf32>
    %56 = arith.truncf %55 : vector<128x128xf32> to vector<128x128xbf16>
    %c6 = arith.constant 6 : index
    %c0_25 = arith.constant 0 : index
    %c0_26 = arith.constant 0 : index
    %57 = vector.load %arg4[%c6, %c0_25, %c0_26] : memref<25x128x128xbf16, #tpu.memory_space<vmem>>, vector<1x128x128xbf16>
    %58 = vector.shape_cast %57 : vector<1x128x128xbf16> to vector<128x128xbf16>
    %cst_27 = arith.constant dense<0.000000e+00> : vector<128x128xf32>
    %59 = tpu.matmul %56, %58, %cst_27 {dimension_numbers = #tpu.dot_dimension_numbers<[1], [0], [0], [1], [0, 0, 1, 1], [], []>} : vector<128x128xbf16>, vector<128x128xbf16>, vector<128x128xf32> -> vector<128x128xf32>
    %60 = arith.addf %53, %59 : vector<128x128xf32>
    %61 = vector.extract_strided_slice %46 {offsets = [0, 16, 0], sizes = [2, 64, 128], strides = [1, 1, 1]} : vector<2x96x128xf32> to vector<2x64x128xf32>
    %62 = vector.shape_cast %61 : vector<2x64x128xf32> to vector<128x128xf32>
    %63 = arith.truncf %62 : vector<128x128xf32> to vector<128x128xbf16>
    %c7 = arith.constant 7 : index
    %c0_28 = arith.constant 0 : index
    %c0_29 = arith.constant 0 : index
    %64 = vector.load %arg4[%c7, %c0_28, %c0_29] : memref<25x128x128xbf16, #tpu.memory_space<vmem>>, vector<1x128x128xbf16>
    %65 = vector.shape_cast %64 : vector<1x128x128xbf16> to vector<128x128xbf16>
    %cst_30 = arith.constant dense<0.000000e+00> : vector<128x128xf32>
    %66 = tpu.matmul %63, %65, %cst_30 {dimension_numbers = #tpu.dot_dimension_numbers<[1], [0], [0], [1], [0, 0, 1, 1], [], []>} : vector<128x128xbf16>, vector<128x128xbf16>, vector<128x128xf32> -> vector<128x128xf32>
    %67 = arith.addf %60, %66 : vector<128x128xf32>
    %68 = vector.extract_strided_slice %46 {offsets = [0, 24, 0], sizes = [2, 64, 128], strides = [1, 1, 1]} : vector<2x96x128xf32> to vector<2x64x128xf32>
    %69 = vector.shape_cast %68 : vector<2x64x128xf32> to vector<128x128xf32>
    %70 = arith.truncf %69 : vector<128x128xf32> to vector<128x128xbf16>
    %c8 = arith.constant 8 : index
    %c0_31 = arith.constant 0 : index
    %c0_32 = arith.constant 0 : index
    %71 = vector.load %arg4[%c8, %c0_31, %c0_32] : memref<25x128x128xbf16, #tpu.memory_space<vmem>>, vector<1x128x128xbf16>
    %72 = vector.shape_cast %71 : vector<1x128x128xbf16> to vector<128x128xbf16>
    %cst_33 = arith.constant dense<0.000000e+00> : vector<128x128xf32>
    %73 = tpu.matmul %70, %72, %cst_33 {dimension_numbers = #tpu.dot_dimension_numbers<[1], [0], [0], [1], [0, 0, 1, 1], [], []>} : vector<128x128xbf16>, vector<128x128xbf16>, vector<128x128xf32> -> vector<128x128xf32>
    %74 = arith.addf %67, %73 : vector<128x128xf32>
    %75 = vector.extract_strided_slice %46 {offsets = [0, 32, 0], sizes = [2, 64, 128], strides = [1, 1, 1]} : vector<2x96x128xf32> to vector<2x64x128xf32>
    %76 = vector.shape_cast %75 : vector<2x64x128xf32> to vector<128x128xf32>
    %77 = arith.truncf %76 : vector<128x128xf32> to vector<128x128xbf16>
    %c9 = arith.constant 9 : index
    %c0_34 = arith.constant 0 : index
    %c0_35 = arith.constant 0 : index
    %78 = vector.load %arg4[%c9, %c0_34, %c0_35] : memref<25x128x128xbf16, #tpu.memory_space<vmem>>, vector<1x128x128xbf16>
    %79 = vector.shape_cast %78 : vector<1x128x128xbf16> to vector<128x128xbf16>
    %cst_36 = arith.constant dense<0.000000e+00> : vector<128x128xf32>
    %80 = tpu.matmul %77, %79, %cst_36 {dimension_numbers = #tpu.dot_dimension_numbers<[1], [0], [0], [1], [0, 0, 1, 1], [], []>} : vector<128x128xbf16>, vector<128x128xbf16>, vector<128x128xf32> -> vector<128x128xf32>
    %81 = arith.addf %74, %80 : vector<128x128xf32>
    %c2_i32_37 = arith.constant 2 : i32
    %82 = arith.muli %c2_i32_37, %arg0 : i32
    %c2_i32_38 = arith.constant 2 : i32
    %83 = arith.addi %82, %c2_i32_38 : i32
    %84 = arith.index_cast %83 : i32 to index
    %c0_39 = arith.constant 0 : index
    %c0_40 = arith.constant 0 : index
    %85 = vector.load %arg11[%84, %c0_39, %c0_40] : memref<12x96x128xf32, #tpu.memory_space<vmem>>, vector<2x96x128xf32>
    %86 = vector.extract_strided_slice %85 {offsets = [0, 0, 0], sizes = [2, 64, 128], strides = [1, 1, 1]} : vector<2x96x128xf32> to vector<2x64x128xf32>
    %87 = vector.shape_cast %86 : vector<2x64x128xf32> to vector<128x128xf32>
    %88 = arith.truncf %87 : vector<128x128xf32> to vector<128x128xbf16>
    %c10 = arith.constant 10 : index
    %c0_41 = arith.constant 0 : index
    %c0_42 = arith.constant 0 : index
    %89 = vector.load %arg4[%c10, %c0_41, %c0_42] : memref<25x128x128xbf16, #tpu.memory_space<vmem>>, vector<1x128x128xbf16>
    %90 = vector.shape_cast %89 : vector<1x128x128xbf16> to vector<128x128xbf16>
    %cst_43 = arith.constant dense<0.000000e+00> : vector<128x128xf32>
    %91 = tpu.matmul %88, %90, %cst_43 {dimension_numbers = #tpu.dot_dimension_numbers<[1], [0], [0], [1], [0, 0, 1, 1], [], []>} : vector<128x128xbf16>, vector<128x128xbf16>, vector<128x128xf32> -> vector<128x128xf32>
    %92 = arith.addf %81, %91 : vector<128x128xf32>
    %93 = vector.extract_strided_slice %85 {offsets = [0, 8, 0], sizes = [2, 64, 128], strides = [1, 1, 1]} : vector<2x96x128xf32> to vector<2x64x128xf32>
    %94 = vector.shape_cast %93 : vector<2x64x128xf32> to vector<128x128xf32>
    %95 = arith.truncf %94 : vector<128x128xf32> to vector<128x128xbf16>
    %c11 = arith.constant 11 : index
    %c0_44 = arith.constant 0 : index
    %c0_45 = arith.constant 0 : index
    %96 = vector.load %arg4[%c11, %c0_44, %c0_45] : memref<25x128x128xbf16, #tpu.memory_space<vmem>>, vector<1x128x128xbf16>
    %97 = vector.shape_cast %96 : vector<1x128x128xbf16> to vector<128x128xbf16>
    %cst_46 = arith.constant dense<0.000000e+00> : vector<128x128xf32>
    %98 = tpu.matmul %95, %97, %cst_46 {dimension_numbers = #tpu.dot_dimension_numbers<[1], [0], [0], [1], [0, 0, 1, 1], [], []>} : vector<128x128xbf16>, vector<128x128xbf16>, vector<128x128xf32> -> vector<128x128xf32>
    %99 = arith.addf %92, %98 : vector<128x128xf32>
    %100 = vector.extract_strided_slice %85 {offsets = [0, 16, 0], sizes = [2, 64, 128], strides = [1, 1, 1]} : vector<2x96x128xf32> to vector<2x64x128xf32>
    %101 = vector.shape_cast %100 : vector<2x64x128xf32> to vector<128x128xf32>
    %102 = arith.truncf %101 : vector<128x128xf32> to vector<128x128xbf16>
    %c12 = arith.constant 12 : index
    %c0_47 = arith.constant 0 : index
    %c0_48 = arith.constant 0 : index
    %103 = vector.load %arg4[%c12, %c0_47, %c0_48] : memref<25x128x128xbf16, #tpu.memory_space<vmem>>, vector<1x128x128xbf16>
    %104 = vector.shape_cast %103 : vector<1x128x128xbf16> to vector<128x128xbf16>
    %cst_49 = arith.constant dense<0.000000e+00> : vector<128x128xf32>
    %105 = tpu.matmul %102, %104, %cst_49 {dimension_numbers = #tpu.dot_dimension_numbers<[1], [0], [0], [1], [0, 0, 1, 1], [], []>} : vector<128x128xbf16>, vector<128x128xbf16>, vector<128x128xf32> -> vector<128x128xf32>
    %106 = arith.addf %99, %105 : vector<128x128xf32>
    %107 = vector.extract_strided_slice %85 {offsets = [0, 24, 0], sizes = [2, 64, 128], strides = [1, 1, 1]} : vector<2x96x128xf32> to vector<2x64x128xf32>
    %108 = vector.shape_cast %107 : vector<2x64x128xf32> to vector<128x128xf32>
    %109 = arith.truncf %108 : vector<128x128xf32> to vector<128x128xbf16>
    %c13 = arith.constant 13 : index
    %c0_50 = arith.constant 0 : index
    %c0_51 = arith.constant 0 : index
    %110 = vector.load %arg4[%c13, %c0_50, %c0_51] : memref<25x128x128xbf16, #tpu.memory_space<vmem>>, vector<1x128x128xbf16>
    %111 = vector.shape_cast %110 : vector<1x128x128xbf16> to vector<128x128xbf16>
    %cst_52 = arith.constant dense<0.000000e+00> : vector<128x128xf32>
    %112 = tpu.matmul %109, %111, %cst_52 {dimension_numbers = #tpu.dot_dimension_numbers<[1], [0], [0], [1], [0, 0, 1, 1], [], []>} : vector<128x128xbf16>, vector<128x128xbf16>, vector<128x128xf32> -> vector<128x128xf32>
    %113 = arith.addf %106, %112 : vector<128x128xf32>
    %114 = vector.extract_strided_slice %85 {offsets = [0, 32, 0], sizes = [2, 64, 128], strides = [1, 1, 1]} : vector<2x96x128xf32> to vector<2x64x128xf32>
    %115 = vector.shape_cast %114 : vector<2x64x128xf32> to vector<128x128xf32>
    %116 = arith.truncf %115 : vector<128x128xf32> to vector<128x128xbf16>
    %c14 = arith.constant 14 : index
    %c0_53 = arith.constant 0 : index
    %c0_54 = arith.constant 0 : index
    %117 = vector.load %arg4[%c14, %c0_53, %c0_54] : memref<25x128x128xbf16, #tpu.memory_space<vmem>>, vector<1x128x128xbf16>
    %118 = vector.shape_cast %117 : vector<1x128x128xbf16> to vector<128x128xbf16>
    %cst_55 = arith.constant dense<0.000000e+00> : vector<128x128xf32>
    %119 = tpu.matmul %116, %118, %cst_55 {dimension_numbers = #tpu.dot_dimension_numbers<[1], [0], [0], [1], [0, 0, 1, 1], [], []>} : vector<128x128xbf16>, vector<128x128xbf16>, vector<128x128xf32> -> vector<128x128xf32>
    %120 = arith.addf %113, %119 : vector<128x128xf32>
    %c2_i32_56 = arith.constant 2 : i32
    %121 = arith.muli %c2_i32_56, %arg0 : i32
    %c3_i32 = arith.constant 3 : i32
    %122 = arith.addi %121, %c3_i32 : i32
    %123 = arith.index_cast %122 : i32 to index
    %c0_57 = arith.constant 0 : index
    %c0_58 = arith.constant 0 : index
    %124 = vector.load %arg11[%123, %c0_57, %c0_58] : memref<12x96x128xf32, #tpu.memory_space<vmem>>, vector<2x96x128xf32>
    %125 = vector.extract_strided_slice %124 {offsets = [0, 0, 0], sizes = [2, 64, 128], strides = [1, 1, 1]} : vector<2x96x128xf32> to vector<2x64x128xf32>
    %126 = vector.shape_cast %125 : vector<2x64x128xf32> to vector<128x128xf32>
    %127 = arith.truncf %126 : vector<128x128xf32> to vector<128x128xbf16>
    %c15 = arith.constant 15 : index
    %c0_59 = arith.constant 0 : index
    %c0_60 = arith.constant 0 : index
    %128 = vector.load %arg4[%c15, %c0_59, %c0_60] : memref<25x128x128xbf16, #tpu.memory_space<vmem>>, vector<1x128x128xbf16>
    %129 = vector.shape_cast %128 : vector<1x128x128xbf16> to vector<128x128xbf16>
    %cst_61 = arith.constant dense<0.000000e+00> : vector<128x128xf32>
    %130 = tpu.matmul %127, %129, %cst_61 {dimension_numbers = #tpu.dot_dimension_numbers<[1], [0], [0], [1], [0, 0, 1, 1], [], []>} : vector<128x128xbf16>, vector<128x128xbf16>, vector<128x128xf32> -> vector<128x128xf32>
    %131 = arith.addf %120, %130 : vector<128x128xf32>
    %132 = vector.extract_strided_slice %124 {offsets = [0, 8, 0], sizes = [2, 64, 128], strides = [1, 1, 1]} : vector<2x96x128xf32> to vector<2x64x128xf32>
    %133 = vector.shape_cast %132 : vector<2x64x128xf32> to vector<128x128xf32>
    %134 = arith.truncf %133 : vector<128x128xf32> to vector<128x128xbf16>
    %c16 = arith.constant 16 : index
    %c0_62 = arith.constant 0 : index
    %c0_63 = arith.constant 0 : index
    %135 = vector.load %arg4[%c16, %c0_62, %c0_63] : memref<25x128x128xbf16, #tpu.memory_space<vmem>>, vector<1x128x128xbf16>
    %136 = vector.shape_cast %135 : vector<1x128x128xbf16> to vector<128x128xbf16>
    %cst_64 = arith.constant dense<0.000000e+00> : vector<128x128xf32>
    %137 = tpu.matmul %134, %136, %cst_64 {dimension_numbers = #tpu.dot_dimension_numbers<[1], [0], [0], [1], [0, 0, 1, 1], [], []>} : vector<128x128xbf16>, vector<128x128xbf16>, vector<128x128xf32> -> vector<128x128xf32>
    %138 = arith.addf %131, %137 : vector<128x128xf32>
    %139 = vector.extract_strided_slice %124 {offsets = [0, 16, 0], sizes = [2, 64, 128], strides = [1, 1, 1]} : vector<2x96x128xf32> to vector<2x64x128xf32>
    %140 = vector.shape_cast %139 : vector<2x64x128xf32> to vector<128x128xf32>
    %141 = arith.truncf %140 : vector<128x128xf32> to vector<128x128xbf16>
    %c17 = arith.constant 17 : index
    %c0_65 = arith.constant 0 : index
    %c0_66 = arith.constant 0 : index
    %142 = vector.load %arg4[%c17, %c0_65, %c0_66] : memref<25x128x128xbf16, #tpu.memory_space<vmem>>, vector<1x128x128xbf16>
    %143 = vector.shape_cast %142 : vector<1x128x128xbf16> to vector<128x128xbf16>
    %cst_67 = arith.constant dense<0.000000e+00> : vector<128x128xf32>
    %144 = tpu.matmul %141, %143, %cst_67 {dimension_numbers = #tpu.dot_dimension_numbers<[1], [0], [0], [1], [0, 0, 1, 1], [], []>} : vector<128x128xbf16>, vector<128x128xbf16>, vector<128x128xf32> -> vector<128x128xf32>
    %145 = arith.addf %138, %144 : vector<128x128xf32>
    %146 = vector.extract_strided_slice %124 {offsets = [0, 24, 0], sizes = [2, 64, 128], strides = [1, 1, 1]} : vector<2x96x128xf32> to vector<2x64x128xf32>
    %147 = vector.shape_cast %146 : vector<2x64x128xf32> to vector<128x128xf32>
    %148 = arith.truncf %147 : vector<128x128xf32> to vector<128x128xbf16>
    %c18 = arith.constant 18 : index
    %c0_68 = arith.constant 0 : index
    %c0_69 = arith.constant 0 : index
    %149 = vector.load %arg4[%c18, %c0_68, %c0_69] : memref<25x128x128xbf16, #tpu.memory_space<vmem>>, vector<1x128x128xbf16>
    %150 = vector.shape_cast %149 : vector<1x128x128xbf16> to vector<128x128xbf16>
    %cst_70 = arith.constant dense<0.000000e+00> : vector<128x128xf32>
    %151 = tpu.matmul %148, %150, %cst_70 {dimension_numbers = #tpu.dot_dimension_numbers<[1], [0], [0], [1], [0, 0, 1, 1], [], []>} : vector<128x128xbf16>, vector<128x128xbf16>, vector<128x128xf32> -> vector<128x128xf32>
    %152 = arith.addf %145, %151 : vector<128x128xf32>
    %153 = vector.extract_strided_slice %124 {offsets = [0, 32, 0], sizes = [2, 64, 128], strides = [1, 1, 1]} : vector<2x96x128xf32> to vector<2x64x128xf32>
    %154 = vector.shape_cast %153 : vector<2x64x128xf32> to vector<128x128xf32>
    %155 = arith.truncf %154 : vector<128x128xf32> to vector<128x128xbf16>
    %c19 = arith.constant 19 : index
    %c0_71 = arith.constant 0 : index
    %c0_72 = arith.constant 0 : index
    %156 = vector.load %arg4[%c19, %c0_71, %c0_72] : memref<25x128x128xbf16, #tpu.memory_space<vmem>>, vector<1x128x128xbf16>
    %157 = vector.shape_cast %156 : vector<1x128x128xbf16> to vector<128x128xbf16>
    %cst_73 = arith.constant dense<0.000000e+00> : vector<128x128xf32>
    %158 = tpu.matmul %155, %157, %cst_73 {dimension_numbers = #tpu.dot_dimension_numbers<[1], [0], [0], [1], [0, 0, 1, 1], [], []>} : vector<128x128xbf16>, vector<128x128xbf16>, vector<128x128xf32> -> vector<128x128xf32>
    %159 = arith.addf %152, %158 : vector<128x128xf32>
    %c2_i32_74 = arith.constant 2 : i32
    %160 = arith.muli %c2_i32_74, %arg0 : i32
    %c4_i32 = arith.constant 4 : i32
    %161 = arith.addi %160, %c4_i32 : i32
    %162 = arith.index_cast %161 : i32 to index
    %c0_75 = arith.constant 0 : index
    %c0_76 = arith.constant 0 : index
    %163 = vector.load %arg11[%162, %c0_75, %c0_76] : memref<12x96x128xf32, #tpu.memory_space<vmem>>, vector<2x96x128xf32>
    %164 = vector.extract_strided_slice %163 {offsets = [0, 0, 0], sizes = [2, 64, 128], strides = [1, 1, 1]} : vector<2x96x128xf32> to vector<2x64x128xf32>
    %165 = vector.shape_cast %164 : vector<2x64x128xf32> to vector<128x128xf32>
    %166 = arith.truncf %165 : vector<128x128xf32> to vector<128x128xbf16>
    %c20 = arith.constant 20 : index
    %c0_77 = arith.constant 0 : index
    %c0_78 = arith.constant 0 : index
    %167 = vector.load %arg4[%c20, %c0_77, %c0_78] : memref<25x128x128xbf16, #tpu.memory_space<vmem>>, vector<1x128x128xbf16>
    %168 = vector.shape_cast %167 : vector<1x128x128xbf16> to vector<128x128xbf16>
    %cst_79 = arith.constant dense<0.000000e+00> : vector<128x128xf32>
    %169 = tpu.matmul %166, %168, %cst_79 {dimension_numbers = #tpu.dot_dimension_numbers<[1], [0], [0], [1], [0, 0, 1, 1], [], []>} : vector<128x128xbf16>, vector<128x128xbf16>, vector<128x128xf32> -> vector<128x128xf32>
    %170 = arith.addf %159, %169 : vector<128x128xf32>
    %171 = vector.extract_strided_slice %163 {offsets = [0, 8, 0], sizes = [2, 64, 128], strides = [1, 1, 1]} : vector<2x96x128xf32> to vector<2x64x128xf32>
    %172 = vector.shape_cast %171 : vector<2x64x128xf32> to vector<128x128xf32>
    %173 = arith.truncf %172 : vector<128x128xf32> to vector<128x128xbf16>
    %c21 = arith.constant 21 : index
    %c0_80 = arith.constant 0 : index
    %c0_81 = arith.constant 0 : index
    %174 = vector.load %arg4[%c21, %c0_80, %c0_81] : memref<25x128x128xbf16, #tpu.memory_space<vmem>>, vector<1x128x128xbf16>
    %175 = vector.shape_cast %174 : vector<1x128x128xbf16> to vector<128x128xbf16>
    %cst_82 = arith.constant dense<0.000000e+00> : vector<128x128xf32>
    %176 = tpu.matmul %173, %175, %cst_82 {dimension_numbers = #tpu.dot_dimension_numbers<[1], [0], [0], [1], [0, 0, 1, 1], [], []>} : vector<128x128xbf16>, vector<128x128xbf16>, vector<128x128xf32> -> vector<128x128xf32>
    %177 = arith.addf %170, %176 : vector<128x128xf32>
    %178 = vector.extract_strided_slice %163 {offsets = [0, 16, 0], sizes = [2, 64, 128], strides = [1, 1, 1]} : vector<2x96x128xf32> to vector<2x64x128xf32>
    %179 = vector.shape_cast %178 : vector<2x64x128xf32> to vector<128x128xf32>
    %180 = arith.truncf %179 : vector<128x128xf32> to vector<128x128xbf16>
    %c22 = arith.constant 22 : index
    %c0_83 = arith.constant 0 : index
    %c0_84 = arith.constant 0 : index
    %181 = vector.load %arg4[%c22, %c0_83, %c0_84] : memref<25x128x128xbf16, #tpu.memory_space<vmem>>, vector<1x128x128xbf16>
    %182 = vector.shape_cast %181 : vector<1x128x128xbf16> to vector<128x128xbf16>
    %cst_85 = arith.constant dense<0.000000e+00> : vector<128x128xf32>
    %183 = tpu.matmul %180, %182, %cst_85 {dimension_numbers = #tpu.dot_dimension_numbers<[1], [0], [0], [1], [0, 0, 1, 1], [], []>} : vector<128x128xbf16>, vector<128x128xbf16>, vector<128x128xf32> -> vector<128x128xf32>
    %184 = arith.addf %177, %183 : vector<128x128xf32>
    %185 = vector.extract_strided_slice %163 {offsets = [0, 24, 0], sizes = [2, 64, 128], strides = [1, 1, 1]} : vector<2x96x128xf32> to vector<2x64x128xf32>
    %186 = vector.shape_cast %185 : vector<2x64x128xf32> to vector<128x128xf32>
    %187 = arith.truncf %186 : vector<128x128xf32> to vector<128x128xbf16>
    %c23 = arith.constant 23 : index
    %c0_86 = arith.constant 0 : index
    %c0_87 = arith.constant 0 : index
    %188 = vector.load %arg4[%c23, %c0_86, %c0_87] : memref<25x128x128xbf16, #tpu.memory_space<vmem>>, vector<1x128x128xbf16>
    %189 = vector.shape_cast %188 : vector<1x128x128xbf16> to vector<128x128xbf16>
    %cst_88 = arith.constant dense<0.000000e+00> : vector<128x128xf32>
    %190 = tpu.matmul %187, %189, %cst_88 {dimension_numbers = #tpu.dot_dimension_numbers<[1], [0], [0], [1], [0, 0, 1, 1], [], []>} : vector<128x128xbf16>, vector<128x128xbf16>, vector<128x128xf32> -> vector<128x128xf32>
    %191 = arith.addf %184, %190 : vector<128x128xf32>
    %192 = vector.extract_strided_slice %163 {offsets = [0, 32, 0], sizes = [2, 64, 128], strides = [1, 1, 1]} : vector<2x96x128xf32> to vector<2x64x128xf32>
    %193 = vector.shape_cast %192 : vector<2x64x128xf32> to vector<128x128xf32>
    %194 = arith.truncf %193 : vector<128x128xf32> to vector<128x128xbf16>
    %c24 = arith.constant 24 : index
    %c0_89 = arith.constant 0 : index
    %c0_90 = arith.constant 0 : index
    %195 = vector.load %arg4[%c24, %c0_89, %c0_90] : memref<25x128x128xbf16, #tpu.memory_space<vmem>>, vector<1x128x128xbf16>
    %196 = vector.shape_cast %195 : vector<1x128x128xbf16> to vector<128x128xbf16>
    %cst_91 = arith.constant dense<0.000000e+00> : vector<128x128xf32>
    %197 = tpu.matmul %194, %196, %cst_91 {dimension_numbers = #tpu.dot_dimension_numbers<[1], [0], [0], [1], [0, 0, 1, 1], [], []>} : vector<128x128xbf16>, vector<128x128xbf16>, vector<128x128xf32> -> vector<128x128xf32>
    %198 = arith.addf %191, %197 : vector<128x128xf32>
    %c0_92 = arith.constant 0 : index
    %c0_93 = arith.constant 0 : index
    %199 = vector.load %arg5[%c0_92, %c0_93] : memref<1x128xf32, #tpu.memory_space<vmem>>, vector<1x128xf32>
    %200 = vector.extract_strided_slice %198 {offsets = [0, 0], sizes = [64, 128], strides = [1, 1]} : vector<128x128xf32> to vector<64x128xf32>
    %201 = vector.extract_strided_slice %198 {offsets = [64, 0], sizes = [64, 128], strides = [1, 1]} : vector<128x128xf32> to vector<64x128xf32>
    %202 = arith.maximumf %200, %201 : vector<64x128xf32>
    %203 = vector.extract_strided_slice %202 {offsets = [0, 0], sizes = [8, 128], strides = [1, 1]} : vector<64x128xf32> to vector<8x128xf32>
    %204 = vector.extract_strided_slice %202 {offsets = [8, 0], sizes = [8, 128], strides = [1, 1]} : vector<64x128xf32> to vector<8x128xf32>
    %205 = arith.maximumf %203, %204 : vector<8x128xf32>
    %206 = vector.broadcast %199 : vector<1x128xf32> to vector<8x128xf32>
    %207 = arith.addf %205, %206 : vector<8x128xf32>
    %cst_94 = arith.constant 0.000000e+00 : f32
    %208 = vector.broadcast %cst_94 : f32 to vector<8x128xf32>
    %209 = arith.maximumf %207, %208 : vector<8x128xf32>
    %210 = vector.extract_strided_slice %202 {offsets = [16, 0], sizes = [8, 128], strides = [1, 1]} : vector<64x128xf32> to vector<8x128xf32>
    %211 = vector.extract_strided_slice %202 {offsets = [24, 0], sizes = [8, 128], strides = [1, 1]} : vector<64x128xf32> to vector<8x128xf32>
    %212 = arith.maximumf %210, %211 : vector<8x128xf32>
    %213 = vector.broadcast %199 : vector<1x128xf32> to vector<8x128xf32>
    %214 = arith.addf %212, %213 : vector<8x128xf32>
    %cst_95 = arith.constant 0.000000e+00 : f32
    %215 = vector.broadcast %cst_95 : f32 to vector<8x128xf32>
    %216 = arith.maximumf %214, %215 : vector<8x128xf32>
    %217 = vector.extract_strided_slice %202 {offsets = [32, 0], sizes = [8, 128], strides = [1, 1]} : vector<64x128xf32> to vector<8x128xf32>
    %218 = vector.extract_strided_slice %202 {offsets = [40, 0], sizes = [8, 128], strides = [1, 1]} : vector<64x128xf32> to vector<8x128xf32>
    %219 = arith.maximumf %217, %218 : vector<8x128xf32>
    %220 = vector.broadcast %199 : vector<1x128xf32> to vector<8x128xf32>
    %221 = arith.addf %219, %220 : vector<8x128xf32>
    %cst_96 = arith.constant 0.000000e+00 : f32
    %222 = vector.broadcast %cst_96 : f32 to vector<8x128xf32>
    %223 = arith.maximumf %221, %222 : vector<8x128xf32>
    %224 = vector.extract_strided_slice %202 {offsets = [48, 0], sizes = [8, 128], strides = [1, 1]} : vector<64x128xf32> to vector<8x128xf32>
    %225 = vector.extract_strided_slice %202 {offsets = [56, 0], sizes = [8, 128], strides = [1, 1]} : vector<64x128xf32> to vector<8x128xf32>
    %226 = arith.maximumf %224, %225 : vector<8x128xf32>
    %227 = vector.broadcast %199 : vector<1x128xf32> to vector<8x128xf32>
    %228 = arith.addf %226, %227 : vector<8x128xf32>
    %cst_97 = arith.constant 0.000000e+00 : f32
    %229 = vector.broadcast %cst_97 : f32 to vector<8x128xf32>
    %230 = arith.maximumf %228, %229 : vector<8x128xf32>
    %231 = tpu.concatenate %209, %216, %223, %230 in 1 : vector<8x128xf32>, vector<8x128xf32>, vector<8x128xf32>, vector<8x128xf32> -> vector<8x512xf32>
    %232 = arith.truncf %231 : vector<8x512xf32> to vector<8x512xbf16>
    %c0_98 = arith.constant 0 : index
    %c0_99 = arith.constant 0 : index
    %233 = vector.load %arg12[%c0_98, %c0_99] : memref<8x512xf32, #tpu.memory_space<vmem>>, vector<8x512xf32>
    %c0_100 = arith.constant 0 : index
    %c0_101 = arith.constant 0 : index
    %234 = vector.load %arg6[%c0_100, %c0_101] : memref<512x512xbf16, #tpu.memory_space<vmem>>, vector<512x512xbf16>
    %cst_102 = arith.constant dense<0.000000e+00> : vector<8x512xf32>
    %235 = tpu.matmul %232, %234, %cst_102 {dimension_numbers = #tpu.dot_dimension_numbers<[1], [0], [0], [1], [0, 0, 1, 1], [], []>} : vector<8x512xbf16>, vector<512x512xbf16>, vector<8x512xf32> -> vector<8x512xf32>
    %236 = arith.addf %233, %235 : vector<8x512xf32>
    %c0_103 = arith.constant 0 : index
    %c0_104 = arith.constant 0 : index
    %237 = vector.load %arg12[%c0_103, %c0_104] : memref<8x512xf32, #tpu.memory_space<vmem>>, vector<8x512xf32>
    tpu.vector_store %arg12[%c0_103, %c0_104], %236 {strides = array<i32>} : memref<8x512xf32, #tpu.memory_space<vmem>>, vector<8x512xf32>,
    %c3_i32_105 = arith.constant 3 : i32
    %238 = arith.cmpi eq, %arg0, %c3_i32_105 : i32
    %239 = arith.extui %238 : i1 to i32
    %c0_i32_106 = arith.constant 0 : i32
    %240 = arith.cmpi ne, %239, %c0_i32_106 : i32
    scf.if %240 {
      %c0_107 = arith.constant 0 : index
      %c0_108 = arith.constant 0 : index
      %241 = vector.load %arg12[%c0_107, %c0_108] : memref<8x512xf32, #tpu.memory_space<vmem>>, vector<8x512xf32>
      %c0_109 = arith.constant 0 : index
      %c0_110 = arith.constant 0 : index
      %242 = vector.load %arg7[%c0_109, %c0_110] : memref<1x512xf32, #tpu.memory_space<vmem>>, vector<1x512xf32>
      %243 = vector.broadcast %242 : vector<1x512xf32> to vector<8x512xf32>
      %244 = arith.addf %241, %243 : vector<8x512xf32>
      %cst_111 = arith.constant 0.000000e+00 : f32
      %245 = vector.broadcast %cst_111 : f32 to vector<8x512xf32>
      %246 = arith.maximumf %244, %245 : vector<8x512xf32>
      %247 = arith.truncf %246 : vector<8x512xf32> to vector<8x512xbf16>
      %c0_112 = arith.constant 0 : index
      %c0_113 = arith.constant 0 : index
      %248 = vector.load %arg8[%c0_112, %c0_113] : memref<512x128xbf16, #tpu.memory_space<vmem>>, vector<512x128xbf16>
      %cst_114 = arith.constant dense<0.000000e+00> : vector<8x128xf32>
      %249 = tpu.matmul %247, %248, %cst_114 {dimension_numbers = #tpu.dot_dimension_numbers<[1], [0], [0], [1], [0, 0, 1, 1], [], []>} : vector<8x512xbf16>, vector<512x128xbf16>, vector<8x128xf32> -> vector<8x128xf32>
      %c0_115 = arith.constant 0 : index
      %c0_116 = arith.constant 0 : index
      %250 = vector.load %arg9[%c0_115, %c0_116] : memref<1x128xf32, #tpu.memory_space<vmem>>, vector<1x128xf32>
      %251 = vector.broadcast %250 : vector<1x128xf32> to vector<8x128xf32>
      %252 = arith.addf %249, %251 : vector<8x128xf32>
      %c0_117 = arith.constant 0 : index
      %c0_118 = arith.constant 0 : index
      %253 = vector.load %arg10[%c0_117, %c0_118] : memref<8x128xf32, #tpu.memory_space<vmem>>, vector<8x128xf32>
      tpu.vector_store %arg10[%c0_117, %c0_118], %252 {strides = array<i32>} : memref<8x128xf32, #tpu.memory_space<vmem>>, vector<8x128xf32>,
    } else {
    }
    return
  }
  func.func @transform_0(%arg0: i32) -> (i32, i32) {
    %c0_i32 = arith.constant 0 : i32
    %c0_i32_0 = arith.constant 0 : i32
    %c0_i32_1 = arith.constant 0 : i32
    return %c0_i32, %c0_i32_0 : i32, i32
  }
  func.func @transform_1(%arg0: i32) -> (i32, i32) {
    %c0_i32 = arith.constant 0 : i32
    %c0_i32_0 = arith.constant 0 : i32
    %c0_i32_1 = arith.constant 0 : i32
    return %c0_i32, %c0_i32_0 : i32, i32
  }
  func.func @transform_2(%arg0: i32) -> (i32, i32) {
    %c0_i32 = arith.constant 0 : i32
    %c0_i32_0 = arith.constant 0 : i32
    %c0_i32_1 = arith.constant 0 : i32
    return %c0_i32, %c0_i32_0 : i32, i32
  }
  func.func @transform_3(%arg0: i32) -> (i32, i32, i32) {
    %c0_i32 = arith.constant 0 : i32
    %c0_i32_0 = arith.constant 0 : i32
    %c0_i32_1 = arith.constant 0 : i32
    %c0_i32_2 = arith.constant 0 : i32
    return %c0_i32, %c0_i32_0, %c0_i32_1 : i32, i32, i32
  }
  func.func @transform_4(%arg0: i32) -> (i32, i32) {
    %c0_i32 = arith.constant 0 : i32
    %c0_i32_0 = arith.constant 0 : i32
    %c0_i32_1 = arith.constant 0 : i32
    return %c0_i32, %c0_i32_0 : i32, i32
  }
  func.func @transform_5(%arg0: i32) -> (i32, i32) {
    %c0_i32 = arith.constant 0 : i32
    %c0_i32_0 = arith.constant 0 : i32
    return %arg0, %c0_i32 : i32, i32
  }
  func.func @transform_6(%arg0: i32) -> (i32, i32) {
    %c0_i32 = arith.constant 0 : i32
    %c0_i32_0 = arith.constant 0 : i32
    %c0_i32_1 = arith.constant 0 : i32
    return %c0_i32, %c0_i32_0 : i32, i32
  }
  func.func @transform_7(%arg0: i32) -> (i32, i32) {
    %c0_i32 = arith.constant 0 : i32
    %c0_i32_0 = arith.constant 0 : i32
    %c0_i32_1 = arith.constant 0 : i32
    return %c0_i32, %c0_i32_0 : i32, i32
  }
  func.func @transform_8(%arg0: i32) -> (i32, i32) {
    %c0_i32 = arith.constant 0 : i32
    %c0_i32_0 = arith.constant 0 : i32
    %c0_i32_1 = arith.constant 0 : i32
    return %c0_i32, %c0_i32_0 : i32, i32
  }
  func.func @transform_9(%arg0: i32) -> (i32, i32) {
    %c0_i32 = arith.constant 0 : i32
    %c0_i32_0 = arith.constant 0 : i32
    %c0_i32_1 = arith.constant 0 : i32
    return %c0_i32, %c0_i32_0 : i32, i32
  }
}

</mosaic_0001>

<bundles_post_ra>
// kernel: lenet5_forward.1
= control target key start
LH: loop header
LB: loop body
LE: loop exit
PB: predicated region body
PF: predicated region fallthrough
CT: control target
= control target key end

     0   :  { %s17833_s30 = smov 0   ;;  %s22028_s0 = inlined_call_operand.vmem [shape: bf16[4608,32], index: 0, kind: input, shape index: {}]   ;;  %s22029_s1 = inlined_call_operand.vmem [shape: bf16[32,128], index: 1, kind: input, shape index: {}]   ;;  %s22030_s2 = inlined_call_operand.vmem [shape: f32[1,128], index: 2, kind: input, shape index: {}]   ;;  %s22031_s3 = inlined_call_operand.vmem [shape: bf16[25,128,128], index: 3, kind: input, shape index: {}]   ;;  %s22032_s4 = inlined_call_operand.vmem [shape: f32[1,128], index: 4, kind: input, shape index: {}]   ;;  %s22033_s5 = inlined_call_operand.vmem [shape: bf16[2048,512], index: 5, kind: input, shape index: {}]   ;;  %s22034_s6 = inlined_call_operand.vmem [shape: f32[1,512], index: 6, kind: input, shape index: {}]   ;;  %s22035_s7 = inlined_call_operand.vmem [shape: bf16[512,128], index: 7, kind: input, shape index: {}]   ;;  %s22036_s8 = inlined_call_operand.vmem [shape: f32[1,128], index: 8, kind: input, shape index: {}]   ;;  %s22037_s9 = inlined_call_operand.vmem [shape: f32[8,128], index: 9, kind: output, shape index: {}]  }
   0x1 LB: > { %s17839_s10 = sadd.s32 4294967295, %s17780_s30   ;;  %p13007_p0 = scmp.ge.s32.totalorder %s17780_s30, 1  ;;  %s17780_s30 = sphi %s17833_s30, %s19_s30  }
   0x2   : > { %p284_p1 = scmp.lt.s32.totalorder %s17780_s30, 5 }
   0x4   : > { %p285_p2 = pnand %p13007_p0, %p284_p1 }
   0x5   : > { %s13008_s11 = sshll.u32 (!%p285_p2), %s17839_s10, 6  ;;  %p13011_p4 = scmp.ne.s32.totalorder (!%p285_p2), %s17839_s10, 0 }
   0x6   : > { %288 = sbr.rel (%p285_p2) target bundleno = 2220 (0x8ac), region = 56  ;;  %p317_p3 = scmp.lt.s32.totalorder (!%p285_p2), %s13008_s11, 255 }
   0xd   : > { %s22489_s11 = smov (!%p317_p3, %s13008_s11), 255  ;;  %327 = sbr.rel (%p13011_p4) target bundleno = 821 (0x335), region = 60 }
   0xe   : > { %s14446_s12 = sshll.u32 %s22489_s11, 4 }
   0xf   : > { %s17847_s15 = scalar_lea.vmem %s22033_s5, %s14446_s12 }
  0x14   : > { %v17853_v0 = vld [vmem:[%s22029_s1] sm:$0xff]   ;;  %v17858_v1 = vld [vmem:[%s22029_s1 + $0x8] sm:$0xff]   ;;  %vm471_vm0 = vcmask 261120   ;;  %v17050_v6 = vld [vmem:[%s22028_s0 + $0x10] sm:$0xff]  }
  0x15   : > { %15211 = vmatprep.subr.bf16.mxu0 %v17853_v0  ;;  %15251 = vmatprep.subr.bf16.mxu1 %v17853_v0  ;;  %v17046_v2 = vld [vmem:[%s22028_s0] sm:$0xff]   ;;  %v17048_v4 = vld [vmem:[%s22028_s0 + $0x8] sm:$0xff]   ;;  %v17051_v7 = vld [vmem:[%s22028_s0 + $0x250] sm:$0xff]  }
  0x16   : > { %15212 = vmatpush3.bf16.msra.mxu0 %v17853_v0  ;;  %15252 = vmatpush3.bf16.msra.mxu1 %v17853_v0  ;;  %v17047_v3 = vld [vmem:[%s22028_s0 + $0x240] sm:$0xff]   ;;  %v17049_v5 = vld [vmem:[%s22028_s0 + $0x248] sm:$0xff]   ;;  %v17052_v8 = vld [vmem:[%s22028_s0 + $0x18] sm:$0xff]  }
  0x17   : > { %15213 = vmatprep.subr.bf16.mxu0 %v17858_v1  ;;  %15253 = vmatprep.subr.bf16.mxu1 %v17858_v1  ;;  %v17053_v9 = vld [vmem:[%s22028_s0 + $0x258] sm:$0xff]   ;;  %v17054_v10 = vld [vmem:[%s22028_s0 + $0x20] sm:$0xff]   ;;  %v17056_v12 = vld [vmem:[%s22028_s0 + $0x28] sm:$0xff]  }
  0x18   : > { %15215 = vmatprep.mubr.msk.bf16.mxu0 %vm471_vm0, %v17046_v2  ;;  %15255 = vmatprep.mubr.msk.bf16.mxu1 %vm471_vm0, %v17047_v3  ;;  %v17055_v11 = vld [vmem:[%s22028_s0 + $0x260] sm:$0xff]   ;;  %v17057_v13 = vld [vmem:[%s22028_s0 + $0x268] sm:$0xff]   ;;  %v17058_v14 = vld [vmem:[%s22028_s0 + $0x30] sm:$0xff]  }
  0x19   : > { %v17059_v15 = vld [vmem:[%s22028_s0 + $0x270] sm:$0xff]   ;;  %v17060_v16 = vld [vmem:[%s22028_s0 + $0x38] sm:$0xff]   ;;  %v17062_v18 = vld [vmem:[%s22028_s0 + $0x40] sm:$0xff]  }
  0x1a   : > { %15214 = vmatpush3.bf16.msra.mxu0 %v17858_v1  ;;  %15254 = vmatpush3.bf16.msra.mxu1 %v17858_v1  ;;  %v17061_v17 = vld [vmem:[%s22028_s0 + $0x278] sm:$0xff]   ;;  %v17063_v19 = vld [vmem:[%s22028_s0 + $0x280] sm:$0xff]   ;;  %v17064_v20 = vld [vmem:[%s22028_s0 + $0x48] sm:$0xff]  }
  0x1b   : > { %15291 = vmatprep.subr.bf16.mxu0 %v17853_v0  ;;  %15331 = vmatprep.subr.bf16.mxu1 %v17853_v0  ;;  %v17065_v21 = vld [vmem:[%s22028_s0 + $0x288] sm:$0xff]   ;;  %v17066_v22 = vld [vmem:[%s22028_s0 + $0x50] sm:$0xff]   ;;  %v17068_v24 = vld [vmem:[%s22028_s0 + $0x58] sm:$0xff]  }
  0x1c   : > { %v17067_v23 = vld [vmem:[%s22028_s0 + $0x290] sm:$0xff]   ;;  %v17069_v25 = vld [vmem:[%s22028_s0 + $0x298] sm:$0xff]   ;;  %v17070_v26 = vld [vmem:[%s22028_s0 + $0x60] sm:$0xff]  }
  0x1d   : > { %15216 = vmatmul.mubr.msk.bf16.vlgmr.msra.gmra.mrb[0].mxu0 %vm471_vm0, %v17048_v4  ;;  %15256 = vmatmul.mubr.msk.bf16.vlgmr.msra.gmra.mrb[0].mxu1 %vm471_vm0, %v17049_v5  ;;  %v17071_v27 = vld [vmem:[%s22028_s0 + $0x2a0] sm:$0xff]   ;;  %v17072_v28 = vld [vmem:[%s22028_s0 + $0x68] sm:$0xff]   ;;  %v17074_v30 = vld [vmem:[%s22028_s0 + $0x70] sm:$0xff]  }
  0x1e   : > { %15292 = vmatpush3.bf16.msra.mxu0 %v17853_v0  ;;  %15332 = vmatpush3.bf16.msra.mxu1 %v17853_v0  ;;  %v17073_v29 = vld [vmem:[%s22028_s0 + $0x2a8] sm:$0xff]   ;;  %v17075_v31 = vld [vmem:[%s22028_s0 + $0x2b0] sm:$0xff]   ;;  %v17076_v32 = vld [vmem:[%s22028_s0 + $0x78] sm:$0xff]  }
  0x1f   : > { %15219 = vmatprep.mubr.msk.bf16.mxu0 %vm471_vm0, %v17050_v6  ;;  %15259 = vmatprep.mubr.msk.bf16.mxu1 %vm471_vm0, %v17051_v7  ;;  %v17077_v33 = vld [vmem:[%s22028_s0 + $0x2b8] sm:$0xff]   ;;  %v17078_v34 = vld [vmem:[%s22028_s0 + $0x80] sm:$0xff]   ;;  %v17080_v36 = vld [vmem:[%s22028_s0 + $0x88] sm:$0xff]  }
  0x20   : > { %15293 = vmatprep.subr.bf16.mxu0 %v17858_v1  ;;  %15333 = vmatprep.subr.bf16.mxu1 %v17858_v1  ;;  %v17079_v35 = vld [vmem:[%s22028_s0 + $0x2c0] sm:$0xff]   ;;  %v17081_v37 = vld [vmem:[%s22028_s0 + $0x2c8] sm:$0xff]   ;;  %v17086_v42 = vld [vmem:[%s22028_s0 + $0x490] sm:$0xff]  }
  0x21   : > { %v17082_v38 = vld [vmem:[%s22028_s0 + $0x480] sm:$0xff]   ;;  %v17084_v40 = vld [vmem:[%s22028_s0 + $0x488] sm:$0xff]   ;;  %v17087_v43 = vld [vmem:[%s22028_s0 + $0x6d0] sm:$0xff]  }
  0x22   : > { %15294 = vmatpush3.bf16.msra.mxu0 %v17858_v1  ;;  %15334 = vmatpush3.bf16.msra.mxu1 %v17858_v1  ;;  %v17083_v39 = vld [vmem:[%s22028_s0 + $0x6c0] sm:$0xff]   ;;  %v17085_v41 = vld [vmem:[%s22028_s0 + $0x6c8] sm:$0xff]   ;;  %v17088_v44 = vld [vmem:[%s22028_s0 + $0x498] sm:$0xff]  }
  0x23   : > { %15371 = vmatprep.subr.bf16.mxu0 %v17853_v0  ;;  %15411 = vmatprep.subr.bf16.mxu1 %v17853_v0  ;;  %v17089_v45 = vld [vmem:[%s22028_s0 + $0x6d8] sm:$0xff]   ;;  %v17090_v46 = vld [vmem:[%s22028_s0 + $0x4a0] sm:$0xff]   ;;  %v17092_v48 = vld [vmem:[%s22028_s0 + $0x4a8] sm:$0xff]  }
  0x24   : > { %v17091_v47 = vld [vmem:[%s22028_s0 + $0x6e0] sm:$0xff]   ;;  %v17093_v49 = vld [vmem:[%s22028_s0 + $0x6e8] sm:$0xff]   ;;  %v17094_v50 = vld [vmem:[%s22028_s0 + $0x4b0] sm:$0xff]  }
  0x25   : > { %15220 = vmatmul.mubr.msk.bf16.gmra.mrb[4].mxu0 %vm471_vm0, %v17052_v8  ;;  %15260 = vmatmul.mubr.msk.bf16.gmra.mrb[4].mxu1 %vm471_vm0, %v17053_v9  ;;  %v17095_v51 = vld [vmem:[%s22028_s0 + $0x6f0] sm:$0xff]   ;;  %v17096_v52 = vld [vmem:[%s22028_s0 + $0x4b8] sm:$0xff]   ;;  %v17098_v54 = vld [vmem:[%s22028_s0 + $0x4c0] sm:$0xff]  }
  0x26   : > { %15223 = vmatprep.mubr.msk.bf16.mxu0 %vm471_vm0, %v17054_v10  ;;  %15263 = vmatprep.mubr.msk.bf16.mxu1 %vm471_vm0, %v17055_v11  ;;  %v17097_v53 = vld [vmem:[%s22028_s0 + $0x6f8] sm:$0xff]   ;;  %v17099_v55 = vld [vmem:[%s22028_s0 + $0x700] sm:$0xff]   ;;  %v17100_v56 = vld [vmem:[%s22028_s0 + $0x4c8] sm:$0xff]  }
  0x27   : > { %v17101_v57 = vld [vmem:[%s22028_s0 + $0x708] sm:$0xff]   ;;  %v17102_v58 = vld [vmem:[%s22028_s0 + $0x4d0] sm:$0xff]   ;;  %v17104_v60 = vld [vmem:[%s22028_s0 + $0x4d8] sm:$0xff]  }
  0x28   : > { %v17103_v59 = vld [vmem:[%s22028_s0 + $0x710] sm:$0xff]   ;;  %v17105_v61 = vld [vmem:[%s22028_s0 + $0x718] sm:$0xff]   ;;  %v17106_v62 = vld [vmem:[%s22028_s0 + $0x4e0] sm:$0xff]  }
  0x29   : > { %v17107_v63 = vld [vmem:[%s22028_s0 + $0x720] sm:$0xff]   ;;  %v17109_v2 = vld [vmem:[%s22028_s0 + $0x728] sm:$0xff]   ;;  %v17110_v3 = vld [vmem:[%s22028_s0 + $0x4f0] sm:$0xff]  }
  0x2a   : > { %v17111_v4 = vld [vmem:[%s22028_s0 + $0x730] sm:$0xff]   ;;  %v17112_v5 = vld [vmem:[%s22028_s0 + $0x4f8] sm:$0xff]   ;;  %v17114_v7 = vld [vmem:[%s22028_s0 + $0x500] sm:$0xff]  }
  0x2b   : > { %v17113_v6 = vld [vmem:[%s22028_s0 + $0x738] sm:$0xff]   ;;  %v17115_v8 = vld [vmem:[%s22028_s0 + $0x740] sm:$0xff]   ;;  %v17116_v9 = vld [vmem:[%s22028_s0 + $0x508] sm:$0xff]  }
  0x2c   : > { %v17117_v10 = vld [vmem:[%s22028_s0 + $0x748] sm:$0xff]   ;;  %v17118_v11 = vld [vmem:[%s22028_s0 + $0x90] sm:$0xff]  }
  0x2d   : > { %15224 = vmatmul.mubr.msk.bf16.gmra.mrb[8].mxu0 %vm471_vm0, %v17056_v12  ;;  %15264 = vmatmul.mubr.msk.bf16.gmra.mrb[8].mxu1 %vm471_vm0, %v17057_v13  ;;  %v17119_v12 = vld [vmem:[%s22028_s0 + $0x2d0] sm:$0xff]   ;;  %v17120_v13 = vld [vmem:[%s22028_s0 + $0x98] sm:$0xff]  }
  0x2e   : > { %15227 = vmatprep.mubr.msk.bf16.mxu0 %vm471_vm0, %v17058_v14  ;;  %15267 = vmatprep.mubr.msk.bf16.mxu1 %vm471_vm0, %v17059_v15  ;;  %v17121_v14 = vld [vmem:[%s22028_s0 + $0x2d8] sm:$0xff]   ;;  %v17122_v15 = vld [vmem:[%s22028_s0 + $0xa0] sm:$0xff]  }
  0x35   : > { %15228 = vmatmul.mubr.msk.bf16.gmra.mrb[12].mxu0 %vm471_vm0, %v17060_v16  ;;  %15268 = vmatmul.mubr.msk.bf16.gmra.mrb[12].mxu1 %vm471_vm0, %v17061_v17  ;;  %v17123_v16 = vld [vmem:[%s22028_s0 + $0x2e0] sm:$0xff]   ;;  %v17124_v17 = vld [vmem:[%s22028_s0 + $0xa8] sm:$0xff]  }
  0x36   : > { %15231 = vmatprep.mubr.msk.bf16.mxu0 %vm471_vm0, %v17062_v18  ;;  %15271 = vmatprep.mubr.msk.bf16.mxu1 %vm471_vm0, %v17063_v19  ;;  %v17125_v18 = vld [vmem:[%s22028_s0 + $0x2e8] sm:$0xff]  }
  0x37   : > { %v18209_v19 = vld [vmem:[%s22029_s1 + $0x8] sm:$0xff]  }
  0x3d   : > { %15232 = vmatmul.mubr.msk.bf16.gmra.mrb[16].mxu0 %vm471_vm0, %v17064_v20  ;;  %15272 = vmatmul.mubr.msk.bf16.gmra.mrb[16].mxu1 %vm471_vm0, %v17065_v21  ;;  %v17127_v20 = vld [vmem:[%s22028_s0 + $0x2f0] sm:$0xff]   ;;  %v18224_v21 = vld [vmem:[%s22029_s1] sm:$0xff]  }
  0x3e   : > { %15235 = vmatprep.mubr.msk.bf16.mxu0 %vm471_vm0, %v17066_v22  ;;  %15275 = vmatprep.mubr.msk.bf16.mxu1 %vm471_vm0, %v17067_v23  ;;  %v17128_v22 = vld [vmem:[%s22028_s0 + $0xb8] sm:$0xff]  }
  0x3f   : > { %v17129_v23 = vld [vmem:[%s22028_s0 + $0x2f8] sm:$0xff]  }
  0x45   : > { %15236 = vmatmul.mubr.msk.bf16.gmra.mrb[20].mxu0 %vm471_vm0, %v17068_v24  ;;  %15276 = vmatmul.mubr.msk.bf16.gmra.mrb[20].mxu1 %vm471_vm0, %v17069_v25  ;;  %v17130_v24 = vld [vmem:[%s22028_s0 + $0xc0] sm:$0xff]  }
  0x46   : > { %15239 = vmatprep.mubr.msk.bf16.mxu0 %vm471_vm0, %v17070_v26  ;;  %15279 = vmatprep.mubr.msk.bf16.mxu1 %vm471_vm0, %v17071_v27  ;;  %v17131_v25 = vld [vmem:[%s22028_s0 + $0x300] sm:$0xff]   ;;  %v17132_v26 = vld [vmem:[%s22028_s0 + $0xc8] sm:$0xff]  }
  0x47   : > { %v17133_v27 = vld [vmem:[%s22028_s0 + $0x308] sm:$0xff]  }
  0x4d   : > { %15240 = vmatmul.mubr.msk.bf16.gmra.mrb[24].mxu0 %vm471_vm0, %v17072_v28  ;;  %15280 = vmatmul.mubr.msk.bf16.gmra.mrb[24].mxu1 %vm471_vm0, %v17073_v29  ;;  %v17134_v28 = vld [vmem:[%s22028_s0 + $0xd0] sm:$0xff]  }
  0x4e   : > { %15243 = vmatprep.mubr.msk.bf16.mxu0 %vm471_vm0, %v17074_v30  ;;  %15283 = vmatprep.mubr.msk.bf16.mxu1 %vm471_vm0, %v17075_v31  ;;  %v17135_v29 = vld [vmem:[%s22028_s0 + $0x310] sm:$0xff]   ;;  %v17136_v30 = vld [vmem:[%s22028_s0 + $0xd8] sm:$0xff]  }
  0x4f   : > { %v17137_v31 = vld [vmem:[%s22028_s0 + $0x318] sm:$0xff]  }
  0x55   : > { %15244 = vmatmul.mubr.msk.bf16.gmra.mrb[28].mxu0 %vm471_vm0, %v17076_v32  ;;  %15284 = vmatmul.mubr.msk.bf16.gmra.mrb[28].mxu1 %vm471_vm0, %v17077_v33  ;;  %v17138_v32 = vld [vmem:[%s22028_s0 + $0xe0] sm:$0xff]  }
  0x56   : > { %15247 = vmatprep.mubr.msk.bf16.mxu0 %vm471_vm0, %v17078_v34  ;;  %15287 = vmatprep.mubr.msk.bf16.mxu1 %vm471_vm0, %v17079_v35  ;;  %v17139_v33 = vld [vmem:[%s22028_s0 + $0x320] sm:$0xff]   ;;  %v17140_v34 = vld [vmem:[%s22028_s0 + $0xe8] sm:$0xff]  }
  0x57   : > { %v17141_v35 = vld [vmem:[%s22028_s0 + $0x328] sm:$0xff]  }
  0x5d   : > { %15248 = vmatmul.mubr.msk.bf16.gmra.mrb[32].mxu0 %vm471_vm0, %v17080_v36  ;;  %15288 = vmatmul.mubr.msk.bf16.gmra.mrb[32].mxu1 %vm471_vm0, %v17081_v37  ;;  %v17142_v36 = vld [vmem:[%s22028_s0 + $0xf0] sm:$0xff]  }
  0x5e   : > { %15295 = vmatprep.mubr.msk.bf16.mxu0 %vm471_vm0, %v17082_v38  ;;  %15335 = vmatprep.mubr.msk.bf16.mxu1 %vm471_vm0, %v17083_v39  ;;  %v17143_v37 = vld [vmem:[%s22028_s0 + $0x330] sm:$0xff]   ;;  %v17144_v38 = vld [vmem:[%s22028_s0 + $0xf8] sm:$0xff]  }
  0x5f   : > { %v17145_v39 = vld [vmem:[%s22028_s0 + $0x338] sm:$0xff]  }
  0x65   : > { %15296 = vmatmul.mubr.msk.bf16.vlgmr.msra.gmra.mrb[36].mxu0 %vm471_vm0, %v17084_v40  ;;  %15336 = vmatmul.mubr.msk.bf16.vlgmr.msra.gmra.mrb[36].mxu1 %vm471_vm0, %v17085_v41  ;;  %v17146_v40 = vld [vmem:[%s22028_s0 + $0x100] sm:$0xff]  }
  0x66   : > { %15372 = vmatpush3.bf16.msra.mxu0 %v17853_v0  ;;  %15412 = vmatpush3.bf16.msra.mxu1 %v17853_v0  ;;  %v17147_v41 = vld [vmem:[%s22028_s0 + $0x340] sm:$0xff]  }
  0x67   : > { %15299 = vmatprep.mubr.msk.bf16.mxu0 %vm471_vm0, %v17086_v42  ;;  %15339 = vmatprep.mubr.msk.bf16.mxu1 %vm471_vm0, %v17087_v43  ;;  %v17148_v42 = vld [vmem:[%s22028_s0 + $0x108] sm:$0xff]  }
  0x68   : > { %15373 = vmatprep.subr.bf16.mxu0 %v17858_v1  ;;  %15413 = vmatprep.subr.bf16.mxu1 %v17858_v1  ;;  %v17149_v43 = vld [vmem:[%s22028_s0 + $0x348] sm:$0xff]  }
  0x6a   : > { %15374 = vmatpush3.bf16.msra.mxu0 %v17858_v1  ;;  %15414 = vmatpush3.bf16.msra.mxu1 %v17858_v1  ;;  %v17108_v1 = vld [vmem:[%s22028_s0 + $0x4e8] sm:$0xff]  }
  0x6b   : > { %15451 = vmatprep.subr.bf16.mxu0 %v17853_v0  ;;  %15491 = vmatprep.subr.bf16.mxu1 %v17853_v0 }
  0x6d   : > { %15300 = vmatmul.mubr.msk.bf16.gmra.mrb[40].mxu0 %vm471_vm0, %v17088_v44  ;;  %15340 = vmatmul.mubr.msk.bf16.gmra.mrb[40].mxu1 %vm471_vm0, %v17089_v45  ;;  %v17150_v44 = vld [vmem:[%s22028_s0 + $0x110] sm:$0xff]  }
  0x6e   : > { %15303 = vmatprep.mubr.msk.bf16.mxu0 %vm471_vm0, %v17090_v46  ;;  %15343 = vmatprep.mubr.msk.bf16.mxu1 %vm471_vm0, %v17091_v47  ;;  %v17151_v45 = vld [vmem:[%s22028_s0 + $0x350] sm:$0xff]   ;;  %v17152_v46 = vld [vmem:[%s22028_s0 + $0x118] sm:$0xff]  }
  0x6f   : > { %v17153_v47 = vld [vmem:[%s22028_s0 + $0x358] sm:$0xff]  }
  0x75   : > { %15304 = vmatmul.mubr.msk.bf16.gmra.mrb[44].mxu0 %vm471_vm0, %v17092_v48  ;;  %15344 = vmatmul.mubr.msk.bf16.gmra.mrb[44].mxu1 %vm471_vm0, %v17093_v49  ;;  %v17154_v48 = vld [vmem:[%s22028_s0 + $0x510] sm:$0xff]  }
  0x76   : > { %15307 = vmatprep.mubr.msk.bf16.mxu0 %vm471_vm0, %v17094_v50  ;;  %15347 = vmatprep.mubr.msk.bf16.mxu1 %vm471_vm0, %v17095_v51  ;;  %v17155_v49 = vld [vmem:[%s22028_s0 + $0x750] sm:$0xff]   ;;  %v17156_v50 = vld [vmem:[%s22028_s0 + $0x518] sm:$0xff]  }
  0x77   : > { %v17157_v51 = vld [vmem:[%s22028_s0 + $0x758] sm:$0xff]  }
  0x7d   : > { %15308 = vmatmul.mubr.msk.bf16.gmra.mrb[48].mxu0 %vm471_vm0, %v17096_v52  ;;  %15348 = vmatmul.mubr.msk.bf16.gmra.mrb[48].mxu1 %vm471_vm0, %v17097_v53 }
  0x7e   : > { %15311 = vmatprep.mubr.msk.bf16.mxu0 %vm471_vm0, %v17098_v54  ;;  %15351 = vmatprep.mubr.msk.bf16.mxu1 %vm471_vm0, %v17099_v55 }
  0x85   : > { %15312 = vmatmul.mubr.msk.bf16.gmra.mrb[52].mxu0 %vm471_vm0, %v17100_v56  ;;  %15352 = vmatmul.mubr.msk.bf16.gmra.mrb[52].mxu1 %vm471_vm0, %v17101_v57 }
  0x86   : > { %15315 = vmatprep.mubr.msk.bf16.mxu0 %vm471_vm0, %v17102_v58  ;;  %15355 = vmatprep.mubr.msk.bf16.mxu1 %vm471_vm0, %v17103_v59 }
  0x8d   : > { %15316 = vmatmul.mubr.msk.bf16.gmra.mrb[56].mxu0 %vm471_vm0, %v17104_v60  ;;  %15356 = vmatmul.mubr.msk.bf16.gmra.mrb[56].mxu1 %vm471_vm0, %v17105_v61 }
  0x8e   : > { %15319 = vmatprep.mubr.msk.bf16.mxu0 %vm471_vm0, %v17106_v62  ;;  %15359 = vmatprep.mubr.msk.bf16.mxu1 %vm471_vm0, %v17107_v63  ;;  %v17158_v63 = vld [vmem:[%s22028_s0 + $0x520] sm:$0xff]  }
  0x95   : > { %15320 = vmatmul.mubr.msk.bf16.gmra.mrb[60].mxu0 %vm471_vm0, %v17108_v1  ;;  %15360 = vmatmul.mubr.msk.bf16.gmra.mrb[60].mxu1 %vm471_vm0, %v17109_v2  ;;  %v17159_v1 = vld [vmem:[%s22028_s0 + $0x760] sm:$0xff]  }
  0x96   : > { %15323 = vmatprep.mubr.msk.bf16.mxu0 %vm471_vm0, %v17110_v3  ;;  %15363 = vmatprep.mubr.msk.bf16.mxu1 %vm471_vm0, %v17111_v4  ;;  %v17160_v3 = vld [vmem:[%s22028_s0 + $0x528] sm:$0xff]  }
  0x97   : > { %v17161_v4 = vld [vmem:[%s22028_s0 + $0x768] sm:$0xff]  }
  0x9d   : > { %15324 = vmatmul.mubr.msk.bf16.gmra.mrb[64].mxu0 %vm471_vm0, %v17112_v5  ;;  %15364 = vmatmul.mubr.msk.bf16.gmra.mrb[64].mxu1 %vm471_vm0, %v17113_v6 }
  0x9e   : > { %15327 = vmatprep.mubr.msk.bf16.mxu0 %vm471_vm0, %v17114_v7  ;;  %15367 = vmatprep.mubr.msk.bf16.mxu1 %vm471_vm0, %v17115_v8  ;;  %v17186_v7 = vld [vmem:[%s22028_s0 + $0x590] sm:$0xff]  }
  0xa5   : > { %15328 = vmatmul.mubr.msk.bf16.gmra.mrb[68].mxu0 %vm471_vm0, %v17116_v9  ;;  %15368 = vmatmul.mubr.msk.bf16.gmra.mrb[68].mxu1 %vm471_vm0, %v17117_v10  ;;  %v17183_v10 = vld [vmem:[%s22028_s0 + $0x7c0] sm:$0xff]  }
  0xa6   : > { %15375 = vmatprep.mubr.msk.bf16.mxu0 %vm471_vm0, %v17118_v11  ;;  %15415 = vmatprep.mubr.msk.bf16.mxu1 %vm471_vm0, %v17119_v12 }
  0xad   : > { %15376 = vmatmul.mubr.msk.bf16.vlgmr.msra.gmra.mrb[72].mxu0 %vm471_vm0, %v17120_v13  ;;  %15416 = vmatmul.mubr.msk.bf16.vlgmr.msra.gmra.mrb[72].mxu1 %vm471_vm0, %v17121_v14  ;;  %v17162_v13 = vld [vmem:[%s22028_s0 + $0x530] sm:$0xff]  }
  0xae   : > { %15452 = vmatpush3.bf16.msra.mxu0 %v17853_v0  ;;  %15492 = vmatpush3.bf16.msra.mxu1 %v17853_v0  ;;  %v17126_v0 = vld [vmem:[%s22028_s0 + $0xb0] sm:$0xff]  }
  0xaf   : > { %15379 = vmatprep.mubr.msk.bf16.mxu0 %vm471_vm0, %v17122_v15  ;;  %15419 = vmatprep.mubr.msk.bf16.mxu1 %vm471_vm0, %v17123_v16  ;;  %v17163_v14 = vld [vmem:[%s22028_s0 + $0x770] sm:$0xff]  }
  0xb0   : > { %15453 = vmatprep.subr.bf16.mxu0 %v18209_v19  ;;  %15493 = vmatprep.subr.bf16.mxu1 %v18209_v19 }
  0xb2   : > { %15454 = vmatpush3.bf16.msra.mxu0 %v18209_v19  ;;  %15494 = vmatpush3.bf16.msra.mxu1 %v18209_v19 }
  0xb3   : > { %15531 = vmatprep.subr.bf16.mxu0 %v18224_v21  ;;  %15571 = vmatprep.subr.bf16.mxu1 %v18224_v21 }
  0xb5   : > { %15380 = vmatmul.mubr.msk.bf16.gmra.mrb[76].mxu0 %vm471_vm0, %v17124_v17  ;;  %15420 = vmatmul.mubr.msk.bf16.gmra.mrb[76].mxu1 %vm471_vm0, %v17125_v18 }
  0xb6   : > { %15383 = vmatprep.mubr.msk.bf16.mxu0 %vm471_vm0, %v17126_v0  ;;  %15423 = vmatprep.mubr.msk.bf16.mxu1 %vm471_vm0, %v17127_v20  ;;  %v17165_v0 = vld [vmem:[%s22028_s0 + $0x778] sm:$0xff]  }
  0xbd   : > { %15384 = vmatmul.mubr.msk.bf16.gmra.mrb[80].mxu0 %vm471_vm0, %v17128_v22  ;;  %15424 = vmatmul.mubr.msk.bf16.gmra.mrb[80].mxu1 %vm471_vm0, %v17129_v23 }
  0xbe   : > { %15387 = vmatprep.mubr.msk.bf16.mxu0 %vm471_vm0, %v17130_v24  ;;  %15427 = vmatprep.mubr.msk.bf16.mxu1 %vm471_vm0, %v17131_v25 }
  0xc5   : > { %15388 = vmatmul.mubr.msk.bf16.gmra.mrb[84].mxu0 %vm471_vm0, %v17132_v26  ;;  %15428 = vmatmul.mubr.msk.bf16.gmra.mrb[84].mxu1 %vm471_vm0, %v17133_v27 }
  0xc6   : > { %15391 = vmatprep.mubr.msk.bf16.mxu0 %vm471_vm0, %v17134_v28  ;;  %15431 = vmatprep.mubr.msk.bf16.mxu1 %vm471_vm0, %v17135_v29  ;;  %v17166_v28 = vld [vmem:[%s22028_s0 + $0x540] sm:$0xff]  }
  0xc7   : > { %v17167_v29 = vld [vmem:[%s22028_s0 + $0x780] sm:$0xff]  }
  0xcd   : > { %15392 = vmatmul.mubr.msk.bf16.gmra.mrb[88].mxu0 %vm471_vm0, %v17136_v30  ;;  %15432 = vmatmul.mubr.msk.bf16.gmra.mrb[88].mxu1 %vm471_vm0, %v17137_v31 }
  0xce   : > { %15395 = vmatprep.mubr.msk.bf16.mxu0 %vm471_vm0, %v17138_v32  ;;  %15435 = vmatprep.mubr.msk.bf16.mxu1 %vm471_vm0, %v17139_v33 }
  0xd5   : > { %15396 = vmatmul.mubr.msk.bf16.gmra.mrb[92].mxu0 %vm471_vm0, %v17140_v34  ;;  %15436 = vmatmul.mubr.msk.bf16.gmra.mrb[92].mxu1 %vm471_vm0, %v17141_v35  ;;  %v17168_v34 = vld [vmem:[%s22028_s0 + $0x548] sm:$0xff]  }
  0xd6   : > { %15399 = vmatprep.mubr.msk.bf16.mxu0 %vm471_vm0, %v17142_v36  ;;  %15439 = vmatprep.mubr.msk.bf16.mxu1 %vm471_vm0, %v17143_v37  ;;  %v17169_v35 = vld [vmem:[%s22028_s0 + $0x788] sm:$0xff]  }
  0xdd   : > { %15400 = vmatmul.mubr.msk.bf16.gmra.mrb[96].mxu0 %vm471_vm0, %v17144_v38  ;;  %15440 = vmatmul.mubr.msk.bf16.gmra.mrb[96].mxu1 %vm471_vm0, %v17145_v39  ;;  %v17182_v38 = vld [vmem:[%s22028_s0 + $0x580] sm:$0xff]  }
  0xde   : > { %15403 = vmatprep.mubr.msk.bf16.mxu0 %vm471_vm0, %v17146_v40  ;;  %15443 = vmatprep.mubr.msk.bf16.mxu1 %vm471_vm0, %v17147_v41  ;;  %v17179_v41 = vld [vmem:[%s22028_s0 + $0x7b0] sm:$0xff]  }
  0xe5   : > { %15404 = vmatmul.mubr.msk.bf16.gmra.mrb[100].mxu0 %vm471_vm0, %v17148_v42  ;;  %15444 = vmatmul.mubr.msk.bf16.gmra.mrb[100].mxu1 %vm471_vm0, %v17149_v43 }
  0xe6   : > { %15407 = vmatprep.mubr.msk.bf16.mxu0 %vm471_vm0, %v17150_v44  ;;  %15447 = vmatprep.mubr.msk.bf16.mxu1 %vm471_vm0, %v17151_v45  ;;  %v17170_v44 = vld [vmem:[%s22028_s0 + $0x550] sm:$0xff]  }
  0xe7   : > { %v17171_v45 = vld [vmem:[%s22028_s0 + $0x790] sm:$0xff]  }
  0xed   : > { %15408 = vmatmul.mubr.msk.bf16.gmra.mrb[104].mxu0 %vm471_vm0, %v17152_v46  ;;  %15448 = vmatmul.mubr.msk.bf16.gmra.mrb[104].mxu1 %vm471_vm0, %v17153_v47 }
  0xee   : > { %15455 = vmatprep.mubr.msk.bf16.mxu0 %vm471_vm0, %v17154_v48  ;;  %15495 = vmatprep.mubr.msk.bf16.mxu1 %vm471_vm0, %v17155_v49 }
  0xf0   : > { %v18350_v52 = vpop.f32.mrb[0].mxu0  ;;  %v18352_v53 = vpop.f32.mrb[0].mxu1 }
  0xf1   : > { %v18356_v55 = vpop.f32.mrb[1].mxu0  ;;  %v18358_v56 = vpop.f32.mrb[1].mxu1 }
  0xf2   : > { %v18362_v58 = vpop.f32.mrb[2].mxu0  ;;  %v18364_v59 = vpop.f32.mrb[2].mxu1 }
  0xf3   : > { %v18368_v61 = vpop.f32.mrb[3].mxu0  ;;  %v18370_v62 = vpop.f32.mrb[3].mxu1 }
  0xf5   : > { %15456 = vmatmul.mubr.msk.bf16.vlgmr.msra.gmra.mrb[108].mxu0 %vm471_vm0, %v17156_v50  ;;  %15496 = vmatmul.mubr.msk.bf16.vlgmr.msra.gmra.mrb[108].mxu1 %vm471_vm0, %v17157_v51  ;;  %v17172_v50 = vld [vmem:[%s22028_s0 + $0x558] sm:$0xff]  }
  0xf6   : > { %15532 = vmatpush3.bf16.msra.mxu0 %v18224_v21  ;;  %15572 = vmatpush3.bf16.msra.mxu1 %v18224_v21  ;;  %v17173_v51 = vld [vmem:[%s22028_s0 + $0x798] sm:$0xff]  }
  0xf7   : > { %15459 = vmatprep.mubr.msk.bf16.mxu0 %vm471_vm0, %v17158_v63  ;;  %15499 = vmatprep.mubr.msk.bf16.mxu1 %vm471_vm0, %v17159_v1 }
  0xf8   : > { %v18392_v5 = vpop.f32.mrb[4].mxu0  ;;  %v18394_v6 = vpop.f32.mrb[4].mxu1  ;;  %15533 = vmatprep.subr.bf16.mxu0 %v18209_v19  ;;  %15573 = vmatprep.subr.bf16.mxu1 %v18209_v19 }
  0xf9   : > { %v18400_v8 = vpop.f32.mrb[5].mxu0  ;;  %v18402_v9 = vpop.f32.mrb[5].mxu1 }
  0xfa   : > { %v18406_v11 = vpop.f32.mrb[6].mxu0  ;;  %v18408_v12 = vpop.f32.mrb[6].mxu1  ;;  %15534 = vmatpush3.bf16.msra.mxu0 %v18209_v19  ;;  %15574 = vmatpush3.bf16.msra.mxu1 %v18209_v19  ;;  %v17164_v19 = vld [vmem:[%s22028_s0 + $0x538] sm:$0xff]  }
  0xfb   : > { %v18420_v16 = vpop.f32.mrb[7].mxu0  ;;  %v18422_v17 = vpop.f32.mrb[7].mxu1  ;;  %15611 = vmatprep.subr.bf16.mxu0 %v18224_v21  ;;  %15651 = vmatprep.subr.bf16.mxu1 %v18224_v21 }
  0xfd   : > { %15460 = vmatmul.mubr.msk.bf16.gmra.mrb[112].mxu0 %vm471_vm0, %v17160_v3  ;;  %15500 = vmatmul.mubr.msk.bf16.gmra.mrb[112].mxu1 %vm471_vm0, %v17161_v4 }
  0xfe   : > { %15463 = vmatprep.mubr.msk.bf16.mxu0 %vm471_vm0, %v17162_v13  ;;  %15503 = vmatprep.mubr.msk.bf16.mxu1 %vm471_vm0, %v17163_v14 }
 0x100   : > { %v18438_v20 = vpop.f32.mrb[8].mxu0  ;;  %v18440_v21 = vpop.f32.mrb[8].mxu1 }
 0x101   : > { %v18444_v23 = vpop.f32.mrb[9].mxu0  ;;  %v18446_v24 = vpop.f32.mrb[9].mxu1 }
 0x102   : > { %v18450_v26 = vpop.f32.mrb[10].mxu0  ;;  %v18452_v27 = vpop.f32.mrb[10].mxu1 }
 0x103   : > { %v18462_v31 = vpop.f32.mrb[11].mxu0  ;;  %v18464_v32 = vpop.f32.mrb[11].mxu1 }
 0x105   : > { %15464 = vmatmul.mubr.msk.bf16.gmra.mrb[116].mxu0 %vm471_vm0, %v17164_v19  ;;  %15504 = vmatmul.mubr.msk.bf16.gmra.mrb[116].mxu1 %vm471_vm0, %v17165_v0 }
 0x106   : > { %15467 = vmatprep.mubr.msk.bf16.mxu0 %vm471_vm0, %v17166_v28  ;;  %15507 = vmatprep.mubr.msk.bf16.mxu1 %vm471_vm0, %v17167_v29  ;;  %v17174_v28 = vld [vmem:[%s22028_s0 + $0x560] sm:$0xff]  }
 0x107   : > { %v17175_v29 = vld [vmem:[%s22028_s0 + $0x7a0] sm:$0xff]  }
 0x108   : > { %v18478_v36 = vpop.f32.mrb[12].mxu0  ;;  %v18480_v37 = vpop.f32.mrb[12].mxu1 }
 0x109   : > { %v18484_v39 = vpop.f32.mrb[13].mxu0  ;;  %v18486_v40 = vpop.f32.mrb[13].mxu1 }
 0x10a   : > { %v18490_v42 = vpop.f32.mrb[14].mxu0  ;;  %v18492_v43 = vpop.f32.mrb[14].mxu1 }
 0x10b   : > { %v18502_v47 = vpop.f32.mrb[15].mxu0  ;;  %v18504_v48 = vpop.f32.mrb[15].mxu1 }
 0x10d   : > { %15468 = vmatmul.mubr.msk.bf16.gmra.mrb[120].mxu0 %vm471_vm0, %v17168_v34  ;;  %15508 = vmatmul.mubr.msk.bf16.gmra.mrb[120].mxu1 %vm471_vm0, %v17169_v35  ;;  %v17178_v34 = vld [vmem:[%s22028_s0 + $0x570] sm:$0xff]  }
 0x10e   : > { %15471 = vmatprep.mubr.msk.bf16.mxu0 %vm471_vm0, %v17170_v44  ;;  %15511 = vmatprep.mubr.msk.bf16.mxu1 %vm471_vm0, %v17171_v45 }
 0x110   : > { %v18518_v63 = vpop.f32.mrb[16].mxu0  ;;  %v18520_v1 = vpop.f32.mrb[16].mxu1 }
 0x111   : > { %v18524_v4 = vpop.f32.mrb[17].mxu0  ;;  %v18526_v13 = vpop.f32.mrb[17].mxu1 }
 0x112   : > { %v18530_v19 = vpop.f32.mrb[18].mxu0  ;;  %v18532_v0 = vpop.f32.mrb[18].mxu1 }
 0x113   : > { %v18542_v35 = vpop.f32.mrb[19].mxu0  ;;  %v18544_v44 = vpop.f32.mrb[19].mxu1 }
 0x115   : > { %15472 = vmatmul.mubr.msk.bf16.gmra.mrb[124].mxu0 %vm471_vm0, %v17172_v50  ;;  %15512 = vmatmul.mubr.msk.bf16.gmra.mrb[124].mxu1 %vm471_vm0, %v17173_v51  ;;  %v17176_v50 = vld [vmem:[%s22028_s0 + $0x568] sm:$0xff]  }
 0x116   : > { %15475 = vmatprep.mubr.msk.bf16.mxu0 %vm471_vm0, %v17174_v28  ;;  %15515 = vmatprep.mubr.msk.bf16.mxu1 %vm471_vm0, %v17175_v29  ;;  %v17177_v51 = vld [vmem:[%s22028_s0 + $0x7a8] sm:$0xff]  }
 0x118   : > { %v18552_v14 = vpop.f32.mrb[20].mxu0  ;;  %v18554_v3 = vpop.f32.mrb[20].mxu1 }
 0x119   : > { %v18558_v49 = vpop.f32.mrb[21].mxu0  ;;  %v18560_v46 = vpop.f32.mrb[21].mxu1 }
 0x11a   : > { %v18570_v29 = vpop.f32.mrb[22].mxu0  ;;  %v18572_v45 = vpop.f32.mrb[22].mxu1 }
 0x11b   : > { %v18582_v33 = vpop.f32.mrb[23].mxu0  ;;  %v18584_v30 = vpop.f32.mrb[23].mxu1 }
 0x11c   : > { %22140 = vst [vmem:[#allocation4_spill] sm:$0xff] %v18582_v33  ;;  %22141 = vst [vmem:[#allocation5_spill] sm:$0xff] %v18584_v30 }
 0x11d   : > { %15476 = vmatmul.mubr.msk.bf16.gmra.mrb[128].mxu0 %vm471_vm0, %v17176_v50  ;;  %15516 = vmatmul.mubr.msk.bf16.gmra.mrb[128].mxu1 %vm471_vm0, %v17177_v51  ;;  %v17180_v50 = vld [vmem:[%s22028_s0 + $0x578] sm:$0xff]  }
 0x11e   : > { %15479 = vmatprep.mubr.msk.bf16.mxu0 %vm471_vm0, %v17178_v34  ;;  %15519 = vmatprep.mubr.msk.bf16.mxu1 %vm471_vm0, %v17179_v41  ;;  %v17181_v34 = vld [vmem:[%s22028_s0 + $0x7b8] sm:$0xff]  }
 0x120   : > { %v18592_v25 = vpop.f32.mrb[24].mxu0  ;;  %v18594_v22 = vpop.f32.mrb[24].mxu1 }
 0x121   : > { %22142 = vst [vmem:[#allocation6_spill] sm:$0xff] %v18592_v25  ;;  %22143 = vst [vmem:[#allocation7_spill] sm:$0xff] %v18594_v22  ;;  %v18598_v18 = vpop.f32.mrb[25].mxu0  ;;  %v18600_v15 = vpop.f32.mrb[25].mxu1  ;;  %v17194_v22 = vld [vmem:[%s22028_s0 + $0x130] sm:$0xff]  }
 0x122   : > { %22144 = vst [vmem:[#allocation8_spill] sm:$0xff] %v18598_v18  ;;  %22145 = vst [vmem:[#allocation9_spill] sm:$0xff] %v18600_v15  ;;  %v18610_v51 = vpop.f32.mrb[26].mxu0  ;;  %v18612_v28 = vpop.f32.mrb[26].mxu1  ;;  %v17195_v25 = vld [vmem:[%s22028_s0 + $0x370] sm:$0xff]  }
 0x123   : > { %22146 = vst [vmem:[#allocation10_spill] sm:$0xff] %v18610_v51  ;;  %22147 = vst [vmem:[#allocation11_spill] sm:$0xff] %v18612_v28  ;;  %v18622_v2 = vpop.f32.mrb[27].mxu0  ;;  %v18624_v60 = vpop.f32.mrb[27].mxu1 }
 0x124   : > { %22148 = vst [vmem:[#allocation12_spill] sm:$0xff] %v18622_v2  ;;  %22149 = vst [vmem:[#allocation13_spill] sm:$0xff] %v18624_v60 }
 0x125   : > { %15480 = vmatmul.mubr.msk.bf16.gmra.mrb[132].mxu0 %vm471_vm0, %v17180_v50  ;;  %15520 = vmatmul.mubr.msk.bf16.gmra.mrb[132].mxu1 %vm471_vm0, %v17181_v34  ;;  %v17184_v50 = vld [vmem:[%s22028_s0 + $0x588] sm:$0xff]  }
 0x126   : > { %15483 = vmatprep.mubr.msk.bf16.mxu0 %vm471_vm0, %v17182_v38  ;;  %15523 = vmatprep.mubr.msk.bf16.mxu1 %vm471_vm0, %v17183_v10  ;;  %v17185_v38 = vld [vmem:[%s22028_s0 + $0x7c8] sm:$0xff]  }
 0x128   : > { %v18632_v57 = vpop.f32.mrb[28].mxu0  ;;  %v18634_v54 = vpop.f32.mrb[28].mxu1 }
 0x129   : > { %22150 = vst [vmem:[#allocation14_spill] sm:$0xff] %v18632_v57  ;;  %22151 = vst [vmem:[#allocation15_spill] sm:$0xff] %v18634_v54  ;;  %v18638_v28 = vpop.f32.mrb[29].mxu0  ;;  %v18640_v51 = vpop.f32.mrb[29].mxu1  ;;  %v17187_v54 = vld [vmem:[%s22028_s0 + $0x7d0] sm:$0xff]   ;;  %v17190_v57 = vld [vmem:[%s22028_s0 + $0x120] sm:$0xff]  }
 0x12a   : > { %22152 = vst [vmem:[#allocation16_spill] sm:$0xff] %v18638_v28  ;;  %22153 = vst [vmem:[#allocation17_spill] sm:$0xff] %v18640_v51  ;;  %v18650_v34 = vpop.f32.mrb[30].mxu0  ;;  %v18652_v41 = vpop.f32.mrb[30].mxu1 }
 0x12b   : > { %22154 = vst [vmem:[#allocation18_spill] sm:$0xff] %v18650_v34  ;;  %22155 = vst [vmem:[#allocation19_spill] sm:$0xff] %v18652_v41  ;;  %v18662_v60 = vpop.f32.mrb[31].mxu0  ;;  %v18664_v2 = vpop.f32.mrb[31].mxu1 }
 0x12c   : > { %22156 = vst [vmem:[#allocation20_spill] sm:$0xff] %v18662_v60  ;;  %22157 = vst [vmem:[#allocation21_spill] sm:$0xff] %v18664_v2 }
 0x12d   : > { %15484 = vmatmul.mubr.msk.bf16.gmra.mrb[136].mxu0 %vm471_vm0, %v17184_v50  ;;  %15524 = vmatmul.mubr.msk.bf16.gmra.mrb[136].mxu1 %vm471_vm0, %v17185_v38  ;;  %v17188_v50 = vld [vmem:[%s22028_s0 + $0x598] sm:$0xff]  }
 0x12e   : > { %15487 = vmatprep.mubr.msk.bf16.mxu0 %vm471_vm0, %v17186_v7  ;;  %15527 = vmatprep.mubr.msk.bf16.mxu1 %vm471_vm0, %v17187_v54  ;;  %v17189_v7 = vld [vmem:[%s22028_s0 + $0x7d8] sm:$0xff]   ;;  %v17193_v54 = vld [vmem:[%s22028_s0 + $0x368] sm:$0xff]  }
 0x130   : > { %v18672_v51 = vpop.f32.mrb[32].mxu0  ;;  %v18674_v28 = vpop.f32.mrb[32].mxu1 }
 0x131   : > { %22158 = vst [vmem:[#allocation22_spill] sm:$0xff] %v18672_v51  ;;  %22159 = vst [vmem:[#allocation23_spill] sm:$0xff] %v18674_v28  ;;  %v18678_v41 = vpop.f32.mrb[33].mxu0  ;;  %v18680_v34 = vpop.f32.mrb[33].mxu1  ;;  %v17191_v28 = vld [vmem:[%s22028_s0 + $0x360] sm:$0xff]  }
 0x132   : > { %22160 = vst [vmem:[#allocation24_spill] sm:$0xff] %v18678_v41  ;;  %22161 = vst [vmem:[#allocation25_spill] sm:$0xff] %v18680_v34  ;;  %v18690_v38 = vpop.f32.mrb[34].mxu0  ;;  %v18692_v10 = vpop.f32.mrb[34].mxu1 }
 0x133   : > { %22162 = vst [vmem:[#allocation26_spill] sm:$0xff] %v18690_v38  ;;  %22163 = vst [vmem:[#allocation27_spill] sm:$0xff] %v18692_v10  ;;  %v18702_v2 = vpop.f32.mrb[35].mxu0  ;;  %v18704_v60 = vpop.f32.mrb[35].mxu1  ;;  %v17192_v10 = vld [vmem:[%s22028_s0 + $0x128] sm:$0xff]  }
 0x134   : > { %22164 = vst [vmem:[#allocation28_spill] sm:$0xff] %v18702_v2  ;;  %22165 = vst [vmem:[#allocation29_spill] sm:$0xff] %v18704_v60 }
 0x135   : > { %15488 = vmatmul.mubr.msk.bf16.gmra.mrb[140].mxu0 %vm471_vm0, %v17188_v50  ;;  %15528 = vmatmul.mubr.msk.bf16.gmra.mrb[140].mxu1 %vm471_vm0, %v17189_v7  ;;  %v18721_v50 = vld [vmem:[%s22030_s2] ss:$0 sm:$0xff] }
 0x136   : > { %15535 = vmatprep.mubr.msk.bf16.mxu0 %vm471_vm0, %v17190_v57  ;;  %15575 = vmatprep.mubr.msk.bf16.mxu1 %vm471_vm0, %v17191_v28 }
 0x138   : > { %v15297_v34 = vpop.f32.mrb[36].mxu0  ;;  %v15337_v41 = vpop.f32.mrb[36].mxu1 }
 0x139   : > { %v1812_v15 = vmax.f32 %v15297_v34, %v15337_v41  ;;  %v1310_v18 = vpop.f32.mrb[37].mxu0  ;;  %v1667_v51 = vpop.f32.mrb[37].mxu1  ;;  %v22166_v41 = vmax.f32 %v18350_v52, %v18352_v53  ;;  %v22168_v52 = vmax.f32 %v18362_v58, %v18364_v59 }
 0x13a   : > { %v1810_v57 = vmax.f32 %v1310_v18, %v1667_v51  ;;  %v15298_v28 = vpop.f32.mrb[38].mxu0  ;;  %v15338_v7 = vpop.f32.mrb[38].mxu1  ;;  %v22167_v18 = vmax.f32 %v18356_v55, %v18358_v56  ;;  %v18748_v55 = vld [vmem:[%s22029_s1] sm:$0xff]  }
 0x13b   : > { %v1848_v34 = vmax.f32 %v22166_v41, %v1812_v15  ;;  %v1813_v60 = vmax.f32 %v15298_v28, %v15338_v7  ;;  %v1313_v2 = vpop.f32.mrb[39].mxu0  ;;  %v1670_v38 = vpop.f32.mrb[39].mxu1  ;;  %v22169_v28 = vmax.f32 %v18368_v61, %v18370_v62 }
 0x13c   : > { %v1846_v51 = vmax.f32 %v22167_v18, %v1810_v57  ;;  %v1811_v30 = vmax.f32 %v1313_v2, %v1670_v38  ;;  %v18759_v2 = vld [vmem:[%s22029_s1 + $0x8] sm:$0xff]   ;;  %v17198_v18 = vld [vmem:[%s22028_s0 + $0x140] sm:$0xff]  }
 0x13d   : > { %v1890_v33 = vadd.f32 %v18721_v50, %v1848_v34  ;;  %v1849_v53 = vmax.f32 %v22168_v52, %v1813_v60  ;;  %15536 = vmatmul.mubr.msk.bf16.vlgmr.msra.gmra.mrb[144].mxu0 %vm471_vm0, %v17192_v10  ;;  %15576 = vmatmul.mubr.msk.bf16.vlgmr.msra.gmra.mrb[144].mxu1 %vm471_vm0, %v17193_v54  ;;  %v17197_v54 = vld [vmem:[%s22028_s0 + $0x378] sm:$0xff]   ;;  %v22170_v52 = vmax.f32 %v18392_v5, %v18394_v6 }
 0x13e   : > { %v1888_v15 = vadd.f32 %v18721_v50, %v1846_v51  ;;  %v1847_v7 = vmax.f32 %v22169_v28, %v1811_v30  ;;  %15612 = vmatpush3.bf16.msra.mxu0 %v18748_v55  ;;  %15652 = vmatpush3.bf16.msra.mxu1 %v18748_v55  ;;  %v17199_v51 = vld [vmem:[%s22028_s0 + $0x380] sm:$0xff]  }
 0x13f   : > { %v1926_v56 = vmax.f32 %v1890_v33, 0.0  ;;  %v1891_v58 = vadd.f32 %v18721_v50, %v1849_v53  ;;  %15539 = vmatprep.mubr.msk.bf16.mxu0 %vm471_vm0, %v17194_v22  ;;  %15579 = vmatprep.mubr.msk.bf16.mxu1 %vm471_vm0, %v17195_v25  ;;  %v17196_v25 = vld [vmem:[%s22028_s0 + $0x138] sm:$0xff]  }
 0x140   : > { %v1924_v59 = vmax.f32 %v1888_v15, 0.0  ;;  %v1889_v60 = vadd.f32 %v18721_v50, %v1847_v7  ;;  %v15301_v61 = vpop.f32.mrb[40].mxu0  ;;  %v15341_v62 = vpop.f32.mrb[40].mxu1  ;;  %15613 = vmatprep.subr.bf16.mxu0 %v18759_v2  ;;  %15653 = vmatprep.subr.bf16.mxu1 %v18759_v2 }
 0x141   : > { %1962 = vst [vmem:[#allocation2 + $0x10] sm:$0xff] %v1926_v56  ;;  %v1927_v30 = vmax.f32 %v1891_v58, 0.0  ;;  %v1816_v33 = vmax.f32 %v15301_v61, %v15341_v62  ;;  %v1326_v22 = vpop.f32.mrb[41].mxu0  ;;  %v1683_v10 = vpop.f32.mrb[41].mxu1  ;;  %v22171_v56 = vmax.f32 %v18400_v8, %v18402_v9  ;;  %v22172_v61 = vmax.f32 %v18406_v11, %v18408_v12 }
 0x142   : > { %1960 = vst [vmem:[#allocation2] sm:$0xff] %v1924_v59  ;;  %v1925_v38 = vmax.f32 %v1889_v60, 0.0  ;;  %v1814_v57 = vmax.f32 %v1326_v22, %v1683_v10  ;;  %v15302_v41 = vpop.f32.mrb[42].mxu0  ;;  %v15342_v34 = vpop.f32.mrb[42].mxu1  ;;  %15614 = vmatpush3.bf16.msra.mxu0 %v18759_v2  ;;  %15654 = vmatpush3.bf16.msra.mxu1 %v18759_v2  ;;  %v22173_v62 = vmax.f32 %v18420_v16, %v18422_v17  ;;  %v17200_v16 = vld [vmem:[%s22028_s0 + $0x148] sm:$0xff]  }
 0x143   : > { %1963 = vst [vmem:[#allocation2 + $0x18] sm:$0xff] %v1927_v30  ;;  %v1852_v53 = vmax.f32 %v22170_v52, %v1816_v33  ;;  %v1817_v15 = vmax.f32 %v15302_v41, %v15342_v34  ;;  %v1329_v28 = vpop.f32.mrb[43].mxu0  ;;  %v1686_v7 = vpop.f32.mrb[43].mxu1  ;;  %15691 = vmatprep.subr.bf16.mxu0 %v18748_v55  ;;  %15731 = vmatprep.subr.bf16.mxu1 %v18748_v55  ;;  %v17201_v17 = vld [vmem:[%s22028_s0 + $0x388] sm:$0xff]   ;;  %v17203_v52 = vld [vmem:[%s22028_s0 + $0x390] sm:$0xff]  }
 0x144   : > { %1961 = vst [vmem:[#allocation2 + $0x8] sm:$0xff] %v1925_v38  ;;  %v1850_v58 = vmax.f32 %v22171_v56, %v1814_v57  ;;  %v1815_v59 = vmax.f32 %v1329_v28, %v1686_v7 }
 0x145   : > { %v1894_v60 = vadd.f32 %v18721_v50, %v1852_v53  ;;  %v1853_v5 = vmax.f32 %v22172_v61, %v1817_v15  ;;  %15540 = vmatmul.mubr.msk.bf16.gmra.mrb[148].mxu0 %vm471_vm0, %v17196_v25  ;;  %15580 = vmatmul.mubr.msk.bf16.gmra.mrb[148].mxu1 %vm471_vm0, %v17197_v54  ;;  %v22174_v53 = vmax.f32 %v18438_v20, %v18440_v21 }
 0x146   : > { %v1892_v6 = vadd.f32 %v18721_v50, %v1850_v58  ;;  %v1851_v30 = vmax.f32 %v22173_v62, %v1815_v59  ;;  %15543 = vmatprep.mubr.msk.bf16.mxu0 %vm471_vm0, %v17198_v18  ;;  %15583 = vmatprep.mubr.msk.bf16.mxu1 %vm471_vm0, %v17199_v51  ;;  %v17202_v51 = vld [vmem:[%s22028_s0 + $0x150] sm:$0xff]   ;;  %v22175_v58 = vmax.f32 %v18444_v23, %v18446_v24 }
 0x147   : > { %v1930_v8 = vmax.f32 %v1894_v60, 0.0  ;;  %v1895_v9 = vadd.f32 %v18721_v50, %v1853_v5  ;;  %v22176_v5 = vmax.f32 %v18450_v26, %v18452_v27  ;;  %v22177_v21 = vmax.f32 %v18462_v31, %v18464_v32  ;;  %v17204_v31 = vld [vmem:[%s22028_s0 + $0x158] sm:$0xff]  }
 0x148   : > { %v1928_v33 = vmax.f32 %v1892_v6, 0.0  ;;  %v1893_v11 = vadd.f32 %v18721_v50, %v1851_v30  ;;  %v15305_v12 = vpop.f32.mrb[44].mxu0  ;;  %v15345_v22 = vpop.f32.mrb[44].mxu1  ;;  %v17205_v32 = vld [vmem:[%s22028_s0 + $0x398] sm:$0xff]  }
 0x149   : > { %1966 = vst [vmem:[#allocation2 + $0x30] sm:$0xff] %v1930_v8  ;;  %v1931_v10 = vmax.f32 %v1895_v9, 0.0  ;;  %v1820_v25 = vmax.f32 %v15305_v12, %v15345_v22  ;;  %v1342_v54 = vpop.f32.mrb[45].mxu0  ;;  %v1699_v38 = vpop.f32.mrb[45].mxu1 }
 0x14a   : > { %1964 = vst [vmem:[#allocation2 + $0x20] sm:$0xff] %v1928_v33  ;;  %v1929_v57 = vmax.f32 %v1893_v11, 0.0  ;;  %v1818_v41 = vmax.f32 %v1342_v54, %v1699_v38  ;;  %v15306_v34 = vpop.f32.mrb[46].mxu0  ;;  %v15346_v18 = vpop.f32.mrb[46].mxu1  ;;  %v17206_v38 = vld [vmem:[%s22028_s0 + $0x160] sm:$0xff]  }
 0x14b   : > { %1967 = vst [vmem:[#allocation2 + $0x38] sm:$0xff] %v1931_v10  ;;  %v1856_v15 = vmax.f32 %v22174_v53, %v1820_v25  ;;  %v1821_v28 = vmax.f32 %v15306_v34, %v15346_v18  ;;  %v1345_v7 = vpop.f32.mrb[47].mxu0  ;;  %v1702_v56 = vpop.f32.mrb[47].mxu1 }
 0x14c   : > { %1965 = vst [vmem:[#allocation2 + $0x28] sm:$0xff] %v1929_v57  ;;  %v1854_v59 = vmax.f32 %v22175_v58, %v1818_v41  ;;  %v1819_v60 = vmax.f32 %v1345_v7, %v1702_v56 }
 0x14d   : > { %v1898_v61 = vadd.f32 %v18721_v50, %v1856_v15  ;;  %v1857_v6 = vmax.f32 %v22176_v5, %v1821_v28  ;;  %15544 = vmatmul.mubr.msk.bf16.gmra.mrb[152].mxu0 %vm471_vm0, %v17200_v16  ;;  %15584 = vmatmul.mubr.msk.bf16.gmra.mrb[152].mxu1 %vm471_vm0, %v17201_v17  ;;  %v17207_v16 = vld [vmem:[%s22028_s0 + $0x3a0] sm:$0xff]   ;;  %v22178_v17 = vmax.f32 %v18478_v36, %v18480_v37 }
 0x14e   : > { %v1896_v20 = vadd.f32 %v18721_v50, %v1854_v59  ;;  %v1855_v62 = vmax.f32 %v22177_v21, %v1819_v60  ;;  %15547 = vmatprep.mubr.msk.bf16.mxu0 %vm471_vm0, %v17202_v51  ;;  %15587 = vmatprep.mubr.msk.bf16.mxu1 %vm471_vm0, %v17203_v52  ;;  %v22179_v51 = vmax.f32 %v18484_v39, %v18486_v40 }
 0x14f   : > { %v1934_v23 = vmax.f32 %v1898_v61, 0.0  ;;  %v1899_v24 = vadd.f32 %v18721_v50, %v1857_v6  ;;  %v22180_v28 = vmax.f32 %v18490_v42, %v18492_v43  ;;  %v22181_v37 = vmax.f32 %v18502_v47, %v18504_v48  ;;  %v17208_v47 = vld [vmem:[%s22028_s0 + $0x168] sm:$0xff]  }
 0x150   : > { %v1932_v30 = vmax.f32 %v1896_v20, 0.0  ;;  %v1897_v26 = vadd.f32 %v18721_v50, %v1855_v62  ;;  %v15309_v27 = vpop.f32.mrb[48].mxu0  ;;  %v15349_v8 = vpop.f32.mrb[48].mxu1  ;;  %v17209_v48 = vld [vmem:[%s22028_s0 + $0x3a8] sm:$0xff]  }
 0x151   : > { %1970 = vst [vmem:[#allocation2 + $0x50] sm:$0xff] %v1934_v23  ;;  %v1935_v9 = vmax.f32 %v1899_v24, 0.0  ;;  %v1824_v33 = vmax.f32 %v15309_v27, %v15349_v8  ;;  %v1358_v11 = vpop.f32.mrb[49].mxu0  ;;  %v1715_v12 = vpop.f32.mrb[49].mxu1  ;;  %v17210_v24 = vld [vmem:[%s22028_s0 + $0x170] sm:$0xff]  }
 0x152   : > { %1968 = vst [vmem:[#allocation2 + $0x40] sm:$0xff] %v1932_v30  ;;  %v1933_v22 = vmax.f32 %v1897_v26, 0.0  ;;  %v1822_v10 = vmax.f32 %v1358_v11, %v1715_v12  ;;  %v15310_v25 = vpop.f32.mrb[50].mxu0  ;;  %v15350_v54 = vpop.f32.mrb[50].mxu1  ;;  %v17211_v30 = vld [vmem:[%s22028_s0 + $0x3b0] sm:$0xff]   ;;  %v22182_v26 = vmax.f32 %v18518_v63, %v18520_v1  ;;  %v22183_v11 = vmax.f32 %v18524_v4, %v18526_v13 }
 0x153   : > { %1971 = vst [vmem:[#allocation2 + $0x58] sm:$0xff] %v1935_v9  ;;  %v1860_v57 = vmax.f32 %v22178_v17, %v1824_v33  ;;  %v1825_v41 = vmax.f32 %v15310_v25, %v15350_v54  ;;  %v1361_v34 = vpop.f32.mrb[51].mxu0  ;;  %v1718_v18 = vpop.f32.mrb[51].mxu1  ;;  %v22185_v1 = vmax.f32 %v18542_v35, %v18544_v44  ;;  %v17212_v35 = vld [vmem:[%s22028_s0 + $0x178] sm:$0xff]  }
 0x154   : > { %1969 = vst [vmem:[#allocation2 + $0x48] sm:$0xff] %v1933_v22  ;;  %v1858_v52 = vmax.f32 %v22179_v51, %v1822_v10  ;;  %v1823_v53 = vmax.f32 %v1361_v34, %v1718_v18  ;;  %v22184_v22 = vmax.f32 %v18530_v19, %v18532_v0  ;;  %v17213_v44 = vld [vmem:[%s22028_s0 + $0x3b8] sm:$0xff]  }
 0x155   : > { %v1902_v15 = vadd.f32 %v18721_v50, %v1860_v57  ;;  %v1861_v7 = vmax.f32 %v22180_v28, %v1825_v41  ;;  %15548 = vmatmul.mubr.msk.bf16.gmra.mrb[156].mxu0 %vm471_vm0, %v17204_v31  ;;  %15588 = vmatmul.mubr.msk.bf16.gmra.mrb[156].mxu1 %vm471_vm0, %v17205_v32  ;;  %v22186_v28 = vmax.f32 %v18552_v14, %v18554_v3  ;;  %v22189_v14 = vld [vmem:[#allocation4_spill] sm:$0xff] }
 0x156   : > { %v1900_v36 = vadd.f32 %v18721_v50, %v1858_v52  ;;  %v1859_v56 = vmax.f32 %v22181_v37, %v1823_v53  ;;  %15551 = vmatprep.mubr.msk.bf16.mxu0 %vm471_vm0, %v17206_v38  ;;  %15591 = vmatprep.mubr.msk.bf16.mxu1 %vm471_vm0, %v17207_v16  ;;  %v17214_v53 = vld [vmem:[%s22028_s0 + $0x180] sm:$0xff]  }
 0x157   : > { %v1938_v39 = vmax.f32 %v1902_v15, 0.0  ;;  %v1903_v40 = vadd.f32 %v18721_v50, %v1861_v7  ;;  %v17215_v15 = vld [vmem:[%s22028_s0 + $0x3c0] sm:$0xff]  }
 0x158   : > { %v1936_v58 = vmax.f32 %v1900_v36, 0.0  ;;  %v1901_v42 = vadd.f32 %v18721_v50, %v1859_v56  ;;  %v15313_v43 = vpop.f32.mrb[52].mxu0  ;;  %v15353_v59 = vpop.f32.mrb[52].mxu1 }
 0x159   : > { %1974 = vst [vmem:[#allocation2 + $0x70] sm:$0xff] %v1938_v39  ;;  %v1939_v60 = vmax.f32 %v1903_v40, 0.0  ;;  %v1828_v61 = vmax.f32 %v15313_v43, %v15353_v59  ;;  %v1374_v5 = vpop.f32.mrb[53].mxu0  ;;  %v1731_v6 = vpop.f32.mrb[53].mxu1  ;;  %v22187_v39 = vmax.f32 %v18558_v49, %v18560_v46  ;;  %v22188_v43 = vmax.f32 %v18570_v29, %v18572_v45 }
 0x15a   : > { %1972 = vst [vmem:[#allocation2 + $0x60] sm:$0xff] %v1936_v58  ;;  %v1937_v20 = vmax.f32 %v1901_v42, 0.0  ;;  %v1826_v21 = vmax.f32 %v1374_v5, %v1731_v6  ;;  %v15314_v62 = vpop.f32.mrb[54].mxu0  ;;  %v15354_v23 = vpop.f32.mrb[54].mxu1 }
 0x15b   : > { %1975 = vst [vmem:[#allocation2 + $0x78] sm:$0xff] %v1939_v60  ;;  %v1864_v27 = vmax.f32 %v22182_v26, %v1828_v61  ;;  %v1829_v8 = vmax.f32 %v15314_v62, %v15354_v23  ;;  %v1377_v9 = vpop.f32.mrb[55].mxu0  ;;  %v1734_v33 = vpop.f32.mrb[55].mxu1  ;;  %v22190_v60 = vld [vmem:[#allocation5_spill] sm:$0xff]  ;;  %v17216_v23 = vld [vmem:[%s22028_s0 + $0x188] sm:$0xff]  }
 0x15c   : > { %1973 = vst [vmem:[#allocation2 + $0x68] sm:$0xff] %v1937_v20  ;;  %v1862_v12 = vmax.f32 %v22183_v11, %v1826_v21  ;;  %v1827_v31 = vmax.f32 %v1377_v9, %v1734_v33  ;;  %v22191_v61 = vmax.f32 %v22189_v14, %v22190_v60  ;;  %v17218_v9 = vld [vmem:[%s22028_s0 + $0x190] sm:$0xff]   ;;  %v22192_v11 = vld [vmem:[#allocation6_spill] sm:$0xff] }
 0x15d   : > { %v1906_v32 = vadd.f32 %v18721_v50, %v1864_v27  ;;  %v1865_v10 = vmax.f32 %v22184_v22, %v1829_v8  ;;  %15552 = vmatmul.mubr.msk.bf16.gmra.mrb[160].mxu0 %vm471_vm0, %v17208_v47  ;;  %15592 = vmatmul.mubr.msk.bf16.gmra.mrb[160].mxu1 %vm471_vm0, %v17209_v48  ;;  %v17219_v33 = vld [vmem:[%s22028_s0 + $0x3d0] sm:$0xff]   ;;  %v17223_v14 = vld [vmem:[%s22028_s0 + $0x3e0] sm:$0xff]  }
 0x15e   : > { %v1904_v63 = vadd.f32 %v18721_v50, %v1862_v12  ;;  %v1863_v25 = vmax.f32 %v22185_v1, %v1827_v31  ;;  %15555 = vmatprep.mubr.msk.bf16.mxu0 %vm471_vm0, %v17210_v24  ;;  %15595 = vmatprep.mubr.msk.bf16.mxu1 %vm471_vm0, %v17211_v30  ;;  %v17217_v24 = vld [vmem:[%s22028_s0 + $0x3c8] sm:$0xff]   ;;  %v22195_v1 = vld [vmem:[#allocation8_spill] sm:$0xff]  ;;  %v22204_v60 = vld [vmem:[#allocation14_spill] sm:$0xff] }
 0x15f   : > { %v1942_v4 = vmax.f32 %v1906_v32, 0.0  ;;  %v1907_v13 = vadd.f32 %v18721_v50, %v1865_v10  ;;  %v22193_v12 = vld [vmem:[#allocation7_spill] sm:$0xff] }
 0x160   : > { %v1940_v54 = vmax.f32 %v1904_v63, 0.0  ;;  %v1905_v19 = vadd.f32 %v18721_v50, %v1863_v25  ;;  %v15317_v0 = vpop.f32.mrb[56].mxu0  ;;  %v15357_v38 = vpop.f32.mrb[56].mxu1  ;;  %v22194_v31 = vmax.f32 %v22192_v11, %v22193_v12  ;;  %v22196_v25 = vld [vmem:[#allocation9_spill] sm:$0xff] }
 0x161   : > { %1978 = vst [vmem:[#allocation2 + $0x90] sm:$0xff] %v1942_v4  ;;  %v1943_v16 = vmax.f32 %v1907_v13, 0.0  ;;  %v1832_v17 = vmax.f32 %v15317_v0, %v15357_v38  ;;  %v1390_v57 = vpop.f32.mrb[57].mxu0  ;;  %v1747_v41 = vpop.f32.mrb[57].mxu1  ;;  %v22197_v4 = vmax.f32 %v22195_v1, %v22196_v25  ;;  %v22198_v0 = vld [vmem:[#allocation10_spill] sm:$0xff]  ;;  %v22199_v38 = vld [vmem:[#allocation11_spill] sm:$0xff] }
 0x162   : > { %1976 = vst [vmem:[#allocation2 + $0x80] sm:$0xff] %v1940_v54  ;;  %v1941_v34 = vmax.f32 %v1905_v19, 0.0  ;;  %v1830_v18 = vmax.f32 %v1390_v57, %v1747_v41  ;;  %v15318_v51 = vpop.f32.mrb[58].mxu0  ;;  %v15358_v52 = vpop.f32.mrb[58].mxu1  ;;  %v22201_v41 = vld [vmem:[#allocation12_spill] sm:$0xff] }
 0x163   : > { %1979 = vst [vmem:[#allocation2 + $0x98] sm:$0xff] %v1943_v16  ;;  %v1868_v7 = vmax.f32 %v22186_v28, %v1832_v17  ;;  %v1833_v36 = vmax.f32 %v15318_v51, %v15358_v52  ;;  %v1393_v37 = vpop.f32.mrb[59].mxu0  ;;  %v1750_v56 = vpop.f32.mrb[59].mxu1  ;;  %v22200_v16 = vmax.f32 %v22198_v0, %v22199_v38 }
 0x164   : > { %1977 = vst [vmem:[#allocation2 + $0x88] sm:$0xff] %v1941_v34  ;;  %v1866_v40 = vmax.f32 %v22187_v39, %v1830_v18  ;;  %v1831_v58 = vmax.f32 %v1393_v37, %v1750_v56  ;;  %v17220_v39 = vld [vmem:[%s22028_s0 + $0x198] sm:$0xff]  }
 0x165   : > { %v1910_v42 = vadd.f32 %v18721_v50, %v1868_v7  ;;  %v1869_v59 = vmax.f32 %v22188_v43, %v1833_v36  ;;  %15556 = vmatmul.mubr.msk.bf16.gmra.mrb[164].mxu0 %vm471_vm0, %v17212_v35  ;;  %15596 = vmatmul.mubr.msk.bf16.gmra.mrb[164].mxu1 %vm471_vm0, %v17213_v44  ;;  %v22202_v35 = vld [vmem:[#allocation13_spill] sm:$0xff] }
 0x166   : > { %v1908_v3 = vadd.f32 %v18721_v50, %v1866_v40  ;;  %v1867_v5 = vmax.f32 %v22191_v61, %v1831_v58  ;;  %15559 = vmatprep.mubr.msk.bf16.mxu0 %vm471_vm0, %v17214_v53  ;;  %15599 = vmatprep.mubr.msk.bf16.mxu1 %vm471_vm0, %v17215_v15  ;;  %v22203_v44 = vmax.f32 %v22201_v41, %v22202_v35  ;;  %v17221_v40 = vld [vmem:[%s22028_s0 + $0x3d8] sm:$0xff]   ;;  %v22205_v61 = vld [vmem:[#allocation15_spill] sm:$0xff]  ;;  %v17227_v41 = vld [vmem:[%s22028_s0 + $0x7e0] sm:$0xff]  }
 0x167   : > { %v1946_v46 = vmax.f32 %v1910_v42, 0.0  ;;  %v1911_v49 = vadd.f32 %v18721_v50, %v1869_v59  ;;  %v22216_v35 = vld [vmem:[#allocation22_spill] sm:$0xff] }
 0x168   : > { %v1944_v6 = vmax.f32 %v1908_v3, 0.0  ;;  %v1909_v45 = vadd.f32 %v18721_v50, %v1867_v5  ;;  %v15321_v29 = vpop.f32.mrb[60].mxu0  ;;  %v15361_v47 = vpop.f32.mrb[60].mxu1  ;;  %v17222_v3 = vld [vmem:[%s22028_s0 + $0x1a0] sm:$0xff]   ;;  %v22206_v5 = vmax.f32 %v22204_v60, %v22205_v61 }
 0x169   : > { %1982 = vst [vmem:[#allocation2 + $0xb0] sm:$0xff] %v1946_v46  ;;  %v1947_v48 = vmax.f32 %v1911_v49, 0.0  ;;  %v1836_v20 = vmax.f32 %v15321_v29, %v15361_v47  ;;  %v1406_v21 = vpop.f32.mrb[61].mxu0  ;;  %v1763_v62 = vpop.f32.mrb[61].mxu1  ;;  %v22207_v29 = vld [vmem:[#allocation16_spill] sm:$0xff]  ;;  %v22208_v47 = vld [vmem:[#allocation17_spill] sm:$0xff] }
 0x16a   : > { %1980 = vst [vmem:[#allocation2 + $0xa0] sm:$0xff] %v1944_v6  ;;  %v1945_v30 = vmax.f32 %v1909_v45, 0.0  ;;  %v1834_v26 = vmax.f32 %v1406_v21, %v1763_v62  ;;  %v15322_v27 = vpop.f32.mrb[62].mxu0  ;;  %v15362_v8 = vpop.f32.mrb[62].mxu1 }
 0x16b   : > { %1983 = vst [vmem:[#allocation2 + $0xb8] sm:$0xff] %v1947_v48  ;;  %v1872_v32 = vmax.f32 %v22194_v31, %v1836_v20  ;;  %v1837_v22 = vmax.f32 %v15322_v27, %v15362_v8  ;;  %v1409_v10 = vpop.f32.mrb[63].mxu0  ;;  %v1766_v63 = vpop.f32.mrb[63].mxu1  ;;  %v22209_v48 = vmax.f32 %v22207_v29, %v22208_v47  ;;  %v22213_v8 = vld [vmem:[#allocation20_spill] sm:$0xff] }
 0x16c   : > { %1981 = vst [vmem:[#allocation2 + $0xa8] sm:$0xff] %v1945_v30  ;;  %v1870_v13 = vmax.f32 %v22197_v4, %v1834_v26  ;;  %v1835_v54 = vmax.f32 %v1409_v10, %v1766_v63 }
 0x16d   : > { %v1914_v19 = vadd.f32 %v18721_v50, %v1872_v32  ;;  %v1873_v17 = vmax.f32 %v22200_v16, %v1837_v22  ;;  %15560 = vmatmul.mubr.msk.bf16.gmra.mrb[168].mxu0 %vm471_vm0, %v17216_v23  ;;  %15600 = vmatmul.mubr.msk.bf16.gmra.mrb[168].mxu1 %vm471_vm0, %v17217_v24  ;;  %v22210_v23 = vld [vmem:[#allocation18_spill] sm:$0xff]  ;;  %v22211_v24 = vld [vmem:[#allocation19_spill] sm:$0xff] }
 0x16e   : > { %v1912_v57 = vadd.f32 %v18721_v50, %v1870_v13  ;;  %v1871_v34 = vmax.f32 %v22203_v44, %v1835_v54  ;;  %15563 = vmatprep.mubr.msk.bf16.mxu0 %vm471_vm0, %v17218_v9  ;;  %15603 = vmatprep.mubr.msk.bf16.mxu1 %vm471_vm0, %v17219_v33  ;;  %v22212_v30 = vmax.f32 %v22210_v23, %v22211_v24  ;;  %v22214_v9 = vld [vmem:[#allocation21_spill] sm:$0xff]  ;;  %v17224_v54 = vld [vmem:[%s22028_s0 + $0x1a8] sm:$0xff]  }
 0x16f   : > { %v1950_v18 = vmax.f32 %v1914_v19, 0.0  ;;  %v1915_v51 = vadd.f32 %v18721_v50, %v1873_v17  ;;  %v22215_v33 = vmax.f32 %v22213_v8, %v22214_v9  ;;  %v17225_v19 = vld [vmem:[%s22028_s0 + $0x3e8] sm:$0xff]   ;;  %v17230_v9 = vld [vmem:[%s22028_s0 + $0x5b0] sm:$0xff]  }
 0x170   : > { %v1948_v52 = vmax.f32 %v1912_v57, 0.0  ;;  %v1913_v53 = vadd.f32 %v18721_v50, %v1871_v34  ;;  %v15325_v15 = vpop.f32.mrb[64].mxu0  ;;  %v15365_v28 = vpop.f32.mrb[64].mxu1  ;;  %v17226_v57 = vld [vmem:[%s22028_s0 + $0x5a0] sm:$0xff]   ;;  %v22217_v44 = vld [vmem:[#allocation23_spill] sm:$0xff] }
 0x171   : > { %1986 = vst [vmem:[#allocation2 + $0xd0] sm:$0xff] %v1950_v18  ;;  %v1951_v7 = vmax.f32 %v1915_v51, 0.0  ;;  %v1840_v36 = vmax.f32 %v15325_v15, %v15365_v28  ;;  %v1422_v37 = vpop.f32.mrb[65].mxu0  ;;  %v1779_v56 = vpop.f32.mrb[65].mxu1  ;;  %v22218_v34 = vmax.f32 %v22216_v35, %v22217_v44  ;;  %v22219_v15 = vld [vmem:[#allocation24_spill] sm:$0xff]  ;;  %v22220_v28 = vld [vmem:[#allocation25_spill] sm:$0xff] }
 0x172   : > { %1984 = vst [vmem:[#allocation2 + $0xc0] sm:$0xff] %v1948_v52  ;;  %v1949_v58 = vmax.f32 %v1913_v53, 0.0  ;;  %v1838_v42 = vmax.f32 %v1422_v37, %v1779_v56  ;;  %v15326_v43 = vpop.f32.mrb[66].mxu0  ;;  %v15366_v59 = vpop.f32.mrb[66].mxu1  ;;  %v17236_v44 = vld [vmem:[%s22028_s0 + $0x5c8] sm:$0xff]  }
 0x173   : > { %1987 = vst [vmem:[#allocation2 + $0xd8] sm:$0xff] %v1951_v7  ;;  %v1876_v46 = vmax.f32 %v22206_v5, %v1840_v36  ;;  %v1841_v49 = vmax.f32 %v15326_v43, %v15366_v59  ;;  %v1425_v6 = vpop.f32.mrb[67].mxu0  ;;  %v1782_v45 = vpop.f32.mrb[67].mxu1  ;;  %v22221_v7 = vmax.f32 %v22219_v15, %v22220_v28  ;;  %v22225_v59 = vld [vmem:[#allocation28_spill] sm:$0xff] }
 0x174   : > { %1985 = vst [vmem:[#allocation2 + $0xc8] sm:$0xff] %v1949_v58  ;;  %v1874_v20 = vmax.f32 %v22209_v48, %v1838_v42  ;;  %v1839_v21 = vmax.f32 %v1425_v6, %v1782_v45  ;;  %v17239_v15 = vld [vmem:[%s22028_s0 + $0x810] sm:$0xff]  }
 0x175   : > { %v1918_v62 = vadd.f32 %v18721_v50, %v1876_v46  ;;  %v1877_v26 = vmax.f32 %v22212_v30, %v1841_v49  ;;  %15564 = vmatmul.mubr.msk.bf16.gmra.mrb[172].mxu0 %vm471_vm0, %v17220_v39  ;;  %15604 = vmatmul.mubr.msk.bf16.gmra.mrb[172].mxu1 %vm471_vm0, %v17221_v40  ;;  %v22222_v39 = vld [vmem:[#allocation26_spill] sm:$0xff]  ;;  %v22223_v40 = vld [vmem:[#allocation27_spill] sm:$0xff] }
 0x176   : > { %v1916_v27 = vadd.f32 %v18721_v50, %v1874_v20  ;;  %v1875_v11 = vmax.f32 %v22215_v33, %v1839_v21  ;;  %15567 = vmatprep.mubr.msk.bf16.mxu0 %vm471_vm0, %v17222_v3  ;;  %15607 = vmatprep.mubr.msk.bf16.mxu1 %vm471_vm0, %v17223_v14  ;;  %v22224_v58 = vmax.f32 %v22222_v39, %v22223_v40  ;;  %v22226_v3 = vld [vmem:[#allocation29_spill] sm:$0xff]  ;;  %v17228_v21 = vld [vmem:[%s22028_s0 + $0x5a8] sm:$0xff]   ;;  %v17231_v33 = vld [vmem:[%s22028_s0 + $0x7f0] sm:$0xff]  }
 0x177   : > { %v1954_v12 = vmax.f32 %v1918_v62, 0.0  ;;  %v1919_v31 = vadd.f32 %v18721_v50, %v1877_v26  ;;  %v22227_v14 = vmax.f32 %v22225_v59, %v22226_v3  ;;  %v17241_v59 = vld [vmem:[%s22028_s0 + $0x818] sm:$0xff]   ;;  %v17251_v3 = vld [vmem:[%s22028_s0 + $0x840] sm:$0xff]   ;;  %v17254_v40 = vld [vmem:[%s22028_s0 + $0x610] sm:$0xff]  }
 0x178   : > { %v1952_v32 = vmax.f32 %v1916_v27, 0.0  ;;  %v1917_v22 = vadd.f32 %v18721_v50, %v1875_v11  ;;  %v15329_v10 = vpop.f32.mrb[68].mxu0  ;;  %v15369_v63 = vpop.f32.mrb[68].mxu1 }
 0x179   : > { %1990 = vst [vmem:[#allocation2 + $0xf0] sm:$0xff] %v1954_v12  ;;  %v1955_v1 = vmax.f32 %v1919_v31, 0.0  ;;  %v1844_v25 = vmax.f32 %v15329_v10, %v15369_v63  ;;  %v1438_v4 = vpop.f32.mrb[69].mxu0  ;;  %v1795_v13 = vpop.f32.mrb[69].mxu1  ;;  %v17232_v63 = vld [vmem:[%s22028_s0 + $0x5b8] sm:$0xff]  }
 0x17a   : > { %1988 = vst [vmem:[#allocation2 + $0xe0] sm:$0xff] %v1952_v32  ;;  %v1953_v0 = vmax.f32 %v1917_v22, 0.0  ;;  %v1842_v38 = vmax.f32 %v1438_v4, %v1795_v13  ;;  %v15330_v16 = vpop.f32.mrb[70].mxu0  ;;  %v15370_v17 = vpop.f32.mrb[70].mxu1  ;;  %v17258_v32 = vld [vmem:[%s22028_s0 + $0x620] sm:$0xff]  }
 0x17b   : > { %1991 = vst [vmem:[#allocation2 + $0xf8] sm:$0xff] %v1955_v1  ;;  %v1880_v18 = vmax.f32 %v22218_v34, %v1844_v25  ;;  %v1845_v51 = vmax.f32 %v15330_v16, %v15370_v17  ;;  %v1441_v52 = vpop.f32.mrb[71].mxu0  ;;  %v1798_v53 = vpop.f32.mrb[71].mxu1  ;;  %v17233_v1 = vld [vmem:[%s22028_s0 + $0x7f8] sm:$0xff]   ;;  %v17237_v34 = vld [vmem:[%s22028_s0 + $0x808] sm:$0xff]   ;;  %v17255_v25 = vld [vmem:[%s22028_s0 + $0x850] sm:$0xff]  }
 0x17c   : > { %1989 = vst [vmem:[#allocation2 + $0xe8] sm:$0xff] %v1953_v0  ;;  %v1878_v36 = vmax.f32 %v22221_v7, %v1842_v38  ;;  %v1843_v37 = vmax.f32 %v1441_v52, %v1798_v53  ;;  %v17238_v53 = vld [vmem:[%s22028_s0 + $0x5d0] sm:$0xff]  }
 0x17d   : > { %v1922_v56 = vadd.f32 %v18721_v50, %v1880_v18  ;;  %v1881_v42 = vmax.f32 %v22224_v58, %v1845_v51  ;;  %15568 = vmatmul.mubr.msk.bf16.gmra.mrb[176].mxu0 %vm471_vm0, %v17224_v54  ;;  %15608 = vmatmul.mubr.msk.bf16.gmra.mrb[176].mxu1 %vm471_vm0, %v17225_v19  ;;  %v17234_v54 = vld [vmem:[%s22028_s0 + $0x5c0] sm:$0xff]  }
 0x17e   : > { %v1920_v43 = vadd.f32 %v18721_v50, %v1878_v36  ;;  %v1879_v60 = vmax.f32 %v22227_v14, %v1843_v37  ;;  %15615 = vmatprep.mubr.msk.bf16.mxu0 %vm471_vm0, %v17226_v57  ;;  %15655 = vmatprep.mubr.msk.bf16.mxu1 %vm471_vm0, %v17227_v41  ;;  %v17235_v19 = vld [vmem:[%s22028_s0 + $0x800] sm:$0xff]  }
 0x17f   : > { %v1958_v61 = vmax.f32 %v1922_v56, 0.0  ;;  %v1923_v5 = vadd.f32 %v18721_v50, %v1881_v42 }
 0x180   : > { %v1956_v46 = vmax.f32 %v1920_v43, 0.0  ;;  %v1921_v49 = vadd.f32 %v18721_v50, %v1879_v60  ;;  %v19023_v6 = vpop.f32.mrb[72].mxu0  ;;  %v19025_v45 = vpop.f32.mrb[72].mxu1  ;;  %v17229_v50 = vld [vmem:[%s22028_s0 + $0x7e8] sm:$0xff]   ;;  %v17240_v43 = vld [vmem:[%s22028_s0 + $0x5d8] sm:$0xff]  }
 0x181   : > { %1994 = vst [vmem:[#allocation2 + $0x110] sm:$0xff] %v1958_v61  ;;  %v1959_v29 = vmax.f32 %v1923_v5, 0.0  ;;  %v19029_v48 = vpop.f32.mrb[73].mxu0  ;;  %v19031_v20 = vpop.f32.mrb[73].mxu1  ;;  %v17242_v61 = vld [vmem:[%s22028_s0 + $0x5e0] sm:$0xff]  }
 0x182   : > { %1992 = vst [vmem:[#allocation2 + $0x100] sm:$0xff] %v1956_v46  ;;  %v1957_v62 = vmax.f32 %v1921_v49, 0.0  ;;  %v19041_v24 = vpop.f32.mrb[74].mxu0  ;;  %v19043_v30 = vpop.f32.mrb[74].mxu1  ;;  %v17243_v5 = vld [vmem:[%s22028_s0 + $0x820] sm:$0xff]  }
 0x183   : > { %1995 = vst [vmem:[#allocation2 + $0x118] sm:$0xff] %v1959_v29  ;;  %v19047_v27 = vpop.f32.mrb[75].mxu0  ;;  %v19049_v8 = vpop.f32.mrb[75].mxu1 }
 0x184   : > { %1993 = vst [vmem:[#allocation2 + $0x108] sm:$0xff] %v1957_v62 }
 0x185   : > { %15616 = vmatmul.mubr.msk.bf16.vlgmr.msra.gmra.mrb[180].mxu0 %vm471_vm0, %v17228_v21  ;;  %15656 = vmatmul.mubr.msk.bf16.vlgmr.msra.gmra.mrb[180].mxu1 %vm471_vm0, %v17229_v50 }
 0x186   : > { %15692 = vmatpush3.bf16.msra.mxu0 %v18748_v55  ;;  %15732 = vmatpush3.bf16.msra.mxu1 %v18748_v55 }
 0x187   : > { %15619 = vmatprep.mubr.msk.bf16.mxu0 %vm471_vm0, %v17230_v9  ;;  %15659 = vmatprep.mubr.msk.bf16.mxu1 %vm471_vm0, %v17231_v33 }
 0x188   : > { %v19065_v12 = vpop.f32.mrb[76].mxu0  ;;  %v19067_v31 = vpop.f32.mrb[76].mxu1  ;;  %15693 = vmatprep.subr.bf16.mxu0 %v18759_v2  ;;  %15733 = vmatprep.subr.bf16.mxu1 %v18759_v2 }
 0x189   : > { %v19073_v22 = vpop.f32.mrb[77].mxu0  ;;  %v19075_v10 = vpop.f32.mrb[77].mxu1 }
 0x18a   : > { %v19085_v4 = vpop.f32.mrb[78].mxu0  ;;  %v19087_v13 = vpop.f32.mrb[78].mxu1  ;;  %15694 = vmatpush3.bf16.msra.mxu0 %v18759_v2  ;;  %15734 = vmatpush3.bf16.msra.mxu1 %v18759_v2 }
 0x18b   : > { %v19099_v38 = vpop.f32.mrb[79].mxu0  ;;  %v19101_v16 = vpop.f32.mrb[79].mxu1  ;;  %15771 = vmatprep.subr.bf16.mxu0 %v18748_v55  ;;  %15811 = vmatprep.subr.bf16.mxu1 %v18748_v55 }
 0x18d   : > { %15620 = vmatmul.mubr.msk.bf16.gmra.mrb[184].mxu0 %vm471_vm0, %v17232_v63  ;;  %15660 = vmatmul.mubr.msk.bf16.gmra.mrb[184].mxu1 %vm471_vm0, %v17233_v1  ;;  %v17244_v1 = vld [vmem:[%s22028_s0 + $0x5e8] sm:$0xff]  }
 0x18e   : > { %15623 = vmatprep.mubr.msk.bf16.mxu0 %vm471_vm0, %v17234_v54  ;;  %15663 = vmatprep.mubr.msk.bf16.mxu1 %vm471_vm0, %v17235_v19  ;;  %v17245_v54 = vld [vmem:[%s22028_s0 + $0x828] sm:$0xff]  }
 0x190   : > { %v19111_v2 = vpop.f32.mrb[80].mxu0  ;;  %v19113_v57 = vpop.f32.mrb[80].mxu1 }
 0x191   : > { %v19117_v35 = vpop.f32.mrb[81].mxu0  ;;  %v19119_v55 = vpop.f32.mrb[81].mxu1 }
 0x192   : > { %v19129_v51 = vpop.f32.mrb[82].mxu0  ;;  %v19131_v52 = vpop.f32.mrb[82].mxu1 }
 0x193   : > { %v19141_v7 = vpop.f32.mrb[83].mxu0  ;;  %v19143_v36 = vpop.f32.mrb[83].mxu1 }
 0x195   : > { %15624 = vmatmul.mubr.msk.bf16.gmra.mrb[188].mxu0 %vm471_vm0, %v17236_v44  ;;  %15664 = vmatmul.mubr.msk.bf16.gmra.mrb[188].mxu1 %vm471_vm0, %v17237_v34 }
 0x196   : > { %15627 = vmatprep.mubr.msk.bf16.mxu0 %vm471_vm0, %v17238_v53  ;;  %15667 = vmatprep.mubr.msk.bf16.mxu1 %vm471_vm0, %v17239_v15  ;;  %v17246_v53 = vld [vmem:[%s22028_s0 + $0x5f0] sm:$0xff]  }
 0x197   : > { %v17247_v15 = vld [vmem:[%s22028_s0 + $0x830] sm:$0xff]  }
 0x198   : > { %v19151_v56 = vpop.f32.mrb[84].mxu0  ;;  %v19153_v39 = vpop.f32.mrb[84].mxu1 }
 0x199   : > { %v19157_v58 = vpop.f32.mrb[85].mxu0  ;;  %v19159_v42 = vpop.f32.mrb[85].mxu1 }
 0x19a   : > { %v19169_v14 = vpop.f32.mrb[86].mxu0  ;;  %v19171_v60 = vpop.f32.mrb[86].mxu1 }
 0x19b   : > { %v19181_v49 = vpop.f32.mrb[87].mxu0  ;;  %v19183_v29 = vpop.f32.mrb[87].mxu1 }
 0x19d   : > { %15628 = vmatmul.mubr.msk.bf16.gmra.mrb[192].mxu0 %vm471_vm0, %v17240_v43  ;;  %15668 = vmatmul.mubr.msk.bf16.gmra.mrb[192].mxu1 %vm471_vm0, %v17241_v59  ;;  %v17250_v43 = vld [vmem:[%s22028_s0 + $0x600] sm:$0xff]  }
 0x19e   : > { %15631 = vmatprep.mubr.msk.bf16.mxu0 %vm471_vm0, %v17242_v61  ;;  %15671 = vmatprep.mubr.msk.bf16.mxu1 %vm471_vm0, %v17243_v5 }
 0x1a0   : > { %v19191_v50 = vpop.f32.mrb[88].mxu0  ;;  %v19193_v62 = vpop.f32.mrb[88].mxu1 }
 0x1a1   : > { %v19197_v33 = vpop.f32.mrb[89].mxu0  ;;  %v19199_v63 = vpop.f32.mrb[89].mxu1 }
 0x1a2   : > { %v19209_v44 = vpop.f32.mrb[90].mxu0  ;;  %v19211_v34 = vpop.f32.mrb[90].mxu1 }
 0x1a3   : > { %v19221_v59 = vpop.f32.mrb[91].mxu0  ;;  %v19223_v61 = vpop.f32.mrb[91].mxu1 }
 0x1a5   : > { %15632 = vmatmul.mubr.msk.bf16.gmra.mrb[196].mxu0 %vm471_vm0, %v17244_v1  ;;  %15672 = vmatmul.mubr.msk.bf16.gmra.mrb[196].mxu1 %vm471_vm0, %v17245_v54  ;;  %v17248_v1 = vld [vmem:[%s22028_s0 + $0x5f8] sm:$0xff]  }
 0x1a6   : > { %15635 = vmatprep.mubr.msk.bf16.mxu0 %vm471_vm0, %v17246_v53  ;;  %15675 = vmatprep.mubr.msk.bf16.mxu1 %vm471_vm0, %v17247_v15  ;;  %v17249_v54 = vld [vmem:[%s22028_s0 + $0x838] sm:$0xff]  }
 0x1a8   : > { %v19231_v19 = vpop.f32.mrb[92].mxu0  ;;  %v19233_v9 = vpop.f32.mrb[92].mxu1 }
 0x1a9   : > { %v19237_v21 = vpop.f32.mrb[93].mxu0  ;;  %v19239_v46 = vpop.f32.mrb[93].mxu1 }
 0x1aa   : > { %v19249_v15 = vpop.f32.mrb[94].mxu0  ;;  %v19251_v5 = vpop.f32.mrb[94].mxu1 }
 0x1ab   : > { %v19261_v37 = vpop.f32.mrb[95].mxu0  ;;  %v19263_v28 = vpop.f32.mrb[95].mxu1 }
 0x1ad   : > { %15636 = vmatmul.mubr.msk.bf16.gmra.mrb[200].mxu0 %vm471_vm0, %v17248_v1  ;;  %15676 = vmatmul.mubr.msk.bf16.gmra.mrb[200].mxu1 %vm471_vm0, %v17249_v54  ;;  %v17252_v1 = vld [vmem:[%s22028_s0 + $0x608] sm:$0xff]  }
 0x1ae   : > { %15639 = vmatprep.mubr.msk.bf16.mxu0 %vm471_vm0, %v17250_v43  ;;  %15679 = vmatprep.mubr.msk.bf16.mxu1 %vm471_vm0, %v17251_v3  ;;  %v17253_v43 = vld [vmem:[%s22028_s0 + $0x848] sm:$0xff]  }
 0x1b0   : > { %v19271_v18 = vpop.f32.mrb[96].mxu0  ;;  %v19273_v41 = vpop.f32.mrb[96].mxu1 }
 0x1b1   : > { %22228 = vst [vmem:[#allocation4_spill] sm:$0xff] %v19271_v18  ;;  %22229 = vst [vmem:[#allocation5_spill] sm:$0xff] %v19273_v41  ;;  %v19277_v17 = vpop.f32.mrb[97].mxu0  ;;  %v19279_v0 = vpop.f32.mrb[97].mxu1  ;;  %v17267_v41 = vld [vmem:[%s22028_s0 + $0x400] sm:$0xff]  }
 0x1b2   : > { %22230 = vst [vmem:[#allocation6_spill] sm:$0xff] %v19277_v17  ;;  %22231 = vst [vmem:[#allocation7_spill] sm:$0xff] %v19279_v0  ;;  %v19289_v54 = vpop.f32.mrb[98].mxu0  ;;  %v19291_v53 = vpop.f32.mrb[98].mxu1 }
 0x1b3   : > { %22232 = vst [vmem:[#allocation8_spill] sm:$0xff] %v19289_v54  ;;  %22233 = vst [vmem:[#allocation9_spill] sm:$0xff] %v19291_v53  ;;  %v19301_v11 = vpop.f32.mrb[99].mxu0  ;;  %v19303_v26 = vpop.f32.mrb[99].mxu1 }
 0x1b4   : > { %22234 = vst [vmem:[#allocation10_spill] sm:$0xff] %v19301_v11  ;;  %22235 = vst [vmem:[#allocation11_spill] sm:$0xff] %v19303_v26 }
 0x1b5   : > { %15640 = vmatmul.mubr.msk.bf16.gmra.mrb[204].mxu0 %vm471_vm0, %v17252_v1  ;;  %15680 = vmatmul.mubr.msk.bf16.gmra.mrb[204].mxu1 %vm471_vm0, %v17253_v43  ;;  %v17256_v1 = vld [vmem:[%s22028_s0 + $0x618] sm:$0xff]  }
 0x1b6   : > { %15643 = vmatprep.mubr.msk.bf16.mxu0 %vm471_vm0, %v17254_v40  ;;  %15683 = vmatprep.mubr.msk.bf16.mxu1 %vm471_vm0, %v17255_v25  ;;  %v17257_v40 = vld [vmem:[%s22028_s0 + $0x858] sm:$0xff]  }
 0x1b8   : > { %v19311_v23 = vpop.f32.mrb[100].mxu0  ;;  %v19313_v47 = vpop.f32.mrb[100].mxu1 }
 0x1b9   : > { %22236 = vst [vmem:[#allocation12_spill] sm:$0xff] %v19311_v23  ;;  %22237 = vst [vmem:[#allocation13_spill] sm:$0xff] %v19313_v47  ;;  %v19317_v53 = vpop.f32.mrb[101].mxu0  ;;  %v19319_v54 = vpop.f32.mrb[101].mxu1  ;;  %v17259_v47 = vld [vmem:[%s22028_s0 + $0x860] sm:$0xff]   ;;  %v17262_v23 = vld [vmem:[%s22028_s0 + $0x1b0] sm:$0xff]  }
 0x1ba   : > { %22238 = vst [vmem:[#allocation14_spill] sm:$0xff] %v19317_v53  ;;  %22239 = vst [vmem:[#allocation15_spill] sm:$0xff] %v19319_v54  ;;  %v19329_v43 = vpop.f32.mrb[102].mxu0  ;;  %v19331_v3 = vpop.f32.mrb[102].mxu1 }
 0x1bb   : > { %22240 = vst [vmem:[#allocation16_spill] sm:$0xff] %v19329_v43  ;;  %22241 = vst [vmem:[#allocation17_spill] sm:$0xff] %v19331_v3  ;;  %v19341_v26 = vpop.f32.mrb[103].mxu0  ;;  %v19343_v11 = vpop.f32.mrb[103].mxu1 }
 0x1bc   : > { %22242 = vst [vmem:[#allocation18_spill] sm:$0xff] %v19341_v26  ;;  %22243 = vst [vmem:[#allocation19_spill] sm:$0xff] %v19343_v11 }
 0x1bd   : > { %15644 = vmatmul.mubr.msk.bf16.gmra.mrb[208].mxu0 %vm471_vm0, %v17256_v1  ;;  %15684 = vmatmul.mubr.msk.bf16.gmra.mrb[208].mxu1 %vm471_vm0, %v17257_v40  ;;  %v17260_v1 = vld [vmem:[%s22028_s0 + $0x628] sm:$0xff]  }
 0x1be   : > { %15647 = vmatprep.mubr.msk.bf16.mxu0 %vm471_vm0, %v17258_v32  ;;  %15687 = vmatprep.mubr.msk.bf16.mxu1 %vm471_vm0, %v17259_v47  ;;  %v17261_v32 = vld [vmem:[%s22028_s0 + $0x868] sm:$0xff]   ;;  %v17265_v47 = vld [vmem:[%s22028_s0 + $0x3f8] sm:$0xff]  }
 0x1c0   : > { %v19351_v54 = vpop.f32.mrb[104].mxu0  ;;  %v19353_v53 = vpop.f32.mrb[104].mxu1 }
 0x1c1   : > { %22244 = vst [vmem:[#allocation20_spill] sm:$0xff] %v19351_v54  ;;  %22245 = vst [vmem:[#allocation21_spill] sm:$0xff] %v19353_v53  ;;  %v19357_v3 = vpop.f32.mrb[105].mxu0  ;;  %v19359_v43 = vpop.f32.mrb[105].mxu1  ;;  %v17263_v53 = vld [vmem:[%s22028_s0 + $0x3f0] sm:$0xff]  }
 0x1c2   : > { %22246 = vst [vmem:[#allocation22_spill] sm:$0xff] %v19357_v3  ;;  %22247 = vst [vmem:[#allocation23_spill] sm:$0xff] %v19359_v43  ;;  %v19369_v40 = vpop.f32.mrb[106].mxu0  ;;  %v19371_v25 = vpop.f32.mrb[106].mxu1 }
 0x1c3   : > { %22248 = vst [vmem:[#allocation24_spill] sm:$0xff] %v19369_v40  ;;  %22249 = vst [vmem:[#allocation25_spill] sm:$0xff] %v19371_v25  ;;  %v19381_v11 = vpop.f32.mrb[107].mxu0  ;;  %v19383_v26 = vpop.f32.mrb[107].mxu1  ;;  %v17264_v25 = vld [vmem:[%s22028_s0 + $0x1b8] sm:$0xff]  }
 0x1c4   : > { %22250 = vst [vmem:[#allocation26_spill] sm:$0xff] %v19381_v11  ;;  %22251 = vst [vmem:[#allocation27_spill] sm:$0xff] %v19383_v26 }
 0x1c5   : > { %15648 = vmatmul.mubr.msk.bf16.gmra.mrb[212].mxu0 %vm471_vm0, %v17260_v1  ;;  %15688 = vmatmul.mubr.msk.bf16.gmra.mrb[212].mxu1 %vm471_vm0, %v17261_v32 }
 0x1c6   : > { %15695 = vmatprep.mubr.msk.bf16.mxu0 %vm471_vm0, %v17262_v23  ;;  %15735 = vmatprep.mubr.msk.bf16.mxu1 %vm471_vm0, %v17263_v53  ;;  %v22252_v23 = vmax.f32 %v19023_v6, %v19025_v45  ;;  %v19412_v6 = vld [vmem:[%s22030_s2] ss:$0 sm:$0xff] }
 0x1c8   : > { %v15457_v43 = vpop.f32.mrb[108].mxu0  ;;  %v15497_v3 = vpop.f32.mrb[108].mxu1 }
 0x1c9   : > { %v3462_v0 = vmax.f32 %v15457_v43, %v15497_v3  ;;  %v2960_v17 = vpop.f32.mrb[109].mxu0  ;;  %v3317_v54 = vpop.f32.mrb[109].mxu1  ;;  %v17266_v43 = vld [vmem:[%s22028_s0 + $0x1c0] sm:$0xff]  }
 0x1ca   : > { %v3460_v1 = vmax.f32 %v2960_v17, %v3317_v54  ;;  %v15458_v26 = vpop.f32.mrb[110].mxu0  ;;  %v15498_v32 = vpop.f32.mrb[110].mxu1  ;;  %v22253_v17 = vmax.f32 %v19029_v48, %v19031_v20  ;;  %v22255_v48 = vmax.f32 %v19047_v27, %v19049_v8  ;;  %v17340_v27 = vld [vmem:[%s22029_s1 + $0x8] sm:$0xff]  }
 0x1cb   : > { %v3498_v53 = vmax.f32 %v22252_v23, %v3462_v0  ;;  %v3463_v11 = vmax.f32 %v15458_v26, %v15498_v32  ;;  %v2963_v40 = vpop.f32.mrb[111].mxu0  ;;  %v3320_v3 = vpop.f32.mrb[111].mxu1  ;;  %v22254_v26 = vmax.f32 %v19041_v24, %v19043_v30 }
 0x1cc   : > { %v3496_v54 = vmax.f32 %v22253_v17, %v3460_v1  ;;  %v3461_v18 = vmax.f32 %v2963_v40, %v3320_v3  ;;  %v17339_v40 = vld [vmem:[%s22029_s1] sm:$0xff]   ;;  %v17269_v3 = vld [vmem:[%s22028_s0 + $0x408] sm:$0xff]  }
 0x1cd   : > { %v3534_v45 = vadd.f32 %v19412_v6, %v3498_v53  ;;  %v3499_v0 = vmax.f32 %v22254_v26, %v3463_v11  ;;  %15696 = vmatmul.mubr.msk.bf16.vlgmr.msra.gmra.mrb[216].mxu0 %vm471_vm0, %v17264_v25  ;;  %15736 = vmatmul.mubr.msk.bf16.vlgmr.msra.gmra.mrb[216].mxu1 %vm471_vm0, %v17265_v47  ;;  %v17270_v26 = vld [vmem:[%s22028_s0 + $0x1d0] sm:$0xff]  }
 0x1ce   : > { %v3532_v32 = vadd.f32 %v19412_v6, %v3496_v54  ;;  %v3497_v20 = vmax.f32 %v22255_v48, %v3461_v18  ;;  %15772 = vmatpush3.bf16.msra.mxu0 %v17339_v40  ;;  %15812 = vmatpush3.bf16.msra.mxu1 %v17339_v40 }
 0x1cf   : > { %v3570_v1 = vmax.f32 %v3534_v45, 0.0  ;;  %v3535_v24 = vadd.f32 %v19412_v6, %v3499_v0  ;;  %15699 = vmatprep.mubr.msk.bf16.mxu0 %vm471_vm0, %v17266_v43  ;;  %15739 = vmatprep.mubr.msk.bf16.mxu1 %vm471_vm0, %v17267_v41  ;;  %v17268_v41 = vld [vmem:[%s22028_s0 + $0x1c8] sm:$0xff]   ;;  %v17271_v0 = vld [vmem:[%s22028_s0 + $0x410] sm:$0xff]  }
 0x1d0   : > { %v3568_v30 = vmax.f32 %v3532_v32, 0.0  ;;  %v3533_v11 = vadd.f32 %v19412_v6, %v3497_v20  ;;  %v15461_v25 = vpop.f32.mrb[112].mxu0  ;;  %v15501_v47 = vpop.f32.mrb[112].mxu1  ;;  %15773 = vmatprep.subr.bf16.mxu0 %v17340_v27  ;;  %15813 = vmatprep.subr.bf16.mxu1 %v17340_v27  ;;  %v22256_v32 = vmax.f32 %v19065_v12, %v19067_v31  ;;  %v22259_v31 = vmax.f32 %v19099_v38, %v19101_v16  ;;  %v17272_v38 = vld [vmem:[%s22028_s0 + $0x1d8] sm:$0xff]  }
 0x1d1   : > { %3607 = vst [vmem:[#allocation2 + $0x130] sm:$0xff] %v3570_v1  ;;  %v3571_v8 = vmax.f32 %v3535_v24, 0.0  ;;  %v3466_v18 = vmax.f32 %v15461_v25, %v15501_v47  ;;  %v2976_v23 = vpop.f32.mrb[113].mxu0  ;;  %v3333_v53 = vpop.f32.mrb[113].mxu1  ;;  %v22257_v24 = vmax.f32 %v19073_v22, %v19075_v10  ;;  %v22258_v47 = vmax.f32 %v19085_v4, %v19087_v13  ;;  %v17273_v16 = vld [vmem:[%s22028_s0 + $0x418] sm:$0xff]  }
 0x1d2   : > { %3605 = vst [vmem:[#allocation2 + $0x120] sm:$0xff] %v3568_v30  ;;  %v3569_v43 = vmax.f32 %v3533_v11, 0.0  ;;  %v3464_v17 = vmax.f32 %v2976_v23, %v3333_v53  ;;  %v15462_v54 = vpop.f32.mrb[114].mxu0  ;;  %v15502_v45 = vpop.f32.mrb[114].mxu1  ;;  %15774 = vmatpush3.bf16.msra.mxu0 %v17340_v27  ;;  %15814 = vmatpush3.bf16.msra.mxu1 %v17340_v27 }
 0x1d3   : > { %3608 = vst [vmem:[#allocation2 + $0x138] sm:$0xff] %v3571_v8  ;;  %v3502_v48 = vmax.f32 %v22256_v32, %v3466_v18  ;;  %v3467_v20 = vmax.f32 %v15462_v54, %v15502_v45  ;;  %v2979_v40 = vpop.f32.mrb[115].mxu0  ;;  %v3336_v1 = vpop.f32.mrb[115].mxu1  ;;  %v17275_v32 = vld [vmem:[%s22028_s0 + $0x420] sm:$0xff]  }
 0x1d4   : > { %3606 = vst [vmem:[#allocation2 + $0x128] sm:$0xff] %v3569_v43  ;;  %v3500_v30 = vmax.f32 %v22257_v24, %v3464_v17  ;;  %v3465_v11 = vmax.f32 %v2979_v40, %v3336_v1 }
 0x1d5   : > { %v3538_v25 = vadd.f32 %v19412_v6, %v3502_v48  ;;  %v3503_v27 = vmax.f32 %v22258_v47, %v3467_v20  ;;  %15700 = vmatmul.mubr.msk.bf16.gmra.mrb[220].mxu0 %vm471_vm0, %v17268_v41  ;;  %15740 = vmatmul.mubr.msk.bf16.gmra.mrb[220].mxu1 %vm471_vm0, %v17269_v3  ;;  %v22260_v48 = vmax.f32 %v19111_v2, %v19113_v57 }
 0x1d6   : > { %v3536_v12 = vadd.f32 %v19412_v6, %v3500_v30  ;;  %v3501_v8 = vmax.f32 %v22259_v31, %v3465_v11  ;;  %15703 = vmatprep.mubr.msk.bf16.mxu0 %vm471_vm0, %v17270_v26  ;;  %15743 = vmatprep.mubr.msk.bf16.mxu1 %vm471_vm0, %v17271_v0  ;;  %v17274_v0 = vld [vmem:[%s22028_s0 + $0x1e0] sm:$0xff]   ;;  %v22261_v30 = vmax.f32 %v19117_v35, %v19119_v55 }
 0x1d7   : > { %v3574_v22 = vmax.f32 %v3538_v25, 0.0  ;;  %v3539_v10 = vadd.f32 %v19412_v6, %v3503_v27  ;;  %v22262_v27 = vmax.f32 %v19129_v51, %v19131_v52  ;;  %v22263_v57 = vmax.f32 %v19141_v7, %v19143_v36  ;;  %v17276_v7 = vld [vmem:[%s22028_s0 + $0x1e8] sm:$0xff]  }
 0x1d8   : > { %v3572_v18 = vmax.f32 %v3536_v12, 0.0  ;;  %v3537_v4 = vadd.f32 %v19412_v6, %v3501_v8  ;;  %v15465_v13 = vpop.f32.mrb[116].mxu0  ;;  %v15505_v23 = vpop.f32.mrb[116].mxu1  ;;  %v17277_v36 = vld [vmem:[%s22028_s0 + $0x428] sm:$0xff]  }
 0x1d9   : > { %3611 = vst [vmem:[#allocation2 + $0x150] sm:$0xff] %v3574_v22  ;;  %v3575_v53 = vmax.f32 %v3539_v10, 0.0  ;;  %v3470_v41 = vmax.f32 %v15465_v13, %v15505_v23  ;;  %v2992_v3 = vpop.f32.mrb[117].mxu0  ;;  %v3349_v43 = vpop.f32.mrb[117].mxu1 }
 0x1da   : > { %3609 = vst [vmem:[#allocation2 + $0x140] sm:$0xff] %v3572_v18  ;;  %v3573_v17 = vmax.f32 %v3537_v4, 0.0  ;;  %v3468_v54 = vmax.f32 %v2992_v3, %v3349_v43  ;;  %v15466_v45 = vpop.f32.mrb[118].mxu0  ;;  %v15506_v26 = vpop.f32.mrb[118].mxu1  ;;  %v17278_v43 = vld [vmem:[%s22028_s0 + $0x1f0] sm:$0xff]  }
 0x1db   : > { %3612 = vst [vmem:[#allocation2 + $0x158] sm:$0xff] %v3575_v53  ;;  %v3506_v20 = vmax.f32 %v22260_v48, %v3470_v41  ;;  %v3471_v40 = vmax.f32 %v15466_v45, %v15506_v26  ;;  %v2995_v1 = vpop.f32.mrb[119].mxu0  ;;  %v3352_v24 = vpop.f32.mrb[119].mxu1 }
 0x1dc   : > { %3610 = vst [vmem:[#allocation2 + $0x148] sm:$0xff] %v3573_v17  ;;  %v3504_v11 = vmax.f32 %v22261_v30, %v3468_v54  ;;  %v3469_v25 = vmax.f32 %v2995_v1, %v3352_v24 }
 0x1dd   : > { %v3542_v47 = vadd.f32 %v19412_v6, %v3506_v20  ;;  %v3507_v12 = vmax.f32 %v22262_v27, %v3471_v40  ;;  %15704 = vmatmul.mubr.msk.bf16.gmra.mrb[224].mxu0 %vm471_vm0, %v17272_v38  ;;  %15744 = vmatmul.mubr.msk.bf16.gmra.mrb[224].mxu1 %vm471_vm0, %v17273_v16  ;;  %v17279_v38 = vld [vmem:[%s22028_s0 + $0x430] sm:$0xff]   ;;  %v22264_v16 = vmax.f32 %v19151_v56, %v19153_v39 }
 0x1de   : > { %v3540_v2 = vadd.f32 %v19412_v6, %v3504_v11  ;;  %v3505_v31 = vmax.f32 %v22263_v57, %v3469_v25  ;;  %15707 = vmatprep.mubr.msk.bf16.mxu0 %vm471_vm0, %v17274_v0  ;;  %15747 = vmatprep.mubr.msk.bf16.mxu1 %vm471_vm0, %v17275_v32  ;;  %v22265_v0 = vmax.f32 %v19157_v58, %v19159_v42 }
 0x1df   : > { %v3578_v35 = vmax.f32 %v3542_v47, 0.0  ;;  %v3543_v55 = vadd.f32 %v19412_v6, %v3507_v12  ;;  %v22266_v40 = vmax.f32 %v19169_v14, %v19171_v60  ;;  %v22267_v39 = vmax.f32 %v19181_v49, %v19183_v29  ;;  %v17280_v49 = vld [vmem:[%s22028_s0 + $0x1f8] sm:$0xff]  }
 0x1e0   : > { %v3576_v8 = vmax.f32 %v3540_v2, 0.0  ;;  %v3541_v51 = vadd.f32 %v19412_v6, %v3505_v31  ;;  %v15469_v52 = vpop.f32.mrb[120].mxu0  ;;  %v15509_v22 = vpop.f32.mrb[120].mxu1  ;;  %v17281_v29 = vld [vmem:[%s22028_s0 + $0x438] sm:$0xff]  }
 0x1e1   : > { %3615 = vst [vmem:[#allocation2 + $0x170] sm:$0xff] %v3578_v35  ;;  %v3579_v10 = vmax.f32 %v3543_v55, 0.0  ;;  %v3474_v18 = vmax.f32 %v15469_v52, %v15509_v22  ;;  %v3008_v4 = vpop.f32.mrb[121].mxu0  ;;  %v3365_v13 = vpop.f32.mrb[121].mxu1  ;;  %v17282_v55 = vld [vmem:[%s22028_s0 + $0x200] sm:$0xff]  }
 0x1e2   : > { %3613 = vst [vmem:[#allocation2 + $0x160] sm:$0xff] %v3576_v8  ;;  %v3577_v23 = vmax.f32 %v3541_v51, 0.0  ;;  %v3472_v53 = vmax.f32 %v3008_v4, %v3365_v13  ;;  %v15470_v41 = vpop.f32.mrb[122].mxu0  ;;  %v15510_v3 = vpop.f32.mrb[122].mxu1  ;;  %v17283_v8 = vld [vmem:[%s22028_s0 + $0x440] sm:$0xff]   ;;  %v22268_v51 = vmax.f32 %v19191_v50, %v19193_v62  ;;  %v22269_v4 = vmax.f32 %v19197_v33, %v19199_v63 }
 0x1e3   : > { %3616 = vst [vmem:[#allocation2 + $0x178] sm:$0xff] %v3579_v10  ;;  %v3510_v17 = vmax.f32 %v22264_v16, %v3474_v18  ;;  %v3475_v54 = vmax.f32 %v15470_v41, %v15510_v3  ;;  %v3011_v45 = vpop.f32.mrb[123].mxu0  ;;  %v3368_v26 = vpop.f32.mrb[123].mxu1  ;;  %v22271_v62 = vmax.f32 %v19221_v59, %v19223_v61  ;;  %v17284_v59 = vld [vmem:[%s22028_s0 + $0x208] sm:$0xff]  }
 0x1e4   : > { %3614 = vst [vmem:[#allocation2 + $0x168] sm:$0xff] %v3577_v23  ;;  %v3508_v32 = vmax.f32 %v22265_v0, %v3472_v53  ;;  %v3473_v48 = vmax.f32 %v3011_v45, %v3368_v26  ;;  %v22270_v23 = vmax.f32 %v19209_v44, %v19211_v34  ;;  %v17285_v61 = vld [vmem:[%s22028_s0 + $0x448] sm:$0xff]  }
 0x1e5   : > { %v3546_v20 = vadd.f32 %v19412_v6, %v3510_v17  ;;  %v3511_v1 = vmax.f32 %v22266_v40, %v3475_v54  ;;  %15708 = vmatmul.mubr.msk.bf16.gmra.mrb[228].mxu0 %vm471_vm0, %v17276_v7  ;;  %15748 = vmatmul.mubr.msk.bf16.gmra.mrb[228].mxu1 %vm471_vm0, %v17277_v36  ;;  %v22272_v40 = vmax.f32 %v19231_v19, %v19233_v9 }
 0x1e6   : > { %v3544_v56 = vadd.f32 %v19412_v6, %v3508_v32  ;;  %v3509_v24 = vmax.f32 %v22267_v39, %v3473_v48  ;;  %15711 = vmatprep.mubr.msk.bf16.mxu0 %vm471_vm0, %v17278_v43  ;;  %15751 = vmatprep.mubr.msk.bf16.mxu1 %vm471_vm0, %v17279_v38  ;;  %v17286_v48 = vld [vmem:[%s22028_s0 + $0x210] sm:$0xff]   ;;  %v22275_v19 = vmax.f32 %v19261_v37, %v19263_v28  ;;  %v17288_v28 = vld [vmem:[%s22028_s0 + $0x218] sm:$0xff]  }
 0x1e7   : > { %v3582_v58 = vmax.f32 %v3546_v20, 0.0  ;;  %v3547_v42 = vadd.f32 %v19412_v6, %v3511_v1  ;;  %v17287_v20 = vld [vmem:[%s22028_s0 + $0x450] sm:$0xff]   ;;  %v17289_v37 = vld [vmem:[%s22028_s0 + $0x458] sm:$0xff]  }
 0x1e8   : > { %v3580_v30 = vmax.f32 %v3544_v56, 0.0  ;;  %v3545_v14 = vadd.f32 %v19412_v6, %v3509_v24  ;;  %v15473_v60 = vpop.f32.mrb[124].mxu0  ;;  %v15513_v11 = vpop.f32.mrb[124].mxu1 }
 0x1e9   : > { %3619 = vst [vmem:[#allocation2 + $0x190] sm:$0xff] %v3582_v58  ;;  %v3583_v25 = vmax.f32 %v3547_v42, 0.0  ;;  %v3478_v47 = vmax.f32 %v15473_v60, %v15513_v11  ;;  %v3024_v27 = vpop.f32.mrb[125].mxu0  ;;  %v3381_v12 = vpop.f32.mrb[125].mxu1  ;;  %v22273_v58 = vmax.f32 %v19237_v21, %v19239_v46  ;;  %v22274_v60 = vmax.f32 %v19249_v15, %v19251_v5 }
 0x1ea   : > { %3617 = vst [vmem:[#allocation2 + $0x180] sm:$0xff] %v3580_v30  ;;  %v3581_v2 = vmax.f32 %v3545_v14, 0.0  ;;  %v3476_v57 = vmax.f32 %v3024_v27, %v3381_v12  ;;  %v15474_v31 = vpop.f32.mrb[126].mxu0  ;;  %v15514_v35 = vpop.f32.mrb[126].mxu1 }
 0x1eb   : > { %3620 = vst [vmem:[#allocation2 + $0x198] sm:$0xff] %v3583_v25  ;;  %v3514_v52 = vmax.f32 %v22268_v51, %v3478_v47  ;;  %v3479_v22 = vmax.f32 %v15474_v31, %v15514_v35  ;;  %v3027_v10 = vpop.f32.mrb[127].mxu0  ;;  %v3384_v18 = vpop.f32.mrb[127].mxu1  ;;  %v17291_v51 = vld [vmem:[%s22028_s0 + $0x460] sm:$0xff]  }
 0x1ec   : > { %3618 = vst [vmem:[#allocation2 + $0x188] sm:$0xff] %v3581_v2  ;;  %v3512_v13 = vmax.f32 %v22269_v4, %v3476_v57  ;;  %v3477_v7 = vmax.f32 %v3027_v10, %v3384_v18 }
 0x1ed   : > { %v3550_v36 = vadd.f32 %v19412_v6, %v3514_v52  ;;  %v3515_v53 = vmax.f32 %v22270_v23, %v3479_v22  ;;  %15712 = vmatmul.mubr.msk.bf16.gmra.mrb[232].mxu0 %vm471_vm0, %v17280_v49  ;;  %15752 = vmatmul.mubr.msk.bf16.gmra.mrb[232].mxu1 %vm471_vm0, %v17281_v29  ;;  %v22276_v52 = vld [vmem:[#allocation4_spill] sm:$0xff]  ;;  %v22277_v22 = vld [vmem:[#allocation5_spill] sm:$0xff]  ;;  %v22280_v23 = vld [vmem:[#allocation7_spill] sm:$0xff] }
 0x1ee   : > { %v3548_v50 = vadd.f32 %v19412_v6, %v3512_v13  ;;  %v3513_v41 = vmax.f32 %v22271_v62, %v3477_v7  ;;  %15715 = vmatprep.mubr.msk.bf16.mxu0 %vm471_vm0, %v17282_v55  ;;  %15755 = vmatprep.mubr.msk.bf16.mxu1 %vm471_vm0, %v17283_v8  ;;  %v17290_v8 = vld [vmem:[%s22028_s0 + $0x220] sm:$0xff]   ;;  %v22278_v10 = vmax.f32 %v22276_v52, %v22277_v22 }
 0x1ef   : > { %v3586_v33 = vmax.f32 %v3550_v36, 0.0  ;;  %v3551_v63 = vadd.f32 %v19412_v6, %v3515_v53  ;;  %v22279_v36 = vld [vmem:[#allocation6_spill] sm:$0xff] }
 0x1f0   : > { %v3584_v3 = vmax.f32 %v3548_v50, 0.0  ;;  %v3549_v44 = vadd.f32 %v19412_v6, %v3513_v41  ;;  %v15477_v34 = vpop.f32.mrb[128].mxu0  ;;  %v15517_v43 = vpop.f32.mrb[128].mxu1  ;;  %v22281_v53 = vmax.f32 %v22279_v36, %v22280_v23 }
 0x1f1   : > { %3623 = vst [vmem:[#allocation2 + $0x1b0] sm:$0xff] %v3586_v33  ;;  %v3587_v38 = vmax.f32 %v3551_v63, 0.0  ;;  %v3482_v16 = vmax.f32 %v15477_v34, %v15517_v43  ;;  %v3040_v17 = vpop.f32.mrb[129].mxu0  ;;  %v3397_v54 = vpop.f32.mrb[129].mxu1  ;;  %v22282_v33 = vld [vmem:[#allocation8_spill] sm:$0xff]  ;;  %v22283_v63 = vld [vmem:[#allocation9_spill] sm:$0xff] }
 0x1f2   : > { %3621 = vst [vmem:[#allocation2 + $0x1a0] sm:$0xff] %v3584_v3  ;;  %v3585_v45 = vmax.f32 %v3549_v44, 0.0  ;;  %v3480_v26 = vmax.f32 %v3040_v17, %v3397_v54  ;;  %v15478_v0 = vpop.f32.mrb[130].mxu0  ;;  %v15518_v32 = vpop.f32.mrb[130].mxu1  ;;  %v22284_v3 = vmax.f32 %v22282_v33, %v22283_v63  ;;  %v22285_v43 = vld [vmem:[#allocation10_spill] sm:$0xff] }
 0x1f3   : > { %3624 = vst [vmem:[#allocation2 + $0x1b8] sm:$0xff] %v3587_v38  ;;  %v3518_v1 = vmax.f32 %v22272_v40, %v3482_v16  ;;  %v3483_v56 = vmax.f32 %v15478_v0, %v15518_v32  ;;  %v3043_v39 = vpop.f32.mrb[131].mxu0  ;;  %v3400_v24 = vpop.f32.mrb[131].mxu1  ;;  %v22286_v38 = vld [vmem:[#allocation11_spill] sm:$0xff] }
 0x1f4   : > { %3622 = vst [vmem:[#allocation2 + $0x1a8] sm:$0xff] %v3585_v45  ;;  %v3516_v42 = vmax.f32 %v22273_v58, %v3480_v26  ;;  %v3481_v30 = vmax.f32 %v3043_v39, %v3400_v24  ;;  %v22287_v16 = vmax.f32 %v22285_v43, %v22286_v38  ;;  %v22301_v43 = vld [vmem:[#allocation21_spill] sm:$0xff] }
 0x1f5   : > { %v3554_v14 = vadd.f32 %v19412_v6, %v3518_v1  ;;  %v3519_v11 = vmax.f32 %v22274_v60, %v3483_v56  ;;  %15716 = vmatmul.mubr.msk.bf16.gmra.mrb[236].mxu0 %vm471_vm0, %v17284_v59  ;;  %15756 = vmatmul.mubr.msk.bf16.gmra.mrb[236].mxu1 %vm471_vm0, %v17285_v61  ;;  %v17292_v1 = vld [vmem:[%s22028_s0 + $0x228] sm:$0xff]   ;;  %v22288_v60 = vld [vmem:[#allocation12_spill] sm:$0xff] }
 0x1f6   : > { %v3552_v9 = vadd.f32 %v19412_v6, %v3516_v42  ;;  %v3517_v25 = vmax.f32 %v22275_v19, %v3481_v30  ;;  %15719 = vmatprep.mubr.msk.bf16.mxu0 %vm471_vm0, %v17286_v48  ;;  %15759 = vmatprep.mubr.msk.bf16.mxu1 %vm471_vm0, %v17287_v20  ;;  %v17293_v56 = vld [vmem:[%s22028_s0 + $0x468] sm:$0xff]   ;;  %v17294_v30 = vld [vmem:[%s22028_s0 + $0x230] sm:$0xff]  }
 0x1f7   : > { %v3590_v46 = vmax.f32 %v3554_v14, 0.0  ;;  %v3555_v21 = vadd.f32 %v19412_v6, %v3519_v11  ;;  %v17295_v14 = vld [vmem:[%s22028_s0 + $0x470] sm:$0xff]   ;;  %v22289_v11 = vld [vmem:[#allocation13_spill] sm:$0xff] }
 0x1f8   : > { %v3588_v47 = vmax.f32 %v3552_v9, 0.0  ;;  %v3553_v5 = vadd.f32 %v19412_v6, %v3517_v25  ;;  %v15481_v15 = vpop.f32.mrb[132].mxu0  ;;  %v15521_v27 = vpop.f32.mrb[132].mxu1  ;;  %v22290_v9 = vmax.f32 %v22288_v60, %v22289_v11 }
 0x1f9   : > { %3627 = vst [vmem:[#allocation2 + $0x1d0] sm:$0xff] %v3590_v46  ;;  %v3591_v12 = vmax.f32 %v3555_v21, 0.0  ;;  %v3486_v49 = vmax.f32 %v15481_v15, %v15521_v27  ;;  %v3056_v29 = vpop.f32.mrb[133].mxu0  ;;  %v3413_v2 = vpop.f32.mrb[133].mxu1 }
 0x1fa   : > { %3625 = vst [vmem:[#allocation2 + $0x1c0] sm:$0xff] %v3588_v47  ;;  %v3589_v57 = vmax.f32 %v3553_v5, 0.0  ;;  %v3484_v31 = vmax.f32 %v3056_v29, %v3413_v2  ;;  %v15482_v35 = vpop.f32.mrb[134].mxu0  ;;  %v15522_v55 = vpop.f32.mrb[134].mxu1  ;;  %v22291_v47 = vld [vmem:[#allocation14_spill] sm:$0xff]  ;;  %v22292_v5 = vld [vmem:[#allocation15_spill] sm:$0xff] }
 0x1fb   : > { %3628 = vst [vmem:[#allocation2 + $0x1d8] sm:$0xff] %v3591_v12  ;;  %v3522_v18 = vmax.f32 %v22278_v10, %v3486_v49  ;;  %v3487_v4 = vmax.f32 %v15482_v35, %v15522_v55  ;;  %v3059_v13 = vpop.f32.mrb[135].mxu0  ;;  %v3416_v7 = vpop.f32.mrb[135].mxu1  ;;  %v22293_v15 = vmax.f32 %v22291_v47, %v22292_v5  ;;  %v22294_v29 = vld [vmem:[#allocation16_spill] sm:$0xff]  ;;  %v22295_v2 = vld [vmem:[#allocation17_spill] sm:$0xff]  ;;  %v22298_v35 = vld [vmem:[#allocation19_spill] sm:$0xff] }
 0x1fc   : > { %3626 = vst [vmem:[#allocation2 + $0x1c8] sm:$0xff] %v3589_v57  ;;  %v3520_v50 = vmax.f32 %v22281_v53, %v3484_v31  ;;  %v3485_v62 = vmax.f32 %v3059_v13, %v3416_v7  ;;  %v22297_v31 = vld [vmem:[#allocation18_spill] sm:$0xff]  ;;  %v17296_v53 = vld [vmem:[%s22028_s0 + $0x238] sm:$0xff]  }
 0x1fd   : > { %v3558_v41 = vadd.f32 %v19412_v6, %v3522_v18  ;;  %v3523_v44 = vmax.f32 %v22284_v3, %v3487_v4  ;;  %15720 = vmatmul.mubr.msk.bf16.gmra.mrb[240].mxu0 %vm471_vm0, %v17288_v28  ;;  %15760 = vmatmul.mubr.msk.bf16.gmra.mrb[240].mxu1 %vm471_vm0, %v17289_v37  ;;  %v22296_v28 = vmax.f32 %v22294_v29, %v22295_v2  ;;  %v17298_v3 = vld [vmem:[%s22028_s0 + $0x630] sm:$0xff]  }
 0x1fe   : > { %v3556_v34 = vadd.f32 %v19412_v6, %v3520_v50  ;;  %v3521_v17 = vmax.f32 %v22287_v16, %v3485_v62  ;;  %15723 = vmatprep.mubr.msk.bf16.mxu0 %vm471_vm0, %v17290_v8  ;;  %15763 = vmatprep.mubr.msk.bf16.mxu1 %vm471_vm0, %v17291_v51  ;;  %v22299_v55 = vmax.f32 %v22297_v31, %v22298_v35  ;;  %v17297_v50 = vld [vmem:[%s22028_s0 + $0x478] sm:$0xff]  }
 0x1ff   : > { %v3594_v54 = vmax.f32 %v3558_v41, 0.0  ;;  %v3559_v59 = vadd.f32 %v19412_v6, %v3523_v44  ;;  %v17299_v44 = vld [vmem:[%s22028_s0 + $0x870] sm:$0xff]  }
 0x200   : > { %v3592_v61 = vmax.f32 %v3556_v34, 0.0  ;;  %v3557_v45 = vadd.f32 %v19412_v6, %v3521_v17  ;;  %v15485_v26 = vpop.f32.mrb[136].mxu0  ;;  %v15525_v0 = vpop.f32.mrb[136].mxu1  ;;  %v22300_v34 = vld [vmem:[#allocation20_spill] sm:$0xff] }
 0x201   : > { %3631 = vst [vmem:[#allocation2 + $0x1f0] sm:$0xff] %v3594_v54  ;;  %v3595_v32 = vmax.f32 %v3559_v59, 0.0  ;;  %v3490_v48 = vmax.f32 %v15485_v26, %v15525_v0  ;;  %v3072_v20 = vpop.f32.mrb[137].mxu0  ;;  %v3429_v40 = vpop.f32.mrb[137].mxu1  ;;  %v22302_v38 = vmax.f32 %v22300_v34, %v22301_v43 }
 0x202   : > { %3629 = vst [vmem:[#allocation2 + $0x1e0] sm:$0xff] %v3592_v61  ;;  %v3593_v39 = vmax.f32 %v3557_v45, 0.0  ;;  %v3488_v24 = vmax.f32 %v3072_v20, %v3429_v40  ;;  %v15486_v58 = vpop.f32.mrb[138].mxu0  ;;  %v15526_v42 = vpop.f32.mrb[138].mxu1  ;;  %v22303_v61 = vld [vmem:[#allocation22_spill] sm:$0xff]  ;;  %v22304_v45 = vld [vmem:[#allocation23_spill] sm:$0xff] }
 0x203   : > { %3632 = vst [vmem:[#allocation2 + $0x1f8] sm:$0xff] %v3595_v32  ;;  %v3526_v19 = vmax.f32 %v22290_v9, %v3490_v48  ;;  %v3491_v25 = vmax.f32 %v15486_v58, %v15526_v42  ;;  %v3075_v46 = vpop.f32.mrb[139].mxu0  ;;  %v3432_v21 = vpop.f32.mrb[139].mxu1  ;;  %v22305_v26 = vmax.f32 %v22303_v61, %v22304_v45  ;;  %v22306_v20 = vld [vmem:[#allocation24_spill] sm:$0xff]  ;;  %v22307_v40 = vld [vmem:[#allocation25_spill] sm:$0xff]  ;;  %v22310_v58 = vld [vmem:[#allocation27_spill] sm:$0xff] }
 0x204   : > { %3630 = vst [vmem:[#allocation2 + $0x1e8] sm:$0xff] %v3593_v39  ;;  %v3524_v27 = vmax.f32 %v22293_v15, %v3488_v24  ;;  %v3489_v12 = vmax.f32 %v3075_v46, %v3432_v21  ;;  %v22309_v24 = vld [vmem:[#allocation26_spill] sm:$0xff]  ;;  %v17300_v15 = vld [vmem:[%s22028_s0 + $0x638] sm:$0xff]  }
 0x205   : > { %v3562_v49 = vadd.f32 %v19412_v6, %v3526_v19  ;;  %v3527_v37 = vmax.f32 %v22296_v28, %v3491_v25  ;;  %15724 = vmatmul.mubr.msk.bf16.gmra.mrb[244].mxu0 %vm471_vm0, %v17292_v1  ;;  %15764 = vmatmul.mubr.msk.bf16.gmra.mrb[244].mxu1 %vm471_vm0, %v17293_v56  ;;  %v22308_v1 = vmax.f32 %v22306_v20, %v22307_v40  ;;  %v17302_v28 = vld [vmem:[%s22028_s0 + $0x640] sm:$0xff]  }
 0x206   : > { %v3560_v57 = vadd.f32 %v19412_v6, %v3524_v27  ;;  %v3525_v8 = vmax.f32 %v22299_v55, %v3489_v12  ;;  %15727 = vmatprep.mubr.msk.bf16.mxu0 %vm471_vm0, %v17294_v30  ;;  %15767 = vmatprep.mubr.msk.bf16.mxu1 %vm471_vm0, %v17295_v14  ;;  %v22311_v42 = vmax.f32 %v22309_v24, %v22310_v58  ;;  %v17301_v27 = vld [vmem:[%s22028_s0 + $0x878] sm:$0xff]   ;;  %v17310_v61 = vld [vmem:[%s22028_s0 + $0x660] sm:$0xff]   ;;  %v17312_v24 = vld [vmem:[%s22028_s0 + $0x668] sm:$0xff]  }
 0x207   : > { %v3598_v51 = vmax.f32 %v3562_v49, 0.0  ;;  %v3563_v52 = vadd.f32 %v19412_v6, %v3527_v37  ;;  %v17303_v37 = vld [vmem:[%s22028_s0 + $0x880] sm:$0xff]   ;;  %v17313_v58 = vld [vmem:[%s22028_s0 + $0x8a8] sm:$0xff]   ;;  %v17330_v55 = vld [vmem:[%s22028_s0 + $0x6b0] sm:$0xff]  }
 0x208   : > { %v3596_v22 = vmax.f32 %v3560_v57, 0.0  ;;  %v3561_v10 = vadd.f32 %v19412_v6, %v3525_v8  ;;  %v15489_v18 = vpop.f32.mrb[140].mxu0  ;;  %v15529_v4 = vpop.f32.mrb[140].mxu1  ;;  %v17311_v45 = vld [vmem:[%s22028_s0 + $0x8a0] sm:$0xff]  }
 0x209   : > { %3635 = vst [vmem:[#allocation2 + $0x210] sm:$0xff] %v3598_v51  ;;  %v3599_v13 = vmax.f32 %v3563_v52, 0.0  ;;  %v3494_v7 = vmax.f32 %v15489_v18, %v15529_v4  ;;  %v3088_v36 = vpop.f32.mrb[141].mxu0  ;;  %v3445_v23 = vpop.f32.mrb[141].mxu1  ;;  %v17304_v18 = vld [vmem:[%s22028_s0 + $0x648] sm:$0xff]   ;;  %v17327_v52 = vld [vmem:[%s22028_s0 + $0x8e0] sm:$0xff]  }
 0x20a   : > { %3633 = vst [vmem:[#allocation2 + $0x200] sm:$0xff] %v3596_v22  ;;  %v3597_v62 = vmax.f32 %v3561_v10, 0.0  ;;  %v3492_v41 = vmax.f32 %v3088_v36, %v3445_v23  ;;  %v15490_v33 = vpop.f32.mrb[142].mxu0  ;;  %v15530_v63 = vpop.f32.mrb[142].mxu1  ;;  %v17305_v4 = vld [vmem:[%s22028_s0 + $0x888] sm:$0xff]   ;;  %v17306_v23 = vld [vmem:[%s22028_s0 + $0x650] sm:$0xff]  }
 0x20b   : > { %3636 = vst [vmem:[#allocation2 + $0x218] sm:$0xff] %v3599_v13  ;;  %v3530_v16 = vmax.f32 %v22302_v38, %v3494_v7  ;;  %v3495_v17 = vmax.f32 %v15490_v33, %v15530_v63  ;;  %v3091_v54 = vpop.f32.mrb[143].mxu0  ;;  %v3448_v59 = vpop.f32.mrb[143].mxu1  ;;  %v17308_v38 = vld [vmem:[%s22028_s0 + $0x658] sm:$0xff]  }
 0x20c   : > { %3634 = vst [vmem:[#allocation2 + $0x208] sm:$0xff] %v3597_v62  ;;  %v3528_v0 = vmax.f32 %v22305_v26, %v3492_v41  ;;  %v3493_v32 = vmax.f32 %v3091_v54, %v3448_v59 }
 0x20d   : > { %v3566_v48 = vadd.f32 %v19412_v6, %v3530_v16  ;;  %v3531_v56 = vmax.f32 %v22308_v1, %v3495_v17  ;;  %15728 = vmatmul.mubr.msk.bf16.gmra.mrb[248].mxu0 %vm471_vm0, %v17296_v53  ;;  %15768 = vmatmul.mubr.msk.bf16.gmra.mrb[248].mxu1 %vm471_vm0, %v17297_v50  ;;  %v17307_v53 = vld [vmem:[%s22028_s0 + $0x890] sm:$0xff]   ;;  %v17309_v16 = vld [vmem:[%s22028_s0 + $0x898] sm:$0xff]  }
 0x20e   : > { %v3564_v39 = vadd.f32 %v19412_v6, %v3528_v0  ;;  %v3529_v30 = vmax.f32 %v22311_v42, %v3493_v32  ;;  %15775 = vmatprep.mubr.msk.bf16.mxu0 %vm471_vm0, %v17298_v3  ;;  %15815 = vmatprep.mubr.msk.bf16.mxu1 %vm471_vm0, %v17299_v44  ;;  %v17323_v1 = vld [vmem:[%s22028_s0 + $0x8d0] sm:$0xff]  }
 0x20f   : > { %v3602_v14 = vmax.f32 %v3566_v48, 0.0  ;;  %v3567_v60 = vadd.f32 %v19412_v6, %v3531_v56  ;;  %v17326_v48 = vld [vmem:[%s22028_s0 + $0x6a0] sm:$0xff]  }
 0x210   : > { %v3600_v11 = vmax.f32 %v3564_v39, 0.0  ;;  %v3565_v9 = vadd.f32 %v19412_v6, %v3529_v30  ;;  %v19690_v19 = vpop.f32.mrb[144].mxu0  ;;  %v19692_v25 = vpop.f32.mrb[144].mxu1 }
 0x211   : > { %3639 = vst [vmem:[#allocation2 + $0x230] sm:$0xff] %v3602_v14  ;;  %v3603_v46 = vmax.f32 %v3567_v60, 0.0  ;;  %v19696_v47 = vpop.f32.mrb[145].mxu0  ;;  %v19698_v5 = vpop.f32.mrb[145].mxu1  ;;  %v17314_v60 = vld [vmem:[%s22028_s0 + $0x670] sm:$0xff]  }
 0x212   : > { %3637 = vst [vmem:[#allocation2 + $0x220] sm:$0xff] %v3600_v11  ;;  %v3601_v12 = vmax.f32 %v3565_v9, 0.0  ;;  %v19708_v29 = vpop.f32.mrb[146].mxu0  ;;  %v19710_v2 = vpop.f32.mrb[146].mxu1  ;;  %v17315_v11 = vld [vmem:[%s22028_s0 + $0x8b0] sm:$0xff]  }
 0x213   : > { %3640 = vst [vmem:[#allocation2 + $0x238] sm:$0xff] %v3603_v46  ;;  %v19720_v31 = vpop.f32.mrb[147].mxu0  ;;  %v19722_v35 = vpop.f32.mrb[147].mxu1 }
 0x214   : > { %3638 = vst [vmem:[#allocation2 + $0x228] sm:$0xff] %v3601_v12 }
 0x215   : > { %15776 = vmatmul.mubr.msk.bf16.vlgmr.msra.gmra.mrb[252].mxu0 %vm471_vm0, %v17300_v15  ;;  %15816 = vmatmul.mubr.msk.bf16.vlgmr.msra.gmra.mrb[252].mxu1 %vm471_vm0, %v17301_v27 }
 0x216   : > { %15779 = vmatprep.mubr.msk.bf16.mxu0 %vm471_vm0, %v17302_v28  ;;  %15819 = vmatprep.mubr.msk.bf16.mxu1 %vm471_vm0, %v17303_v37 }
 0x218   : > { %v19730_v8 = vpop.f32.mrb[148].mxu0  ;;  %v19732_v51 = vpop.f32.mrb[148].mxu1 }
 0x219   : > { %v19736_v22 = vpop.f32.mrb[149].mxu0  ;;  %v19738_v10 = vpop.f32.mrb[149].mxu1 }
 0x21a   : > { %v19748_v7 = vpop.f32.mrb[150].mxu0  ;;  %v19750_v36 = vpop.f32.mrb[150].mxu1 }
 0x21b   : > { %v19760_v62 = vpop.f32.mrb[151].mxu0  ;;  %v19762_v41 = vpop.f32.mrb[151].mxu1 }
 0x21d   : > { %15780 = vmatmul.mubr.msk.bf16.gmra.mrb[0].mxu0 %vm471_vm0, %v17304_v18  ;;  %15820 = vmatmul.mubr.msk.bf16.gmra.mrb[0].mxu1 %vm471_vm0, %v17305_v4 }
 0x21e   : > { %15783 = vmatprep.mubr.msk.bf16.mxu0 %vm471_vm0, %v17306_v23  ;;  %15823 = vmatprep.mubr.msk.bf16.mxu1 %vm471_vm0, %v17307_v53  ;;  %v17316_v23 = vld [vmem:[%s22028_s0 + $0x678] sm:$0xff]  }
 0x21f   : > { %v17317_v53 = vld [vmem:[%s22028_s0 + $0x8b8] sm:$0xff]  }
 0x220   : > { %v19770_v63 = vpop.f32.mrb[152].mxu0  ;;  %v19772_v3 = vpop.f32.mrb[152].mxu1 }
 0x221   : > { %v19776_v34 = vpop.f32.mrb[153].mxu0  ;;  %v19778_v43 = vpop.f32.mrb[153].mxu1 }
 0x222   : > { %v19788_v54 = vpop.f32.mrb[154].mxu0  ;;  %v19790_v59 = vpop.f32.mrb[154].mxu1 }
 0x223   : > { %v19800_v0 = vpop.f32.mrb[155].mxu0  ;;  %v19802_v32 = vpop.f32.mrb[155].mxu1 }
 0x225   : > { %15784 = vmatmul.mubr.msk.bf16.gmra.mrb[4].mxu0 %vm471_vm0, %v17308_v38  ;;  %15824 = vmatmul.mubr.msk.bf16.gmra.mrb[4].mxu1 %vm471_vm0, %v17309_v16 }
 0x226   : > { %15787 = vmatprep.mubr.msk.bf16.mxu0 %vm471_vm0, %v17310_v61  ;;  %15827 = vmatprep.mubr.msk.bf16.mxu1 %vm471_vm0, %v17311_v45  ;;  %v17318_v45 = vld [vmem:[%s22028_s0 + $0x680] sm:$0xff]  }
 0x228   : > { %v19810_v20 = vpop.f32.mrb[156].mxu0  ;;  %v19812_v40 = vpop.f32.mrb[156].mxu1 }
 0x229   : > { %v19816_v56 = vpop.f32.mrb[157].mxu0  ;;  %v19818_v39 = vpop.f32.mrb[157].mxu1 }
 0x22a   : > { %v19828_v30 = vpop.f32.mrb[158].mxu0  ;;  %v19830_v14 = vpop.f32.mrb[158].mxu1 }
 0x22b   : > { %v19840_v46 = vpop.f32.mrb[159].mxu0  ;;  %v19842_v15 = vpop.f32.mrb[159].mxu1 }
 0x22d   : > { %15788 = vmatmul.mubr.msk.bf16.gmra.mrb[8].mxu0 %vm471_vm0, %v17312_v24  ;;  %15828 = vmatmul.mubr.msk.bf16.gmra.mrb[8].mxu1 %vm471_vm0, %v17313_v58  ;;  %v17319_v24 = vld [vmem:[%s22028_s0 + $0x8c0] sm:$0xff]   ;;  %v17322_v58 = vld [vmem:[%s22028_s0 + $0x690] sm:$0xff]  }
 0x22e   : > { %15791 = vmatprep.mubr.msk.bf16.mxu0 %vm471_vm0, %v17314_v60  ;;  %15831 = vmatprep.mubr.msk.bf16.mxu1 %vm471_vm0, %v17315_v11 }
 0x230   : > { %v19850_v12 = vpop.f32.mrb[160].mxu0  ;;  %v19852_v28 = vpop.f32.mrb[160].mxu1 }
 0x231   : > { %v19856_v18 = vpop.f32.mrb[161].mxu0  ;;  %v19858_v4 = vpop.f32.mrb[161].mxu1 }
 0x232   : > { %v19868_v16 = vpop.f32.mrb[162].mxu0  ;;  %v19870_v61 = vpop.f32.mrb[162].mxu1 }
 0x233   : > { %v19880_v60 = vpop.f32.mrb[163].mxu0  ;;  %v19882_v11 = vpop.f32.mrb[163].mxu1 }
 0x235   : > { %15792 = vmatmul.mubr.msk.bf16.gmra.mrb[12].mxu0 %vm471_vm0, %v17316_v23  ;;  %15832 = vmatmul.mubr.msk.bf16.gmra.mrb[12].mxu1 %vm471_vm0, %v17317_v53  ;;  %v17320_v23 = vld [vmem:[%s22028_s0 + $0x688] sm:$0xff]  }
 0x236   : > { %15795 = vmatprep.mubr.msk.bf16.mxu0 %vm471_vm0, %v17318_v45  ;;  %15835 = vmatprep.mubr.msk.bf16.mxu1 %vm471_vm0, %v17319_v24  ;;  %v17321_v53 = vld [vmem:[%s22028_s0 + $0x8c8] sm:$0xff]  }
 0x238   : > { %v19890_v37 = vpop.f32.mrb[164].mxu0  ;;  %v19892_v27 = vpop.f32.mrb[164].mxu1 }
 0x239   : > { %v19896_v9 = vpop.f32.mrb[165].mxu0  ;;  %v19898_v42 = vpop.f32.mrb[165].mxu1 }
 0x23a   : > { %v19908_v24 = vpop.f32.mrb[166].mxu0  ;;  %v19910_v38 = vpop.f32.mrb[166].mxu1 }
 0x23b   : > { %22312 = vst [vmem:[#allocation28_spill] sm:$0xff] %v19910_v38  ;;  %v19920_v26 = vpop.f32.mrb[167].mxu0  ;;  %v19922_v17 = vpop.f32.mrb[167].mxu1 }
 0x23c   : > { %22313 = vst [vmem:[#allocation29_spill] sm:$0xff] %v19920_v26  ;;  %22314 = vst [vmem:[#allocation4_spill] sm:$0xff] %v19922_v17 }
 0x23d   : > { %15796 = vmatmul.mubr.msk.bf16.gmra.mrb[16].mxu0 %vm471_vm0, %v17320_v23  ;;  %15836 = vmatmul.mubr.msk.bf16.gmra.mrb[16].mxu1 %vm471_vm0, %v17321_v53  ;;  %v17324_v23 = vld [vmem:[%s22028_s0 + $0x698] sm:$0xff]  }
 0x23e   : > { %15799 = vmatprep.mubr.msk.bf16.mxu0 %vm471_vm0, %v17322_v58  ;;  %15839 = vmatprep.mubr.msk.bf16.mxu1 %vm471_vm0, %v17323_v1  ;;  %v17325_v58 = vld [vmem:[%s22028_s0 + $0x8d8] sm:$0xff]  }
 0x240   : > { %v19930_v44 = vpop.f32.mrb[168].mxu0  ;;  %v19932_v33 = vpop.f32.mrb[168].mxu1 }
 0x241   : > { %22315 = vst [vmem:[#allocation5_spill] sm:$0xff] %v19930_v44  ;;  %22316 = vst [vmem:[#allocation6_spill] sm:$0xff] %v19932_v33  ;;  %v19936_v50 = vpop.f32.mrb[169].mxu0  ;;  %v19938_v13 = vpop.f32.mrb[169].mxu1 }
 0x242   : > { %22317 = vst [vmem:[#allocation7_spill] sm:$0xff] %v19936_v50  ;;  %22318 = vst [vmem:[#allocation8_spill] sm:$0xff] %v19938_v13  ;;  %v19948_v53 = vpop.f32.mrb[170].mxu0  ;;  %v19950_v45 = vpop.f32.mrb[170].mxu1 }
 0x243   : > { %22319 = vst [vmem:[#allocation9_spill] sm:$0xff] %v19948_v53  ;;  %22320 = vst [vmem:[#allocation10_spill] sm:$0xff] %v19950_v45  ;;  %v19960_v57 = vpop.f32.mrb[171].mxu0  ;;  %v19962_v49 = vpop.f32.mrb[171].mxu1 }
 0x244   : > { %22321 = vst [vmem:[#allocation11_spill] sm:$0xff] %v19960_v57  ;;  %22322 = vst [vmem:[#allocation12_spill] sm:$0xff] %v19962_v49 }
 0x245   : > { %15800 = vmatmul.mubr.msk.bf16.gmra.mrb[20].mxu0 %vm471_vm0, %v17324_v23  ;;  %15840 = vmatmul.mubr.msk.bf16.gmra.mrb[20].mxu1 %vm471_vm0, %v17325_v58  ;;  %v17328_v23 = vld [vmem:[%s22028_s0 + $0x6a8] sm:$0xff]  }
 0x246   : > { %15803 = vmatprep.mubr.msk.bf16.mxu0 %vm471_vm0, %v17326_v48  ;;  %15843 = vmatprep.mubr.msk.bf16.mxu1 %vm471_vm0, %v17327_v52  ;;  %v17329_v48 = vld [vmem:[%s22028_s0 + $0x8e8] sm:$0xff]  }
 0x248   : > { %v19970_v21 = vpop.f32.mrb[172].mxu0  ;;  %v19972_v13 = vpop.f32.mrb[172].mxu1 }
 0x249   : > { %22323 = vst [vmem:[#allocation13_spill] sm:$0xff] %v19970_v21  ;;  %22324 = vst [vmem:[#allocation14_spill] sm:$0xff] %v19972_v13  ;;  %v19976_v45 = vpop.f32.mrb[173].mxu0  ;;  %v19978_v53 = vpop.f32.mrb[173].mxu1  ;;  %v17331_v13 = vld [vmem:[%s22028_s0 + $0x8f0] sm:$0xff]   ;;  %v22338_v21 = vmax.f32 %v19690_v19, %v19692_v25  ;;  %v22341_v19 = vmax.f32 %v19720_v31, %v19722_v35  ;;  %v22342_v31 = vmax.f32 %v19730_v8, %v19732_v51 }
 0x24a   : > { %22325 = vst [vmem:[#allocation15_spill] sm:$0xff] %v19976_v45  ;;  %22326 = vst [vmem:[#allocation16_spill] sm:$0xff] %v19978_v53  ;;  %v19988_v58 = vpop.f32.mrb[174].mxu0  ;;  %v19990_v1 = vpop.f32.mrb[174].mxu1  ;;  %v22344_v8 = vmax.f32 %v19748_v7, %v19750_v36 }
 0x24b   : > { %22327 = vst [vmem:[#allocation17_spill] sm:$0xff] %v19988_v58  ;;  %22328 = vst [vmem:[#allocation18_spill] sm:$0xff] %v19990_v1  ;;  %v20000_v49 = vpop.f32.mrb[175].mxu0  ;;  %v20002_v57 = vpop.f32.mrb[175].mxu1 }
 0x24c   : > { %22329 = vst [vmem:[#allocation19_spill] sm:$0xff] %v20000_v49  ;;  %22330 = vst [vmem:[#allocation20_spill] sm:$0xff] %v20002_v57 }
 0x24d   : > { %15804 = vmatmul.mubr.msk.bf16.gmra.mrb[24].mxu0 %vm471_vm0, %v17328_v23  ;;  %15844 = vmatmul.mubr.msk.bf16.gmra.mrb[24].mxu1 %vm471_vm0, %v17329_v48  ;;  %v17332_v23 = vld [vmem:[%s22028_s0 + $0x6b8] sm:$0xff]  }
 0x24e   : > { %15807 = vmatprep.mubr.msk.bf16.mxu0 %vm471_vm0, %v17330_v55  ;;  %15847 = vmatprep.mubr.msk.bf16.mxu1 %vm471_vm0, %v17331_v13  ;;  %v17333_v55 = vld [vmem:[%s22028_s0 + $0x8f8] sm:$0xff]  }
 0x250   : > { %v20010_v53 = vpop.f32.mrb[176].mxu0  ;;  %v20012_v45 = vpop.f32.mrb[176].mxu1 }
 0x251   : > { %22331 = vst [vmem:[#allocation21_spill] sm:$0xff] %v20010_v53  ;;  %22332 = vst [vmem:[#allocation22_spill] sm:$0xff] %v20012_v45  ;;  %v20016_v1 = vpop.f32.mrb[177].mxu0  ;;  %v20018_v58 = vpop.f32.mrb[177].mxu1 }
 0x252   : > { %22333 = vst [vmem:[#allocation23_spill] sm:$0xff] %v20016_v1  ;;  %22334 = vst [vmem:[#allocation24_spill] sm:$0xff] %v20018_v58  ;;  %v20028_v48 = vpop.f32.mrb[178].mxu0  ;;  %v20030_v52 = vpop.f32.mrb[178].mxu1 }
 0x253   : > { %22335 = vst [vmem:[#allocation25_spill] sm:$0xff] %v20028_v48  ;;  %22336 = vst [vmem:[#allocation26_spill] sm:$0xff] %v20030_v52  ;;  %v20034_v45 = vpop.f32.mrb[179].mxu0  ;;  %v20036_v53 = vpop.f32.mrb[179].mxu1 }
 0x254   : > { %22337 = vst [vmem:[#allocation27_spill] sm:$0xff] %v20036_v53 }
 0x255   : > { %15808 = vmatmul.mubr.msk.bf16.gmra.mrb[28].mxu0 %vm471_vm0, %v17332_v23  ;;  %15848 = vmatmul.mubr.msk.bf16.gmra.mrb[28].mxu1 %vm471_vm0, %v17333_v55  ;;  %v22339_v23 = vmax.f32 %v19696_v47, %v19698_v5 }
 0x258   : > { %v15617_v49 = vpop.f32.mrb[180].mxu0  ;;  %v15657_v13 = vpop.f32.mrb[180].mxu1 }
 0x259   : > { %v5107_v58 = vmax.f32 %v15617_v49, %v15657_v13  ;;  %v4605_v1 = vpop.f32.mrb[181].mxu0  ;;  %v4962_v50 = vpop.f32.mrb[181].mxu1  ;;  %v22340_v49 = vmax.f32 %v19708_v29, %v19710_v2 }
 0x25a   : > { %v5105_v33 = vmax.f32 %v4605_v1, %v4962_v50  ;;  %v15618_v44 = vpop.f32.mrb[182].mxu0  ;;  %v15658_v17 = vpop.f32.mrb[182].mxu1 }
 0x25b   : > { %v5143_v52 = vmax.f32 %v22338_v21, %v5107_v58  ;;  %v5108_v48 = vmax.f32 %v15618_v44, %v15658_v17  ;;  %v4608_v26 = vpop.f32.mrb[183].mxu0  ;;  %v4965_v38 = vpop.f32.mrb[183].mxu1 }
 0x25c   : > { %v5141_v57 = vmax.f32 %v22339_v23, %v5105_v33  ;;  %v5106_v55 = vmax.f32 %v4608_v26, %v4965_v38  ;;  %v22343_v23 = vmax.f32 %v19736_v22, %v19738_v10 }
 0x25d   : > { %v5179_v53 = vadd.f32 %v19412_v6, %v5143_v52  ;;  %v5144_v50 = vmax.f32 %v22340_v49, %v5108_v48 }
 0x25e   : > { %v5177_v1 = vadd.f32 %v19412_v6, %v5141_v57  ;;  %v5142_v25 = vmax.f32 %v22341_v19, %v5106_v55 }
 0x25f   : > { %v5215_v21 = vmax.f32 %v5179_v53, 0.0  ;;  %v5180_v44 = vadd.f32 %v19412_v6, %v5144_v50  ;;  %v20067_v50 = vld [vmem:[%s22030_s2] ss:$0 sm:$0xff] }
 0x260   : > { %v5213_v17 = vmax.f32 %v5177_v1, 0.0  ;;  %v5178_v47 = vadd.f32 %v19412_v6, %v5142_v25  ;;  %v15621_v5 = vpop.f32.mrb[184].mxu0  ;;  %v15661_v33 = vpop.f32.mrb[184].mxu1  ;;  %v22345_v25 = vmax.f32 %v19760_v62, %v19762_v41  ;;  %v22346_v62 = vmax.f32 %v19770_v63, %v19772_v3 }
 0x261   : > { %5252 = vst [vmem:[#allocation2 + $0x250] sm:$0xff] %v5215_v21  ;;  %v5216_v26 = vmax.f32 %v5180_v44, 0.0  ;;  %v5111_v38 = vmax.f32 %v15621_v5, %v15661_v33  ;;  %v4621_v52 = vpop.f32.mrb[185].mxu0  ;;  %v4978_v29 = vpop.f32.mrb[185].mxu1  ;;  %v22349_v63 = vmax.f32 %v19800_v0, %v19802_v32  ;;  %v22350_v0 = vmax.f32 %v19810_v20, %v19812_v40 }
 0x262   : > { %5250 = vst [vmem:[#allocation2 + $0x240] sm:$0xff] %v5213_v17  ;;  %v5214_v2 = vmax.f32 %v5178_v47, 0.0  ;;  %v5109_v57 = vmax.f32 %v4621_v52, %v4978_v29  ;;  %v15622_v58 = vpop.f32.mrb[186].mxu0  ;;  %v15662_v13 = vpop.f32.mrb[186].mxu1  ;;  %v22353_v20 = vmax.f32 %v19840_v46, %v19842_v15  ;;  %v22354_v46 = vmax.f32 %v19850_v12, %v19852_v28 }
 0x263   : > { %5253 = vst [vmem:[#allocation2 + $0x258] sm:$0xff] %v5216_v26  ;;  %v5147_v35 = vmax.f32 %v22342_v31, %v5111_v38  ;;  %v5112_v53 = vmax.f32 %v15622_v58, %v15662_v13  ;;  %v4624_v48 = vpop.f32.mrb[187].mxu0  ;;  %v4981_v6 = vpop.f32.mrb[187].mxu1  ;;  %v22347_v31 = vmax.f32 %v19776_v34, %v19778_v43  ;;  %v22357_v12 = vmax.f32 %v19880_v60, %v19882_v11 }
 0x264   : > { %5251 = vst [vmem:[#allocation2 + $0x248] sm:$0xff] %v5214_v2  ;;  %v5145_v55 = vmax.f32 %v22343_v23, %v5109_v57  ;;  %v5110_v49 = vmax.f32 %v4624_v48, %v4981_v6  ;;  %v22348_v6 = vmax.f32 %v19788_v54, %v19790_v59  ;;  %v22358_v60 = vmax.f32 %v19890_v37, %v19892_v27  ;;  %v22363_v27 = vld [vmem:[#allocation4_spill] sm:$0xff] }
 0x265   : > { %v5183_v1 = vadd.f32 %v20067_v50, %v5147_v35  ;;  %v5148_v51 = vmax.f32 %v22344_v8, %v5112_v53 }
 0x266   : > { %v5181_v19 = vadd.f32 %v20067_v50, %v5145_v55  ;;  %v5146_v21 = vmax.f32 %v22345_v25, %v5110_v49 }
 0x267   : > { %v5219_v22 = vmax.f32 %v5183_v1, 0.0  ;;  %v5184_v10 = vadd.f32 %v20067_v50, %v5148_v51 }
 0x268   : > { %v5217_v44 = vmax.f32 %v5181_v19, 0.0  ;;  %v5182_v17 = vadd.f32 %v20067_v50, %v5146_v21  ;;  %v15625_v47 = vpop.f32.mrb[188].mxu0  ;;  %v15665_v5 = vpop.f32.mrb[188].mxu1 }
 0x269   : > { %5256 = vst [vmem:[#allocation2 + $0x270] sm:$0xff] %v5219_v22  ;;  %v5220_v33 = vmax.f32 %v5184_v10, 0.0  ;;  %v5115_v26 = vmax.f32 %v15625_v47, %v15665_v5  ;;  %v4637_v38 = vpop.f32.mrb[189].mxu0  ;;  %v4994_v7 = vpop.f32.mrb[189].mxu1 }
 0x26a   : > { %5254 = vst [vmem:[#allocation2 + $0x260] sm:$0xff] %v5217_v44  ;;  %v5218_v36 = vmax.f32 %v5182_v17, 0.0  ;;  %v5113_v52 = vmax.f32 %v4637_v38, %v4994_v7  ;;  %v15626_v29 = vpop.f32.mrb[190].mxu0  ;;  %v15666_v2 = vpop.f32.mrb[190].mxu1 }
 0x26b   : > { %5257 = vst [vmem:[#allocation2 + $0x278] sm:$0xff] %v5220_v33  ;;  %v5151_v41 = vmax.f32 %v22346_v62, %v5115_v26  ;;  %v5116_v57 = vmax.f32 %v15626_v29, %v15666_v2  ;;  %v4640_v58 = vpop.f32.mrb[191].mxu0  ;;  %v4997_v13 = vpop.f32.mrb[191].mxu1  ;;  %v22351_v33 = vmax.f32 %v19816_v56, %v19818_v39 }
 0x26c   : > { %5255 = vst [vmem:[#allocation2 + $0x268] sm:$0xff] %v5218_v36  ;;  %v5149_v35 = vmax.f32 %v22347_v31, %v5113_v52  ;;  %v5114_v53 = vmax.f32 %v4640_v58, %v4997_v13  ;;  %v22352_v36 = vmax.f32 %v19828_v30, %v19830_v14 }
 0x26d   : > { %v5187_v48 = vadd.f32 %v20067_v50, %v5151_v41  ;;  %v5152_v23 = vmax.f32 %v22348_v6, %v5116_v57 }
 0x26e   : > { %v5185_v55 = vadd.f32 %v20067_v50, %v5149_v35  ;;  %v5150_v3 = vmax.f32 %v22349_v63, %v5114_v53  ;;  %v22355_v63 = vmax.f32 %v19856_v18, %v19858_v4 }
 0x26f   : > { %v5223_v49 = vmax.f32 %v5187_v48, 0.0  ;;  %v5188_v1 = vadd.f32 %v20067_v50, %v5152_v23 }
 0x270   : > { %v5221_v8 = vmax.f32 %v5185_v55, 0.0  ;;  %v5186_v34 = vadd.f32 %v20067_v50, %v5150_v3  ;;  %v15629_v43 = vpop.f32.mrb[192].mxu0  ;;  %v15669_v51 = vpop.f32.mrb[192].mxu1 }
 0x271   : > { %5260 = vst [vmem:[#allocation2 + $0x290] sm:$0xff] %v5223_v49  ;;  %v5224_v19 = vmax.f32 %v5188_v1, 0.0  ;;  %v5119_v25 = vmax.f32 %v15629_v43, %v15669_v51  ;;  %v4653_v21 = vpop.f32.mrb[193].mxu0  ;;  %v5010_v54 = vpop.f32.mrb[193].mxu1 }
 0x272   : > { %5258 = vst [vmem:[#allocation2 + $0x280] sm:$0xff] %v5221_v8  ;;  %v5222_v59 = vmax.f32 %v5186_v34, 0.0  ;;  %v5117_v22 = vmax.f32 %v4653_v21, %v5010_v54  ;;  %v15630_v10 = vpop.f32.mrb[194].mxu0  ;;  %v15670_v44 = vpop.f32.mrb[194].mxu1  ;;  %v22356_v8 = vmax.f32 %v19868_v16, %v19870_v61 }
 0x273   : > { %5261 = vst [vmem:[#allocation2 + $0x298] sm:$0xff] %v5224_v19  ;;  %v5155_v32 = vmax.f32 %v22350_v0, %v5119_v25  ;;  %v5120_v17 = vmax.f32 %v15630_v10, %v15670_v44  ;;  %v4656_v47 = vpop.f32.mrb[195].mxu0  ;;  %v5013_v5 = vpop.f32.mrb[195].mxu1 }
 0x274   : > { %5259 = vst [vmem:[#allocation2 + $0x288] sm:$0xff] %v5222_v59  ;;  %v5153_v26 = vmax.f32 %v22351_v33, %v5117_v22  ;;  %v5118_v38 = vmax.f32 %v4656_v47, %v5013_v5  ;;  %v22359_v5 = vmax.f32 %v19896_v9, %v19898_v42 }
 0x275   : > { %v5191_v7 = vadd.f32 %v20067_v50, %v5155_v32  ;;  %v5156_v52 = vmax.f32 %v22352_v36, %v5120_v17 }
 0x276   : > { %v5189_v29 = vadd.f32 %v20067_v50, %v5153_v26  ;;  %v5154_v40 = vmax.f32 %v22353_v20, %v5118_v38  ;;  %v22362_v20 = vld [vmem:[#allocation29_spill] sm:$0xff] }
 0x277   : > { %v5227_v2 = vmax.f32 %v5191_v7, 0.0  ;;  %v5192_v62 = vadd.f32 %v20067_v50, %v5156_v52  ;;  %v22360_v7 = vld [vmem:[#allocation28_spill] sm:$0xff]  ;;  %v22364_v37 = vmax.f32 %v22362_v20, %v22363_v27 }
 0x278   : > { %v5225_v41 = vmax.f32 %v5189_v29, 0.0  ;;  %v5190_v56 = vadd.f32 %v20067_v50, %v5154_v40  ;;  %v15633_v39 = vpop.f32.mrb[196].mxu0  ;;  %v15673_v57 = vpop.f32.mrb[196].mxu1  ;;  %v22361_v36 = vmax.f32 %v19908_v24, %v22360_v7  ;;  %v22381_v20 = vld [vmem:[#allocation16_spill] sm:$0xff] }
 0x279   : > { %5264 = vst [vmem:[#allocation2 + $0x2b0] sm:$0xff] %v5227_v2  ;;  %v5228_v58 = vmax.f32 %v5192_v62, 0.0  ;;  %v5123_v13 = vmax.f32 %v15633_v39, %v15673_v57  ;;  %v4669_v31 = vpop.f32.mrb[197].mxu0  ;;  %v5026_v30 = vpop.f32.mrb[197].mxu1 }
 0x27a   : > { %5262 = vst [vmem:[#allocation2 + $0x2a0] sm:$0xff] %v5225_v41  ;;  %v5226_v14 = vmax.f32 %v5190_v56, 0.0  ;;  %v5121_v35 = vmax.f32 %v4669_v31, %v5026_v30  ;;  %v15634_v53 = vpop.f32.mrb[198].mxu0  ;;  %v15674_v48 = vpop.f32.mrb[198].mxu1 }
 0x27b   : > { %5265 = vst [vmem:[#allocation2 + $0x2b8] sm:$0xff] %v5228_v58  ;;  %v5159_v15 = vmax.f32 %v22354_v46, %v5123_v13  ;;  %v5124_v6 = vmax.f32 %v15634_v53, %v15674_v48  ;;  %v4672_v23 = vpop.f32.mrb[199].mxu0  ;;  %v5029_v55 = vpop.f32.mrb[199].mxu1  ;;  %v22366_v53 = vld [vmem:[#allocation6_spill] sm:$0xff] }
 0x27c   : > { %5263 = vst [vmem:[#allocation2 + $0x2a8] sm:$0xff] %v5226_v14  ;;  %v5157_v3 = vmax.f32 %v22355_v63, %v5121_v35  ;;  %v5122_v49 = vmax.f32 %v4672_v23, %v5029_v55  ;;  %v22365_v35 = vld [vmem:[#allocation5_spill] sm:$0xff]  ;;  %v22368_v55 = vld [vmem:[#allocation7_spill] sm:$0xff]  ;;  %v22369_v63 = vld [vmem:[#allocation8_spill] sm:$0xff] }
 0x27d   : > { %v5195_v1 = vadd.f32 %v20067_v50, %v5159_v15  ;;  %v5160_v34 = vmax.f32 %v22356_v8, %v5124_v6  ;;  %v22367_v48 = vmax.f32 %v22365_v35, %v22366_v53 }
 0x27e   : > { %v5193_v43 = vadd.f32 %v20067_v50, %v5157_v3  ;;  %v5158_v28 = vmax.f32 %v22357_v12, %v5122_v49  ;;  %v22370_v3 = vmax.f32 %v22368_v55, %v22369_v63 }
 0x27f   : > { %v5231_v51 = vmax.f32 %v5195_v1, 0.0  ;;  %v5196_v19 = vadd.f32 %v20067_v50, %v5160_v34  ;;  %v22371_v34 = vld [vmem:[#allocation9_spill] sm:$0xff] }
 0x280   : > { %v5229_v25 = vmax.f32 %v5193_v43, 0.0  ;;  %v5194_v18 = vadd.f32 %v20067_v50, %v5158_v28  ;;  %v15637_v4 = vpop.f32.mrb[200].mxu0  ;;  %v15677_v21 = vpop.f32.mrb[200].mxu1  ;;  %v22372_v43 = vld [vmem:[#allocation10_spill] sm:$0xff] }
 0x281   : > { %5268 = vst [vmem:[#allocation2 + $0x2d0] sm:$0xff] %v5231_v51  ;;  %v5232_v54 = vmax.f32 %v5196_v19, 0.0  ;;  %v5127_v59 = vmax.f32 %v15637_v4, %v15677_v21  ;;  %v4685_v22 = vpop.f32.mrb[201].mxu0  ;;  %v5042_v16 = vpop.f32.mrb[201].mxu1  ;;  %v22373_v12 = vmax.f32 %v22371_v34, %v22372_v43  ;;  %v22374_v19 = vld [vmem:[#allocation11_spill] sm:$0xff] }
 0x282   : > { %5266 = vst [vmem:[#allocation2 + $0x2c0] sm:$0xff] %v5229_v25  ;;  %v5230_v61 = vmax.f32 %v5194_v18, 0.0  ;;  %v5125_v10 = vmax.f32 %v4685_v22, %v5042_v16  ;;  %v15638_v44 = vpop.f32.mrb[202].mxu0  ;;  %v15678_v0 = vpop.f32.mrb[202].mxu1  ;;  %v22375_v25 = vld [vmem:[#allocation12_spill] sm:$0xff] }
 0x283   : > { %5269 = vst [vmem:[#allocation2 + $0x2d8] sm:$0xff] %v5232_v54  ;;  %v5163_v11 = vmax.f32 %v22358_v60, %v5127_v59  ;;  %v5128_v32 = vmax.f32 %v15638_v44, %v15678_v0  ;;  %v4688_v17 = vpop.f32.mrb[203].mxu0  ;;  %v5045_v47 = vpop.f32.mrb[203].mxu1  ;;  %v22376_v18 = vmax.f32 %v22374_v19, %v22375_v25  ;;  %v22393_v19 = vld [vmem:[#allocation24_spill] sm:$0xff] }
 0x284   : > { %5267 = vst [vmem:[#allocation2 + $0x2c8] sm:$0xff] %v5230_v61  ;;  %v5161_v33 = vmax.f32 %v22359_v5, %v5125_v10  ;;  %v5126_v26 = vmax.f32 %v4688_v17, %v5045_v47  ;;  %v22377_v5 = vld [vmem:[#allocation13_spill] sm:$0xff] }
 0x285   : > { %v5199_v38 = vadd.f32 %v20067_v50, %v5163_v11  ;;  %v5164_v52 = vmax.f32 %v22361_v36, %v5128_v32 }
 0x286   : > { %v5197_v29 = vadd.f32 %v20067_v50, %v5161_v33  ;;  %v5162_v40 = vmax.f32 %v22364_v37, %v5126_v26  ;;  %v22378_v33 = vld [vmem:[#allocation14_spill] sm:$0xff] }
 0x287   : > { %v5235_v2 = vmax.f32 %v5199_v38, 0.0  ;;  %v5200_v62 = vadd.f32 %v20067_v50, %v5164_v52  ;;  %v22379_v26 = vmax.f32 %v22377_v5, %v22378_v33 }
 0x288   : > { %v5233_v41 = vmax.f32 %v5197_v29, 0.0  ;;  %v5198_v42 = vadd.f32 %v20067_v50, %v5162_v40  ;;  %v15641_v9 = vpop.f32.mrb[204].mxu0  ;;  %v15681_v56 = vpop.f32.mrb[204].mxu1  ;;  %v22380_v29 = vld [vmem:[#allocation15_spill] sm:$0xff] }
 0x289   : > { %5272 = vst [vmem:[#allocation2 + $0x2f0] sm:$0xff] %v5235_v2  ;;  %v5236_v39 = vmax.f32 %v5200_v62, 0.0  ;;  %v5131_v57 = vmax.f32 %v15641_v9, %v15681_v56  ;;  %v4701_v58 = vpop.f32.mrb[205].mxu0  ;;  %v5058_v24 = vpop.f32.mrb[205].mxu1  ;;  %v22382_v27 = vmax.f32 %v22380_v29, %v22381_v20  ;;  %v22383_v62 = vld [vmem:[#allocation17_spill] sm:$0xff] }
 0x28a   : > { %5270 = vst [vmem:[#allocation2 + $0x2e0] sm:$0xff] %v5233_v41  ;;  %v5234_v13 = vmax.f32 %v5198_v42, 0.0  ;;  %v5129_v31 = vmax.f32 %v4701_v58, %v5058_v24  ;;  %v15642_v30 = vpop.f32.mrb[206].mxu0  ;;  %v15682_v14 = vpop.f32.mrb[206].mxu1  ;;  %v22384_v41 = vld [vmem:[#allocation18_spill] sm:$0xff] }
 0x28b   : > { %5273 = vst [vmem:[#allocation2 + $0x2f8] sm:$0xff] %v5236_v39  ;;  %v5167_v46 = vmax.f32 %v22367_v48, %v5131_v57  ;;  %v5132_v15 = vmax.f32 %v15642_v30, %v15682_v14  ;;  %v4704_v6 = vpop.f32.mrb[207].mxu0  ;;  %v5061_v23 = vpop.f32.mrb[207].mxu1  ;;  %v22385_v42 = vmax.f32 %v22383_v62, %v22384_v41  ;;  %v22386_v39 = vld [vmem:[#allocation19_spill] sm:$0xff]  ;;  %v22387_v57 = vld [vmem:[#allocation20_spill] sm:$0xff] }
 0x28c   : > { %5271 = vst [vmem:[#allocation2 + $0x2e8] sm:$0xff] %v5234_v13  ;;  %v5165_v49 = vmax.f32 %v22370_v3, %v5129_v31  ;;  %v5130_v1 = vmax.f32 %v4704_v6, %v5061_v23  ;;  %v22388_v58 = vmax.f32 %v22386_v39, %v22387_v57 }
 0x28d   : > { %v5203_v8 = vadd.f32 %v20067_v50, %v5167_v46  ;;  %v5168_v28 = vmax.f32 %v22373_v12, %v5132_v15 }
 0x28e   : > { %v5201_v51 = vadd.f32 %v20067_v50, %v5165_v49  ;;  %v5166_v4 = vmax.f32 %v22376_v18, %v5130_v1  ;;  %v22389_v49 = vld [vmem:[#allocation21_spill] sm:$0xff]  ;;  %v22390_v1 = vld [vmem:[#allocation22_spill] sm:$0xff] }
 0x28f   : > { %v5239_v21 = vmax.f32 %v5203_v8, 0.0  ;;  %v5204_v54 = vadd.f32 %v20067_v50, %v5168_v28  ;;  %v22391_v8 = vmax.f32 %v22389_v49, %v22390_v1  ;;  %v17782_v49 = vmov 0.0  }
 0x290   : > { %v5237_v59 = vmax.f32 %v5201_v51, 0.0  ;;  %v5202_v22 = vadd.f32 %v20067_v50, %v5166_v4  ;;  %v15645_v16 = vpop.f32.mrb[208].mxu0  ;;  %v15685_v61 = vpop.f32.mrb[208].mxu1  ;;  %v22392_v51 = vld [vmem:[#allocation23_spill] sm:$0xff]  ;;  %6931 = vst [vmem:[#allocation3] sm:$0xff] %v17782_v49  ;;  %6932 = vst [vmem:[#allocation3 + $0x8] sm:$0xff] %v17782_v49 }
 0x291   : > { %5276 = vst [vmem:[#allocation2 + $0x310] sm:$0xff] %v5239_v21  ;;  %v5240_v10 = vmax.f32 %v5204_v54, 0.0  ;;  %v5135_v44 = vmax.f32 %v15645_v16, %v15685_v61  ;;  %v4717_v0 = vpop.f32.mrb[209].mxu0  ;;  %v5074_v60 = vpop.f32.mrb[209].mxu1  ;;  %v22394_v25 = vmax.f32 %v22392_v51, %v22393_v19  ;;  %v22395_v54 = vld [vmem:[#allocation25_spill] sm:$0xff]  ;;  %6933 = vst [vmem:[#allocation3 + $0x10] sm:$0xff] %v17782_v49 }
 0x292   : > { %5274 = vst [vmem:[#allocation2 + $0x300] sm:$0xff] %v5237_v59  ;;  %v5238_v11 = vmax.f32 %v5202_v22, 0.0  ;;  %v5133_v32 = vmax.f32 %v4717_v0, %v5074_v60  ;;  %v15646_v17 = vpop.f32.mrb[210].mxu0  ;;  %v15686_v47 = vpop.f32.mrb[210].mxu1  ;;  %v22396_v59 = vld [vmem:[#allocation26_spill] sm:$0xff]  ;;  %6934 = vst [vmem:[#allocation3 + $0x18] sm:$0xff] %v17782_v49 }
 0x293   : > { %5277 = vst [vmem:[#allocation2 + $0x318] sm:$0xff] %v5240_v10  ;;  %v5171_v38 = vmax.f32 %v22379_v26, %v5135_v44  ;;  %v5136_v7 = vmax.f32 %v15646_v17, %v15686_v47  ;;  %v4720_v36 = vpop.f32.mrb[211].mxu0  ;;  %v5077_v52 = vpop.f32.mrb[211].mxu1  ;;  %v22397_v22 = vmax.f32 %v22395_v54, %v22396_v59  ;;  %v22398_v10 = vld [vmem:[#allocation27_spill] sm:$0xff] }
 0x294   : > { %5275 = vst [vmem:[#allocation2 + $0x308] sm:$0xff] %v5238_v11  ;;  %v5169_v37 = vmax.f32 %v22382_v27, %v5133_v32  ;;  %v5134_v40 = vmax.f32 %v4720_v36, %v5077_v52  ;;  %v22399_v44 = vmax.f32 %v20034_v45, %v22398_v10 }
 0x295   : > { %v5207_v2 = vadd.f32 %v20067_v50, %v5171_v38  ;;  %v5172_v9 = vmax.f32 %v22385_v42, %v5136_v7 }
 0x296   : > { %v5205_v56 = vadd.f32 %v20067_v50, %v5169_v37  ;;  %v5170_v24 = vmax.f32 %v22388_v58, %v5134_v40 }
 0x297   : > { %v5243_v13 = vmax.f32 %v5207_v2, 0.0  ;;  %v5208_v31 = vadd.f32 %v20067_v50, %v5172_v9 }
 0x298   : > { %v5241_v30 = vmax.f32 %v5205_v56, 0.0  ;;  %v5206_v14 = vadd.f32 %v20067_v50, %v5170_v24  ;;  %v15649_v35 = vpop.f32.mrb[212].mxu0  ;;  %v15689_v53 = vpop.f32.mrb[212].mxu1 }
 0x299   : > { %5280 = vst [vmem:[#allocation2 + $0x330] sm:$0xff] %v5243_v13  ;;  %v5244_v48 = vmax.f32 %v5208_v31, 0.0  ;;  %v5139_v46 = vmax.f32 %v15649_v35, %v15689_v53  ;;  %v4733_v15 = vpop.f32.mrb[213].mxu0  ;;  %v5090_v6 = vpop.f32.mrb[213].mxu1 }
 0x29a   : > { %5278 = vst [vmem:[#allocation2 + $0x320] sm:$0xff] %v5241_v30  ;;  %v5242_v23 = vmax.f32 %v5206_v14, 0.0  ;;  %v5137_v55 = vmax.f32 %v4733_v15, %v5090_v6  ;;  %v15650_v63 = vpop.f32.mrb[214].mxu0  ;;  %v15690_v3 = vpop.f32.mrb[214].mxu1 }
 0x29b   : > { %5281 = vst [vmem:[#allocation2 + $0x338] sm:$0xff] %v5244_v48  ;;  %v5175_v34 = vmax.f32 %v22391_v8, %v5139_v46  ;;  %v5140_v43 = vmax.f32 %v15650_v63, %v15690_v3  ;;  %v4736_v12 = vpop.f32.mrb[215].mxu0  ;;  %v5093_v28 = vpop.f32.mrb[215].mxu1 }
 0x29c   : > { %5279 = vst [vmem:[#allocation2 + $0x328] sm:$0xff] %v5242_v23  ;;  %v5173_v18 = vmax.f32 %v22394_v25, %v5137_v55  ;;  %v5138_v4 = vmax.f32 %v4736_v12, %v5093_v28 }
 0x29d   : > { %v5211_v21 = vadd.f32 %v20067_v50, %v5175_v34  ;;  %v5176_v16 = vmax.f32 %v22397_v22, %v5140_v43 }
 0x29e   : > { %v5209_v61 = vadd.f32 %v20067_v50, %v5173_v18  ;;  %v5174_v0 = vmax.f32 %v22399_v44, %v5138_v4 }
 0x29f   : > { %v5247_v60 = vmax.f32 %v5211_v21, 0.0  ;;  %v5212_v11 = vadd.f32 %v20067_v50, %v5176_v16 }
 0x2a0   : > { %v5245_v32 = vmax.f32 %v5209_v61, 0.0  ;;  %v5210_v17 = vadd.f32 %v20067_v50, %v5174_v0  ;;  %v20191_v47 = vpop.f32.mrb[216].mxu0  ;;  %v20193_v5 = vpop.f32.mrb[216].mxu1 }
 0x2a1   : > { %5284 = vst [vmem:[#allocation2 + $0x350] sm:$0xff] %v5247_v60  ;;  %v5248_v33 = vmax.f32 %v5212_v11, 0.0  ;;  %v20197_v38 = vpop.f32.mrb[217].mxu0  ;;  %v20199_v7 = vpop.f32.mrb[217].mxu1 }
 0x2a2   : > { %5282 = vst [vmem:[#allocation2 + $0x340] sm:$0xff] %v5245_v32  ;;  %v5246_v45 = vmax.f32 %v5210_v17, 0.0  ;;  %v20203_v52 = vpop.f32.mrb[218].mxu0  ;;  %v20205_v29 = vpop.f32.mrb[218].mxu1 }
 0x2a3   : > { %5285 = vst [vmem:[#allocation2 + $0x358] sm:$0xff] %v5248_v33  ;;  %v20209_v27 = vpop.f32.mrb[219].mxu0  ;;  %v20211_v37 = vpop.f32.mrb[219].mxu1 }
 0x2a4   : > { %5283 = vst [vmem:[#allocation2 + $0x348] sm:$0xff] %v5246_v45 }
 0x2a8   : > { %v20215_v2 = vpop.f32.mrb[220].mxu0  ;;  %v20217_v62 = vpop.f32.mrb[220].mxu1 }
 0x2a9   : > { %v20221_v42 = vpop.f32.mrb[221].mxu0  ;;  %v20223_v9 = vpop.f32.mrb[221].mxu1 }
 0x2aa   : > { %v20227_v39 = vpop.f32.mrb[222].mxu0  ;;  %v20229_v57 = vpop.f32.mrb[222].mxu1 }
 0x2ab   : > { %v20233_v24 = vpop.f32.mrb[223].mxu0  ;;  %v20235_v13 = vpop.f32.mrb[223].mxu1 }
 0x2b0   : > { %v20239_v30 = vpop.f32.mrb[224].mxu0  ;;  %v20241_v14 = vpop.f32.mrb[224].mxu1 }
 0x2b1   : > { %v20245_v53 = vpop.f32.mrb[225].mxu0  ;;  %v20247_v48 = vpop.f32.mrb[225].mxu1 }
 0x2b2   : > { %v20251_v15 = vpop.f32.mrb[226].mxu0  ;;  %v20253_v6 = vpop.f32.mrb[226].mxu1 }
 0x2b3   : > { %v20257_v55 = vpop.f32.mrb[227].mxu0  ;;  %v20259_v63 = vpop.f32.mrb[227].mxu1 }
 0x2b8   : > { %v20263_v1 = vpop.f32.mrb[228].mxu0  ;;  %v20265_v8 = vpop.f32.mrb[228].mxu1 }
 0x2b9   : > { %v20269_v43 = vpop.f32.mrb[229].mxu0  ;;  %v20271_v12 = vpop.f32.mrb[229].mxu1 }
 0x2ba   : > { %v20275_v51 = vpop.f32.mrb[230].mxu0  ;;  %v20277_v19 = vpop.f32.mrb[230].mxu1 }
 0x2bb   : > { %v20281_v18 = vpop.f32.mrb[231].mxu0  ;;  %v20283_v4 = vpop.f32.mrb[231].mxu1 }
 0x2c0   : > { %v20287_v54 = vpop.f32.mrb[232].mxu0  ;;  %v20289_v59 = vpop.f32.mrb[232].mxu1 }
 0x2c1   : > { %v20293_v16 = vpop.f32.mrb[233].mxu0  ;;  %v20295_v61 = vpop.f32.mrb[233].mxu1 }
 0x2c2   : > { %v20299_v44 = vpop.f32.mrb[234].mxu0  ;;  %v20301_v0 = vpop.f32.mrb[234].mxu1 }
 0x2c3   : > { %v20305_v11 = vpop.f32.mrb[235].mxu0  ;;  %v20307_v32 = vpop.f32.mrb[235].mxu1 }
 0x2c8   : > { %v20311_v33 = vpop.f32.mrb[236].mxu0  ;;  %v20313_v45 = vpop.f32.mrb[236].mxu1 }
 0x2c9   : > { %v20317_v10 = vpop.f32.mrb[237].mxu0  ;;  %v20319_v22 = vpop.f32.mrb[237].mxu1 }
 0x2ca   : > { %v20323_v21 = vpop.f32.mrb[238].mxu0  ;;  %v20325_v25 = vpop.f32.mrb[238].mxu1 }
 0x2cb   : > { %22400 = vst [vmem:[#allocation28_spill] sm:$0xff] %v20325_v25  ;;  %v20329_v28 = vpop.f32.mrb[239].mxu0  ;;  %v20331_v34 = vpop.f32.mrb[239].mxu1 }
 0x2cc   : > { %22401 = vst [vmem:[#allocation29_spill] sm:$0xff] %v20329_v28  ;;  %22402 = vst [vmem:[#allocation4_spill] sm:$0xff] %v20331_v34  ;;  %v22427_v28 = vmax.f32 %v20197_v38, %v20199_v7 }
 0x2d0   : > { %v20335_v3 = vpop.f32.mrb[240].mxu0  ;;  %v20337_v23 = vpop.f32.mrb[240].mxu1 }
 0x2d1   : > { %22403 = vst [vmem:[#allocation5_spill] sm:$0xff] %v20335_v3  ;;  %22404 = vst [vmem:[#allocation6_spill] sm:$0xff] %v20337_v23  ;;  %v20341_v46 = vpop.f32.mrb[241].mxu0  ;;  %v20343_v35 = vpop.f32.mrb[241].mxu1  ;;  %v22426_v3 = vmax.f32 %v20191_v47, %v20193_v5  ;;  %v22429_v47 = vmax.f32 %v20209_v27, %v20211_v37  ;;  %v22430_v27 = vmax.f32 %v20215_v2, %v20217_v62 }
 0x2d2   : > { %22405 = vst [vmem:[#allocation7_spill] sm:$0xff] %v20341_v46  ;;  %22406 = vst [vmem:[#allocation8_spill] sm:$0xff] %v20343_v35  ;;  %v20347_v31 = vpop.f32.mrb[242].mxu0  ;;  %v20349_v58 = vpop.f32.mrb[242].mxu1  ;;  %v22433_v2 = vmax.f32 %v20233_v24, %v20235_v13  ;;  %v22434_v24 = vmax.f32 %v20239_v30, %v20241_v14  ;;  %v22437_v30 = vmax.f32 %v20257_v55, %v20259_v63 }
 0x2d3   : > { %22407 = vst [vmem:[#allocation9_spill] sm:$0xff] %v20347_v31  ;;  %22408 = vst [vmem:[#allocation10_spill] sm:$0xff] %v20349_v58  ;;  %v20353_v56 = vpop.f32.mrb[243].mxu0  ;;  %v20355_v41 = vpop.f32.mrb[243].mxu1  ;;  %v22438_v55 = vmax.f32 %v20263_v1, %v20265_v8  ;;  %v22441_v1 = vmax.f32 %v20281_v18, %v20283_v4  ;;  %v22442_v18 = vmax.f32 %v20287_v54, %v20289_v59 }
 0x2d4   : > { %22409 = vst [vmem:[#allocation11_spill] sm:$0xff] %v20353_v56  ;;  %22410 = vst [vmem:[#allocation12_spill] sm:$0xff] %v20355_v41  ;;  %v22445_v54 = vmax.f32 %v20305_v11, %v20307_v32  ;;  %v22446_v11 = vmax.f32 %v20311_v33, %v20313_v45  ;;  %v22451_v33 = vld [vmem:[#allocation4_spill] sm:$0xff] }
 0x2d8   : > { %v20359_v40 = vpop.f32.mrb[244].mxu0  ;;  %v20361_v20 = vpop.f32.mrb[244].mxu1 }
 0x2d9   : > { %22411 = vst [vmem:[#allocation13_spill] sm:$0xff] %v20359_v40  ;;  %22412 = vst [vmem:[#allocation14_spill] sm:$0xff] %v20361_v20  ;;  %v20365_v36 = vpop.f32.mrb[245].mxu0  ;;  %v20367_v26 = vpop.f32.mrb[245].mxu1 }
 0x2da   : > { %22413 = vst [vmem:[#allocation15_spill] sm:$0xff] %v20365_v36  ;;  %22414 = vst [vmem:[#allocation16_spill] sm:$0xff] %v20367_v26  ;;  %v20371_v58 = vpop.f32.mrb[246].mxu0  ;;  %v20373_v31 = vpop.f32.mrb[246].mxu1 }
 0x2db   : > { %22415 = vst [vmem:[#allocation17_spill] sm:$0xff] %v20371_v58  ;;  %22416 = vst [vmem:[#allocation18_spill] sm:$0xff] %v20373_v31  ;;  %v20377_v41 = vpop.f32.mrb[247].mxu0  ;;  %v20379_v56 = vpop.f32.mrb[247].mxu1 }
 0x2dc   : > { %22417 = vst [vmem:[#allocation19_spill] sm:$0xff] %v20377_v41  ;;  %22418 = vst [vmem:[#allocation20_spill] sm:$0xff] %v20379_v56 }
 0x2e0   : > { %v20383_v20 = vpop.f32.mrb[248].mxu0  ;;  %v20385_v40 = vpop.f32.mrb[248].mxu1 }
 0x2e1   : > { %22419 = vst [vmem:[#allocation21_spill] sm:$0xff] %v20383_v20  ;;  %22420 = vst [vmem:[#allocation22_spill] sm:$0xff] %v20385_v40  ;;  %v20389_v26 = vpop.f32.mrb[249].mxu0  ;;  %v20391_v36 = vpop.f32.mrb[249].mxu1 }
 0x2e2   : > { %22421 = vst [vmem:[#allocation23_spill] sm:$0xff] %v20389_v26  ;;  %22422 = vst [vmem:[#allocation24_spill] sm:$0xff] %v20391_v36  ;;  %v20395_v31 = vpop.f32.mrb[250].mxu0  ;;  %v20397_v58 = vpop.f32.mrb[250].mxu1 }
 0x2e3   : > { %22423 = vst [vmem:[#allocation25_spill] sm:$0xff] %v20395_v31  ;;  %22424 = vst [vmem:[#allocation26_spill] sm:$0xff] %v20397_v58  ;;  %v20401_v56 = vpop.f32.mrb[251].mxu0  ;;  %v20403_v41 = vpop.f32.mrb[251].mxu1 }
 0x2e4   : > { %22425 = vst [vmem:[#allocation27_spill] sm:$0xff] %v20403_v41 }
 0x2e8   : > { %v15777_v40 = vpop.f32.mrb[252].mxu0  ;;  %v15817_v20 = vpop.f32.mrb[252].mxu1 }
 0x2e9   : > { %v6752_v35 = vmax.f32 %v15777_v40, %v15817_v20  ;;  %v6250_v46 = vpop.f32.mrb[253].mxu0  ;;  %v6607_v23 = vpop.f32.mrb[253].mxu1  ;;  %v22428_v20 = vmax.f32 %v20203_v52, %v20205_v29 }
 0x2ea   : > { %v6750_v60 = vmax.f32 %v6250_v46, %v6607_v23  ;;  %v15778_v36 = vpop.f32.mrb[254].mxu0  ;;  %v15818_v26 = vpop.f32.mrb[254].mxu1 }
 0x2eb   : > { %v6788_v34 = vmax.f32 %v22426_v3, %v6752_v35  ;;  %v6753_v17 = vmax.f32 %v15778_v36, %v15818_v26  ;;  %v6253_v58 = vpop.f32.mrb[255].mxu0  ;;  %v6610_v31 = vpop.f32.mrb[255].mxu1 }
 0x2ec   : > { %v6786_v25 = vmax.f32 %v22427_v28, %v6750_v60  ;;  %v6751_v49 = vmax.f32 %v6253_v58, %v6610_v31 }
 0x2ed   : > { %v6824_v41 = vadd.f32 %v20067_v50, %v6788_v34  ;;  %v6789_v40 = vmax.f32 %v22428_v20, %v6753_v17 }
 0x2ee   : > { %v6822_v46 = vadd.f32 %v20067_v50, %v6786_v25  ;;  %v6787_v5 = vmax.f32 %v22429_v47, %v6751_v49  ;;  %v22431_v49 = vmax.f32 %v20221_v42, %v20223_v9  ;;  %v22432_v47 = vmax.f32 %v20227_v39, %v20229_v57 }
 0x2ef   : > { %v6860_v26 = vmax.f32 %v6824_v41, 0.0  ;;  %v6825_v36 = vadd.f32 %v20067_v50, %v6789_v40 }
 0x2f0   : > { %v6858_v35 = vmax.f32 %v6822_v46, 0.0  ;;  %v6823_v38 = vadd.f32 %v20067_v50, %v6787_v5  ;;  %v15781_v7 = vpop.f32.mrb[0].mxu0  ;;  %v15821_v58 = vpop.f32.mrb[0].mxu1 }
 0x2f1   : > { %6897 = vst [vmem:[#allocation2 + $0x370] sm:$0xff] %v6860_v26  ;;  %v6861_v31 = vmax.f32 %v6825_v36, 0.0  ;;  %v6756_v23 = vmax.f32 %v15781_v7, %v15821_v58  ;;  %v6266_v3 = vpop.f32.mrb[1].mxu0  ;;  %v6623_v52 = vpop.f32.mrb[1].mxu1 }
 0x2f2   : > { %6895 = vst [vmem:[#allocation2 + $0x360] sm:$0xff] %v6858_v35  ;;  %v6859_v29 = vmax.f32 %v6823_v38, 0.0  ;;  %v6754_v34 = vmax.f32 %v6266_v3, %v6623_v52  ;;  %v15782_v28 = vpop.f32.mrb[2].mxu0  ;;  %v15822_v25 = vpop.f32.mrb[2].mxu1 }
 0x2f3   : > { %6898 = vst [vmem:[#allocation2 + $0x378] sm:$0xff] %v6861_v31  ;;  %v6792_v37 = vmax.f32 %v22430_v27, %v6756_v23  ;;  %v6757_v41 = vmax.f32 %v15782_v28, %v15822_v25  ;;  %v6269_v60 = vpop.f32.mrb[3].mxu0  ;;  %v6626_v17 = vpop.f32.mrb[3].mxu1  ;;  %v22435_v27 = vmax.f32 %v20245_v53, %v20247_v48 }
 0x2f4   : > { %6896 = vst [vmem:[#allocation2 + $0x368] sm:$0xff] %v6859_v29  ;;  %v6790_v20 = vmax.f32 %v22431_v49, %v6754_v34  ;;  %v6755_v40 = vmax.f32 %v6269_v60, %v6626_v17  ;;  %v22436_v17 = vmax.f32 %v20251_v15, %v20253_v6 }
 0x2f5   : > { %v6828_v46 = vadd.f32 %v20067_v50, %v6792_v37  ;;  %v6793_v5 = vmax.f32 %v22432_v47, %v6757_v41 }
 0x2f6   : > { %v6826_v26 = vadd.f32 %v20067_v50, %v6790_v20  ;;  %v6791_v62 = vmax.f32 %v22433_v2, %v6755_v40 }
 0x2f7   : > { %v6864_v36 = vmax.f32 %v6828_v46, 0.0  ;;  %v6829_v35 = vadd.f32 %v20067_v50, %v6793_v5 }
 0x2f8   : > { %v6862_v38 = vmax.f32 %v6826_v26, 0.0  ;;  %v6827_v42 = vadd.f32 %v20067_v50, %v6791_v62  ;;  %v15785_v9 = vpop.f32.mrb[4].mxu0  ;;  %v15825_v7 = vpop.f32.mrb[4].mxu1 }
 0x2f9   : > { %6901 = vst [vmem:[#allocation2 + $0x390] sm:$0xff] %v6864_v36  ;;  %v6865_v58 = vmax.f32 %v6829_v35, 0.0  ;;  %v6760_v31 = vmax.f32 %v15785_v9, %v15825_v7  ;;  %v6282_v23 = vpop.f32.mrb[5].mxu0  ;;  %v6639_v39 = vpop.f32.mrb[5].mxu1 }
 0x2fa   : > { %6899 = vst [vmem:[#allocation2 + $0x380] sm:$0xff] %v6862_v38  ;;  %v6863_v57 = vmax.f32 %v6827_v42, 0.0  ;;  %v6758_v3 = vmax.f32 %v6282_v23, %v6639_v39  ;;  %v15786_v52 = vpop.f32.mrb[6].mxu0  ;;  %v15826_v29 = vpop.f32.mrb[6].mxu1 }
 0x2fb   : > { %6902 = vst [vmem:[#allocation2 + $0x398] sm:$0xff] %v6865_v58  ;;  %v6796_v13 = vmax.f32 %v22434_v24, %v6760_v31  ;;  %v6761_v34 = vmax.f32 %v15786_v52, %v15826_v29  ;;  %v6285_v28 = vpop.f32.mrb[7].mxu0  ;;  %v6642_v25 = vpop.f32.mrb[7].mxu1  ;;  %v22439_v58 = vmax.f32 %v20269_v43, %v20271_v12 }
 0x2fc   : > { %6900 = vst [vmem:[#allocation2 + $0x388] sm:$0xff] %v6863_v57  ;;  %v6794_v37 = vmax.f32 %v22435_v27, %v6758_v3  ;;  %v6759_v41 = vmax.f32 %v6285_v28, %v6642_v25  ;;  %v22440_v57 = vmax.f32 %v20275_v51, %v20277_v19 }
 0x2fd   : > { %v6832_v60 = vadd.f32 %v20067_v50, %v6796_v13  ;;  %v6797_v49 = vmax.f32 %v22436_v17, %v6761_v34 }
 0x2fe   : > { %v6830_v20 = vadd.f32 %v20067_v50, %v6794_v37  ;;  %v6795_v14 = vmax.f32 %v22437_v30, %v6759_v41  ;;  %v22443_v30 = vmax.f32 %v20293_v16, %v20295_v61 }
 0x2ff   : > { %v6868_v40 = vmax.f32 %v6832_v60, 0.0  ;;  %v6833_v46 = vadd.f32 %v20067_v50, %v6797_v49 }
 0x300   : > { %v6866_v47 = vmax.f32 %v6830_v20, 0.0  ;;  %v6831_v53 = vadd.f32 %v20067_v50, %v6795_v14  ;;  %v15789_v48 = vpop.f32.mrb[8].mxu0  ;;  %v15829_v5 = vpop.f32.mrb[8].mxu1 }
 0x301   : > { %6905 = vst [vmem:[#allocation2 + $0x3b0] sm:$0xff] %v6868_v40  ;;  %v6869_v26 = vmax.f32 %v6833_v46, 0.0  ;;  %v6764_v2 = vmax.f32 %v15789_v48, %v15829_v5  ;;  %v6298_v62 = vpop.f32.mrb[9].mxu0  ;;  %v6655_v15 = vpop.f32.mrb[9].mxu1 }
 0x302   : > { %6903 = vst [vmem:[#allocation2 + $0x3a0] sm:$0xff] %v6866_v47  ;;  %v6867_v6 = vmax.f32 %v6831_v53, 0.0  ;;  %v6762_v36 = vmax.f32 %v6298_v62, %v6655_v15  ;;  %v15790_v35 = vpop.f32.mrb[10].mxu0  ;;  %v15830_v38 = vpop.f32.mrb[10].mxu1  ;;  %v22444_v47 = vmax.f32 %v20299_v44, %v20301_v0 }
 0x303   : > { %6906 = vst [vmem:[#allocation2 + $0x3b8] sm:$0xff] %v6869_v26  ;;  %v6800_v63 = vmax.f32 %v22438_v55, %v6764_v2  ;;  %v6765_v42 = vmax.f32 %v15790_v35, %v15830_v38  ;;  %v6301_v9 = vpop.f32.mrb[11].mxu0  ;;  %v6658_v7 = vpop.f32.mrb[11].mxu1 }
 0x304   : > { %6904 = vst [vmem:[#allocation2 + $0x3a8] sm:$0xff] %v6867_v6  ;;  %v6798_v31 = vmax.f32 %v22439_v58, %v6762_v36  ;;  %v6763_v23 = vmax.f32 %v6301_v9, %v6658_v7  ;;  %v22447_v7 = vmax.f32 %v20317_v10, %v20319_v22 }
 0x305   : > { %v6836_v39 = vadd.f32 %v20067_v50, %v6800_v63  ;;  %v6801_v3 = vmax.f32 %v22440_v57, %v6765_v42 }
 0x306   : > { %v6834_v52 = vadd.f32 %v20067_v50, %v6798_v31  ;;  %v6799_v8 = vmax.f32 %v22441_v1, %v6763_v23  ;;  %v22450_v1 = vld [vmem:[#allocation29_spill] sm:$0xff] }
 0x307   : > { %v6872_v29 = vmax.f32 %v6836_v39, 0.0  ;;  %v6837_v24 = vadd.f32 %v20067_v50, %v6801_v3  ;;  %v22448_v39 = vld [vmem:[#allocation28_spill] sm:$0xff]  ;;  %v22452_v45 = vmax.f32 %v22450_v1, %v22451_v33 }
 0x308   : > { %v6870_v13 = vmax.f32 %v6834_v52, 0.0  ;;  %v6835_v43 = vadd.f32 %v20067_v50, %v6799_v8  ;;  %v15793_v12 = vpop.f32.mrb[12].mxu0  ;;  %v15833_v34 = vpop.f32.mrb[12].mxu1  ;;  %v22449_v57 = vmax.f32 %v20323_v21, %v22448_v39  ;;  %v22469_v1 = vld [vmem:[#allocation16_spill] sm:$0xff] }
 0x309   : > { %6909 = vst [vmem:[#allocation2 + $0x3d0] sm:$0xff] %v6872_v29  ;;  %v6873_v28 = vmax.f32 %v6837_v24, 0.0  ;;  %v6768_v25 = vmax.f32 %v15793_v12, %v15833_v34  ;;  %v6314_v27 = vpop.f32.mrb[13].mxu0  ;;  %v6671_v51 = vpop.f32.mrb[13].mxu1 }
 0x30a   : > { %6907 = vst [vmem:[#allocation2 + $0x3c0] sm:$0xff] %v6870_v13  ;;  %v6871_v19 = vmax.f32 %v6835_v43, 0.0  ;;  %v6766_v37 = vmax.f32 %v6314_v27, %v6671_v51  ;;  %v15794_v41 = vpop.f32.mrb[14].mxu0  ;;  %v15834_v60 = vpop.f32.mrb[14].mxu1 }
 0x30b   : > { %6910 = vst [vmem:[#allocation2 + $0x3d8] sm:$0xff] %v6873_v28  ;;  %v6804_v4 = vmax.f32 %v22442_v18, %v6768_v25  ;;  %v6769_v17 = vmax.f32 %v15794_v41, %v15834_v60  ;;  %v6317_v49 = vpop.f32.mrb[15].mxu0  ;;  %v6674_v20 = vpop.f32.mrb[15].mxu1  ;;  %v22454_v41 = vld [vmem:[#allocation6_spill] sm:$0xff] }
 0x30c   : > { %6908 = vst [vmem:[#allocation2 + $0x3c8] sm:$0xff] %v6871_v19  ;;  %v6802_v14 = vmax.f32 %v22443_v30, %v6766_v37  ;;  %v6767_v40 = vmax.f32 %v6317_v49, %v6674_v20  ;;  %v22453_v37 = vld [vmem:[#allocation5_spill] sm:$0xff]  ;;  %v22456_v20 = vld [vmem:[#allocation7_spill] sm:$0xff]  ;;  %v22457_v30 = vld [vmem:[#allocation8_spill] sm:$0xff] }
 0x30d   : > { %v6840_v46 = vadd.f32 %v20067_v50, %v6804_v4  ;;  %v6805_v53 = vmax.f32 %v22444_v47, %v6769_v17  ;;  %v22455_v60 = vmax.f32 %v22453_v37, %v22454_v41 }
 0x30e   : > { %v6838_v48 = vadd.f32 %v20067_v50, %v6802_v14  ;;  %v6803_v59 = vmax.f32 %v22445_v54, %v6767_v40  ;;  %v22458_v14 = vmax.f32 %v22456_v20, %v22457_v30 }
 0x30f   : > { %v6876_v5 = vmax.f32 %v6840_v46, 0.0  ;;  %v6841_v26 = vadd.f32 %v20067_v50, %v6805_v53  ;;  %v22459_v53 = vld [vmem:[#allocation9_spill] sm:$0xff] }
 0x310   : > { %v6874_v2 = vmax.f32 %v6838_v48, 0.0  ;;  %v6839_v16 = vadd.f32 %v20067_v50, %v6803_v59  ;;  %v15797_v61 = vpop.f32.mrb[16].mxu0  ;;  %v15837_v62 = vpop.f32.mrb[16].mxu1  ;;  %v22460_v48 = vld [vmem:[#allocation10_spill] sm:$0xff] }
 0x311   : > { %6913 = vst [vmem:[#allocation2 + $0x3f0] sm:$0xff] %v6876_v5  ;;  %v6877_v15 = vmax.f32 %v6841_v26, 0.0  ;;  %v6772_v6 = vmax.f32 %v15797_v61, %v15837_v62  ;;  %v6330_v36 = vpop.f32.mrb[17].mxu0  ;;  %v6687_v44 = vpop.f32.mrb[17].mxu1  ;;  %v22461_v54 = vmax.f32 %v22459_v53, %v22460_v48  ;;  %v22462_v26 = vld [vmem:[#allocation11_spill] sm:$0xff] }
 0x312   : > { %6911 = vst [vmem:[#allocation2 + $0x3e0] sm:$0xff] %v6874_v2  ;;  %v6875_v0 = vmax.f32 %v6839_v16, 0.0  ;;  %v6770_v35 = vmax.f32 %v6330_v36, %v6687_v44  ;;  %v15798_v38 = vpop.f32.mrb[18].mxu0  ;;  %v15838_v55 = vpop.f32.mrb[18].mxu1  ;;  %v22463_v2 = vld [vmem:[#allocation12_spill] sm:$0xff] }
 0x313   : > { %6914 = vst [vmem:[#allocation2 + $0x3f8] sm:$0xff] %v6877_v15  ;;  %v6808_v32 = vmax.f32 %v22446_v11, %v6772_v6  ;;  %v6773_v63 = vmax.f32 %v15798_v38, %v15838_v55  ;;  %v6333_v42 = vpop.f32.mrb[19].mxu0  ;;  %v6690_v9 = vpop.f32.mrb[19].mxu1  ;;  %v22464_v16 = vmax.f32 %v22462_v26, %v22463_v2  ;;  %v17342_v36 = vld [vmem:[%s22030_s2] ss:$0 sm:$0xff]  ;;  %v22481_v26 = vld [vmem:[#allocation24_spill] sm:$0xff] }
 0x314   : > { %6912 = vst [vmem:[#allocation2 + $0x3e8] sm:$0xff] %v6875_v0  ;;  %v6806_v58 = vmax.f32 %v22447_v7, %v6770_v35  ;;  %v6771_v31 = vmax.f32 %v6333_v42, %v6690_v9 }
 0x315   : > { %v6844_v23 = vadd.f32 %v20067_v50, %v6808_v32  ;;  %v6809_v3 = vmax.f32 %v22449_v57, %v6773_v63 }
 0x316   : > { %v6842_v52 = vadd.f32 %v20067_v50, %v6806_v58  ;;  %v6807_v8 = vmax.f32 %v22452_v45, %v6771_v31  ;;  %v22466_v58 = vld [vmem:[#allocation14_spill] sm:$0xff] }
 0x317   : > { %v6880_v29 = vmax.f32 %v6844_v23, 0.0  ;;  %v6845_v24 = vadd.f32 %v20067_v50, %v6809_v3 }
 0x318   : > { %v6878_v13 = vmax.f32 %v6842_v52, 0.0  ;;  %v6843_v22 = vadd.f32 %v20067_v50, %v6807_v8  ;;  %v15801_v10 = vpop.f32.mrb[20].mxu0  ;;  %v15841_v43 = vpop.f32.mrb[20].mxu1  ;;  %v22468_v52 = vld [vmem:[#allocation15_spill] sm:$0xff] }
 0x319   : > { %6917 = vst [vmem:[#allocation2 + $0x410] sm:$0xff] %v6880_v29  ;;  %v6881_v12 = vmax.f32 %v6845_v24, 0.0  ;;  %v6776_v34 = vmax.f32 %v15801_v10, %v15841_v43  ;;  %v6346_v28 = vpop.f32.mrb[21].mxu0  ;;  %v6703_v21 = vpop.f32.mrb[21].mxu1  ;;  %v22470_v33 = vmax.f32 %v22468_v52, %v22469_v1  ;;  %v22471_v24 = vld [vmem:[#allocation17_spill] sm:$0xff] }
 0x31a   : > { %6915 = vst [vmem:[#allocation2 + $0x400] sm:$0xff] %v6878_v13  ;;  %v6879_v25 = vmax.f32 %v6843_v22, 0.0  ;;  %v6774_v27 = vmax.f32 %v6346_v28, %v6703_v21  ;;  %v15802_v51 = vpop.f32.mrb[22].mxu0  ;;  %v15842_v19 = vpop.f32.mrb[22].mxu1  ;;  %v22472_v13 = vld [vmem:[#allocation18_spill] sm:$0xff] }
 0x31b   : > { %6918 = vst [vmem:[#allocation2 + $0x418] sm:$0xff] %v6881_v12  ;;  %v6812_v18 = vmax.f32 %v22455_v60, %v6776_v34  ;;  %v6777_v4 = vmax.f32 %v15802_v51, %v15842_v19  ;;  %v6349_v17 = vpop.f32.mrb[23].mxu0  ;;  %v6706_v49 = vpop.f32.mrb[23].mxu1  ;;  %v22473_v22 = vmax.f32 %v22471_v24, %v22472_v13  ;;  %v22474_v12 = vld [vmem:[#allocation19_spill] sm:$0xff]  ;;  %v22475_v34 = vld [vmem:[#allocation20_spill] sm:$0xff] }
 0x31c   : > { %6916 = vst [vmem:[#allocation2 + $0x408] sm:$0xff] %v6879_v25  ;;  %v6810_v40 = vmax.f32 %v22458_v14, %v6774_v27  ;;  %v6775_v46 = vmax.f32 %v6349_v17, %v6706_v49  ;;  %v22476_v28 = vmax.f32 %v22474_v12, %v22475_v34 }
 0x31d   : > { %v6848_v47 = vadd.f32 %v20067_v50, %v6812_v18  ;;  %v6813_v59 = vmax.f32 %v22461_v54, %v6777_v4 }
 0x31e   : > { %v6846_v5 = vadd.f32 %v20067_v50, %v6810_v40  ;;  %v6811_v61 = vmax.f32 %v22464_v16, %v6775_v46  ;;  %v22477_v40 = vld [vmem:[#allocation21_spill] sm:$0xff]  ;;  %v22478_v46 = vld [vmem:[#allocation22_spill] sm:$0xff] }
 0x31f   : > { %v6884_v62 = vmax.f32 %v6848_v47, 0.0  ;;  %v6849_v15 = vadd.f32 %v20067_v50, %v6813_v59  ;;  %v22465_v50 = vld [vmem:[#allocation13_spill] sm:$0xff]  ;;  %v22479_v47 = vmax.f32 %v22477_v40, %v22478_v46 }
 0x320   : > { %v6882_v6 = vmax.f32 %v6846_v5, 0.0  ;;  %v6847_v44 = vadd.f32 %v17342_v36, %v6811_v61  ;;  %v15805_v0 = vpop.f32.mrb[24].mxu0  ;;  %v15845_v35 = vpop.f32.mrb[24].mxu1  ;;  %v22467_v31 = vmax.f32 %v22465_v50, %v22466_v58  ;;  %v22480_v5 = vld [vmem:[#allocation23_spill] sm:$0xff] }
 0x321   : > { %6921 = vst [vmem:[#allocation2 + $0x430] sm:$0xff] %v6884_v62  ;;  %v6885_v38 = vmax.f32 %v6849_v15, 0.0  ;;  %v6780_v55 = vmax.f32 %v15805_v0, %v15845_v35  ;;  %v6362_v11 = vpop.f32.mrb[25].mxu0  ;;  %v6719_v32 = vpop.f32.mrb[25].mxu1  ;;  %v22482_v2 = vmax.f32 %v22480_v5, %v22481_v26  ;;  %v22483_v15 = vld [vmem:[#allocation25_spill] sm:$0xff] }
 0x322   : > { %6919 = vst [vmem:[#allocation2 + $0x420] sm:$0xff] %v6882_v6  ;;  %v6883_v63 = vmax.f32 %v6847_v44, 0.0  ;;  %v6778_v42 = vmax.f32 %v6362_v11, %v6719_v32  ;;  %v15806_v9 = vpop.f32.mrb[26].mxu0  ;;  %v15846_v7 = vpop.f32.mrb[26].mxu1  ;;  %v22484_v6 = vld [vmem:[#allocation26_spill] sm:$0xff] }
 0x323   : > { %6922 = vst [vmem:[#allocation2 + $0x438] sm:$0xff] %v6885_v38  ;;  %v6816_v23 = vmax.f32 %v22467_v31, %v6780_v55  ;;  %v6781_v39 = vmax.f32 %v15806_v9, %v15846_v7  ;;  %v6365_v57 = vpop.f32.mrb[27].mxu0  ;;  %v6722_v3 = vpop.f32.mrb[27].mxu1  ;;  %v22485_v44 = vmax.f32 %v22483_v15, %v22484_v6  ;;  %v22486_v38 = vld [vmem:[#allocation27_spill] sm:$0xff] }
 0x324   : > { %6920 = vst [vmem:[#allocation2 + $0x428] sm:$0xff] %v6883_v63  ;;  %v6814_v45 = vmax.f32 %v22470_v33, %v6778_v42  ;;  %v6779_v8 = vmax.f32 %v6365_v57, %v6722_v3  ;;  %v22487_v55 = vmax.f32 %v20401_v56, %v22486_v38 }
 0x325   : > { %v6852_v29 = vadd.f32 %v17342_v36, %v6816_v23  ;;  %v6817_v10 = vmax.f32 %v22473_v22, %v6781_v39 }
 0x326   : > { %v6850_v43 = vadd.f32 %v17342_v36, %v6814_v45  ;;  %v6815_v21 = vmax.f32 %v22476_v28, %v6779_v8 }
 0x327   : > { %v6888_v25 = vmax.f32 %v6852_v29, 0.0  ;;  %v6853_v27 = vadd.f32 %v17342_v36, %v6817_v10 }
 0x328   : > { %v6886_v51 = vmax.f32 %v6850_v43, 0.0  ;;  %v6851_v19 = vadd.f32 %v17342_v36, %v6815_v21  ;;  %v15809_v37 = vpop.f32.mrb[28].mxu0  ;;  %v15849_v41 = vpop.f32.mrb[28].mxu1 }
 0x329   : > { %6925 = vst [vmem:[#allocation2 + $0x450] sm:$0xff] %v6888_v25  ;;  %v6889_v60 = vmax.f32 %v6853_v27, 0.0  ;;  %v6784_v18 = vmax.f32 %v15809_v37, %v15849_v41  ;;  %v6378_v4 = vpop.f32.mrb[29].mxu0  ;;  %v6735_v17 = vpop.f32.mrb[29].mxu1 }
 0x32a   : > { %6923 = vst [vmem:[#allocation2 + $0x440] sm:$0xff] %v6886_v51  ;;  %v6887_v49 = vmax.f32 %v6851_v19, 0.0  ;;  %v6782_v20 = vmax.f32 %v6378_v4, %v6735_v17  ;;  %v15810_v30 = vpop.f32.mrb[30].mxu0  ;;  %v15850_v14 = vpop.f32.mrb[30].mxu1 }
 0x32b   : > { %6926 = vst [vmem:[#allocation2 + $0x458] sm:$0xff] %v6889_v60  ;;  %v6820_v53 = vmax.f32 %v22479_v47, %v6784_v18  ;;  %v6785_v48 = vmax.f32 %v15810_v30, %v15850_v14  ;;  %v6381_v54 = vpop.f32.mrb[31].mxu0  ;;  %v6738_v59 = vpop.f32.mrb[31].mxu1 }
 0x32c   : > { %6924 = vst [vmem:[#allocation2 + $0x448] sm:$0xff] %v6887_v49  ;;  %v6818_v16 = vmax.f32 %v22482_v2, %v6782_v20  ;;  %v6783_v61 = vmax.f32 %v6381_v54, %v6738_v59 }
 0x32d   : > { %v6856_v62 = vadd.f32 %v17342_v36, %v6820_v53  ;;  %v6821_v0 = vmax.f32 %v22485_v44, %v6785_v48 }
 0x32e   : > { %v6854_v35 = vadd.f32 %v17342_v36, %v6818_v16  ;;  %v6819_v11 = vmax.f32 %v22487_v55, %v6783_v61 }
 0x32f   : > { %v6892_v32 = vmax.f32 %v6856_v62, 0.0  ;;  %v6857_v63 = vadd.f32 %v17342_v36, %v6821_v0 }
 0x330   : > { %v6890_v42 = vmax.f32 %v6854_v35, 0.0  ;;  %v6855_v9 = vadd.f32 %v17342_v36, %v6819_v11 }
 0x331   : > { %6929 = vst [vmem:[#allocation2 + $0x470] sm:$0xff] %v6892_v32  ;;  %v6893_v7 = vmax.f32 %v6857_v63, 0.0 }
 0x332   : > { %6927 = vst [vmem:[#allocation2 + $0x460] sm:$0xff] %v6890_v42  ;;  %v6891_v50 = vmax.f32 %v6855_v9, 0.0 }
 0x333   : > { %6930 = vst [vmem:[#allocation2 + $0x478] sm:$0xff] %v6893_v7 }
 0x334   : > { %6928 = vst [vmem:[#allocation2 + $0x468] sm:$0xff] %v6891_v50 }
 0x335 PF: > { %v17343_v58 = vld [vmem:[%s22031_s3 + $0x40] sm:$0xff]   ;;  %v17345_v36 = vld [vmem:[%s22031_s3 + $0x48] sm:$0xff]   ;;  %v17347_v23 = vld [vmem:[%s22031_s3 + $0x50] sm:$0xff]   ;;  %s13592_s20 = smul.u32 192, %s17839_s10  ;;  %p14410_p5 = scmp.ne.s32.totalorder %s17839_s10, 3 }
 0x336   : > { %v17344_v56 = vld [vmem:[%s22031_s3 + $0x240] sm:$0xff]   ;;  %15851 = vmatprep.subr.bf16.mxu1 %v17343_v58  ;;  %v17346_v31 = vld [vmem:[%s22031_s3 + $0x248] sm:$0xff]   ;;  %v17348_v39 = vld [vmem:[%s22031_s3 + $0x250] sm:$0xff]  }
 0x337   : > { %16139 = vmatprep.subr.bf16.mxu0 %v17344_v56  ;;  %15852 = vmatpush3.bf16.msra.mxu1 %v17343_v58  ;;  %v17349_v57 = vld [vmem:[%s22031_s3 + $0x58] sm:$0xff]   ;;  %v17351_v52 = vld [vmem:[%s22031_s3 + $0x60] sm:$0xff]   ;;  %v17353_v33 = vld [vmem:[%s22031_s3 + $0x68] sm:$0xff]   ;;  %s20579_s27 = scalar_lea.vmem [#allocation2], %s13592_s20 }
 0x338   : > { %16140 = vmatpush3.bf16.msra.mxu0 %v17344_v56  ;;  %15853 = vmatprep.subr.bf16.mxu1 %v17345_v36  ;;  %v17350_v3 = vld [vmem:[%s22031_s3 + $0x258] sm:$0xff]   ;;  %v17352_v1 = vld [vmem:[%s22031_s3 + $0x260] sm:$0xff]   ;;  %v17354_v29 = vld [vmem:[%s22031_s3 + $0x268] sm:$0xff]  }
 0x339   : > { %16141 = vmatprep.subr.bf16.mxu0 %v17346_v31  ;;  %v17355_v43 = vld [vmem:[%s22031_s3 + $0x70] sm:$0xff]   ;;  %v17357_v34 = vld [vmem:[%s22031_s3 + $0x78] sm:$0xff]   ;;  %v17359_v27 = vld [vmem:[%s22031_s3] sm:$0xff]  }
 0x33a   : > { %v17356_v12 = vld [vmem:[%s22031_s3 + $0x270] sm:$0xff]   ;;  %v17358_v28 = vld [vmem:[%s22031_s3 + $0x278] sm:$0xff]   ;;  %v17360_v18 = vld [vmem:[%s22031_s3 + $0x280] sm:$0xff]  }
 0x33b   : > { %15854 = vmatpush3.bf16.msra.mxu1 %v17345_v36  ;;  %v20582_v45 = vld [vmem:[%s20579_s27 + $0x8] sm:$0xff]  ;;  %v20585_v8 = vld [vmem:[%s20579_s27 + $0x10] sm:$0xff]  ;;  %v20593_v13 = vld [vmem:[%s20579_s27 + $0x80] sm:$0xff] }
 0x33c   : > { %16142 = vmatpush3.bf16.msra.mxu0 %v17346_v31  ;;  %15855 = vmatprep.subr.bf16.mxu1 %v17347_v23  ;;  %v6986_v24 = vpack.c.bf16 %v20585_v8, %v20582_v45  ;;  %v20596_v22 = vld [vmem:[%s20579_s27 + $0x88] sm:$0xff]  ;;  %v20616_v21 = vld [vmem:[%s20579_s27 + $0x18] sm:$0xff]  ;;  %v20619_v25 = vld [vmem:[%s20579_s27 + $0x20] sm:$0xff] }
 0x33d   : > { %16143 = vmatprep.subr.bf16.mxu0 %v17348_v39  ;;  %v20600_v10 = vpack.c.bf16 %v20596_v22, %v20593_v13  ;;  %v13708_v51 = vld [vmem:[%s20579_s27 + $0xa8] sm:$0xff]  ;;  %v13709_v19 = vld [vmem:[%s20579_s27 + $0xb0] sm:$0xff]  ;;  %v20632_v60 = vld [vmem:[%s20579_s27 + $0x98] sm:$0xff]  ;;  %v20639_v4 = vpack.c.bf16 %v20619_v25, %v20616_v21 }
 0x33e   : > { %15867 = vmatprep.mubr.bf16.mxu1 %v6986_v24  ;;  %v20627_v37 = vld [vmem:[%s20579_s27 + $0x90] sm:$0xff]  ;;  %v20629_v41 = vpack.c.bf16 %v13709_v19, %v13708_v51  ;;  %v20642_v17 = vld [vmem:[%s20579_s27 + $0x28] sm:$0xff]  ;;  %v20652_v30 = vld [vmem:[%s20579_s27 + $0xa0] sm:$0xff] }
 0x33f   : > { %15856 = vmatpush3.bf16.msra.mxu1 %v17347_v23  ;;  %16155 = vmatprep.mubr.bf16.mxu0 %v20600_v10  ;;  %v20645_v49 = vld [vmem:[%s20579_s27 + $0x30] sm:$0xff]  ;;  %v20649_v20 = vpack.c.bf16 %v20632_v60, %v20627_v37  ;;  %v17361_v14 = vld [vmem:[%s22031_s3 + $0x8] sm:$0xff]   ;;  %v20665_v47 = vld [vmem:[%s20579_s27 + $0x38] sm:$0xff]  ;;  %v20669_v53 = vpack.c.bf16 %v13708_v51, %v20652_v30  ;;  %v20755_v23 = vpack.c.bf16 %v20627_v37, %v20596_v22 }
 0x340   : > { %16144 = vmatpush3.bf16.msra.mxu0 %v17348_v39  ;;  %15857 = vmatprep.subr.bf16.mxu1 %v17349_v57  ;;  %v17362_v40 = vld [vmem:[%s22031_s3 + $0x288] sm:$0xff]   ;;  %v20662_v46 = vpack.c.bf16 %v20645_v49, %v20642_v17  ;;  %v20672_v48 = vld [vmem:[%s20579_s27 + $0x40] sm:$0xff]  ;;  %v17363_v54 = vld [vmem:[%s22031_s3 + $0x10] sm:$0xff]  }
 0x341   : > { %16145 = vmatprep.subr.bf16.mxu0 %v17350_v3  ;;  %v20679_v59 = vld [vmem:[%s20579_s27 + $0x70] sm:$0xff]  ;;  %v13710_v5 = vld [vmem:[%s20579_s27 + $0xb8] sm:$0xff]  ;;  %v20687_v2 = vld [vmem:[%s20579_s27 + $0x68] sm:$0xff]  ;;  %v20695_v61 = vpack.c.bf16 %v20672_v48, %v20665_v47 }
 0x342   : > { %v17364_v26 = vld [vmem:[%s22031_s3 + $0x290] sm:$0xff]   ;;  %v20690_v16 = vld [vmem:[%s20579_s27 + $0xe0] sm:$0xff]  ;;  %v17365_v62 = vld [vmem:[%s22031_s3 + $0x18] sm:$0xff]   ;;  %v20703_v6 = vpack.c.bf16 %v13710_v5, %v13709_v19  ;;  %v6990_v38 = vpack.c.bf16 %v20679_v59, %v20687_v2  ;;  %v20808_v19 = vpack.c.bf16 %v20616_v21, %v20585_v8  ;;  %v20823_v21 = vpack.c.bf16 %v20642_v17, %v20619_v25 }
 0x343   : > { %15858 = vmatpush3.bf16.msra.mxu1 %v17349_v57  ;;  %v20701_v15 = vld [vmem:[%s20579_s27 + $0xe8] sm:$0xff]  ;;  %v13721_v0 = vld [vmem:[%s20579_s27 + $0x110] sm:$0xff]  ;;  %v17366_v35 = vld [vmem:[%s22031_s3 + $0x298] sm:$0xff]   ;;  %v20840_v17 = vpack.c.bf16 %v20665_v47, %v20645_v49 }
 0x344   : > { %16146 = vmatpush3.bf16.msra.mxu0 %v17350_v3  ;;  %15859 = vmatprep.subr.bf16.mxu1 %v17351_v52  ;;  %v13720_v44 = vld [vmem:[%s20579_s27 + $0x108] sm:$0xff]  ;;  %v20715_v11 = vld [vmem:[%s20579_s27 + $0x78] sm:$0xff]  ;;  %v20720_v32 = vpack.c.bf16 %v20701_v15, %v20690_v16  ;;  %v17367_v63 = vld [vmem:[%s22031_s3 + $0x20] sm:$0xff]  }
 0x345   : > { %16147 = vmatprep.subr.bf16.mxu0 %v17352_v1  ;;  %v20712_v55 = vpack.c.bf16 %v13721_v0, %v13720_v44  ;;  %v20727_v42 = vld [vmem:[%s20579_s27 + $0xf0] sm:$0xff]  ;;  %v20730_v9 = vld [vmem:[%s20579_s27 + $0xf8] sm:$0xff]  ;;  %v17368_v7 = vld [vmem:[%s22031_s3 + $0x2a0] sm:$0xff]   ;;  %v20737_v50 = vpack.c.bf16 %v20593_v13, %v20715_v11 }
 0x346   : > { %v20742_v58 = vpack.c.bf16 %v20730_v9, %v20727_v42  ;;  %v20745_v56 = vld [vmem:[%s20579_s27 + $0x100] sm:$0xff]  ;;  %v17369_v36 = vld [vmem:[%s22031_s3 + $0x28] sm:$0xff]   ;;  %v17371_v3 = vld [vmem:[%s22031_s3 + $0x30] sm:$0xff]  }
 0x347   : > { %15860 = vmatpush3.bf16.msra.mxu1 %v17351_v52  ;;  %v17370_v31 = vld [vmem:[%s22031_s3 + $0x2a8] sm:$0xff]   ;;  %v20759_v39 = vpack.c.bf16 %v13720_v44, %v20745_v56  ;;  %v6938_v57 = vld [vmem:[%s20579_s27] sm:$0xff]  ;;  %v13722_v52 = vld [vmem:[%s20579_s27 + $0x118] sm:$0xff] }
 0x348   : > { %16148 = vmatpush3.bf16.msra.mxu0 %v17352_v1  ;;  %15861 = vmatprep.subr.bf16.mxu1 %v17353_v33  ;;  %v17372_v1 = vld [vmem:[%s22031_s3 + $0x2b0] sm:$0xff]   ;;  %v20777_v24 = vpack.c.bf16 %v13722_v52, %v13721_v0  ;;  %v20780_v13 = vld [vmem:[%s20579_s27 + $0xc8] sm:$0xff]  ;;  %v17373_v22 = vld [vmem:[%s22031_s3 + $0x38] sm:$0xff]   ;;  %v20873_v0 = vpack.c.bf16 %v20715_v11, %v20679_v59 }
 0x349   : > { %16149 = vmatprep.subr.bf16.mxu0 %v17354_v29  ;;  %v17376_v51 = vld [vmem:[%s22031_s3 + $0x2c0] sm:$0xff]   ;;  %v17378_v8 = vld [vmem:[%s22031_s3 + $0x2c8] sm:$0xff]   ;;  %v17382_v5 = vld [vmem:[%s22031_s3 + $0x2d8] sm:$0xff]  }
 0x34a   : > { %v20835_v25 = vld [vmem:[%s20579_s27 + $0x60] sm:$0xff]  ;;  %v20866_v44 = vld [vmem:[%s20579_s27 + $0x138] sm:$0xff]  ;;  %v17385_v59 = vld [vmem:[%s22031_s3 + $0xa8] sm:$0xff]  }
 0x34b   : > { %15862 = vmatpush3.bf16.msra.mxu1 %v17353_v33  ;;  %v20774_v33 = vpack.c.bf16 %v20652_v30, %v20632_v60  ;;  %v17377_v60 = vld [vmem:[%s22031_s3 + $0x88] sm:$0xff]   ;;  %v17380_v30 = vld [vmem:[%s22031_s3 + $0x2d0] sm:$0xff]   ;;  %v6966_v49 = vpack.c.bf16 %v20687_v2, %v20835_v25  ;;  %v17384_v2 = vld [vmem:[%s22031_s3 + $0x2e0] sm:$0xff]  }
 0x34c   : > { %16150 = vmatpush3.bf16.msra.mxu0 %v17354_v29  ;;  %15863 = vmatprep.subr.bf16.mxu1 %v17355_v43  ;;  %v13845_v29 = vld [vmem:[%s20579_s27 + $0xc0] sm:$0xff]  ;;  %v17386_v11 = vld [vmem:[%s22031_s3 + $0x2e8] sm:$0xff]  }
 0x34d   : > { %16151 = vmatprep.subr.bf16.mxu0 %v17356_v12 }
 0x34f   : > { %15864 = vmatpush3.bf16.msra.mxu1 %v17355_v43  ;;  %v6962_v43 = vpack.c.bf16 %v20582_v45, %v6938_v57  ;;  %v20801_v45 = vld [vmem:[%s20579_s27 + $0xd8] sm:$0xff] }
 0x350   : > { %16152 = vmatpush3.bf16.msra.mxu0 %v17356_v12  ;;  %15865 = vmatprep.subr.bf16.mxu1 %v17357_v34  ;;  %v17374_v12 = vld [vmem:[%s22031_s3 + $0x2b8] sm:$0xff]  }
 0x351   : > { %16153 = vmatprep.subr.bf16.mxu0 %v17358_v28  ;;  %v20905_v57 = vld [vmem:[%s20579_s27 + $0x158] sm:$0xff] }
 0x353   : > { %15866 = vmatpush3.bf16.msra.mxu1 %v17357_v34  ;;  %v20791_v34 = vpack.c.bf16 %v20780_v13, %v13845_v29  ;;  %v17390_v29 = vld [vmem:[%s22031_s3 + $0x2f8] sm:$0xff]  }
 0x354   : > { %16154 = vmatpush3.bf16.msra.mxu0 %v17358_v28  ;;  %15883 = vmatprep.subr.bf16.mxu1 %v17359_v27  ;;  %v17375_v28 = vld [vmem:[%s22031_s3 + $0x80] sm:$0xff]  }
 0x355   : > { %16171 = vmatprep.subr.bf16.mxu0 %v17360_v18 }
 0x356   : > { %15868 = vmatmul.mubr.bf16.vlgmr.msra.gmra.mrb[0].mxu1 %v20639_v4 }
 0x357   : > { %16156 = vmatmul.mubr.bf16.vlgmr.msra.gmra.mrb[0].mxu0 %v20649_v20  ;;  %15884 = vmatpush3.bf16.msra.mxu1 %v17359_v27  ;;  %v20798_v27 = vld [vmem:[%s20579_s27 + $0xd0] sm:$0xff] }
 0x358   : > { %16172 = vmatpush3.bf16.msra.mxu0 %v17360_v18  ;;  %15885 = vmatprep.subr.bf16.mxu1 %v17361_v14  ;;  %v20813_v37 = vpack.c.bf16 %v20801_v45, %v20798_v27  ;;  %v17379_v18 = vld [vmem:[%s22031_s3 + $0x90] sm:$0xff]  }
 0x359   : > { %16173 = vmatprep.subr.bf16.mxu0 %v17362_v40  ;;  %15871 = vmatprep.mubr.bf16.mxu1 %v20662_v46 }
 0x35a   : > { %16159 = vmatprep.mubr.bf16.mxu0 %v20669_v53 }
 0x35b   : > { %15886 = vmatpush3.bf16.msra.mxu1 %v17361_v14  ;;  %v13857_v14 = vld [vmem:[%s20579_s27 + $0x120] sm:$0xff] }
 0x35c   : > { %16174 = vmatpush3.bf16.msra.mxu0 %v17362_v40  ;;  %15887 = vmatprep.subr.bf16.mxu1 %v17363_v54  ;;  %v20844_v40 = vld [vmem:[%s20579_s27 + $0x128] sm:$0xff] }
 0x35d   : > { %16175 = vmatprep.subr.bf16.mxu0 %v17364_v26  ;;  %v20856_v47 = vpack.c.bf16 %v20844_v40, %v13857_v14  ;;  %v17402_v14 = vld [vmem:[%s22031_s3 + $0x328] sm:$0xff]  }
 0x35e   : > { %15872 = vmatmul.mubr.bf16.gmra.mrb[4].mxu1 %v20695_v61 }
 0x35f   : > { %16160 = vmatmul.mubr.bf16.gmra.mrb[4].mxu0 %v20703_v6  ;;  %15888 = vmatpush3.bf16.msra.mxu1 %v17363_v54  ;;  %v17381_v54 = vld [vmem:[%s22031_s3 + $0x98] sm:$0xff]  }
 0x360   : > { %16176 = vmatpush3.bf16.msra.mxu0 %v17364_v26  ;;  %15889 = vmatprep.subr.bf16.mxu1 %v17365_v62  ;;  %v17383_v26 = vld [vmem:[%s22031_s3 + $0xa0] sm:$0xff]  }
 0x361   : > { %16177 = vmatprep.subr.bf16.mxu0 %v17366_v35  ;;  %15875 = vmatprep.mubr.bf16.mxu1 %v6990_v38 }
 0x362   : > { %16163 = vmatprep.mubr.bf16.mxu0 %v20720_v32 }
 0x363   : > { %15890 = vmatpush3.bf16.msra.mxu1 %v17365_v62  ;;  %v20863_v62 = vld [vmem:[%s20579_s27 + $0x130] sm:$0xff] }
 0x364   : > { %16178 = vmatpush3.bf16.msra.mxu0 %v17366_v35  ;;  %15891 = vmatprep.subr.bf16.mxu1 %v17367_v63  ;;  %v20877_v35 = vld [vmem:[%s20579_s27 + $0x140] sm:$0xff]  ;;  %v20881_v38 = vpack.c.bf16 %v20866_v44, %v20863_v62 }
 0x365   : > { %16179 = vmatprep.subr.bf16.mxu0 %v17368_v7 }
 0x366   : > { %15876 = vmatmul.mubr.bf16.gmra.mrb[8].mxu1 %v20737_v50 }
 0x367   : > { %16164 = vmatmul.mubr.bf16.gmra.mrb[8].mxu0 %v20742_v58  ;;  %15892 = vmatpush3.bf16.msra.mxu1 %v17367_v63  ;;  %v20884_v63 = vld [vmem:[%s20579_s27 + $0x148] sm:$0xff] }
 0x368   : > { %16180 = vmatpush3.bf16.msra.mxu0 %v17368_v7  ;;  %15893 = vmatprep.subr.bf16.mxu1 %v17369_v36  ;;  %v20895_v7 = vpack.c.bf16 %v20884_v63, %v20877_v35 }
 0x369   : > { %16181 = vmatprep.subr.bf16.mxu0 %v17370_v31  ;;  %15879 = vmatprep.mubr.bf16.mxu1 %v20755_v23 }
 0x36a   : > { %16167 = vmatprep.mubr.bf16.mxu0 %v20759_v39 }
 0x36b   : > { %15894 = vmatpush3.bf16.msra.mxu1 %v17369_v36  ;;  %v17387_v36 = vld [vmem:[%s22031_s3 + $0xb0] sm:$0xff]  }
 0x36c   : > { %16182 = vmatpush3.bf16.msra.mxu0 %v17370_v31  ;;  %15895 = vmatprep.subr.bf16.mxu1 %v17371_v3  ;;  %v20902_v31 = vld [vmem:[%s20579_s27 + $0x150] sm:$0xff] }
 0x36d   : > { %16183 = vmatprep.subr.bf16.mxu0 %v17372_v1  ;;  %v20914_v52 = vpack.c.bf16 %v20905_v57, %v20902_v31 }
 0x36e   : > { %15880 = vmatmul.mubr.bf16.gmra.mrb[12].mxu1 %v20774_v33 }
 0x36f   : > { %16168 = vmatmul.mubr.bf16.gmra.mrb[12].mxu0 %v20777_v24  ;;  %15896 = vmatpush3.bf16.msra.mxu1 %v17371_v3  ;;  %v17388_v3 = vld [vmem:[%s22031_s3 + $0x2f0] sm:$0xff]  }
 0x370   : > { %16184 = vmatpush3.bf16.msra.mxu0 %v17372_v1  ;;  %15897 = vmatprep.subr.bf16.mxu1 %v17373_v22  ;;  %v17389_v1 = vld [vmem:[%s22031_s3 + $0xb8] sm:$0xff]  }
 0x371   : > { %16185 = vmatprep.subr.bf16.mxu0 %v17374_v12  ;;  %15899 = vmatprep.mubr.bf16.mxu1 %v6962_v43  ;;  %v17391_v43 = vld [vmem:[%s22031_s3 + $0xc0] sm:$0xff]  }
 0x372   : > { %16187 = vmatprep.mubr.bf16.mxu0 %v20791_v34 }
 0x373   : > { %15898 = vmatpush3.bf16.msra.mxu1 %v17373_v22  ;;  %v20925_v22 = vpack.c.bf16 %v20798_v27, %v20780_v13  ;;  %v20938_v13 = vpack.c.bf16 %v20690_v16, %v20801_v45  ;;  %v17394_v27 = vld [vmem:[%s22031_s3 + $0x308] sm:$0xff]   ;;  %v17395_v45 = vld [vmem:[%s22031_s3 + $0xd0] sm:$0xff]  }
 0x374   : > { %16186 = vmatpush3.bf16.msra.mxu0 %v17374_v12  ;;  %15915 = vmatprep.subr.bf16.mxu1 %v17375_v28  ;;  %v17392_v12 = vld [vmem:[%s22031_s3 + $0x300] sm:$0xff]   ;;  %v20953_v16 = vld [vmem:[%s20579_s27 + $0x48] sm:$0xff] }
 0x375   : > { %16203 = vmatprep.subr.bf16.mxu0 %v17376_v51 }
 0x376   : > { %15900 = vmatmul.mubr.bf16.vlgmr.msra.gmra.mrb[0].mxu1 %v20808_v19 }
 0x377   : > { %16188 = vmatmul.mubr.bf16.vlgmr.msra.gmra.mrb[0].mxu0 %v20813_v37  ;;  %15916 = vmatpush3.bf16.msra.mxu1 %v17375_v28  ;;  %v17393_v28 = vld [vmem:[%s22031_s3 + $0xc8] sm:$0xff]  }
 0x378   : > { %16204 = vmatpush3.bf16.msra.mxu0 %v17376_v51  ;;  %15917 = vmatprep.subr.bf16.mxu1 %v17377_v60  ;;  %v20949_v51 = vpack.c.bf16 %v20727_v42, %v20701_v15  ;;  %v20965_v15 = vpack.c.bf16 %v20953_v16, %v20672_v48  ;;  %v20969_v42 = vpack.c.bf16 %v20745_v56, %v20730_v9  ;;  %v17399_v9 = vld [vmem:[%s22031_s3 + $0xe0] sm:$0xff]  }
 0x379   : > { %16205 = vmatprep.subr.bf16.mxu0 %v17378_v8  ;;  %15903 = vmatprep.mubr.bf16.mxu1 %v20823_v21  ;;  %v20980_v48 = vpack.c.bf16 %v20863_v62, %v20844_v40  ;;  %v17400_v56 = vld [vmem:[%s22031_s3 + $0x320] sm:$0xff]   ;;  %v21004_v40 = vpack.c.bf16 %v20902_v31, %v20884_v63  ;;  %v17405_v62 = vld [vmem:[%s22031_s3 + $0xf8] sm:$0xff]   ;;  %v17409_v63 = vld [vmem:[%s22031_s3 + $0x108] sm:$0xff]  }
 0x37a   : > { %16191 = vmatprep.mubr.bf16.mxu0 %v20720_v32  ;;  %v17413_v31 = vld [vmem:[%s22031_s3 + $0x118] sm:$0xff]  }
 0x37b   : > { %15918 = vmatpush3.bf16.msra.mxu1 %v17377_v60  ;;  %v17397_v60 = vld [vmem:[%s22031_s3 + $0xd8] sm:$0xff]  }
 0x37c   : > { %16206 = vmatpush3.bf16.msra.mxu0 %v17378_v8  ;;  %15919 = vmatprep.subr.bf16.mxu1 %v17379_v18  ;;  %v17398_v8 = vld [vmem:[%s22031_s3 + $0x318] sm:$0xff]  }
 0x37d   : > { %16207 = vmatprep.subr.bf16.mxu0 %v17380_v30 }
 0x37e   : > { %15904 = vmatmul.mubr.bf16.gmra.mrb[4].mxu1 %v20840_v17 }
 0x37f   : > { %16192 = vmatmul.mubr.bf16.gmra.mrb[4].mxu0 %v20742_v58  ;;  %15920 = vmatpush3.bf16.msra.mxu1 %v17379_v18  ;;  %v20993_v18 = vpack.c.bf16 %v20877_v35, %v20866_v44  ;;  %v17406_v44 = vld [vmem:[%s22031_s3 + $0x338] sm:$0xff]   ;;  %v17408_v35 = vld [vmem:[%s22031_s3 + $0x340] sm:$0xff]  }
 0x380   : > { %16208 = vmatpush3.bf16.msra.mxu0 %v17380_v30  ;;  %15921 = vmatprep.subr.bf16.mxu1 %v17381_v54  ;;  %v17401_v30 = vld [vmem:[%s22031_s3 + $0xe8] sm:$0xff]  }
 0x381   : > { %16209 = vmatprep.subr.bf16.mxu0 %v17382_v5  ;;  %15907 = vmatprep.mubr.bf16.mxu1 %v6966_v49  ;;  %v17404_v49 = vld [vmem:[%s22031_s3 + $0x330] sm:$0xff]  }
 0x382   : > { %16195 = vmatprep.mubr.bf16.mxu0 %v20856_v47 }
 0x383   : > { %15922 = vmatpush3.bf16.msra.mxu1 %v17381_v54  ;;  %v17403_v54 = vld [vmem:[%s22031_s3 + $0xf0] sm:$0xff]  }
 0x384   : > { %16210 = vmatpush3.bf16.msra.mxu0 %v17382_v5  ;;  %15923 = vmatprep.subr.bf16.mxu1 %v17383_v26  ;;  %v21011_v5 = vld [vmem:[%s20579_s27 + $0x160] sm:$0xff] }
 0x385   : > { %16211 = vmatprep.subr.bf16.mxu0 %v17384_v2 }
 0x386   : > { %15908 = vmatmul.mubr.bf16.gmra.mrb[8].mxu1 %v20873_v0 }
 0x387   : > { %16196 = vmatmul.mubr.bf16.gmra.mrb[8].mxu0 %v20881_v38  ;;  %15924 = vmatpush3.bf16.msra.mxu1 %v17383_v26  ;;  %v21020_v26 = vpack.c.bf16 %v21011_v5, %v20905_v57  ;;  %v17415_v57 = vld [vmem:[%s22031_s3 + $0x120] sm:$0xff]  }
 0x388   : > { %16212 = vmatpush3.bf16.msra.mxu0 %v17384_v2  ;;  %15925 = vmatprep.subr.bf16.mxu1 %v17385_v59  ;;  %v17407_v2 = vld [vmem:[%s22031_s3 + $0x100] sm:$0xff]  }
 0x389   : > { %16213 = vmatprep.subr.bf16.mxu0 %v17386_v11  ;;  %15911 = vmatprep.mubr.bf16.mxu1 %v20600_v10 }
 0x38a   : > { %16199 = vmatprep.mubr.bf16.mxu0 %v20895_v7 }
 0x38b   : > { %15926 = vmatpush3.bf16.msra.mxu1 %v17385_v59  ;;  %v17410_v59 = vld [vmem:[%s22031_s3 + $0x348] sm:$0xff]  }
 0x38c   : > { %16214 = vmatpush3.bf16.msra.mxu0 %v17386_v11  ;;  %15927 = vmatprep.subr.bf16.mxu1 %v17387_v36  ;;  %v17411_v11 = vld [vmem:[%s22031_s3 + $0x110] sm:$0xff]  }
 0x38d   : > { %16215 = vmatprep.subr.bf16.mxu0 %v17388_v3 }
 0x38e   : > { %15912 = vmatmul.mubr.bf16.gmra.mrb[12].mxu1 %v20649_v20 }
 0x38f   : > { %16200 = vmatmul.mubr.bf16.gmra.mrb[12].mxu0 %v20914_v52  ;;  %15928 = vmatpush3.bf16.msra.mxu1 %v17387_v36  ;;  %v17412_v36 = vld [vmem:[%s22031_s3 + $0x350] sm:$0xff]  }
 0x390   : > { %16216 = vmatpush3.bf16.msra.mxu0 %v17388_v3  ;;  %15929 = vmatprep.subr.bf16.mxu1 %v17389_v1  ;;  %v17416_v3 = vld [vmem:[%s22031_s3 + $0x360] sm:$0xff]  }
 0x391   : > { %16217 = vmatprep.subr.bf16.mxu0 %v17390_v29  ;;  %15931 = vmatprep.mubr.bf16.mxu1 %v20808_v19  ;;  %v17396_v19 = vld [vmem:[%s22031_s3 + $0x310] sm:$0xff]  }
 0x392   : > { %16219 = vmatprep.mubr.bf16.mxu0 %v20925_v22 }
 0x393   : > { %15930 = vmatpush3.bf16.msra.mxu1 %v17389_v1  ;;  %v17417_v1 = vld [vmem:[%s22031_s3 + $0x128] sm:$0xff]  }
 0x394   : > { %16218 = vmatpush3.bf16.msra.mxu0 %v17390_v29  ;;  %15947 = vmatprep.subr.bf16.mxu1 %v17391_v43  ;;  %v17418_v29 = vld [vmem:[%s22031_s3 + $0x368] sm:$0xff]  }
 0x395   : > { %16235 = vmatprep.subr.bf16.mxu0 %v17392_v12 }
 0x396   : > { %15932 = vmatmul.mubr.bf16.vlgmr.msra.gmra.mrb[0].mxu1 %v20823_v21 }
 0x397   : > { %16220 = vmatmul.mubr.bf16.vlgmr.msra.gmra.mrb[0].mxu0 %v20938_v13  ;;  %15948 = vmatpush3.bf16.msra.mxu1 %v17391_v43  ;;  %v17419_v43 = vld [vmem:[%s22031_s3 + $0x130] sm:$0xff]  }
 0x398   : > { %16236 = vmatpush3.bf16.msra.mxu0 %v17392_v12  ;;  %15949 = vmatprep.subr.bf16.mxu1 %v17393_v28  ;;  %v21086_v12 = vld [vmem:[%s20579_s27 + $0x168] sm:$0xff] }
 0x399   : > { %16237 = vmatprep.subr.bf16.mxu0 %v17394_v27  ;;  %15935 = vmatprep.mubr.bf16.mxu1 %v20840_v17 }
 0x39a   : > { %16223 = vmatprep.mubr.bf16.mxu0 %v20949_v51 }
 0x39b   : > { %15950 = vmatpush3.bf16.msra.mxu1 %v17393_v28  ;;  %v17420_v28 = vld [vmem:[%s22031_s3 + $0x370] sm:$0xff]  }
 0x39c   : > { %16238 = vmatpush3.bf16.msra.mxu0 %v17394_v27  ;;  %15951 = vmatprep.subr.bf16.mxu1 %v17395_v45  ;;  %v17421_v27 = vld [vmem:[%s22031_s3 + $0x138] sm:$0xff]  }
 0x39d   : > { %16239 = vmatprep.subr.bf16.mxu0 %v17396_v19 }
 0x39e   : > { %15936 = vmatmul.mubr.bf16.gmra.mrb[4].mxu1 %v20965_v15 }
 0x39f   : > { %16224 = vmatmul.mubr.bf16.gmra.mrb[4].mxu0 %v20969_v42  ;;  %15952 = vmatpush3.bf16.msra.mxu1 %v17395_v45  ;;  %v17424_v45 = vld [vmem:[%s22031_s3 + $0x380] sm:$0xff]  }
 0x3a0   : > { %16240 = vmatpush3.bf16.msra.mxu0 %v17396_v19  ;;  %15953 = vmatprep.subr.bf16.mxu1 %v17397_v60  ;;  %v17425_v19 = vld [vmem:[%s22031_s3 + $0x148] sm:$0xff]  }
 0x3a1   : > { %16241 = vmatprep.subr.bf16.mxu0 %v17398_v8  ;;  %15939 = vmatprep.mubr.bf16.mxu1 %v20873_v0 }
 0x3a2   : > { %16227 = vmatprep.mubr.bf16.mxu0 %v20980_v48 }
 0x3a3   : > { %15954 = vmatpush3.bf16.msra.mxu1 %v17397_v60  ;;  %v17426_v60 = vld [vmem:[%s22031_s3 + $0x388] sm:$0xff]  }
 0x3a4   : > { %16242 = vmatpush3.bf16.msra.mxu0 %v17398_v8  ;;  %15955 = vmatprep.subr.bf16.mxu1 %v17399_v9  ;;  %v17428_v8 = vld [vmem:[%s22031_s3 + $0x390] sm:$0xff]  }
 0x3a5   : > { %16243 = vmatprep.subr.bf16.mxu0 %v17400_v56 }
 0x3a6   : > { %15940 = vmatmul.mubr.bf16.gmra.mrb[8].mxu1 %v20600_v10 }
 0x3a7   : > { %16228 = vmatmul.mubr.bf16.gmra.mrb[8].mxu0 %v20993_v18  ;;  %15956 = vmatpush3.bf16.msra.mxu1 %v17399_v9  ;;  %v17429_v9 = vld [vmem:[%s22031_s3 + $0x158] sm:$0xff]  }
 0x3a8   : > { %16244 = vmatpush3.bf16.msra.mxu0 %v17400_v56  ;;  %15957 = vmatprep.subr.bf16.mxu1 %v17401_v30  ;;  %v17431_v56 = vld [vmem:[%s22031_s3 + $0x160] sm:$0xff]  }
 0x3a9   : > { %16245 = vmatprep.subr.bf16.mxu0 %v17402_v14  ;;  %15943 = vmatprep.mubr.bf16.mxu1 %v20649_v20 }
 0x3aa   : > { %16231 = vmatprep.mubr.bf16.mxu0 %v21004_v40 }
 0x3ab   : > { %15958 = vmatpush3.bf16.msra.mxu1 %v17401_v30  ;;  %v17432_v30 = vld [vmem:[%s22031_s3 + $0x3a0] sm:$0xff]  }
 0x3ac   : > { %16246 = vmatpush3.bf16.msra.mxu0 %v17402_v14  ;;  %15959 = vmatprep.subr.bf16.mxu1 %v17403_v54  ;;  %v17433_v14 = vld [vmem:[%s22031_s3 + $0x168] sm:$0xff]  }
 0x3ad   : > { %16247 = vmatprep.subr.bf16.mxu0 %v17404_v49 }
 0x3ae   : > { %15944 = vmatmul.mubr.bf16.gmra.mrb[12].mxu1 %v20669_v53 }
 0x3af   : > { %16232 = vmatmul.mubr.bf16.gmra.mrb[12].mxu0 %v21020_v26  ;;  %15960 = vmatpush3.bf16.msra.mxu1 %v17403_v54  ;;  %v17434_v54 = vld [vmem:[%s22031_s3 + $0x3a8] sm:$0xff]  }
 0x3b0   : > { %16248 = vmatpush3.bf16.msra.mxu0 %v17404_v49  ;;  %15961 = vmatprep.subr.bf16.mxu1 %v17405_v62  ;;  %v21157_v49 = vld [vmem:[%s20579_s27 + $0x170] sm:$0xff] }
 0x3b1   : > { %16249 = vmatprep.subr.bf16.mxu0 %v17406_v44  ;;  %15963 = vmatprep.mubr.bf16.mxu1 %v20639_v4  ;;  %v21047_v4 = vld [vmem:[%s20579_s27 + $0x50] sm:$0xff] }
 0x3b2   : > { %16251 = vmatprep.mubr.bf16.mxu0 %v20813_v37 }
 0x3b3   : > { %15962 = vmatpush3.bf16.msra.mxu1 %v17405_v62  ;;  %v17436_v62 = vld [vmem:[%s22031_s3 + $0x3b0] sm:$0xff]  }
 0x3b4   : > { %16250 = vmatpush3.bf16.msra.mxu0 %v17406_v44  ;;  %15979 = vmatprep.subr.bf16.mxu1 %v17407_v2  ;;  %v21164_v44 = vld [vmem:[%s20579_s27 + $0x68] sm:$0xff] }
 0x3b5   : > { %16267 = vmatprep.subr.bf16.mxu0 %v17408_v35 }
 0x3b6   : > { %15964 = vmatmul.mubr.bf16.vlgmr.msra.gmra.mrb[0].mxu1 %v20662_v46  ;;  %v7481_v46 = vpack.c.bf16 %v21047_v4, %v20953_v16  ;;  %v17423_v16 = vld [vmem:[%s22031_s3 + $0x140] sm:$0xff]  }
 0x3b7   : > { %16252 = vmatmul.mubr.bf16.vlgmr.msra.gmra.mrb[0].mxu0 %v20720_v32  ;;  %15980 = vmatpush3.bf16.msra.mxu1 %v17407_v2  ;;  %v21170_v2 = vpack.c.bf16 %v21157_v49, %v21086_v12 }
 0x3b8   : > { %16268 = vmatpush3.bf16.msra.mxu0 %v17408_v35  ;;  %15981 = vmatprep.subr.bf16.mxu1 %v17409_v63  ;;  %v17437_v35 = vld [vmem:[%s22031_s3 + $0x178] sm:$0xff]  }
 0x3b9   : > { %16269 = vmatprep.subr.bf16.mxu0 %v17410_v59  ;;  %15967 = vmatprep.mubr.bf16.mxu1 %v20695_v61  ;;  %v17414_v61 = vld [vmem:[%s22031_s3 + $0x358] sm:$0xff]  }
 0x3ba   : > { %16255 = vmatprep.mubr.bf16.mxu0 %v20742_v58 }
 0x3bb   : > { %15982 = vmatpush3.bf16.msra.mxu1 %v17409_v63  ;;  %v17438_v63 = vld [vmem:[%s22031_s3 + $0x3b8] sm:$0xff]  }
 0x3bc   : > { %16270 = vmatpush3.bf16.msra.mxu0 %v17410_v59  ;;  %15983 = vmatprep.subr.bf16.mxu1 %v17411_v11  ;;  %v7868_v59 = vpack.c.bf16 %v21164_v44, %v20835_v25  ;;  %v17442_v25 = vld [vmem:[%s22031_s3 + $0x3c8] sm:$0xff]  }
 0x3bd   : > { %16271 = vmatprep.subr.bf16.mxu0 %v17412_v36 }
 0x3be   : > { %15968 = vmatmul.mubr.bf16.gmra.mrb[4].mxu1 %v7481_v46  ;;  %v17444_v46 = vld [vmem:[%s22031_s3 + $0x3d0] sm:$0xff]  }
 0x3bf   : > { %16256 = vmatmul.mubr.bf16.gmra.mrb[4].mxu0 %v20759_v39  ;;  %15984 = vmatpush3.bf16.msra.mxu1 %v17411_v11  ;;  %v17440_v11 = vld [vmem:[%s22031_s3 + $0x3c0] sm:$0xff]  }
 0x3c0   : > { %16272 = vmatpush3.bf16.msra.mxu0 %v17412_v36  ;;  %15985 = vmatprep.subr.bf16.mxu1 %v17413_v31  ;;  %v17443_v36 = vld [vmem:[%s22031_s3 + $0x190] sm:$0xff]  }
 0x3c1   : > { %16273 = vmatprep.subr.bf16.mxu0 %v17414_v61  ;;  %15971 = vmatprep.mubr.bf16.mxu1 %v20737_v50 }
 0x3c2   : > { %16259 = vmatprep.mubr.bf16.mxu0 %v20881_v38 }
 0x3c3   : > { %15986 = vmatpush3.bf16.msra.mxu1 %v17413_v31  ;;  %v17445_v31 = vld [vmem:[%s22031_s3 + $0x198] sm:$0xff]  }
 0x3c4   : > { %16274 = vmatpush3.bf16.msra.mxu0 %v17414_v61  ;;  %15987 = vmatprep.subr.bf16.mxu1 %v17415_v57  ;;  %v17446_v61 = vld [vmem:[%s22031_s3 + $0x3d8] sm:$0xff]  }
 0x3c5   : > { %16275 = vmatprep.subr.bf16.mxu0 %v17416_v3 }
 0x3c6   : > { %15972 = vmatmul.mubr.bf16.gmra.mrb[8].mxu1 %v20755_v23  ;;  %v21095_v23 = vpack.c.bf16 %v21086_v12, %v21011_v5  ;;  %v17435_v5 = vld [vmem:[%s22031_s3 + $0x170] sm:$0xff]  }
 0x3c7   : > { %16260 = vmatmul.mubr.bf16.gmra.mrb[8].mxu0 %v20895_v7  ;;  %15988 = vmatpush3.bf16.msra.mxu1 %v17415_v57  ;;  %v17447_v57 = vld [vmem:[%s22031_s3 + $0x1a0] sm:$0xff]  }
 0x3c8   : > { %16276 = vmatpush3.bf16.msra.mxu0 %v17416_v3  ;;  %15989 = vmatprep.subr.bf16.mxu1 %v17417_v1  ;;  %v17448_v3 = vld [vmem:[%s22031_s3 + $0x3e0] sm:$0xff]  }
 0x3c9   : > { %16277 = vmatprep.subr.bf16.mxu0 %v17418_v29  ;;  %15975 = vmatprep.mubr.bf16.mxu1 %v20774_v33  ;;  %v17422_v33 = vld [vmem:[%s22031_s3 + $0x378] sm:$0xff]  }
 0x3ca   : > { %16263 = vmatprep.mubr.bf16.mxu0 %v20914_v52 }
 0x3cb   : > { %15990 = vmatpush3.bf16.msra.mxu1 %v17417_v1  ;;  %v17449_v1 = vld [vmem:[%s22031_s3 + $0x1a8] sm:$0xff]  }
 0x3cc   : > { %16278 = vmatpush3.bf16.msra.mxu0 %v17418_v29  ;;  %15991 = vmatprep.subr.bf16.mxu1 %v17419_v43  ;;  %v13868_v29 = vld [vmem:[%s20579_s27 + $0x178] sm:$0xff] }
 0x3cd   : > { %16279 = vmatprep.subr.bf16.mxu0 %v17420_v28  ;;  %v21239_v12 = vpack.c.bf16 %v13868_v29, %v21157_v49  ;;  %v17462_v49 = vld [vmem:[%s22031_s3 + $0x418] sm:$0xff]  }
 0x3ce   : > { %15976 = vmatmul.mubr.bf16.gmra.mrb[12].mxu1 %v20629_v41  ;;  %v17469_v29 = vld [vmem:[%s22031_s3 + $0x1f8] sm:$0xff]  }
 0x3cf   : > { %16264 = vmatmul.mubr.bf16.gmra.mrb[12].mxu0 %v21095_v23  ;;  %15992 = vmatpush3.bf16.msra.mxu1 %v17419_v43  ;;  %v17452_v43 = vld [vmem:[%s22031_s3 + $0x3f0] sm:$0xff]  }
 0x3d0   : > { %16280 = vmatpush3.bf16.msra.mxu0 %v17420_v28  ;;  %15993 = vmatprep.subr.bf16.mxu1 %v17421_v27  ;;  %v17453_v28 = vld [vmem:[%s22031_s3 + $0x1b8] sm:$0xff]  }
 0x3d1   : > { %16281 = vmatprep.subr.bf16.mxu0 %v17422_v33  ;;  %15995 = vmatprep.mubr.bf16.mxu1 %v20823_v21  ;;  %v6949_v21 = vld [vmem:[%s20579_s27 + $0x58] sm:$0xff] }
 0x3d2   : > { %16283 = vmatprep.mubr.bf16.mxu0 %v20938_v13  ;;  %v17427_v13 = vld [vmem:[%s22031_s3 + $0x150] sm:$0xff]  }
 0x3d3   : > { %15994 = vmatpush3.bf16.msra.mxu1 %v17421_v27  ;;  %v17454_v27 = vld [vmem:[%s22031_s3 + $0x3f8] sm:$0xff]  }
 0x3d4   : > { %16282 = vmatpush3.bf16.msra.mxu0 %v17422_v33  ;;  %16011 = vmatprep.subr.bf16.mxu1 %v17423_v16  ;;  %v17735_v33 = vld [vmem:[%s20579_s27 + $0x70] sm:$0xff] }
 0x3d5   : > { %16299 = vmatprep.subr.bf16.mxu0 %v17424_v45 }
 0x3d6   : > { %15996 = vmatmul.mubr.bf16.vlgmr.msra.gmra.mrb[0].mxu1 %v20840_v17  ;;  %v7661_v17 = vpack.c.bf16 %v6949_v21, %v21047_v4  ;;  %v17439_v4 = vld [vmem:[%s22031_s3 + $0x180] sm:$0xff]   ;;  %v17458_v21 = vld [vmem:[%s22031_s3 + $0x408] sm:$0xff]  }
 0x3d7   : > { %16284 = vmatmul.mubr.bf16.vlgmr.msra.gmra.mrb[0].mxu0 %v20949_v51  ;;  %16012 = vmatpush3.bf16.msra.mxu1 %v17423_v16  ;;  %v8054_v16 = vpack.c.bf16 %v17735_v33, %v21164_v44  ;;  %v17463_v44 = vld [vmem:[%s22031_s3 + $0x1e0] sm:$0xff]   ;;  %v17473_v33 = vld [vmem:[%s22031_s3 + $0x208] sm:$0xff]  }
 0x3d8   : > { %16300 = vmatpush3.bf16.msra.mxu0 %v17424_v45  ;;  %16013 = vmatprep.subr.bf16.mxu1 %v17425_v19  ;;  %v17455_v45 = vld [vmem:[%s22031_s3 + $0x1c0] sm:$0xff]  }
 0x3d9   : > { %16301 = vmatprep.subr.bf16.mxu0 %v17426_v60  ;;  %15999 = vmatprep.mubr.bf16.mxu1 %v20965_v15  ;;  %v17430_v15 = vld [vmem:[%s22031_s3 + $0x398] sm:$0xff]  }
 0x3da   : > { %16287 = vmatprep.mubr.bf16.mxu0 %v20969_v42 }
 0x3db   : > { %16014 = vmatpush3.bf16.msra.mxu1 %v17425_v19  ;;  %v17456_v19 = vld [vmem:[%s22031_s3 + $0x400] sm:$0xff]  }
 0x3dc   : > { %16302 = vmatpush3.bf16.msra.mxu0 %v17426_v60  ;;  %16015 = vmatprep.subr.bf16.mxu1 %v17427_v13  ;;  %v17457_v60 = vld [vmem:[%s22031_s3 + $0x1c8] sm:$0xff]  }
 0x3dd   : > { %16303 = vmatprep.subr.bf16.mxu0 %v17428_v8 }
 0x3de   : > { %16000 = vmatmul.mubr.bf16.gmra.mrb[4].mxu1 %v7661_v17 }
 0x3df   : > { %16288 = vmatmul.mubr.bf16.gmra.mrb[4].mxu0 %v20712_v55  ;;  %16016 = vmatpush3.bf16.msra.mxu1 %v17427_v13  ;;  %v17736_v13 = vld [vmem:[%s20579_s27 + $0x88] sm:$0xff] }
 0x3e0   : > { %16304 = vmatpush3.bf16.msra.mxu0 %v17428_v8  ;;  %16017 = vmatprep.subr.bf16.mxu1 %v17429_v9  ;;  %v17737_v8 = vld [vmem:[%s20579_s27 + $0x90] sm:$0xff] }
 0x3e1   : > { %16305 = vmatprep.subr.bf16.mxu0 %v17430_v15  ;;  %16003 = vmatprep.mubr.bf16.mxu1 %v20600_v10  ;;  %v21266_v17 = vpack.c.bf16 %v17737_v8, %v17736_v13  ;;  %v17483_v8 = vld [vmem:[%s22031_s3 + $0x230] sm:$0xff]  }
 0x3e2   : > { %16291 = vmatprep.mubr.bf16.mxu0 %v20993_v18 }
 0x3e3   : > { %16018 = vmatpush3.bf16.msra.mxu1 %v17429_v9  ;;  %v17460_v9 = vld [vmem:[%s22031_s3 + $0x410] sm:$0xff]  }
 0x3e4   : > { %16306 = vmatpush3.bf16.msra.mxu0 %v17430_v15  ;;  %16019 = vmatprep.subr.bf16.mxu1 %v17431_v56  ;;  %v14003_v15 = vld [vmem:[%s20579_s27 + $0x180] sm:$0xff] }
 0x3e5   : > { %16307 = vmatprep.subr.bf16.mxu0 %v17432_v30 }
 0x3e6   : > { %16004 = vmatmul.mubr.bf16.gmra.mrb[8].mxu1 %v20649_v20 }
 0x3e7   : > { %16292 = vmatmul.mubr.bf16.gmra.mrb[8].mxu0 %v21004_v40  ;;  %16020 = vmatpush3.bf16.msra.mxu1 %v17431_v56  ;;  %v21279_v56 = vld [vmem:[%s20579_s27 + $0x188] sm:$0xff] }
 0x3e8   : > { %16308 = vmatpush3.bf16.msra.mxu0 %v17432_v30  ;;  %16021 = vmatprep.subr.bf16.mxu1 %v17433_v14  ;;  %v17738_v30 = vld [vmem:[%s20579_s27 + $0x98] sm:$0xff] }
 0x3e9   : > { %16309 = vmatprep.subr.bf16.mxu0 %v17434_v54  ;;  %16007 = vmatprep.mubr.bf16.mxu1 %v20669_v53 }
 0x3ea   : > { %16295 = vmatprep.mubr.bf16.mxu0 %v21020_v26 }
 0x3eb   : > { %16022 = vmatpush3.bf16.msra.mxu1 %v17433_v14  ;;  %v17739_v14 = vld [vmem:[%s20579_s27 + $0xa0] sm:$0xff] }
 0x3ec   : > { %16310 = vmatpush3.bf16.msra.mxu0 %v17434_v54  ;;  %16023 = vmatprep.subr.bf16.mxu1 %v17435_v5  ;;  %v21284_v54 = vpack.c.bf16 %v17739_v14, %v17738_v30  ;;  %v17492_v30 = vld [vmem:[%s22031_s3 + $0x4a8] sm:$0xff]   ;;  %v17493_v14 = vld [vmem:[%s22031_s3 + $0x4b0] sm:$0xff]  }
 0x3ed   : > { %16311 = vmatprep.subr.bf16.mxu0 %v17436_v62 }
 0x3ee   : > { %16008 = vmatmul.mubr.bf16.gmra.mrb[12].mxu1 %v20703_v6  ;;  %v17441_v6 = vld [vmem:[%s22031_s3 + $0x188] sm:$0xff]  }
 0x3ef   : > { %16296 = vmatmul.mubr.bf16.gmra.mrb[12].mxu0 %v21170_v2  ;;  %16024 = vmatpush3.bf16.msra.mxu1 %v17435_v5  ;;  %v17461_v5 = vld [vmem:[%s22031_s3 + $0x1d8] sm:$0xff]  }
 0x3f0   : > { %16312 = vmatpush3.bf16.msra.mxu0 %v17436_v62  ;;  %16025 = vmatprep.subr.bf16.mxu1 %v17437_v35  ;;  %v21294_v62 = vpack.c.bf16 %v21279_v56, %v14003_v15  ;;  %v17485_v15 = vld [vmem:[%s22031_s3 + $0x238] sm:$0xff]  }
 0x3f1   : > { %16313 = vmatprep.subr.bf16.mxu0 %v17438_v63  ;;  %16027 = vmatprep.mubr.bf16.mxu1 %v7868_v59  ;;  %v17464_v59 = vld [vmem:[%s22031_s3 + $0x420] sm:$0xff]  }
 0x3f2   : > { %16315 = vmatprep.mubr.bf16.mxu0 %v20720_v32 }
 0x3f3   : > { %16026 = vmatpush3.bf16.msra.mxu1 %v17437_v35  ;;  %v21300_v35 = vld [vmem:[%s20579_s27 + $0x190] sm:$0xff] }
 0x3f4   : > { %16314 = vmatpush3.bf16.msra.mxu0 %v17438_v63  ;;  %16043 = vmatprep.subr.bf16.mxu1 %v17439_v4  ;;  %v21303_v63 = vld [vmem:[%s20579_s27 + $0x198] sm:$0xff] }
 0x3f5   : > { %16331 = vmatprep.subr.bf16.mxu0 %v17440_v11 }
 0x3f6   : > { %16028 = vmatmul.mubr.bf16.vlgmr.msra.gmra.mrb[0].mxu1 %v20873_v0 }
 0x3f7   : > { %16316 = vmatmul.mubr.bf16.vlgmr.msra.gmra.mrb[0].mxu0 %v20742_v58  ;;  %16044 = vmatpush3.bf16.msra.mxu1 %v17439_v4  ;;  %v21311_v4 = vld [vmem:[%s20579_s27 + $0x1a0] sm:$0xff] }
 0x3f8   : > { %16332 = vmatpush3.bf16.msra.mxu0 %v17440_v11  ;;  %16045 = vmatprep.subr.bf16.mxu1 %v17441_v6  ;;  %v21314_v11 = vld [vmem:[%s20579_s27 + $0x1a8] sm:$0xff] }
 0x3f9   : > { %16333 = vmatprep.subr.bf16.mxu0 %v17442_v25  ;;  %16031 = vmatprep.mubr.bf16.mxu1 %v20600_v10 }
 0x3fa   : > { %16319 = vmatprep.mubr.bf16.mxu0 %v20759_v39 }
 0x3fb   : > { %16046 = vmatpush3.bf16.msra.mxu1 %v17441_v6  ;;  %v17740_v6 = vld [vmem:[%s20579_s27 + $0xe0] sm:$0xff] }
 0x3fc   : > { %16334 = vmatpush3.bf16.msra.mxu0 %v17442_v25  ;;  %16047 = vmatprep.subr.bf16.mxu1 %v17443_v36  ;;  %v17741_v25 = vld [vmem:[%s20579_s27 + $0xd8] sm:$0xff] }
 0x3fd   : > { %16335 = vmatprep.subr.bf16.mxu0 %v17444_v46 }
 0x3fe   : > { %16032 = vmatmul.mubr.bf16.gmra.mrb[4].mxu1 %v20649_v20 }
 0x3ff   : > { %16320 = vmatmul.mubr.bf16.gmra.mrb[4].mxu0 %v20777_v24  ;;  %16048 = vmatpush3.bf16.msra.mxu1 %v17443_v36  ;;  %v17450_v24 = vld [vmem:[%s22031_s3 + $0x3e8] sm:$0xff]   ;;  %v21319_v36 = vpack.c.bf16 %v17740_v6, %v17741_v25  ;;  %v17510_v25 = vld [vmem:[%s22031_s3 + $0x538] sm:$0xff]  }
 0x400   : > { %16336 = vmatpush3.bf16.msra.mxu0 %v17444_v46  ;;  %16049 = vmatprep.subr.bf16.mxu1 %v17445_v31  ;;  %v17465_v46 = vld [vmem:[%s22031_s3 + $0x1e8] sm:$0xff]  }
 0x401   : > { %16337 = vmatprep.subr.bf16.mxu0 %v17446_v61  ;;  %16035 = vmatprep.mubr.bf16.mxu1 %v20791_v34  ;;  %v17451_v34 = vld [vmem:[%s22031_s3 + $0x1b0] sm:$0xff]  }
 0x402   : > { %16323 = vmatprep.mubr.bf16.mxu0 %v20895_v7 }
 0x403   : > { %16050 = vmatpush3.bf16.msra.mxu1 %v17445_v31  ;;  %v17466_v31 = vld [vmem:[%s22031_s3 + $0x428] sm:$0xff]  }
 0x404   : > { %16338 = vmatpush3.bf16.msra.mxu0 %v17446_v61  ;;  %16051 = vmatprep.subr.bf16.mxu1 %v17447_v57  ;;  %v21334_v61 = vpack.c.bf16 %v21314_v11, %v21311_v4 }
 0x405   : > { %16339 = vmatprep.subr.bf16.mxu0 %v17448_v3 }
 0x406   : > { %16036 = vmatmul.mubr.bf16.gmra.mrb[8].mxu1 %v20813_v37 }
 0x407   : > { %16324 = vmatmul.mubr.bf16.gmra.mrb[8].mxu0 %v20914_v52  ;;  %16052 = vmatpush3.bf16.msra.mxu1 %v17447_v57  ;;  %v17467_v57 = vld [vmem:[%s22031_s3 + $0x1f0] sm:$0xff]  }
 0x408   : > { %16340 = vmatpush3.bf16.msra.mxu0 %v17448_v3  ;;  %16053 = vmatprep.subr.bf16.mxu1 %v17449_v1  ;;  %v21340_v3 = vld [vmem:[%s20579_s27 + $0x1b0] sm:$0xff] }
 0x409   : > { %16341 = vmatprep.subr.bf16.mxu0 %v17450_v24  ;;  %16039 = vmatprep.mubr.bf16.mxu1 %v20720_v32  ;;  %v21420_v13 = vpack.c.bf16 %v21340_v3, %v21314_v11  ;;  %v17509_v11 = vld [vmem:[%s22031_s3 + $0x530] sm:$0xff]  }
 0x40a   : > { %16327 = vmatprep.mubr.bf16.mxu0 %v21095_v23 }
 0x40b   : > { %16054 = vmatpush3.bf16.msra.mxu1 %v17449_v1  ;;  %v21343_v1 = vld [vmem:[%s20579_s27 + $0x1b8] sm:$0xff] }
 0x40c   : > { %16342 = vmatpush3.bf16.msra.mxu0 %v17450_v24  ;;  %16055 = vmatprep.subr.bf16.mxu1 %v17451_v34  ;;  %v17468_v24 = vld [vmem:[%s22031_s3 + $0x430] sm:$0xff]  }
 0x40d   : > { %16343 = vmatprep.subr.bf16.mxu0 %v17452_v43 }
 0x40e   : > { %16040 = vmatmul.mubr.bf16.gmra.mrb[12].mxu1 %v20742_v58 }
 0x40f   : > { %16328 = vmatmul.mubr.bf16.gmra.mrb[12].mxu0 %v21239_v12  ;;  %16056 = vmatpush3.bf16.msra.mxu1 %v17451_v34  ;;  %v21353_v34 = vpack.c.bf16 %v21343_v1, %v21340_v3 }
 0x410   : > { %16344 = vmatpush3.bf16.msra.mxu0 %v17452_v43  ;;  %16057 = vmatprep.subr.bf16.mxu1 %v17453_v28  ;;  %v17470_v43 = vld [vmem:[%s22031_s3 + $0x438] sm:$0xff]  }
 0x411   : > { %16345 = vmatprep.subr.bf16.mxu0 %v17454_v27  ;;  %16059 = vmatprep.mubr.bf16.mxu1 %v8054_v16  ;;  %v17474_v16 = vld [vmem:[%s22031_s3 + $0x448] sm:$0xff]  }
 0x412   : > { %16347 = vmatprep.mubr.bf16.mxu0 %v20856_v47  ;;  %v17459_v47 = vld [vmem:[%s22031_s3 + $0x1d0] sm:$0xff]  }
 0x413   : > { %16058 = vmatpush3.bf16.msra.mxu1 %v17453_v28  ;;  %v17471_v28 = vld [vmem:[%s22031_s3 + $0x200] sm:$0xff]  }
 0x414   : > { %16346 = vmatpush3.bf16.msra.mxu0 %v17454_v27  ;;  %16075 = vmatprep.subr.bf16.mxu1 %v17455_v45  ;;  %v17472_v27 = vld [vmem:[%s22031_s3 + $0x440] sm:$0xff]  }
 0x415   : > { %16363 = vmatprep.subr.bf16.mxu0 %v17456_v19 }
 0x416   : > { %16060 = vmatmul.mubr.bf16.vlgmr.msra.gmra.mrb[0].mxu1 %v20737_v50 }
 0x417   : > { %16348 = vmatmul.mubr.bf16.vlgmr.msra.gmra.mrb[0].mxu0 %v20881_v38  ;;  %16076 = vmatpush3.bf16.msra.mxu1 %v17455_v45  ;;  %v17478_v45 = vld [vmem:[%s22031_s3 + $0x458] sm:$0xff]  }
 0x418   : > { %16364 = vmatpush3.bf16.msra.mxu0 %v17456_v19  ;;  %16077 = vmatprep.subr.bf16.mxu1 %v17457_v60  ;;  %v17479_v19 = vld [vmem:[%s22031_s3 + $0x220] sm:$0xff]  }
 0x419   : > { %16365 = vmatprep.subr.bf16.mxu0 %v17458_v21  ;;  %16063 = vmatprep.mubr.bf16.mxu1 %v21266_v17 }
 0x41a   : > { %16351 = vmatprep.mubr.bf16.mxu0 %v20895_v7 }
 0x41b   : > { %16078 = vmatpush3.bf16.msra.mxu1 %v17457_v60  ;;  %v21409_v60 = vpack.c.bf16 %v21311_v4, %v21303_v63  ;;  %v17506_v4 = vld [vmem:[%s22031_s3 + $0x518] sm:$0xff]  }
 0x41c   : > { %16366 = vmatpush3.bf16.msra.mxu0 %v17458_v21  ;;  %16079 = vmatprep.subr.bf16.mxu1 %v17459_v47  ;;  %v17481_v21 = vld [vmem:[%s22031_s3 + $0x228] sm:$0xff]  }
 0x41d   : > { %16367 = vmatprep.subr.bf16.mxu0 %v17460_v9 }
 0x41e   : > { %16064 = vmatmul.mubr.bf16.gmra.mrb[4].mxu1 %v21284_v54 }
 0x41f   : > { %16352 = vmatmul.mubr.bf16.gmra.mrb[4].mxu0 %v20914_v52  ;;  %16080 = vmatpush3.bf16.msra.mxu1 %v17459_v47  ;;  %v14011_v47 = vld [vmem:[%s20579_s27 + $0x1c0] sm:$0xff] }
 0x420   : > { %16368 = vmatpush3.bf16.msra.mxu0 %v17460_v9  ;;  %16081 = vmatprep.subr.bf16.mxu1 %v17461_v5  ;;  %v21433_v9 = vpack.c.bf16 %v14011_v47, %v21343_v1  ;;  %v17514_v1 = vld [vmem:[%s22031_s3 + $0x558] sm:$0xff]  }
 0x421   : > { %16369 = vmatprep.subr.bf16.mxu0 %v17462_v49  ;;  %16067 = vmatprep.mubr.bf16.mxu1 %v20925_v22  ;;  %v21326_v22 = vpack.c.bf16 %v21303_v63, %v21300_v35  ;;  %v17503_v63 = vld [vmem:[%s22031_s3 + $0x500] sm:$0xff]  }
 0x422   : > { %16355 = vmatprep.mubr.bf16.mxu0 %v21294_v62 }
 0x423   : > { %16082 = vmatpush3.bf16.msra.mxu1 %v17461_v5  ;;  %v17496_v5 = vld [vmem:[%s22031_s3 + $0x4c8] sm:$0xff]  }
 0x424   : > { %16370 = vmatpush3.bf16.msra.mxu0 %v17462_v49  ;;  %16083 = vmatprep.subr.bf16.mxu1 %v17463_v44  ;;  %v17501_v49 = vld [vmem:[%s22031_s3 + $0x4f0] sm:$0xff]  }
 0x425   : > { %16371 = vmatprep.subr.bf16.mxu0 %v17464_v59 }
 0x426   : > { %16068 = vmatmul.mubr.bf16.gmra.mrb[8].mxu1 %v21319_v36 }
 0x427   : > { %16356 = vmatmul.mubr.bf16.gmra.mrb[8].mxu0 %v21326_v22  ;;  %16084 = vmatpush3.bf16.msra.mxu1 %v17463_v44 }
 0x428   : > { %16372 = vmatpush3.bf16.msra.mxu0 %v17464_v59  ;;  %16085 = vmatprep.subr.bf16.mxu1 %v17465_v46  ;;  %v17504_v59 = vld [vmem:[%s22031_s3 + $0x508] sm:$0xff]  }
 0x429   : > { %16373 = vmatprep.subr.bf16.mxu0 %v17466_v31  ;;  %16071 = vmatprep.mubr.bf16.mxu1 %v20949_v51 }
 0x42a   : > { %16359 = vmatprep.mubr.bf16.mxu0 %v21334_v61 }
 0x42b   : > { %16086 = vmatpush3.bf16.msra.mxu1 %v17465_v46  ;;  %v17512_v46 = vld [vmem:[%s22031_s3 + $0x548] sm:$0xff]  }
 0x42c   : > { %16374 = vmatpush3.bf16.msra.mxu0 %v17466_v31  ;;  %16087 = vmatprep.subr.bf16.mxu1 %v17467_v57  ;;  %v14149_v31 = vld [vmem:[%s20579_s27 + $0x1e0] sm:$0xff] }
 0x42d   : > { %16375 = vmatprep.subr.bf16.mxu0 %v17468_v24 }
 0x42e   : > { %16072 = vmatmul.mubr.bf16.gmra.mrb[12].mxu1 %v20969_v42 }
 0x42f   : > { %16360 = vmatmul.mubr.bf16.gmra.mrb[12].mxu0 %v21353_v34  ;;  %16088 = vmatpush3.bf16.msra.mxu1 %v17467_v57  ;;  %v21570_v57 = vld [vmem:[%s20579_s27 + $0x1e8] sm:$0xff] }
 0x430   : > { %16376 = vmatpush3.bf16.msra.mxu0 %v17468_v24  ;;  %16089 = vmatprep.subr.bf16.mxu1 %v17469_v29  ;;  %v10689_v3 = vpack.c.bf16 %v21570_v57, %v14149_v31  ;;  %v14151_v24 = vld [vmem:[%s20579_s27 + $0x1f0] sm:$0xff] }
 0x431   : > { %16377 = vmatprep.subr.bf16.mxu0 %v17470_v43  ;;  %16091 = vmatprep.mubr.bf16.mxu1 %v20873_v0  ;;  %v17475_v0 = vld [vmem:[%s22031_s3 + $0x210] sm:$0xff]  }
 0x432   : > { %16379 = vmatprep.mubr.bf16.mxu0 %v20980_v48  ;;  %v17476_v48 = vld [vmem:[%s22031_s3 + $0x450] sm:$0xff]  }
 0x433   : > { %16090 = vmatpush3.bf16.msra.mxu1 %v17469_v29  ;;  %v21579_v29 = vld [vmem:[%s20579_s27 + $0x1f8] sm:$0xff] }
 0x434   : > { %16378 = vmatpush3.bf16.msra.mxu0 %v17470_v43  ;;  %16107 = vmatprep.subr.bf16.mxu1 %v17471_v28  ;;  %v17515_v43 = vld [vmem:[%s22031_s3 + $0x560] sm:$0xff]  }
 0x435   : > { %16395 = vmatprep.subr.bf16.mxu0 %v17472_v27 }
 0x436   : > { %16092 = vmatmul.mubr.bf16.vlgmr.msra.gmra.mrb[0].mxu1 %v20600_v10  ;;  %v17477_v10 = vld [vmem:[%s22031_s3 + $0x218] sm:$0xff]  }
 0x437   : > { %16380 = vmatmul.mubr.bf16.vlgmr.msra.gmra.mrb[0].mxu0 %v20993_v18  ;;  %16108 = vmatpush3.bf16.msra.mxu1 %v17471_v28  ;;  %v14153_v28 = vld [vmem:[%s20579_s27 + $0x200] sm:$0xff] }
 0x438   : > { %16396 = vmatpush3.bf16.msra.mxu0 %v17472_v27  ;;  %16109 = vmatprep.subr.bf16.mxu1 %v17473_v33  ;;  %v21586_v27 = vld [vmem:[%s20579_s27 + $0x208] sm:$0xff] }
 0x439   : > { %16397 = vmatprep.subr.bf16.mxu0 %v17474_v16  ;;  %16095 = vmatprep.mubr.bf16.mxu1 %v20649_v20  ;;  %v21396_v20 = vpack.c.bf16 %v21300_v35, %v21279_v56  ;;  %v17487_v56 = vld [vmem:[%s22031_s3 + $0x480] sm:$0xff]   ;;  %v17502_v35 = vld [vmem:[%s22031_s3 + $0x4f8] sm:$0xff]  }
 0x43a   : > { %16383 = vmatprep.mubr.bf16.mxu0 %v21004_v40 }
 0x43b   : > { %16110 = vmatpush3.bf16.msra.mxu1 %v17473_v33  ;;  %v21589_v33 = vpack.c.bf16 %v21579_v29, %v14151_v24 }
 0x43c   : > { %16398 = vmatpush3.bf16.msra.mxu0 %v17474_v16  ;;  %16111 = vmatprep.subr.bf16.mxu1 %v17475_v0  ;;  %v21592_v16 = vpack.c.bf16 %v21586_v27, %v14153_v28 }
 0x43d   : > { %16399 = vmatprep.subr.bf16.mxu0 %v17476_v48 }
 0x43e   : > { %16096 = vmatmul.mubr.bf16.gmra.mrb[4].mxu1 %v20669_v53  ;;  %v17480_v53 = vld [vmem:[%s22031_s3 + $0x460] sm:$0xff]  }
 0x43f   : > { %16384 = vmatmul.mubr.bf16.gmra.mrb[4].mxu0 %v21020_v26  ;;  %16112 = vmatpush3.bf16.msra.mxu1 %v17475_v0  ;;  %v17516_v0 = vld [vmem:[%s22031_s3 + $0x568] sm:$0xff]  }
 0x440   : > { %16400 = vmatpush3.bf16.msra.mxu0 %v17476_v48  ;;  %16113 = vmatprep.subr.bf16.mxu1 %v17477_v10  ;;  %v14155_v48 = vld [vmem:[%s20579_s27 + $0x210] sm:$0xff] }
 0x441   : > { %16401 = vmatprep.subr.bf16.mxu0 %v17478_v45  ;;  %16099 = vmatprep.mubr.bf16.mxu1 %v20813_v37  ;;  %v17482_v37 = vld [vmem:[%s22031_s3 + $0x468] sm:$0xff]  }
 0x442   : > { %16387 = vmatprep.mubr.bf16.mxu0 %v21396_v20 }
 0x443   : > { %16114 = vmatpush3.bf16.msra.mxu1 %v17477_v10  ;;  %v21601_v10 = vld [vmem:[%s20579_s27 + $0x218] sm:$0xff] }
 0x444   : > { %16402 = vmatpush3.bf16.msra.mxu0 %v17478_v45  ;;  %16115 = vmatprep.subr.bf16.mxu1 %v17479_v19  ;;  %v17517_v45 = vld [vmem:[%s22031_s3 + $0x570] sm:$0xff]  }
 0x445   : > { %16403 = vmatprep.subr.bf16.mxu0 %v17480_v53 }
 0x446   : > { %16100 = vmatmul.mubr.bf16.gmra.mrb[8].mxu1 %v20720_v32  ;;  %v17484_v32 = vld [vmem:[%s22031_s3 + $0x470] sm:$0xff]  }
 0x447   : > { %16388 = vmatmul.mubr.bf16.gmra.mrb[8].mxu0 %v21409_v60  ;;  %16116 = vmatpush3.bf16.msra.mxu1 %v17479_v19  ;;  %v21607_v19 = vpack.c.bf16 %v21601_v10, %v14155_v48 }
 0x448   : > { %16404 = vmatpush3.bf16.msra.mxu0 %v17480_v53  ;;  %16117 = vmatprep.subr.bf16.mxu1 %v17481_v21  ;;  %v17518_v53 = vld [vmem:[%s22031_s3 + $0x578] sm:$0xff]  }
 0x449   : > { %16405 = vmatprep.subr.bf16.mxu0 %v17482_v37  ;;  %16103 = vmatprep.mubr.bf16.mxu1 %v20742_v58  ;;  %v17486_v58 = vld [vmem:[%s22031_s3 + $0x478] sm:$0xff]  }
 0x44a   : > { %16391 = vmatprep.mubr.bf16.mxu0 %v21420_v13 }
 0x44b   : > { %16118 = vmatpush3.bf16.msra.mxu1 %v17481_v21  ;;  %v17543_v21 = vld [vmem:[%s17847_s15] ss:$16 sps:$4 sm:$0xff]  }
 0x44c   : > { %16406 = vmatpush3.bf16.msra.mxu0 %v17482_v37  ;;  %16119 = vmatprep.subr.bf16.mxu1 %v17483_v8  ;;  %v17545_v37 = vld [vmem:[%s17847_s15 + $0x4] ss:$16 sps:$4 sm:$0xff]  }
 0x44d   : > { %16407 = vmatprep.subr.bf16.mxu0 %v17484_v32 }
 0x44e   : > { %16104 = vmatmul.mubr.bf16.gmra.mrb[12].mxu1 %v20759_v39  ;;  %v17488_v39 = vld [vmem:[%s22031_s3 + $0x488] sm:$0xff]  }
 0x44f   : > { %16392 = vmatmul.mubr.bf16.gmra.mrb[12].mxu0 %v21433_v9  ;;  %16120 = vmatpush3.bf16.msra.mxu1 %v17483_v8  ;;  %v17548_v8 = vld [vmem:[%s17847_s15 + $0x24] ss:$16 sps:$4 sm:$0xff]  }
 0x450   : > { %16408 = vmatpush3.bf16.msra.mxu0 %v17484_v32  ;;  %16121 = vmatprep.subr.bf16.mxu1 %v17485_v15  ;;  %v17546_v32 = vld [vmem:[%s17847_s15 + $0x20] ss:$16 sps:$4 sm:$0xff]  }
 0x451   : > { %16409 = vmatprep.subr.bf16.mxu0 %v17486_v58  ;;  %16123 = vmatprep.mubr.bf16.mxu1 %v20737_v50  ;;  %v17489_v50 = vld [vmem:[%s22031_s3 + $0x490] sm:$0xff]  }
 0x452   : > { %16411 = vmatprep.mubr.bf16.mxu0 %v20881_v38  ;;  %v17490_v38 = vld [vmem:[%s22031_s3 + $0x498] sm:$0xff]  }
 0x453   : > { %16122 = vmatpush3.bf16.msra.mxu1 %v17485_v15  ;;  %v17551_v15 = vld [vmem:[%s17847_s15 + $0x44] ss:$16 sps:$4 sm:$0xff]  }
 0x454   : > { %16410 = vmatpush3.bf16.msra.mxu0 %v17486_v58  ;;  %12400 = vmatprep.subr.bf16.mxu1 %v17545_v37  ;;  %v17549_v58 = vld [vmem:[%s17847_s15 + $0x40] ss:$16 sps:$4 sm:$0xff]  }
 0x455   : > { %16427 = vmatprep.subr.bf16.mxu0 %v17487_v56 }
 0x456   : > { %16124 = vmatmul.mubr.bf16.vlgmr.msra.gmra.mrb[0].mxu1 %v21266_v17  ;;  %v17491_v17 = vld [vmem:[%s22031_s3 + $0x4a0] sm:$0xff]  }
 0x457   : > { %16412 = vmatmul.mubr.bf16.vlgmr.msra.gmra.mrb[0].mxu0 %v20895_v7  ;;  %16127 = vmatprep.mubr.bf16.mxu1 %v21284_v54 }
 0x458   : > { %16428 = vmatpush3.bf16.msra.mxu0 %v17487_v56  ;;  %16415 = vmatprep.mubr.bf16.mxu0 %v20914_v52  ;;  %v17554_v56 = vld [vmem:[%s17847_s15 + $0x64] ss:$16 sps:$4 sm:$0xff]  }
 0x459   : > { %16429 = vmatprep.subr.bf16.mxu0 %v17488_v39  ;;  %12401 = vmatpush1.bf16.msra.mxu1 %v17543_v21 }
 0x45a   : > { %12402 = vmatprep.subr.bf16.mxu1 %v17548_v8 }
 0x45c   : > { %16430 = vmatpush3.bf16.msra.mxu0 %v17488_v39  ;;  %v17521_v39 = vld [vmem:[%s22031_s3 + $0x590] sm:$0xff]  }
 0x45d   : > { %16431 = vmatprep.subr.bf16.mxu0 %v17489_v50  ;;  %12403 = vmatpush1.bf16.msra.mxu1 %v17546_v32 }
 0x45e   : > { %16128 = vmatmul.mubr.bf16.gmra.mrb[4].mxu1 %v20629_v41  ;;  %v14012_v41 = vld [vmem:[%s20579_s27 + $0x1c8] sm:$0xff]  ;;  %12404 = vmatprep.subr.bf16.mxu1 %v17551_v15 }
 0x45f   : > { %16416 = vmatmul.mubr.bf16.gmra.mrb[4].mxu0 %v21095_v23  ;;  %16131 = vmatprep.mubr.bf16.mxu1 %v21319_v36  ;;  %v21479_v54 = vpack.c.bf16 %v14012_v41, %v14011_v47  ;;  %v17511_v36 = vld [vmem:[%s22031_s3 + $0x540] sm:$0xff]  }
 0x460   : > { %16432 = vmatpush3.bf16.msra.mxu0 %v17489_v50  ;;  %16419 = vmatprep.mubr.bf16.mxu0 %v21326_v22  ;;  %v17519_v47 = vld [vmem:[%s22031_s3 + $0x580] sm:$0xff]  }
 0x461   : > { %16433 = vmatprep.subr.bf16.mxu0 %v17490_v38  ;;  %12405 = vmatpush1.bf16.msra.mxu1 %v17549_v58  ;;  %v17552_v50 = vld [vmem:[%s17847_s15 + $0x60] ss:$16 sps:$4 sm:$0xff]  }
 0x462   : > { %12406 = vmatprep.subr.bf16.mxu1 %v17554_v56  ;;  %v17570_v58 = vld [vmem:[%s17847_s15 + $0x120] ss:$16 sps:$4 sm:$0xff]  }
 0x463   : > { %v17573_v56 = vld [vmem:[%s17847_s15 + $0x140] ss:$16 sps:$4 sm:$0xff]  }
 0x464   : > { %16434 = vmatpush3.bf16.msra.mxu0 %v17490_v38  ;;  %v17557_v38 = vld [vmem:[%s17847_s15 + $0x84] ss:$16 sps:$4 sm:$0xff]  }
 0x465   : > { %16435 = vmatprep.subr.bf16.mxu0 %v17491_v17  ;;  %12407 = vmatpush1.bf16.msra.mxu1 %v17552_v50  ;;  %v17576_v50 = vld [vmem:[%s17847_s15 + $0x160] ss:$16 sps:$4 sm:$0xff]  }
 0x466   : > { %16132 = vmatmul.mubr.bf16.gmra.mrb[8].mxu1 %v20949_v51  ;;  %v17494_v51 = vld [vmem:[%s22031_s3 + $0x4b8] sm:$0xff]   ;;  %12408 = vmatprep.subr.bf16.mxu1 %v17557_v38  ;;  %v17579_v38 = vld [vmem:[%s17847_s15 + $0x180] ss:$16 sps:$4 sm:$0xff]  }
 0x467   : > { %16420 = vmatmul.mubr.bf16.gmra.mrb[8].mxu0 %v21334_v61  ;;  %16135 = vmatprep.mubr.bf16.mxu1 %v20969_v42  ;;  %v17495_v42 = vld [vmem:[%s22031_s3 + $0x4c0] sm:$0xff]  }
 0x468   : > { %16436 = vmatpush3.bf16.msra.mxu0 %v17491_v17  ;;  %16423 = vmatprep.mubr.bf16.mxu0 %v21353_v34  ;;  %v10875_v17 = vpack.c.bf16 %v14151_v24, %v21570_v57  ;;  %v17534_v57 = vld [vmem:[%s22031_s3 + $0x5f8] sm:$0xff]  }
 0x469   : > { %16437 = vmatprep.subr.bf16.mxu0 %v17492_v30  ;;  %v17538_v24 = vld [vmem:[%s22031_s3 + $0x618] sm:$0xff]  }
 0x46c   : > { %16438 = vmatpush3.bf16.msra.mxu0 %v17492_v30  ;;  %v17522_v30 = vld [vmem:[%s22031_s3 + $0x598] sm:$0xff]  }
 0x46d   : > { %16439 = vmatprep.subr.bf16.mxu0 %v17493_v14 }
 0x46e   : > { %16136 = vmatmul.mubr.bf16.gmra.mrb[12].mxu1 %v20712_v55  ;;  %v17497_v55 = vld [vmem:[%s22031_s3 + $0x4d0] sm:$0xff]  }
 0x46f   : > { %16424 = vmatmul.mubr.bf16.gmra.mrb[12].mxu0 %v21479_v54 }
 0x470   : > { %16440 = vmatpush3.bf16.msra.mxu0 %v17493_v14  ;;  %16443 = vmatprep.mubr.bf16.mxu0 %v20993_v18  ;;  %v17498_v18 = vld [vmem:[%s22031_s3 + $0x4d8] sm:$0xff]   ;;  %v17560_v14 = vld [vmem:[%s17847_s15 + $0xa4] ss:$16 sps:$4 sm:$0xff]  }
 0x471   : > { %16441 = vmatprep.subr.bf16.mxu0 %v17494_v51 }
 0x474   : > { %16442 = vmatpush3.bf16.msra.mxu0 %v17494_v51  ;;  %v17523_v51 = vld [vmem:[%s22031_s3 + $0x5a0] sm:$0xff]  }
 0x475   : > { %16459 = vmatprep.subr.bf16.mxu0 %v17495_v42 }
 0x477   : > { %16444 = vmatmul.mubr.bf16.vlgmr.msra.gmra.mrb[0].mxu0 %v21004_v40  ;;  %v17499_v40 = vld [vmem:[%s22031_s3 + $0x4e0] sm:$0xff]  }
 0x478   : > { %16460 = vmatpush3.bf16.msra.mxu0 %v17495_v42  ;;  %16447 = vmatprep.mubr.bf16.mxu0 %v21020_v26  ;;  %v17500_v26 = vld [vmem:[%s22031_s3 + $0x4e8] sm:$0xff]   ;;  %v17558_v42 = vld [vmem:[%s17847_s15 + $0xa0] ss:$16 sps:$4 sm:$0xff]  }
 0x479   : > { %16461 = vmatprep.subr.bf16.mxu0 %v17496_v5 }
 0x47c   : > { %16462 = vmatpush3.bf16.msra.mxu0 %v17496_v5  ;;  %v21646_v5 = vpack.c.bf16 %v14153_v28, %v21579_v29 }
 0x47d   : > { %16463 = vmatprep.subr.bf16.mxu0 %v17497_v55 }
 0x47f   : > { %16448 = vmatmul.mubr.bf16.gmra.mrb[4].mxu0 %v21170_v2  ;;  %v14013_v2 = vld [vmem:[%s20579_s27 + $0x1d0] sm:$0xff] }
 0x480   : > { %16464 = vmatpush3.bf16.msra.mxu0 %v17497_v55  ;;  %16451 = vmatprep.mubr.bf16.mxu0 %v21409_v60  ;;  %v21515_v44 = vpack.c.bf16 %v14013_v2, %v14012_v41  ;;  %v17555_v41 = vld [vmem:[%s17847_s15 + $0x80] ss:$16 sps:$4 sm:$0xff]   ;;  %v17563_v55 = vld [vmem:[%s17847_s15 + $0xc4] ss:$16 sps:$4 sm:$0xff]  }
 0x481   : > { %16465 = vmatprep.subr.bf16.mxu0 %v17498_v18  ;;  %12409 = vmatpush1.bf16.msra.mxu1 %v17555_v41  ;;  %v17582_v41 = vld [vmem:[%s17847_s15 + $0x1a0] ss:$16 sps:$4 sm:$0xff]  }
 0x482   : > { %12410 = vmatprep.subr.bf16.mxu1 %v17560_v14  ;;  %v17587_v14 = vld [vmem:[%s17847_s15 + $0x1c4] ss:$16 sps:$4 sm:$0xff]  }
 0x484   : > { %16466 = vmatpush3.bf16.msra.mxu0 %v17498_v18  ;;  %v21650_v18 = vpack.c.bf16 %v14155_v48, %v21586_v27  ;;  %v17542_v48 = vld [vmem:[%s22031_s3 + $0x638] sm:$0xff]  }
 0x485   : > { %16467 = vmatprep.subr.bf16.mxu0 %v17499_v40  ;;  %12411 = vmatpush1.bf16.msra.mxu1 %v17558_v42  ;;  %v17590_v42 = vld [vmem:[%s17847_s15 + $0x1e4] ss:$16 sps:$4 sm:$0xff]  }
 0x486   : > { %12412 = vmatprep.subr.bf16.mxu1 %v17563_v55  ;;  %v17593_v55 = vld [vmem:[%s17847_s15 + $0x204] ss:$16 sps:$4 sm:$0xff]  }
 0x487   : > { %16452 = vmatmul.mubr.bf16.gmra.mrb[8].mxu0 %v21420_v13 }
 0x488   : > { %16468 = vmatpush3.bf16.msra.mxu0 %v17499_v40  ;;  %16455 = vmatprep.mubr.bf16.mxu0 %v21433_v9  ;;  %v17524_v40 = vld [vmem:[%s22031_s3 + $0x5a8] sm:$0xff]  }
 0x489   : > { %16469 = vmatprep.subr.bf16.mxu0 %v17500_v26 }
 0x48c   : > { %16470 = vmatpush3.bf16.msra.mxu0 %v17500_v26  ;;  %v17561_v26 = vld [vmem:[%s17847_s15 + $0xc0] ss:$16 sps:$4 sm:$0xff]  }
 0x48d   : > { %16471 = vmatprep.subr.bf16.mxu0 %v17501_v49  ;;  %12413 = vmatpush1.bf16.msra.mxu1 %v17561_v26 }
 0x48f   : > { %16456 = vmatmul.mubr.bf16.gmra.mrb[12].mxu0 %v21515_v44 }
 0x490   : > { %16472 = vmatpush3.bf16.msra.mxu0 %v17501_v49  ;;  %16475 = vmatprep.mubr.bf16.mxu0 %v20895_v7  ;;  %v17505_v7 = vld [vmem:[%s22031_s3 + $0x510] sm:$0xff]   ;;  %v14157_v49 = vld [vmem:[%s20579_s27 + $0x220] sm:$0xff] }
 0x491   : > { %16473 = vmatprep.subr.bf16.mxu0 %v17502_v35 }
 0x494   : > { %16474 = vmatpush3.bf16.msra.mxu0 %v17502_v35  ;;  %v17525_v35 = vld [vmem:[%s22031_s3 + $0x5b0] sm:$0xff]  }
 0x495   : > { %16491 = vmatprep.subr.bf16.mxu0 %v17503_v63 }
 0x497   : > { %16476 = vmatmul.mubr.bf16.vlgmr.msra.gmra.mrb[0].mxu0 %v20914_v52  ;;  %v17507_v52 = vld [vmem:[%s22031_s3 + $0x520] sm:$0xff]  }
 0x498   : > { %16492 = vmatpush3.bf16.msra.mxu0 %v17503_v63  ;;  %16479 = vmatprep.mubr.bf16.mxu0 %v21095_v23  ;;  %v17508_v23 = vld [vmem:[%s22031_s3 + $0x528] sm:$0xff]   ;;  %v17564_v63 = vld [vmem:[%s17847_s15 + $0xe0] ss:$16 sps:$4 sm:$0xff]  }
 0x499   : > { %16493 = vmatprep.subr.bf16.mxu0 %v17504_v59 }
 0x49c   : > { %16494 = vmatpush3.bf16.msra.mxu0 %v17504_v59  ;;  %v21665_v59 = vpack.c.bf16 %v14157_v49, %v21601_v10 }
 0x49d   : > { %16495 = vmatprep.subr.bf16.mxu0 %v17505_v7 }
 0x49f   : > { %16480 = vmatmul.mubr.bf16.gmra.mrb[4].mxu0 %v21239_v12  ;;  %v14014_v12 = vld [vmem:[%s20579_s27 + $0x1d8] sm:$0xff] }
 0x4a0   : > { %16496 = vmatpush3.bf16.msra.mxu0 %v17505_v7  ;;  %16483 = vmatprep.mubr.bf16.mxu0 %v21334_v61  ;;  %v21550_v6 = vpack.c.bf16 %v14014_v12, %v14013_v2  ;;  %v17566_v2 = vld [vmem:[%s17847_s15 + $0xe4] ss:$16 sps:$4 sm:$0xff]   ;;  %v17528_v12 = vld [vmem:[%s22031_s3 + $0x5c8] sm:$0xff]  }
 0x4a1   : > { %16497 = vmatprep.subr.bf16.mxu0 %v17506_v4  ;;  %12414 = vmatprep.subr.bf16.mxu1 %v17566_v2  ;;  %v17569_v7 = vld [vmem:[%s17847_s15 + $0x104] ss:$16 sps:$4 sm:$0xff]  }
 0x4a2   : > { %12415 = vmatpush1.bf16.msra.mxu1 %v17564_v63 }
 0x4a3   : > { %12416 = vmatprep.subr.bf16.mxu1 %v17569_v7 }
 0x4a4   : > { %16498 = vmatpush3.bf16.msra.mxu0 %v17506_v4  ;;  %v17526_v4 = vld [vmem:[%s22031_s3 + $0x5b8] sm:$0xff]  }
 0x4a5   : > { %16499 = vmatprep.subr.bf16.mxu0 %v17507_v52 }
 0x4a7   : > { %16484 = vmatmul.mubr.bf16.gmra.mrb[8].mxu0 %v21353_v34 }
 0x4a8   : > { %16500 = vmatpush3.bf16.msra.mxu0 %v17507_v52  ;;  %16487 = vmatprep.mubr.bf16.mxu0 %v21479_v54  ;;  %v17567_v52 = vld [vmem:[%s17847_s15 + $0x100] ss:$16 sps:$4 sm:$0xff]  }
 0x4a9   : > { %16501 = vmatprep.subr.bf16.mxu0 %v17508_v23  ;;  %12417 = vmatpush1.bf16.msra.mxu1 %v17567_v52 }
 0x4ac   : > { %16502 = vmatpush3.bf16.msra.mxu0 %v17508_v23  ;;  %v17527_v23 = vld [vmem:[%s22031_s3 + $0x5c0] sm:$0xff]  }
 0x4ad   : > { %16503 = vmatprep.subr.bf16.mxu0 %v17509_v11 }
 0x4af   : > { %16488 = vmatmul.mubr.bf16.gmra.mrb[12].mxu0 %v21550_v6 }
 0x4b0   : > { %16504 = vmatpush3.bf16.msra.mxu0 %v17509_v11  ;;  %16507 = vmatprep.mubr.bf16.mxu0 %v21294_v62  ;;  %v17513_v62 = vld [vmem:[%s22031_s3 + $0x550] sm:$0xff]   ;;  %v17530_v11 = vld [vmem:[%s22031_s3 + $0x5d8] sm:$0xff]  }
 0x4b1   : > { %16505 = vmatprep.subr.bf16.mxu0 %v17510_v25 }
 0x4b4   : > { %16506 = vmatpush3.bf16.msra.mxu0 %v17510_v25  ;;  %v17531_v25 = vld [vmem:[%s22031_s3 + $0x5e0] sm:$0xff]  }
 0x4b5   : > { %16523 = vmatprep.subr.bf16.mxu0 %v17511_v36 }
 0x4b7   : > { %16508 = vmatmul.mubr.bf16.vlgmr.msra.gmra.mrb[0].mxu0 %v21326_v22 }
 0x4b8   : > { %16524 = vmatpush3.bf16.msra.mxu0 %v17511_v36  ;;  %16511 = vmatprep.mubr.bf16.mxu0 %v21334_v61  ;;  %v17532_v36 = vld [vmem:[%s22031_s3 + $0x5e8] sm:$0xff]  }
 0x4b9   : > { %16525 = vmatprep.subr.bf16.mxu0 %v17512_v46 }
 0x4bc   : > { %16526 = vmatpush3.bf16.msra.mxu0 %v17512_v46  ;;  %v14158_v46 = vld [vmem:[%s20579_s27 + $0x228] sm:$0xff] }
 0x4bd   : > { %16527 = vmatprep.subr.bf16.mxu0 %v17513_v62  ;;  %v21702_v31 = vpack.c.bf16 %v14158_v46, %v14157_v49 }
 0x4bf   : > { %16512 = vmatmul.mubr.bf16.gmra.mrb[4].mxu0 %v21353_v34 }
 0x4c0   : > { %16528 = vmatpush3.bf16.msra.mxu0 %v17513_v62  ;;  %16515 = vmatprep.mubr.bf16.mxu0 %v10689_v3  ;;  %v17533_v62 = vld [vmem:[%s22031_s3 + $0x5f0] sm:$0xff]   ;;  %v17535_v3 = vld [vmem:[%s22031_s3 + $0x600] sm:$0xff]  }
 0x4c1   : > { %16529 = vmatprep.subr.bf16.mxu0 %v17514_v1 }
 0x4c4   : > { %16530 = vmatpush3.bf16.msra.mxu0 %v17514_v1  ;;  %v17536_v1 = vld [vmem:[%s22031_s3 + $0x608] sm:$0xff]  }
 0x4c5   : > { %16531 = vmatprep.subr.bf16.mxu0 %v17515_v43 }
 0x4c7   : > { %16516 = vmatmul.mubr.bf16.gmra.mrb[8].mxu0 %v21589_v33 }
 0x4c8   : > { %16532 = vmatpush3.bf16.msra.mxu0 %v17515_v43  ;;  %16519 = vmatprep.mubr.bf16.mxu0 %v21592_v16  ;;  %v17541_v43 = vld [vmem:[%s22031_s3 + $0x630] sm:$0xff]  }
 0x4c9   : > { %16533 = vmatprep.subr.bf16.mxu0 %v17516_v0 }
 0x4cc   : > { %16534 = vmatpush3.bf16.msra.mxu0 %v17516_v0 }
 0x4cd   : > { %16535 = vmatprep.subr.bf16.mxu0 %v17517_v45 }
 0x4cf   : > { %16520 = vmatmul.mubr.bf16.gmra.mrb[12].mxu0 %v21607_v19 }
 0x4d0   : > { %16536 = vmatpush3.bf16.msra.mxu0 %v17517_v45  ;;  %16539 = vmatprep.mubr.bf16.mxu0 %v21396_v20  ;;  %v17520_v20 = vld [vmem:[%s22031_s3 + $0x588] sm:$0xff]  }
 0x4d1   : > { %16537 = vmatprep.subr.bf16.mxu0 %v17518_v53 }
 0x4d4   : > { %16538 = vmatpush3.bf16.msra.mxu0 %v17518_v53 }
 0x4d5   : > { %16555 = vmatprep.subr.bf16.mxu0 %v17519_v47 }
 0x4d7   : > { %16540 = vmatmul.mubr.bf16.vlgmr.msra.gmra.mrb[0].mxu0 %v21409_v60 }
 0x4d8   : > { %16556 = vmatpush3.bf16.msra.mxu0 %v17519_v47  ;;  %16543 = vmatprep.mubr.bf16.mxu0 %v21420_v13 }
 0x4d9   : > { %16557 = vmatprep.subr.bf16.mxu0 %v17520_v20 }
 0x4dc   : > { %16558 = vmatpush3.bf16.msra.mxu0 %v17520_v20  ;;  %v14160_v20 = vld [vmem:[%s20579_s27 + $0x238] sm:$0xff] }
 0x4dd   : > { %16559 = vmatprep.subr.bf16.mxu0 %v17521_v39 }
 0x4df   : > { %16544 = vmatmul.mubr.bf16.gmra.mrb[4].mxu0 %v21433_v9 }
 0x4e0   : > { %16560 = vmatpush3.bf16.msra.mxu0 %v17521_v39  ;;  %16547 = vmatprep.mubr.bf16.mxu0 %v10875_v17  ;;  %v17575_v39 = vld [vmem:[%s17847_s15 + $0x144] ss:$16 sps:$4 sm:$0xff]  }
 0x4e1   : > { %16561 = vmatprep.subr.bf16.mxu0 %v17522_v30  ;;  %v17581_v17 = vld [vmem:[%s17847_s15 + $0x184] ss:$16 sps:$4 sm:$0xff]  }
 0x4e4   : > { %16562 = vmatpush3.bf16.msra.mxu0 %v17522_v30  ;;  %v17584_v30 = vld [vmem:[%s17847_s15 + $0x1a4] ss:$16 sps:$4 sm:$0xff]  }
 0x4e5   : > { %16563 = vmatprep.subr.bf16.mxu0 %v17523_v51 }
 0x4e7   : > { %16548 = vmatmul.mubr.bf16.gmra.mrb[8].mxu0 %v21646_v5 }
 0x4e8   : > { %16564 = vmatpush3.bf16.msra.mxu0 %v17523_v51  ;;  %16551 = vmatprep.mubr.bf16.mxu0 %v21650_v18  ;;  %v17585_v51 = vld [vmem:[%s17847_s15 + $0x1c0] ss:$16 sps:$4 sm:$0xff]  }
 0x4e9   : > { %16565 = vmatprep.subr.bf16.mxu0 %v17524_v40 }
 0x4ec   : > { %16566 = vmatpush3.bf16.msra.mxu0 %v17524_v40 }
 0x4ed   : > { %16567 = vmatprep.subr.bf16.mxu0 %v17525_v35 }
 0x4ef   : > { %16552 = vmatmul.mubr.bf16.gmra.mrb[12].mxu0 %v21665_v59 }
 0x4f0   : > { %16568 = vmatpush3.bf16.msra.mxu0 %v17525_v35  ;;  %16571 = vmatprep.mubr.bf16.mxu0 %v21326_v22  ;;  %v17529_v22 = vld [vmem:[%s22031_s3 + $0x5d0] sm:$0xff]  }
 0x4f1   : > { %16569 = vmatprep.subr.bf16.mxu0 %v17526_v4 }
 0x4f4   : > { %16570 = vmatpush3.bf16.msra.mxu0 %v17526_v4 }
 0x4f5   : > { %16587 = vmatprep.subr.bf16.mxu0 %v17527_v23 }
 0x4f7   : > { %16572 = vmatmul.mubr.bf16.vlgmr.msra.gmra.mrb[0].mxu0 %v21334_v61 }
 0x4f8   : > { %16588 = vmatpush3.bf16.msra.mxu0 %v17527_v23  ;;  %16575 = vmatprep.mubr.bf16.mxu0 %v21353_v34 }
 0x4f9   : > { %16589 = vmatprep.subr.bf16.mxu0 %v17528_v12 }
 0x4fc   : > { %16590 = vmatpush3.bf16.msra.mxu0 %v17528_v12 }
 0x4fd   : > { %16591 = vmatprep.subr.bf16.mxu0 %v17529_v22 }
 0x4ff   : > { %16576 = vmatmul.mubr.bf16.gmra.mrb[4].mxu0 %v21479_v54 }
 0x500   : > { %16592 = vmatpush3.bf16.msra.mxu0 %v17529_v22  ;;  %16579 = vmatprep.mubr.bf16.mxu0 %v21589_v33 }
 0x501   : > { %16593 = vmatprep.subr.bf16.mxu0 %v17530_v11 }
 0x504   : > { %16594 = vmatpush3.bf16.msra.mxu0 %v17530_v11 }
 0x505   : > { %16595 = vmatprep.subr.bf16.mxu0 %v17531_v25 }
 0x507   : > { %16580 = vmatmul.mubr.bf16.gmra.mrb[8].mxu0 %v21592_v16 }
 0x508   : > { %16596 = vmatpush3.bf16.msra.mxu0 %v17531_v25  ;;  %16583 = vmatprep.mubr.bf16.mxu0 %v21607_v19 }
 0x509   : > { %16597 = vmatprep.subr.bf16.mxu0 %v17532_v36 }
 0x50c   : > { %16598 = vmatpush3.bf16.msra.mxu0 %v17532_v36 }
 0x50d   : > { %16599 = vmatprep.subr.bf16.mxu0 %v17533_v62 }
 0x50f   : > { %16584 = vmatmul.mubr.bf16.gmra.mrb[12].mxu0 %v21702_v31 }
 0x510   : > { %16600 = vmatpush3.bf16.msra.mxu0 %v17533_v62  ;;  %16603 = vmatprep.mubr.bf16.mxu0 %v21409_v60  ;;  %v17537_v60 = vld [vmem:[%s22031_s3 + $0x610] sm:$0xff]  }
 0x511   : > { %16601 = vmatprep.subr.bf16.mxu0 %v17534_v57 }
 0x514   : > { %16602 = vmatpush3.bf16.msra.mxu0 %v17534_v57 }
 0x515   : > { %16619 = vmatprep.subr.bf16.mxu0 %v17535_v3 }
 0x517   : > { %16604 = vmatmul.mubr.bf16.vlgmr.msra.gmra.mrb[0].mxu0 %v21420_v13  ;;  %v17539_v13 = vld [vmem:[%s22031_s3 + $0x620] sm:$0xff]  }
 0x518   : > { %16620 = vmatpush3.bf16.msra.mxu0 %v17535_v3  ;;  %16607 = vmatprep.mubr.bf16.mxu0 %v21433_v9  ;;  %v17540_v9 = vld [vmem:[%s22031_s3 + $0x628] sm:$0xff]  }
 0x519   : > { %16621 = vmatprep.subr.bf16.mxu0 %v17536_v1 }
 0x51c   : > { %16622 = vmatpush3.bf16.msra.mxu0 %v17536_v1 }
 0x51d   : > { %16623 = vmatprep.subr.bf16.mxu0 %v17537_v60 }
 0x51f   : > { %16608 = vmatmul.mubr.bf16.gmra.mrb[4].mxu0 %v21515_v44  ;;  %v14159_v44 = vld [vmem:[%s20579_s27 + $0x230] sm:$0xff] }
 0x520   : > { %16624 = vmatpush3.bf16.msra.mxu0 %v17537_v60  ;;  %16611 = vmatprep.mubr.bf16.mxu0 %v21646_v5  ;;  %v11238_v33 = vpack.c.bf16 %v14159_v44, %v14158_v46  ;;  %v17588_v5 = vld [vmem:[%s17847_s15 + $0x1e0] ss:$16 sps:$4 sm:$0xff]  }
 0x521   : > { %16625 = vmatprep.subr.bf16.mxu0 %v17538_v24 }
 0x524   : > { %16626 = vmatpush3.bf16.msra.mxu0 %v17538_v24 }
 0x525   : > { %16627 = vmatprep.subr.bf16.mxu0 %v17539_v13 }
 0x527   : > { %16612 = vmatmul.mubr.bf16.gmra.mrb[8].mxu0 %v21650_v18 }
 0x528   : > { %16628 = vmatpush3.bf16.msra.mxu0 %v17539_v13  ;;  %16615 = vmatprep.mubr.bf16.mxu0 %v21665_v59 }
 0x529   : > { %v21734_v29 = vpop.f32.mrb[0].mxu1  ;;  %16629 = vmatprep.subr.bf16.mxu0 %v17540_v9 }
 0x52a   : > { %v21739_v28 = vpop.f32.mrb[1].mxu1 }
 0x52b   : > { %v21741_v27 = vpop.f32.mrb[2].mxu1 }
 0x52c   : > { %16630 = vmatpush3.bf16.msra.mxu0 %v17540_v9  ;;  %v21743_v0 = vpop.f32.mrb[3].mxu1 }
 0x52d   : > { %16631 = vmatprep.subr.bf16.mxu0 %v17541_v43 }
 0x52f   : > { %16616 = vmatmul.mubr.bf16.gmra.mrb[12].mxu0 %v11238_v33 }
 0x530   : > { %16632 = vmatpush3.bf16.msra.mxu0 %v17541_v43  ;;  %16635 = vmatprep.mubr.bf16.mxu0 %v21334_v61 }
 0x531   : > { %v16129_v10 = vpop.f32.mrb[4].mxu1  ;;  %16633 = vmatprep.subr.bf16.mxu0 %v17542_v48 }
 0x532   : > { %v8537_v45 = vpop.f32.mrb[5].mxu1 }
 0x533   : > { %v21749_v53 = vpop.f32.mrb[6].mxu1 }
 0x534   : > { %16634 = vmatpush3.bf16.msra.mxu0 %v17542_v48  ;;  %v21751_v21 = vpop.f32.mrb[7].mxu1 }
 0x537   : > { %16636 = vmatmul.mubr.bf16.vlgmr.msra.gmra.mrb[0].mxu0 %v21353_v34 }
 0x538   : > { %16639 = vmatprep.mubr.bf16.mxu0 %v21479_v54 }
 0x539   : > { %v16133_v37 = vpop.f32.mrb[8].mxu1 }
 0x53a   : > { %v21755_v8 = vpop.f32.mrb[9].mxu1 }
 0x53b   : > { %v21757_v47 = vpop.f32.mrb[10].mxu1 }
 0x53c   : > { %v21759_v61 = vpop.f32.mrb[11].mxu1 }
 0x53f   : > { %16640 = vmatmul.mubr.bf16.gmra.mrb[4].mxu0 %v21550_v6  ;;  %v11418_v6 = vpack.c.bf16 %v14160_v20, %v14159_v44  ;;  %v14281_v44 = vld [vmem:[%s22032_s4] ss:$0 sm:$0xff] }
 0x540   : > { %16643 = vmatprep.mubr.bf16.mxu0 %v21592_v16  ;;  %v17572_v16 = vld [vmem:[%s17847_s15 + $0x124] ss:$16 sps:$4 sm:$0xff]  }
 0x541   : > { %v21763_v32 = vpop.f32.mrb[12].mxu1  ;;  %12418 = vmatprep.subr.bf16.mxu1 %v17572_v16 }
 0x542   : > { %v21765_v34 = vpop.f32.mrb[13].mxu1  ;;  %12419 = vmatpush1.bf16.msra.mxu1 %v17570_v58  ;;  %v17591_v58 = vld [vmem:[%s17847_s15 + $0x200] ss:$16 sps:$4 sm:$0xff]  }
 0x543   : > { %v21767_v54 = vpop.f32.mrb[14].mxu1  ;;  %12420 = vmatprep.subr.bf16.mxu1 %v17575_v39  ;;  %v17596_v39 = vld [vmem:[%s17847_s15 + $0x224] ss:$16 sps:$4 sm:$0xff]  }
 0x544   : > { %v21769_v15 = vpop.f32.mrb[15].mxu1 }
 0x546   : > { %12421 = vmatpush1.bf16.msra.mxu1 %v17573_v56 }
 0x547   : > { %16644 = vmatmul.mubr.bf16.gmra.mrb[8].mxu0 %v21607_v19  ;;  %v17578_v19 = vld [vmem:[%s17847_s15 + $0x164] ss:$16 sps:$4 sm:$0xff]  }
 0x548   : > { %16647 = vmatprep.mubr.bf16.mxu0 %v21702_v31  ;;  %12422 = vmatprep.subr.bf16.mxu1 %v17578_v19 }
 0x54a   : > { %12423 = vmatpush1.bf16.msra.mxu1 %v17576_v50 }
 0x54b   : > { %12424 = vmatprep.subr.bf16.mxu1 %v17581_v17  ;;  %v17599_v17 = vld [vmem:[%s17847_s15 + $0x244] ss:$16 sps:$4 sm:$0xff]  }
 0x54e   : > { %12425 = vmatpush1.bf16.msra.mxu1 %v17579_v38 }
 0x54f   : > { %16648 = vmatmul.mubr.bf16.gmra.mrb[12].mxu0 %v11418_v6  ;;  %12426 = vmatprep.subr.bf16.mxu1 %v17584_v30 }
 0x552   : > { %12427 = vmatpush1.bf16.msra.mxu1 %v17582_v41  ;;  %v17597_v41 = vld [vmem:[%s17847_s15 + $0x240] ss:$16 sps:$4 sm:$0xff]  }
 0x553   : > { %12428 = vmatprep.subr.bf16.mxu1 %v17587_v14 }
 0x556   : > { %12429 = vmatpush1.bf16.msra.mxu1 %v17585_v51  ;;  %v17602_v51 = vld [vmem:[%s17847_s15 + $0x264] ss:$16 sps:$4 sm:$0xff]  }
 0x557   : > { %12430 = vmatprep.subr.bf16.mxu1 %v17590_v42  ;;  %v17600_v42 = vld [vmem:[%s17847_s15 + $0x260] ss:$16 sps:$4 sm:$0xff]  }
 0x55a   : > { %12431 = vmatpush1.bf16.msra.mxu1 %v17588_v5  ;;  %v17605_v5 = vld [vmem:[%s17847_s15 + $0x284] ss:$16 sps:$4 sm:$0xff]  }
 0x55b   : > { %12441 = vmatprep.subr.bf16.mxu1 %v17593_v55  ;;  %v17603_v55 = vld [vmem:[%s17847_s15 + $0x280] ss:$16 sps:$4 sm:$0xff]  }
 0x60a   : > { %v16637_v18 = vpop.f32.mrb[0].mxu0 }
 0x60b   : > { %v16651_v40 = vadd.f32 %v16637_v18, %v21734_v29  ;;  %v11518_v26 = vpop.f32.mrb[1].mxu0  ;;  %v17608_v18 = vld [vmem:[%s17847_s15 + $0x2a4] ss:$16 sps:$4 sm:$0xff]  }
 0x60c   : > { %v16652_v2 = vadd.f32 %v11518_v26, %v21739_v28  ;;  %v16638_v49 = vpop.f32.mrb[2].mxu0  ;;  %v17611_v26 = vld [vmem:[%s17847_s15 + $0x2c4] ss:$16 sps:$4 sm:$0xff]  }
 0x60d   : > { %v16653_v35 = vadd.f32 %v16638_v49, %v21741_v27  ;;  %v11521_v63 = vpop.f32.mrb[3].mxu0  ;;  %v17614_v49 = vld [vmem:[%s17847_s15 + $0x2e4] ss:$16 sps:$4 sm:$0xff]  }
 0x60e   : > { %v16654_v59 = vadd.f32 %v11521_v63, %v21743_v0  ;;  %v17617_v63 = vld [vmem:[%s17847_s15 + $0x304] ss:$16 sps:$4 sm:$0xff]  }
 0x612   : > { %v16641_v7 = vpop.f32.mrb[4].mxu0 }
 0x613   : > { %v16655_v4 = vadd.f32 %v16641_v7, %v16129_v10  ;;  %v11534_v52 = vpop.f32.mrb[5].mxu0  ;;  %v17620_v7 = vld [vmem:[%s17847_s15 + $0x324] ss:$16 sps:$4 sm:$0xff]  }
 0x614   : > { %v16656_v23 = vadd.f32 %v11534_v52, %v8537_v45  ;;  %v16642_v12 = vpop.f32.mrb[6].mxu0  ;;  %v17623_v52 = vld [vmem:[%s17847_s15 + $0x344] ss:$16 sps:$4 sm:$0xff]  }
 0x615   : > { %v16657_v22 = vadd.f32 %v16642_v12, %v21749_v53  ;;  %v11537_v11 = vpop.f32.mrb[7].mxu0  ;;  %v17626_v12 = vld [vmem:[%s17847_s15 + $0x364] ss:$16 sps:$4 sm:$0xff]  }
 0x616   : > { %v16658_v25 = vadd.f32 %v11537_v11, %v21751_v21  ;;  %v17629_v11 = vld [vmem:[%s17847_s15 + $0x384] ss:$16 sps:$4 sm:$0xff]  }
 0x61a   : > { %v16645_v36 = vpop.f32.mrb[8].mxu0 }
 0x61b   : > { %v16659_v46 = vadd.f32 %v16645_v36, %v16133_v37  ;;  %v11550_v62 = vpop.f32.mrb[9].mxu0  ;;  %v17632_v36 = vld [vmem:[%s17847_s15 + $0x3a4] ss:$16 sps:$4 sm:$0xff]  }
 0x61c   : > { %v16660_v31 = vadd.f32 %v11550_v62, %v21755_v8  ;;  %v16646_v57 = vpop.f32.mrb[10].mxu0  ;;  %v17635_v62 = vld [vmem:[%s17847_s15 + $0x3c4] ss:$16 sps:$4 sm:$0xff]  }
 0x61d   : > { %v11600_v3 = vmax.f32 %v16651_v40, %v16659_v46  ;;  %v16661_v1 = vadd.f32 %v16646_v57, %v21757_v47  ;;  %v11553_v60 = vpop.f32.mrb[11].mxu0  ;;  %v17606_v40 = vld [vmem:[%s17847_s15 + $0x2a0] ss:$16 sps:$4 sm:$0xff]   ;;  %v17638_v57 = vld [vmem:[%s17847_s15 + $0x3e4] ss:$16 sps:$4 sm:$0xff]  }
 0x61e   : > { %v11598_v24 = vmax.f32 %v16652_v2, %v16660_v31  ;;  %v16662_v13 = vadd.f32 %v11553_v60, %v21759_v61  ;;  %v17609_v2 = vld [vmem:[%s17847_s15 + $0x2c0] ss:$16 sps:$4 sm:$0xff]   ;;  %v17641_v60 = vld [vmem:[%s17847_s15 + $0xc] ss:$16 sps:$4 sm:$0xff]  }
 0x61f   : > { %v11601_v9 = vmax.f32 %v16653_v35, %v16661_v1  ;;  %v17612_v35 = vld [vmem:[%s17847_s15 + $0x2e0] ss:$16 sps:$4 sm:$0xff]  }
 0x620   : > { %v11599_v29 = vmax.f32 %v16654_v59, %v16662_v13  ;;  %v17615_v59 = vld [vmem:[%s17847_s15 + $0x300] ss:$16 sps:$4 sm:$0xff]  }
 0x621   : > { %v11615_v43 = vmax.f32 %v11600_v3, %v11601_v9  ;;  %v17630_v46 = vld [vmem:[%s17847_s15 + $0x3a0] ss:$16 sps:$4 sm:$0xff]   ;;  %v17644_v9 = vld [vmem:[%s17847_s15 + $0x2c] ss:$16 sps:$4 sm:$0xff]  }
 0x622   : > { %v11606_v28 = vmax.f32 %v11598_v24, %v11599_v29  ;;  %v16649_v27 = vpop.f32.mrb[12].mxu0  ;;  %v17633_v31 = vld [vmem:[%s17847_s15 + $0x3c0] ss:$16 sps:$4 sm:$0xff]   ;;  %v17639_v24 = vld [vmem:[%s17847_s15 + $0x8] ss:$16 sps:$4 sm:$0xff]  }
 0x623   : > { %v16663_v33 = vadd.f32 %v16649_v27, %v21763_v32  ;;  %v11566_v0 = vpop.f32.mrb[13].mxu0  ;;  %v11616_v48 = vadd.f32 %v14281_v44, %v11615_v43  ;;  %v17636_v3 = vld [vmem:[%s17847_s15 + $0x3e0] ss:$16 sps:$4 sm:$0xff]   ;;  %v17647_v29 = vld [vmem:[%s17847_s15 + $0x4c] ss:$16 sps:$4 sm:$0xff]  }
 0x624   : > { %v11613_v10 = vadd.f32 %v14281_v44, %v11606_v28  ;;  %v16664_v45 = vadd.f32 %v11566_v0, %v21765_v34  ;;  %v16650_v53 = vpop.f32.mrb[14].mxu0  ;;  %v17645_v43 = vld [vmem:[%s17847_s15 + $0x48] ss:$16 sps:$4 sm:$0xff]   ;;  %v17650_v28 = vld [vmem:[%s17847_s15 + $0x6c] ss:$16 sps:$4 sm:$0xff]  }
 0x625   : > { %v11604_v21 = vmax.f32 %v16655_v4, %v16663_v33  ;;  %v16665_v37 = vadd.f32 %v16650_v53, %v21767_v54  ;;  %v11569_v8 = vpop.f32.mrb[15].mxu0  ;;  %v11617_v47 = vmax.f32 %v11616_v48, 0.0  ;;  %v17618_v4 = vld [vmem:[%s17847_s15 + $0x320] ss:$16 sps:$4 sm:$0xff]   ;;  %v17648_v27 = vld [vmem:[%s17847_s15 + $0x68] ss:$16 sps:$4 sm:$0xff]  }
 0x626   : > { %v11614_v61 = vmax.f32 %v11613_v10, 0.0  ;;  %v11602_v20 = vmax.f32 %v16656_v23, %v16664_v45  ;;  %v16666_v6 = vadd.f32 %v11569_v8, %v21769_v15  ;;  %v17594_v15 = vld [vmem:[%s17847_s15 + $0x220] ss:$16 sps:$4 sm:$0xff]   ;;  %v17653_v33 = vld [vmem:[%s17847_s15 + $0x8c] ss:$16 sps:$4 sm:$0xff]  }
 0x627   : > { %v11605_v16 = vmax.f32 %v16657_v22, %v16665_v37  ;;  %v21805_v32 = vpack.c.bf16 %v11617_v47, %v11617_v47  ;;  %v17621_v23 = vld [vmem:[%s17847_s15 + $0x340] ss:$16 sps:$4 sm:$0xff]   ;;  %v17651_v0 = vld [vmem:[%s17847_s15 + $0x88] ss:$16 sps:$4 sm:$0xff]   ;;  %v17656_v48 = vld [vmem:[%s17847_s15 + $0xac] ss:$16 sps:$4 sm:$0xff]  }
 0x628   : > { %v21808_v56 = vpack.c.bf16 %v11614_v61, %v11614_v61  ;;  %v11603_v34 = vmax.f32 %v16658_v25, %v16666_v6  ;;  %v17624_v22 = vld [vmem:[%s17847_s15 + $0x360] ss:$16 sps:$4 sm:$0xff]   ;;  %v17654_v10 = vld [vmem:[%s17847_s15 + $0xa8] ss:$16 sps:$4 sm:$0xff]   ;;  %v17659_v45 = vld [vmem:[%s17847_s15 + $0xcc] ss:$16 sps:$4 sm:$0xff]  }
 0x629   : > { %v11621_v19 = vmax.f32 %v11604_v21, %v11605_v16  ;;  %12432 = vmatprep.mubr.bf16.mxu1 %v21805_v32  ;;  %v17627_v25 = vld [vmem:[%s17847_s15 + $0x380] ss:$16 sps:$4 sm:$0xff]   ;;  %v17657_v53 = vld [vmem:[%s17847_s15 + $0xc8] ss:$16 sps:$4 sm:$0xff]   ;;  %v17662_v21 = vld [vmem:[%s17847_s15 + $0xec] ss:$16 sps:$4 sm:$0xff]  }
 0x62a   : > { %v11618_v54 = vmax.f32 %v11602_v20, %v11603_v34  ;;  %12433 = vmatmul.mubr.bf16.vlgmr.msra.gmra.mrb[16].mxu1 %v21808_v56  ;;  %v17660_v37 = vld [vmem:[%s17847_s15 + $0xe8] ss:$16 sps:$4 sm:$0xff]   ;;  %v17665_v8 = vld [vmem:[%s17847_s15 + $0x10c] ss:$16 sps:$4 sm:$0xff]  }
 0x62b   : > { %12442 = vmatpush1.bf16.msra.mxu1 %v17591_v58  ;;  %v11622_v50 = vadd.f32 %v14281_v44, %v11621_v19  ;;  %v17663_v47 = vld [vmem:[%s17847_s15 + $0x108] ss:$16 sps:$4 sm:$0xff]   ;;  %v17668_v61 = vld [vmem:[%s17847_s15 + $0x12c] ss:$16 sps:$4 sm:$0xff]  }
 0x62c   : > { %v21814_v38 = vadd.f32 %v14281_v44, %v11618_v54  ;;  %12443 = vmatprep.subr.bf16.mxu1 %v17596_v39  ;;  %v17642_v44 = vld [vmem:[%s17847_s15 + $0x28] ss:$16 sps:$4 sm:$0xff]   ;;  %v17671_v6 = vld [vmem:[%s17847_s15 + $0x14c] ss:$16 sps:$4 sm:$0xff]  }
 0x62d   : > { %v11623_v30 = vmax.f32 %v11622_v50, 0.0  ;;  %v17666_v20 = vld [vmem:[%s17847_s15 + $0x128] ss:$16 sps:$4 sm:$0xff]   ;;  %v17677_v34 = vld [vmem:[%s17847_s15 + $0x18c] ss:$16 sps:$4 sm:$0xff]  }
 0x62e   : > { %v11620_v1 = vmax.f32 %v21814_v38, 0.0  ;;  %v17669_v16 = vld [vmem:[%s17847_s15 + $0x148] ss:$16 sps:$4 sm:$0xff]   ;;  %v17680_v19 = vld [vmem:[%s17847_s15 + $0x1ac] ss:$16 sps:$4 sm:$0xff]  }
 0x62f   : > { %12444 = vmatpush1.bf16.msra.mxu1 %v17594_v15  ;;  %v21818_v14 = vpack.c.bf16 %v11623_v30, %v11623_v30  ;;  %v17672_v58 = vld [vmem:[%s17847_s15 + $0x168] ss:$16 sps:$4 sm:$0xff]   ;;  %v17683_v15 = vld [vmem:[%s17847_s15 + $0x1cc] ss:$16 sps:$4 sm:$0xff]  }
 0x630   : > { %12445 = vmatprep.subr.bf16.mxu1 %v17599_v17  ;;  %v21850_v13 = vpack.c.bf16 %v11620_v1, %v11620_v1  ;;  %v17675_v39 = vld [vmem:[%s17847_s15 + $0x188] ss:$16 sps:$4 sm:$0xff]   ;;  %v17686_v38 = vld [vmem:[%s17847_s15 + $0x1ec] ss:$16 sps:$4 sm:$0xff]  }
 0x631   : > { %12473 = vmatprep.mubr.bf16.mxu1 %v21818_v14  ;;  %v17678_v54 = vld [vmem:[%s17847_s15 + $0x1a8] ss:$16 sps:$4 sm:$0xff]   ;;  %v17689_v30 = vld [vmem:[%s17847_s15 + $0x20c] ss:$16 sps:$4 sm:$0xff]  }
 0x632   : > { %v17681_v50 = vld [vmem:[%s17847_s15 + $0x1c8] ss:$16 sps:$4 sm:$0xff]   ;;  %v17734_v1 = vld [vmem:[%s17847_s15 + $0x3ec] ss:$16 sps:$4 sm:$0xff]  }
 0x633   : > { %12446 = vmatpush1.bf16.msra.mxu1 %v17597_v41  ;;  %v17684_v17 = vld [vmem:[%s17847_s15 + $0x1e8] ss:$16 sps:$4 sm:$0xff]  }
 0x634   : > { %12447 = vmatprep.subr.bf16.mxu1 %v17602_v51  ;;  %v17687_v41 = vld [vmem:[%s17847_s15 + $0x208] ss:$16 sps:$4 sm:$0xff]   ;;  %v17692_v51 = vld [vmem:[%s17847_s15 + $0x22c] ss:$16 sps:$4 sm:$0xff]  }
 0x637   : > { %12448 = vmatpush1.bf16.msra.mxu1 %v17600_v42  ;;  %v17690_v42 = vld [vmem:[%s17847_s15 + $0x228] ss:$16 sps:$4 sm:$0xff]  }
 0x638   : > { %12449 = vmatprep.subr.bf16.mxu1 %v17605_v5  ;;  %v17695_v5 = vld [vmem:[%s17847_s15 + $0x24c] ss:$16 sps:$4 sm:$0xff]  }
 0x63b   : > { %12450 = vmatpush1.bf16.msra.mxu1 %v17603_v55  ;;  %v17693_v55 = vld [vmem:[%s17847_s15 + $0x248] ss:$16 sps:$4 sm:$0xff]  }
 0x63c   : > { %12451 = vmatprep.subr.bf16.mxu1 %v17608_v18  ;;  %v17698_v18 = vld [vmem:[%s17847_s15 + $0x26c] ss:$16 sps:$4 sm:$0xff]  }
 0x63f   : > { %12452 = vmatpush1.bf16.msra.mxu1 %v17606_v40  ;;  %v17696_v40 = vld [vmem:[%s17847_s15 + $0x268] ss:$16 sps:$4 sm:$0xff]  }
 0x640   : > { %12453 = vmatprep.subr.bf16.mxu1 %v17611_v26  ;;  %v17699_v26 = vld [vmem:[%s17847_s15 + $0x288] ss:$16 sps:$4 sm:$0xff]  }
 0x643   : > { %12454 = vmatpush1.bf16.msra.mxu1 %v17609_v2  ;;  %v17702_v2 = vld [vmem:[%s17847_s15 + $0x2a8] ss:$16 sps:$4 sm:$0xff]  }
 0x644   : > { %12455 = vmatprep.subr.bf16.mxu1 %v17614_v49  ;;  %v17707_v49 = vld [vmem:[%s17847_s15 + $0x2cc] ss:$16 sps:$4 sm:$0xff]  }
 0x647   : > { %12456 = vmatpush1.bf16.msra.mxu1 %v17612_v35  ;;  %v17705_v35 = vld [vmem:[%s17847_s15 + $0x2c8] ss:$16 sps:$4 sm:$0xff]  }
 0x648   : > { %12457 = vmatprep.subr.bf16.mxu1 %v17617_v63  ;;  %v17710_v63 = vld [vmem:[%s17847_s15 + $0x2ec] ss:$16 sps:$4 sm:$0xff]  }
 0x64b   : > { %12458 = vmatpush1.bf16.msra.mxu1 %v17615_v59  ;;  %v17708_v59 = vld [vmem:[%s17847_s15 + $0x2e8] ss:$16 sps:$4 sm:$0xff]  }
 0x64c   : > { %12459 = vmatprep.subr.bf16.mxu1 %v17620_v7  ;;  %v17713_v7 = vld [vmem:[%s17847_s15 + $0x30c] ss:$16 sps:$4 sm:$0xff]  }
 0x64f   : > { %12460 = vmatpush1.bf16.msra.mxu1 %v17618_v4  ;;  %v17711_v4 = vld [vmem:[%s17847_s15 + $0x308] ss:$16 sps:$4 sm:$0xff]  }
 0x650   : > { %12461 = vmatprep.subr.bf16.mxu1 %v17623_v52  ;;  %v17716_v52 = vld [vmem:[%s17847_s15 + $0x32c] ss:$16 sps:$4 sm:$0xff]  }
 0x653   : > { %12462 = vmatpush1.bf16.msra.mxu1 %v17621_v23  ;;  %v17714_v23 = vld [vmem:[%s17847_s15 + $0x328] ss:$16 sps:$4 sm:$0xff]  }
 0x654   : > { %12463 = vmatprep.subr.bf16.mxu1 %v17626_v12  ;;  %v17719_v12 = vld [vmem:[%s17847_s15 + $0x34c] ss:$16 sps:$4 sm:$0xff]  }
 0x657   : > { %12464 = vmatpush1.bf16.msra.mxu1 %v17624_v22  ;;  %v17717_v22 = vld [vmem:[%s17847_s15 + $0x348] ss:$16 sps:$4 sm:$0xff]  }
 0x658   : > { %12465 = vmatprep.subr.bf16.mxu1 %v17629_v11  ;;  %v17722_v11 = vld [vmem:[%s17847_s15 + $0x36c] ss:$16 sps:$4 sm:$0xff]  }
 0x65b   : > { %12466 = vmatpush1.bf16.msra.mxu1 %v17627_v25  ;;  %v17720_v25 = vld [vmem:[%s17847_s15 + $0x368] ss:$16 sps:$4 sm:$0xff]  }
 0x65c   : > { %12467 = vmatprep.subr.bf16.mxu1 %v17632_v36  ;;  %v17725_v36 = vld [vmem:[%s17847_s15 + $0x38c] ss:$16 sps:$4 sm:$0xff]  }
 0x65f   : > { %12468 = vmatpush1.bf16.msra.mxu1 %v17630_v46  ;;  %v17723_v46 = vld [vmem:[%s17847_s15 + $0x388] ss:$16 sps:$4 sm:$0xff]  }
 0x660   : > { %12469 = vmatprep.subr.bf16.mxu1 %v17635_v62  ;;  %v17728_v62 = vld [vmem:[%s17847_s15 + $0x3ac] ss:$16 sps:$4 sm:$0xff]  }
 0x663   : > { %12470 = vmatpush1.bf16.msra.mxu1 %v17633_v31  ;;  %v17726_v31 = vld [vmem:[%s17847_s15 + $0x3a8] ss:$16 sps:$4 sm:$0xff]  }
 0x664   : > { %12471 = vmatprep.subr.bf16.mxu1 %v17638_v57  ;;  %v17731_v57 = vld [vmem:[%s17847_s15 + $0x3cc] ss:$16 sps:$4 sm:$0xff]  }
 0x667   : > { %12472 = vmatpush1.bf16.msra.mxu1 %v17636_v3  ;;  %v17729_v3 = vld [vmem:[%s17847_s15 + $0x3c8] ss:$16 sps:$4 sm:$0xff]  }
 0x668   : > { %12482 = vmatprep.subr.bf16.mxu1 %v17641_v60  ;;  %v17732_v60 = vld [vmem:[%s17847_s15 + $0x3e8] ss:$16 sps:$4 sm:$0xff]  }
 0x66a   : > { %12474 = vmatmul.mubr.bf16.vlgmr.msra.gmra.mrb[20].mxu1 %v21850_v13 }
 0x66b   : > { %12483 = vmatpush1.bf16.msra.mxu1 %v17639_v24  ;;  %12514 = vmatprep.mubr.bf16.mxu1 %v21805_v32  ;;  %v17674_v32 = vld [vmem:[%s17847_s15 + $0x16c] ss:$16 sps:$4 sm:$0xff]  }
 0x66c   : > { %12484 = vmatprep.subr.bf16.mxu1 %v17644_v9 }
 0x66f   : > { %12485 = vmatpush1.bf16.msra.mxu1 %v17642_v44 }
 0x670   : > { %12486 = vmatprep.subr.bf16.mxu1 %v17647_v29 }
 0x673   : > { %12487 = vmatpush1.bf16.msra.mxu1 %v17645_v43  ;;  %v11628_v43 = vld [vmem:[#allocation3] sm:$0xff] }
 0x674   : > { %12488 = vmatprep.subr.bf16.mxu1 %v17650_v28 }
 0x677   : > { %12489 = vmatpush1.bf16.msra.mxu1 %v17648_v27 }
 0x678   : > { %12490 = vmatprep.subr.bf16.mxu1 %v17653_v33  ;;  %v11629_v33 = vld [vmem:[#allocation3 + $0x8] sm:$0xff] }
 0x67b   : > { %12491 = vmatpush1.bf16.msra.mxu1 %v17651_v0 }
 0x67c   : > { %12492 = vmatprep.subr.bf16.mxu1 %v17656_v48 }
 0x67f   : > { %12493 = vmatpush1.bf16.msra.mxu1 %v17654_v10 }
 0x680   : > { %12494 = vmatprep.subr.bf16.mxu1 %v17659_v45 }
 0x683   : > { %12495 = vmatpush1.bf16.msra.mxu1 %v17657_v53 }
 0x684   : > { %12496 = vmatprep.subr.bf16.mxu1 %v17662_v21 }
 0x687   : > { %12497 = vmatpush1.bf16.msra.mxu1 %v17660_v37 }
 0x688   : > { %12498 = vmatprep.subr.bf16.mxu1 %v17665_v8 }
 0x68b   : > { %12499 = vmatpush1.bf16.msra.mxu1 %v17663_v47 }
 0x68c   : > { %12500 = vmatprep.subr.bf16.mxu1 %v17668_v61  ;;  %v11630_v61 = vld [vmem:[#allocation3 + $0x10] sm:$0xff] }
 0x68f   : > { %12501 = vmatpush1.bf16.msra.mxu1 %v17666_v20 }
 0x690   : > { %12502 = vmatprep.subr.bf16.mxu1 %v17671_v6 }
 0x693   : > { %12503 = vmatpush1.bf16.msra.mxu1 %v17669_v16  ;;  %v11631_v16 = vld [vmem:[#allocation3 + $0x18] sm:$0xff] }
 0x694   : > { %12504 = vmatprep.subr.bf16.mxu1 %v17674_v32 }
 0x697   : > { %12505 = vmatpush1.bf16.msra.mxu1 %v17672_v58 }
 0x698   : > { %12506 = vmatprep.subr.bf16.mxu1 %v17677_v34 }
 0x69b   : > { %12507 = vmatpush1.bf16.msra.mxu1 %v17675_v39 }
 0x69c   : > { %12508 = vmatprep.subr.bf16.mxu1 %v17680_v19 }
 0x69f   : > { %12509 = vmatpush1.bf16.msra.mxu1 %v17678_v54 }
 0x6a0   : > { %12510 = vmatprep.subr.bf16.mxu1 %v17683_v15  ;;  %v17742_v15 = vld [vmem:[%s22035_s7 + $0x40] sm:$0xff] (!%p14410_p5)  }
 0x6a1   : > { %15167 = vmatprep.subr.bf16.mxu0 (!%p14410_p5), %v17742_v15 }
 0x6a3   : > { %12511 = vmatpush1.bf16.msra.mxu1 %v17681_v50  ;;  %v17743_v50 = vld [vmem:[%s22035_s7 + $0xc0] sm:$0xff] (!%p14410_p5)  }
 0x6a4   : > { %12512 = vmatprep.subr.bf16.mxu1 %v17686_v38  ;;  %v17744_v38 = vld [vmem:[%s22035_s7] sm:$0xff] (!%p14410_p5)  }
 0x6a5   : > { %15168 = vmatpush3.bf16.msra.mxu0 (!%p14410_p5), %v17744_v38 }
 0x6a7   : > { %12513 = vmatpush1.bf16.msra.mxu1 %v17684_v17  ;;  %v17745_v17 = vld [vmem:[%s22035_s7 + $0x80] sm:$0xff] (!%p14410_p5)  }
 0x6a8   : > { %12523 = vmatprep.subr.bf16.mxu1 %v17689_v30  ;;  %v17746_v30 = vld [vmem:[%s22035_s7 + $0x48] sm:$0xff] (!%p14410_p5)  }
 0x6a9   : > { %15169 = vmatprep.subr.bf16.mxu0 (!%p14410_p5), %v17746_v30 }
 0x6aa   : > { %12515 = vmatmul.mubr.bf16.vlgmr.msra.gmra.mrb[24].mxu1 %v21808_v56  ;;  %v17701_v56 = vld [vmem:[%s17847_s15 + $0x28c] ss:$16 sps:$4 sm:$0xff]  }
 0x6ab   : > { %12524 = vmatpush1.bf16.msra.mxu1 %v17687_v41  ;;  %12555 = vmatprep.mubr.bf16.mxu1 %v21818_v14  ;;  %v17704_v14 = vld [vmem:[%s17847_s15 + $0x2ac] ss:$16 sps:$4 sm:$0xff]  }
 0x6ac   : > { %12525 = vmatprep.subr.bf16.mxu1 %v17692_v51  ;;  %v17747_v41 = vld [vmem:[%s22035_s7 + $0xc8] sm:$0xff] (!%p14410_p5)  }
 0x6ad   : > { %v17748_v51 = vld [vmem:[%s22035_s7 + $0x8] sm:$0xff] (!%p14410_p5)  }
 0x6ae   : > { %15170 = vmatpush3.bf16.msra.mxu0 (!%p14410_p5), %v17748_v51 }
 0x6af   : > { %12526 = vmatpush1.bf16.msra.mxu1 %v17690_v42  ;;  %v17749_v42 = vld [vmem:[%s22035_s7 + $0x88] sm:$0xff] (!%p14410_p5)  }
 0x6b0   : > { %12527 = vmatprep.subr.bf16.mxu1 %v17695_v5  ;;  %v17750_v5 = vld [vmem:[%s22035_s7 + $0x50] sm:$0xff] (!%p14410_p5)  }
 0x6b1   : > { %15171 = vmatprep.subr.bf16.mxu0 (!%p14410_p5), %v17750_v5 }
 0x6b3   : > { %12528 = vmatpush1.bf16.msra.mxu1 %v17693_v55  ;;  %v17751_v55 = vld [vmem:[%s22035_s7 + $0xd0] sm:$0xff] (!%p14410_p5)  }
 0x6b4   : > { %12529 = vmatprep.subr.bf16.mxu1 %v17698_v18  ;;  %v17752_v18 = vld [vmem:[%s22035_s7 + $0x10] sm:$0xff] (!%p14410_p5)  }
 0x6b5   : > { %15172 = vmatpush3.bf16.msra.mxu0 (!%p14410_p5), %v17752_v18 }
 0x6b7   : > { %12530 = vmatpush1.bf16.msra.mxu1 %v17696_v40  ;;  %v17753_v40 = vld [vmem:[%s22035_s7 + $0x90] sm:$0xff] (!%p14410_p5)  }
 0x6b8   : > { %12531 = vmatprep.subr.bf16.mxu1 %v17701_v56  ;;  %v17754_v56 = vld [vmem:[%s22035_s7 + $0x58] sm:$0xff] (!%p14410_p5)  }
 0x6b9   : > { %15173 = vmatprep.subr.bf16.mxu0 (!%p14410_p5), %v17754_v56 }
 0x6bb   : > { %12532 = vmatpush1.bf16.msra.mxu1 %v17699_v26  ;;  %v17755_v26 = vld [vmem:[%s22035_s7 + $0xd8] sm:$0xff] (!%p14410_p5)  }
 0x6bc   : > { %12533 = vmatprep.subr.bf16.mxu1 %v17704_v14  ;;  %v17756_v14 = vld [vmem:[%s22035_s7 + $0x18] sm:$0xff] (!%p14410_p5)  }
 0x6bd   : > { %15174 = vmatpush3.bf16.msra.mxu0 (!%p14410_p5), %v17756_v14 }
 0x6bf   : > { %12534 = vmatpush1.bf16.msra.mxu1 %v17702_v2  ;;  %v17757_v2 = vld [vmem:[%s22035_s7 + $0x98] sm:$0xff] (!%p14410_p5)  }
 0x6c0   : > { %12535 = vmatprep.subr.bf16.mxu1 %v17707_v49  ;;  %v17758_v49 = vld [vmem:[%s22035_s7 + $0x60] sm:$0xff] (!%p14410_p5)  }
 0x6c1   : > { %15175 = vmatprep.subr.bf16.mxu0 (!%p14410_p5), %v17758_v49 }
 0x6c3   : > { %12536 = vmatpush1.bf16.msra.mxu1 %v17705_v35  ;;  %v17759_v35 = vld [vmem:[%s22035_s7 + $0xe0] sm:$0xff] (!%p14410_p5)  }
 0x6c4   : > { %12537 = vmatprep.subr.bf16.mxu1 %v17710_v63  ;;  %v17760_v63 = vld [vmem:[%s22035_s7 + $0x20] sm:$0xff] (!%p14410_p5)  }
 0x6c5   : > { %15176 = vmatpush3.bf16.msra.mxu0 (!%p14410_p5), %v17760_v63 }
 0x6c7   : > { %12538 = vmatpush1.bf16.msra.mxu1 %v17708_v59  ;;  %v12582_v59 = vlaneseq (!%p14410_p5) }
 0x6c8   : > { %12539 = vmatprep.subr.bf16.mxu1 %v17713_v7  ;;  %v17761_v7 = vld [vmem:[%s22035_s7 + $0xa0] sm:$0xff] (!%p14410_p5)  }
 0x6cb   : > { %12540 = vmatpush1.bf16.msra.mxu1 %v17711_v4  ;;  %v17762_v4 = vld [vmem:[%s22035_s7 + $0x68] sm:$0xff] (!%p14410_p5)  }
 0x6cc   : > { %12541 = vmatprep.subr.bf16.mxu1 %v17716_v52  ;;  %v17763_v52 = vld [vmem:[%s22035_s7 + $0xe8] sm:$0xff] (!%p14410_p5)   ;;  %15177 = vmatprep.subr.bf16.mxu0 (!%p14410_p5), %v17762_v4 }
 0x6cf   : > { %12542 = vmatpush1.bf16.msra.mxu1 %v17714_v23  ;;  %v17764_v23 = vld [vmem:[%s22035_s7 + $0x28] sm:$0xff] (!%p14410_p5)  }
 0x6d0   : > { %12543 = vmatprep.subr.bf16.mxu1 %v17719_v12  ;;  %v12583_v12 = vshrl.u32 (!%p14410_p5), %v12582_v59, 7  ;;  %15178 = vmatpush3.bf16.msra.mxu0 (!%p14410_p5), %v17764_v23 }
 0x6d3   : > { %12544 = vmatpush1.bf16.msra.mxu1 %v17717_v22  ;;  %v17765_v22 = vld [vmem:[%s22035_s7 + $0xa8] sm:$0xff] (!%p14410_p5)  }
 0x6d4   : > { %12545 = vmatprep.subr.bf16.mxu1 %v17722_v11  ;;  %v17766_v11 = vld [vmem:[%s22035_s7 + $0x70] sm:$0xff] (!%p14410_p5)  }
 0x6d5   : > { %15179 = vmatprep.subr.bf16.mxu0 (!%p14410_p5), %v17766_v11 }
 0x6d7   : > { %12546 = vmatpush1.bf16.msra.mxu1 %v17720_v25  ;;  %v17767_v25 = vld [vmem:[%s22035_s7 + $0xf0] sm:$0xff] (!%p14410_p5)  }
 0x6d8   : > { %12547 = vmatprep.subr.bf16.mxu1 %v17725_v36  ;;  %v17768_v36 = vld [vmem:[%s22035_s7 + $0x30] sm:$0xff] (!%p14410_p5)  }
 0x6d9   : > { %15180 = vmatpush3.bf16.msra.mxu0 (!%p14410_p5), %v17768_v36 }
 0x6db   : > { %12548 = vmatpush1.bf16.msra.mxu1 %v17723_v46  ;;  %v12588_v46 = vsub.s32 (!%p14410_p5), 1, %v12583_v12 }
 0x6dc   : > { %12549 = vmatprep.subr.bf16.mxu1 %v17728_v62  ;;  %v17769_v62 = vld [vmem:[%s22035_s7 + $0xb0] sm:$0xff] (!%p14410_p5)  }
 0x6df   : > { %12550 = vmatpush1.bf16.msra.mxu1 %v17726_v31  ;;  %v12596_v31 = vsub.s32 (!%p14410_p5), 3, %v12583_v12 }
 0x6e0   : > { %12551 = vmatprep.subr.bf16.mxu1 %v17731_v57  ;;  %v17770_v57 = vld [vmem:[%s22035_s7 + $0x78] sm:$0xff] (!%p14410_p5)  }
 0x6e1   : > { %15181 = vmatprep.subr.bf16.mxu0 (!%p14410_p5), %v17770_v57 }
 0x6e3   : > { %12552 = vmatpush1.bf16.msra.mxu1 %v17729_v3  ;;  %v12584_v3 = vsub.s32 (!%p14410_p5), 0, %v12583_v12 }
 0x6e4   : > { %12553 = vmatprep.subr.bf16.mxu1 %v17734_v1  ;;  %v17771_v1 = vld [vmem:[%s22035_s7 + $0xf8] sm:$0xff] (!%p14410_p5)  }
 0x6e7   : > { %12554 = vmatpush1.bf16.msra.mxu1 %v17732_v60  ;;  %v12592_v60 = vsub.s32 (!%p14410_p5), 2, %v12583_v12 }
 0x6e8   : > { %15189 = vmatprep.subr.bf16.mxu1 (!%p14410_p5), %v17743_v50 }
 0x6ea   : > { %12556 = vmatmul.mubr.bf16.vlgmr.msra.gmra.mrb[28].mxu1 %v21850_v13 }
 0x6eb   : > { %15190 = vmatpush3.bf16.msra.mxu1 (!%p14410_p5), %v17745_v17 }
 0x6ec   : > { %15191 = vmatprep.subr.bf16.mxu1 (!%p14410_p5), %v17747_v41 }
 0x6ef   : > { %15192 = vmatpush3.bf16.msra.mxu1 (!%p14410_p5), %v17749_v42 }
 0x6f0   : > { %15193 = vmatprep.subr.bf16.mxu1 (!%p14410_p5), %v17751_v55 }
 0x6f3   : > { %15194 = vmatpush3.bf16.msra.mxu1 (!%p14410_p5), %v17753_v40 }
 0x6f4   : > { %15195 = vmatprep.subr.bf16.mxu1 (!%p14410_p5), %v17755_v26 }
 0x6f7   : > { %15196 = vmatpush3.bf16.msra.mxu1 (!%p14410_p5), %v17757_v2 }
 0x6f8   : > { %15197 = vmatprep.subr.bf16.mxu1 (!%p14410_p5), %v17759_v35 }
 0x6fb   : > { %15198 = vmatpush3.bf16.msra.mxu1 (!%p14410_p5), %v17761_v7 }
 0x6fc   : > { %15199 = vmatprep.subr.bf16.mxu1 (!%p14410_p5), %v17763_v52 }
 0x6fd   : > { %v12434_v24 = vpop.f32.mrb[16].mxu1 }
 0x6fe   : > { %v12436_v9 = vpop.f32.mrb[17].mxu1 }
 0x6ff   : > { %v12438_v44 = vpop.f32.mrb[18].mxu1  ;;  %15200 = vmatpush3.bf16.msra.mxu1 (!%p14410_p5), %v17765_v22 }
 0x700   : > { %v12439_v29 = vpop.f32.mrb[19].mxu1  ;;  %15201 = vmatprep.subr.bf16.mxu1 (!%p14410_p5), %v17767_v25 }
 0x701   : > { %v12580_v29 = vld [vmem:[%s22034_s6] sm:$0xf] (!%p14410_p5) }
 0x703   : > { %15202 = vmatpush3.bf16.msra.mxu1 (!%p14410_p5), %v17769_v62 }
 0x704   : > { %15203 = vmatprep.subr.bf16.mxu1 (!%p14410_p5), %v17771_v1 }
 0x73d   : > { %v12475_v28 = vpop.f32.mrb[20].mxu1 }
 0x73e   : > { %v12476_v27 = vadd.f32 %v12475_v28, %v12434_v24  ;;  %v12477_v0 = vpop.f32.mrb[21].mxu1  ;;  %v17772_v24 = vld [vmem:[%s22035_s7 + $0x38] sm:$0xff] (!%p14410_p5)   ;;  %v12589_v28 = vrot.slane (!%p14410_p5), %v12580_v29, %v12588_v46 }
 0x73f   : > { %v12478_v48 = vadd.f32 %v12477_v0, %v12436_v9  ;;  %v12479_v10 = vpop.f32.mrb[22].mxu1  ;;  %v17773_v9 = vld [vmem:[%s22035_s7 + $0xb8] sm:$0xff] (!%p14410_p5)   ;;  %15182 = vmatpush3.bf16.msra.mxu0 (!%p14410_p5), %v17772_v24  ;;  %v12585_v0 = vrot.slane (!%p14410_p5), %v12580_v29, %v12584_v3 }
 0x740   : > { %v12564_v45 = vadd.f32 %v12476_v27, %v11628_v43  ;;  %v12480_v53 = vpop.f32.mrb[23].mxu1  ;;  %15204 = vmatpush3.bf16.msra.mxu1 (!%p14410_p5), %v17773_v9  ;;  %v12597_v27 = vrot.slane (!%p14410_p5), %v12580_v29, %v12596_v31  ;;  %v12593_v10 = vrot.slane (!%p14410_p5), %v12580_v29, %v12592_v60 }
 0x741   : > { %v12565_v21 = vadd.f32 %v12478_v48, %v11629_v33 }
 0x742   : > { %12568 = vst [vmem:[#allocation3] sm:$0xff] %v12564_v45 }
 0x743   : > { %12569 = vst [vmem:[#allocation3 + $0x8] sm:$0xff] %v12565_v21 }
 0x749   : > { %v12576_v33 = vld [vmem:[#allocation3] sm:$0xff] (!%p14410_p5) }
 0x74a   : > { %v12577_v44 = vld [vmem:[#allocation3 + $0x8] sm:$0xff] (!%p14410_p5)  ;;  %v12602_v21 = vadd.f32 (!%p14410_p5), %v12585_v0, %v12576_v33 }
 0x74b   : > { %v12603_v45 = vadd.f32 (!%p14410_p5), %v12589_v28, %v12577_v44 }
 0x77d   : > { %v12516_v37 = vpop.f32.mrb[24].mxu1 }
 0x77e   : > { %v12518_v8 = vpop.f32.mrb[25].mxu1 }
 0x77f   : > { %v12520_v47 = vpop.f32.mrb[26].mxu1 }
 0x780   : > { %v12521_v13 = vpop.f32.mrb[27].mxu1 }
 0x781   : > { %v12606_v13 = vmax.f32 (!%p14410_p5), %v12602_v21, 0.0 }
 0x7bd   : > { %v12557_v20 = vpop.f32.mrb[28].mxu1  ;;  %12575 = sbr.rel (%p14410_p5) target bundleno = 2220 (0x8ac), region = 64 }
 0x7be   : > { %v12558_v6 = vadd.f32 %v12557_v20, %v12516_v37  ;;  %v12559_v32 = vpop.f32.mrb[29].mxu1 }
 0x7bf   : > { %v12560_v58 = vadd.f32 %v12559_v32, %v12518_v8  ;;  %v12561_v34 = vpop.f32.mrb[30].mxu1  ;;  %v12607_v8 = vmax.f32 (!%p14410_p5), %v12603_v45, 0.0 }
 0x7c0   : > { %v12566_v39 = vadd.f32 %v12558_v6, %v11630_v61  ;;  %v12562_v19 = vpop.f32.mrb[31].mxu1 }
 0x7c1   : > { %v12567_v54 = vadd.f32 %v12560_v58, %v11631_v16  ;;  %v12611_v20 = vpack.c.bf16 (!%p14410_p5), %v12607_v8, %v12607_v8  ;;  %v12610_v16 = vpack.c.bf16 (!%p14410_p5), %v12606_v13, %v12606_v13 }
 0x7c2   : > { %12570 = vst [vmem:[#allocation3 + $0x10] sm:$0xff] %v12566_v39  ;;  %v14411_v39 = vld [vmem:[%s22036_s8] ss:$0 sm:$0xff] (!%p14410_p5) }
 0x7c3   : > { %12571 = vst [vmem:[#allocation3 + $0x18] sm:$0xff] %v12567_v54  ;;  %12909 = vmatprep.mubr.bf16.mxu0 (!%p14410_p5), %v12611_v20 }
 0x7c4   : > { %12910 = vmatmul.mubr.bf16.vlgmr.msra.gmra.mrb[0].mxu0 %v12610_v16 }
 0x7c9   : > { %v12578_v48 = vld [vmem:[#allocation3 + $0x10] sm:$0xff] }
 0x7ca   : > { %v12579_v43 = vld [vmem:[#allocation3 + $0x18] sm:$0xff]  ;;  %v12604_v37 = vadd.f32 %v12593_v10, %v12578_v48 }
 0x7cb   : > { %v12605_v53 = vadd.f32 %v12597_v27, %v12579_v43 }
 0x7cc   : > { %v12608_v61 = vmax.f32 %v12604_v37, 0.0 }
 0x7cd   : > { %v12609_v47 = vmax.f32 %v12605_v53, 0.0 }
 0x7ce   : > { %v12612_v32 = vpack.c.bf16 %v12608_v61, %v12608_v61 }
 0x7cf   : > { %v12613_v6 = vpack.c.bf16 %v12609_v47, %v12609_v47 }
 0x7d1   : > { %12949 = vmatprep.mubr.bf16.mxu1 %v12613_v6 }
 0x7d2   : > { %12950 = vmatmul.mubr.bf16.vlgmr.msra.gmra.mrb[0].mxu1 %v12612_v32 }
 0x897   : > { %v15183_v58 = vpop.f32.mrb[0].mxu0 }
 0x898   : > { %v15184_v19 = vpop.f32.mrb[1].mxu0 }
 0x899   : > { %v15185_v15 = vadd.f32 %v15184_v19, %v15183_v58  ;;  %v15186_v38 = vpop.f32.mrb[2].mxu0 }
 0x89a   : > { %v15187_v30 = vpop.f32.mrb[3].mxu0 }
 0x89b   : > { %v12912_v51 = vadd.f32 %v15185_v15, %v14411_v39 }
 0x8a5   : > { %v15205_v34 = vpop.f32.mrb[0].mxu1 }
 0x8a6   : > { %v15206_v54 = vpop.f32.mrb[1].mxu1 }
 0x8a7   : > { %v15207_v50 = vadd.f32 %v15206_v54, %v15205_v34  ;;  %v15208_v17 = vpop.f32.mrb[2].mxu1 }
 0x8a8   : > { %v15209_v41 = vpop.f32.mrb[3].mxu1 }
 0x8a9   : > { %v12952_v42 = vadd.f32 %v15207_v50, %v12912_v51 }
 0x8ab   : > { %12957 = vst [vmem:[%s22037_s9] sm:$0xff] %v12952_v42 }
 0x8ac PF: > { %s19_s30 = sadd.s32 1, %s17780_s30  }
 0x8ad   : > { %p16_p6 = scmp.ge.s32.totalorder %s19_s30, 6  }
 0x8af   :  { %18 = sbr.rel (!%p16_p6) target bundleno = 1 (0x1), region = 122 }

</bundles_post_ra>
